<compile_context>
chip_gen: v5e
topology: v5e:2x2
jax: 0.10.0
libtpu: 0.0.40
codegen_flags: <defaults>
</compile_context>

<pallas_src>
import math
import functools

import jax
import jax.numpy as jnp
from jax.experimental import pallas as pl
from jax.experimental.pallas import tpu as pltpu


def _round_up(x, m):
    return (x + m - 1) // m * m


# ----------------------------------------------------------------------------
# Pallas kernel: conv-as-GEMM with fused bias.
#   out[n] = W @ patches[n] + bias
#   W:(Cp,K) bf16, patches:(N,K,P) bf16, bias:(Cp,1) f32, out:(N,Cp,P) f32.
# One grid step per image (parallel -> both v7x TensorCores used at N=2); the full K
# strip is a single block (no K pipeline, no accumulator scratch, output stored
# exactly once).  P is the full-extent last dim (121/49), Cp is sublane-aligned (x8).
# ----------------------------------------------------------------------------
def _conv_gemm_kernel(w_ref, p_ref, b_ref, o_ref):
    o_ref[0] = (jnp.dot(w_ref[...], p_ref[0],
                        preferred_element_type=jnp.float32)
                + b_ref[...])


def conv2d_pallas(x, w, b=None, stride=1, padding=0):
    """2-D conv, NCHW activations, PyTorch (Cout,Cin,kh,kw) weights.

    im2col is built from kh + kw dense strided slices (no gather), directly in the
    channel-major (ci, dy, dx) K order that matches w.reshape(Cout, Cin*kh*kw), then a
    single Pallas MXU GEMM per image with the bias fused in the epilogue.  Operands
    are bf16; accumulation and output stay f32.
    NOTE: tuned for small spatial sizes (P <= ~1k, whole-K block in VMEM); larger
    inputs would want a K/P grid with an accumulator (see TODO at top of file).
    """
    N, C, H, W = x.shape
    Cout, Cin, kh, kw = w.shape
    assert Cin == C
    xb = x.astype(jnp.bfloat16)
    if padding:
        xb = jnp.pad(xb, ((0, 0), (0, 0), (padding, padding), (padding, padding)))
    Hp, Wp = H + 2 * padding, W + 2 * padding
    Ho = (Hp - kh) // stride + 1
    Wo = (Wp - kw) // stride + 1
    P = Ho * Wo
    K = C * kh * kw
    Cp = _round_up(Cout, 8)           # sublane-aligned output channels (tiny pad)

    # --- dense strided-slice im2col (review item 1): rows, then columns ---------
    # (N, C, kh, Ho, Wp): kh strided slices along H.
    rows = jnp.stack(
        [xb[:, :, dy:dy + stride * (Ho - 1) + 1:stride, :] for dy in range(kh)],
        axis=2)
    # (N, C, kh, kw, Ho, Wo): kw strided slices along W.
    pat = jnp.stack(
        [rows[..., dx:dx + stride * (Wo - 1) + 1:stride] for dx in range(kw)],
        axis=3)
    # Free reshape: K ordered (ci, dy, dx), matching w.reshape(Cout, Cin*kh*kw).
    patches = pat.reshape(N, K, P)                               # bf16

    wmat = jnp.pad(w.reshape(Cout, K).astype(jnp.bfloat16),
                   ((0, Cp - Cout), (0, 0)))
    if b is None:
        bias = jnp.zeros((Cp, 1), jnp.float32)
    else:
        bias = jnp.pad(b.astype(jnp.float32), (0, Cp - Cout)).reshape(Cp, 1)

    out = pl.pallas_call(
        _conv_gemm_kernel,
        out_shape=jax.ShapeDtypeStruct((N, Cp, P), jnp.float32),
        grid=(N,),
        in_specs=[
            # weight / bias: constant index_map -> fetched into VMEM once.
            pl.BlockSpec((Cp, K), lambda n: (0, 0)),
            pl.BlockSpec((1, K, P), lambda n: (n, 0, 0)),
            pl.BlockSpec((Cp, 1), lambda n: (0, 0)),
        ],
        out_specs=pl.BlockSpec((1, Cp, P), lambda n: (n, 0, 0)),
        compiler_params=pltpu.CompilerParams(
            dimension_semantics=("parallel",)),
    )(wmat, patches, bias)
    return out[:, :Cout, :].reshape(N, Cout, Ho, Wo)


# ----------------------------------------------------------------------------
# Channel competition: softmax_C(a * (x - b)).
# Per perf review: the tensor is tiny (~35 KB), so a dedicated pallas_call costs more
# than the math; let XLA fuse the affine + softmax with the surrounding elementwise ops.
# ----------------------------------------------------------------------------
def competition_softmax(x, a, b):
    return jax.nn.softmax((x - b) * a, axis=1)


# ----------------------------------------------------------------------------
# Tiny GEMMs: 1x1 convs stay in XLA (not worth a padded Pallas launch).
# ----------------------------------------------------------------------------
def conv1x1(x, w, b=None):
    out = jnp.einsum('oi,nihw->nohw', w[:, :, 0, 0], x)
    if b is not None:
        out = out + b[None, :, None, None]
    return out


# ----------------------------------------------------------------------------
# GaborConv2d: learnable Gabor filter bank (parameter construction = glue).
# Matches the PyTorch reference formula exactly (including the 8*sigma^2).
# ----------------------------------------------------------------------------
def gabor_bank(ksize, cin, cout, sigma, gamma, theta, f, psi):
    half = ksize // 2
    coords = jnp.arange(-half, half + 1, dtype=jnp.float32)
    x = jnp.broadcast_to(coords[None, None, :, None], (cout, cin, ksize, ksize))
    y = jnp.broadcast_to(coords[None, None, None, :], (cout, cin, ksize, ksize))
    th = theta.reshape(-1, 1, 1, 1)
    x_theta = x * jnp.cos(th) + y * jnp.sin(th)
    y_theta = -x * jnp.sin(th) + y * jnp.cos(th)
    sig = sigma.reshape(-1, 1, 1, 1)
    fr = f.reshape(-1, 1, 1, 1)
    ps = psi.reshape(-1, 1, 1, 1)
    gb = -jnp.exp(-0.5 * ((gamma * x_theta) ** 2 + y_theta ** 2) / (8.0 * sig ** 2)) \
         * jnp.cos(2.0 * math.pi * fr * x_theta + ps)
    gb = gb - gb.mean(axis=(2, 3), keepdims=True)
    return gb


# ----------------------------------------------------------------------------
# CoordAtt (coordinate attention) -- 1x1 convs via XLA dot, all NCHW.
# ----------------------------------------------------------------------------
def coord_att(x, p):
    n, c, h, w = x.shape
    x_h = jnp.mean(x, axis=3, keepdims=True)                          # (n,c,h,1)
    x_w = jnp.mean(x, axis=2, keepdims=True).transpose(0, 1, 3, 2)    # (n,c,w,1)
    y = jnp.concatenate([x_h, x_w], axis=2)                           # (n,c,h+w,1)
    y = conv1x1(y, p["w1"], p["b1"])
    # BatchNorm2d (eval mode, running stats)
    y = (y - p["bn_mean"].reshape(1, -1, 1, 1)) / jnp.sqrt(
        p["bn_var"].reshape(1, -1, 1, 1) + 1e-5)
    y = y * p["bn_gamma"].reshape(1, -1, 1, 1) + p["bn_beta"].reshape(1, -1, 1, 1)
    # h_swish(x) = x * relu6(x + 3) / 6
    y = y * (jnp.clip(y + 3.0, 0.0, 6.0) / 6.0)
    y_h = y[:, :, :h, :]
    y_w = y[:, :, h:, :].transpose(0, 1, 3, 2)                         # (n,mip,1,w)
    a_h = jax.nn.sigmoid(conv1x1(y_h, p["wh"], p["bh"]))               # (n,oup,h,1)
    a_w = jax.nn.sigmoid(conv1x1(y_w, p["ww"], p["bw"]))               # (n,oup,1,w)
    return x * a_w * a_h


# ----------------------------------------------------------------------------
# CompetitiveBlock = LGC + CoordAtt + LGC + CoordAtt + softmax competition + PPU
# ----------------------------------------------------------------------------
def competitive_block(x, p, cfg):
    cin, ncomp, ksize, stride = cfg["cin"], cfg["ncomp"], cfg["ksize"], cfg["stride"]
    pad = ksize // 2
    k1 = gabor_bank(ksize, cin, ncomp, p["sigma1"], p["gamma1"],
                    p["theta1"], p["f1"], p["psi1"])
    x = conv2d_pallas(x, k1, stride=stride, padding=pad)               # Pallas MXU
    x = coord_att(x, p["ca1"])
    k2 = gabor_bank(ksize, ncomp, ncomp, p["sigma2"], p["gamma2"],
                    p["theta2"], p["f2"], p["psi2"])
    x = conv2d_pallas(x, k2, stride=1, padding=pad)                    # Pallas MXU
    x = coord_att(x, p["ca2"])
    # channel competition: softmax over dim=1 of a*(x - b), fused by XLA
    x = competition_softmax(x, p["a"], p["b"])
    # PPU: 5x5 valid conv (Pallas, bias fused) -> 2x2 maxpool -> 1x1 conv
    x = conv2d_pallas(x, p["conv1_w"], p["conv1_b"], stride=1, padding=0)
    n, c, h, w = x.shape
    h2, w2 = h // 2, w // 2
    x = x[:, :, :h2 * 2, :w2 * 2].reshape(n, c, h2, 2, w2, 2).max(axis=(3, 5))
    x = conv1x1(x, p["conv2_w"], p["conv2_b"])
    return x


# ----------------------------------------------------------------------------
# Parameter initialization (deterministic, synthetic -- no checkpoints).
# ----------------------------------------------------------------------------
def _unif(key, shape, fan_in):
    bound = 1.0 / math.sqrt(fan_in)
    return jax.random.uniform(key, shape, jnp.float32, -bound, bound)


def init_coordatt(key, inp, oup):
    mip = max(8, inp)
    k = jax.random.split(key, 6)
    return dict(
        w1=_unif(k[0], (mip, inp, 1, 1), inp), b1=_unif(k[1], (mip,), inp),
        bn_gamma=jnp.ones((mip,), jnp.float32), bn_beta=jnp.zeros((mip,), jnp.float32),
        bn_mean=jnp.zeros((mip,), jnp.float32), bn_var=jnp.ones((mip,), jnp.float32),
        wh=_unif(k[2], (oup, mip, 1, 1), mip), bh=_unif(k[3], (oup,), mip),
        ww=_unif(k[4], (oup, mip, 1, 1), mip), bw=_unif(k[5], (oup,), mip),
    )


def init_cb(key, cin, ncomp, init_ratio, o1=32, o2=12):
    k = jax.random.split(key, 6)
    theta = jnp.arange(ncomp, dtype=jnp.float32) * math.pi / ncomp
    return dict(
        sigma1=jnp.array([9.2 * init_ratio], jnp.float32),
        gamma1=jnp.array([2.0], jnp.float32),
        theta1=theta,
        f1=jnp.array([0.057 / init_ratio], jnp.float32),
        psi1=jnp.array([0.0], jnp.float32),
        sigma2=jnp.array([9.2 * init_ratio], jnp.float32),
        gamma2=jnp.array([2.0], jnp.float32),
        theta2=theta,
        f2=jnp.array([0.057 / init_ratio], jnp.float32),
        psi2=jnp.array([0.0], jnp.float32),
        a=jnp.array([1.0], jnp.float32),
        b=jnp.array([0.0], jnp.float32),
        ca1=init_coordatt(k[0], ncomp, ncomp),
        ca2=init_coordatt(k[1], ncomp, ncomp),
        conv1_w=_unif(k[2], (o1, ncomp, 5, 5), ncomp * 25),
        conv1_b=_unif(k[3], (o1,), ncomp * 25),
        conv2_w=_unif(k[4], (o2, o1, 1, 1), o1),
        conv2_b=_unif(k[5], (o2,), o1),
    )


def cb_feat_dim(H, W, ksize, stride, o2):
    Ho = (H + 2 * (ksize // 2) - ksize) // stride + 1
    Wo = (W + 2 * (ksize // 2) - ksize) // stride + 1
    Hc, Wc = Ho - 4, Wo - 4            # 5x5 valid conv
    return o2 * (Hc // 2) * (Wc // 2)  # 2x2 maxpool, then 1x1 conv


def init_co3net(key, H, W, fc_dim, fc1_dim, num_classes):
    k = jax.random.split(key, 8)
    feat_dim = (cb_feat_dim(H, W, 35, 3, 12)
                + cb_feat_dim(H, W, 17, 3, 24)
                + cb_feat_dim(H, W, 7, 3, 12))
    xavier_bound = math.sqrt(6.0 / (fc1_dim + num_classes))
    return dict(
        cb1=init_cb(k[0], 1, 9, 1.0, o1=32, o2=12),
        cb2=init_cb(k[1], 1, 36, 0.5, o1=32, o2=24),
        cb3=init_cb(k[2], 1, 9, 0.25, o1=32, o2=12),
        fc_w=_unif(k[3], (fc_dim, feat_dim), feat_dim),
        fc_b=_unif(k[4], (fc_dim,), feat_dim),
        fc1_w=_unif(k[5], (fc1_dim, fc_dim), fc_dim),
        fc1_b=_unif(k[6], (fc1_dim,), fc_dim),
        arc_w=jax.random.uniform(k[7], (num_classes, fc1_dim), jnp.float32,
                                 -xavier_bound, xavier_bound),
    ), feat_dim


CB_CFGS = dict(
    cb1=dict(cin=1, ncomp=9, ksize=35, stride=3),
    cb2=dict(cin=1, ncomp=36, ksize=17, stride=3),
    cb3=dict(cin=1, ncomp=9, ksize=7, stride=3),
)


def _l2norm(x, axis, eps=1e-12):
    return x / jnp.maximum(jnp.linalg.norm(x, axis=axis, keepdims=True), eps)


def co3net_forward(params, x, y=None, training=False, s=30.0, m=0.5):
    n = x.shape[0]
    x1 = competitive_block(x, params["cb1"], CB_CFGS["cb1"])
    x2 = competitive_block(x, params["cb2"], CB_CFGS["cb2"])
    x3 = competitive_block(x, params["cb3"], CB_CFGS["cb3"])
    feat = jnp.concatenate([x1.reshape(n, -1), x2.reshape(n, -1),
                            x3.reshape(n, -1)], axis=1)
    # Batch-2 FC layers & cosine are tiny GEMMs -> plain XLA dots.
    x1f = jnp.dot(feat, params["fc_w"].T) + params["fc_b"][None, :]
    xf = jnp.dot(x1f, params["fc1_w"].T) + params["fc1_b"][None, :]
    fe = jnp.concatenate([x1f, xf], axis=1)
    # Dropout(p=0.5): identity in eval mode.
    # TODO(synk): training-mode dropout mask (stateful RNG) not implemented here.
    # ArcMarginProduct
    xn = _l2norm(xf, axis=1)
    wn = _l2norm(params["arc_w"], axis=1)
    cosine = jnp.dot(xn, wn.T)
    if training and y is not None:
        sine = jnp.sqrt(jnp.clip(1.0 - cosine ** 2, 0.0, 1.0))
        phi = cosine * math.cos(m) - sine * math.sin(m)
        th = math.cos(math.pi - m)
        mm = math.sin(math.pi - m) * m
        phi = jnp.where(cosine > th, phi, cosine - mm)
        one_hot = jax.nn.one_hot(y, params["arc_w"].shape[0], dtype=cosine.dtype)
        logits = (one_hot * phi + (1.0 - one_hot) * cosine) * s
    else:
        logits = s * cosine
    return logits, _l2norm(fe, axis=-1)


if __name__ == "__main__":
    # Small shapes consistent with the module: NCHW, single-channel input.
    N, H, W = 2, 32, 32
    FC_DIM, FC1_DIM, NUM_CLASSES = 512, 256, 16

    key = jax.random.PRNGKey(0)
    kx, kp = jax.random.split(key)
    x = jax.random.normal(kx, (N, 1, H, W), jnp.float32)

    params, feat_dim = init_co3net(kp, H, W, FC_DIM, FC1_DIM, NUM_CLASSES)

    fwd = jax.jit(functools.partial(co3net_forward, training=False))
    logits, fe = fwd(params, x)
    jax.block_until_ready(logits)
    jax.block_until_ready(fe)

    assert logits.shape == (N, NUM_CLASSES)
    assert fe.shape == (N, FC_DIM + FC1_DIM)
    assert bool(jnp.all(jnp.isfinite(logits))) and bool(jnp.all(jnp.isfinite(fe)))
    print("KERNEL_OK")
</pallas_src>

<mosaic_0001>
module attributes {stable_mosaic.version = 11 : i64} {
  func.func @_conv_gemm_kernel(%arg0: i32, %arg1: memref<16x1225xbf16, #tpu.memory_space<vmem>>, %arg2: memref<1x1225x121xbf16, #tpu.memory_space<vmem>>, %arg3: memref<16x1xf32, #tpu.memory_space<vmem>>, %arg4: memref<1x16x121xf32, #tpu.memory_space<vmem>>) attributes {dimension_semantics = [#tpu.dimension_semantics<parallel>], iteration_bounds = array<i64: 2>, scalar_prefetch = 0 : i64, scratch_operands = 0 : i64, tpu.core_type = #tpu.core_type<tc>, window_params = [{pipeline_mode = #tpu.pipeline_mode<synchronous>, transform_indices = @transform_0, window_bounds = array<i64: 16, 1225>}, {transform_indices = @transform_1, window_bounds = array<i64: 1, 1225, 121>}, {pipeline_mode = #tpu.pipeline_mode<synchronous>, transform_indices = @transform_2, window_bounds = array<i64: 16, 1>}, {transform_indices = @transform_3, window_bounds = array<i64: 1, 16, 121>}]} {
    %c0 = arith.constant 0 : index
    %c0_0 = arith.constant 0 : index
    %0 = vector.load %arg1[%c0, %c0_0] : memref<16x1225xbf16, #tpu.memory_space<vmem>>, vector<16x1225xbf16>
    %c0_1 = arith.constant 0 : index
    %c0_2 = arith.constant 0 : index
    %c0_3 = arith.constant 0 : index
    %1 = vector.load %arg2[%c0_1, %c0_2, %c0_3] : memref<1x1225x121xbf16, #tpu.memory_space<vmem>>, vector<1x1225x121xbf16>
    %2 = vector.shape_cast %1 : vector<1x1225x121xbf16> to vector<1225x121xbf16>
    %cst = arith.constant dense<0.000000e+00> : vector<16x121xf32>
    %3 = tpu.matmul %0, %2, %cst {dimension_numbers = #tpu.dot_dimension_numbers<[1], [0], [0], [1], [0, 0, 1, 1], [], []>} : vector<16x1225xbf16>, vector<1225x121xbf16>, vector<16x121xf32> -> vector<16x121xf32>
    %c0_4 = arith.constant 0 : index
    %c0_5 = arith.constant 0 : index
    %4 = vector.load %arg3[%c0_4, %c0_5] : memref<16x1xf32, #tpu.memory_space<vmem>>, vector<16x1xf32>
    %5 = vector.broadcast %4 : vector<16x1xf32> to vector<16x121xf32>
    %6 = arith.addf %3, %5 : vector<16x121xf32>
    %c0_6 = arith.constant 0 : index
    %c0_7 = arith.constant 0 : index
    %c0_8 = arith.constant 0 : index
    %7 = vector.load %arg4[%c0_6, %c0_7, %c0_8] : memref<1x16x121xf32, #tpu.memory_space<vmem>>, vector<1x16x121xf32>
    %8 = vector.shape_cast %7 : vector<1x16x121xf32> to vector<16x121xf32>
    %9 = vector.shape_cast %6 : vector<16x121xf32> to vector<1x16x121xf32>
    tpu.vector_store %arg4[%c0_6, %c0_7, %c0_8], %9 {strides = array<i32>} : memref<1x16x121xf32, #tpu.memory_space<vmem>>, vector<1x16x121xf32>,
    return
  }
  func.func @transform_0(%arg0: i32) -> (i32, i32) {
    %c0_i32 = arith.constant 0 : i32
    %c0_i32_0 = arith.constant 0 : i32
    %c0_i32_1 = arith.constant 0 : i32
    return %c0_i32, %c0_i32_0 : i32, i32
  }
  func.func @transform_1(%arg0: i32) -> (i32, i32, i32) {
    %c0_i32 = arith.constant 0 : i32
    %c0_i32_0 = arith.constant 0 : i32
    %c0_i32_1 = arith.constant 0 : i32
    return %arg0, %c0_i32, %c0_i32_0 : i32, i32, i32
  }
  func.func @transform_2(%arg0: i32) -> (i32, i32) {
    %c0_i32 = arith.constant 0 : i32
    %c0_i32_0 = arith.constant 0 : i32
    %c0_i32_1 = arith.constant 0 : i32
    return %c0_i32, %c0_i32_0 : i32, i32
  }
  func.func @transform_3(%arg0: i32) -> (i32, i32, i32) {
    %c0_i32 = arith.constant 0 : i32
    %c0_i32_0 = arith.constant 0 : i32
    %c0_i32_1 = arith.constant 0 : i32
    return %arg0, %c0_i32, %c0_i32_0 : i32, i32, i32
  }
}

module attributes {stable_mosaic.version = 11 : i64} {
  func.func @_conv_gemm_kernel(%arg0: i32, %arg1: memref<16x11025xbf16, #tpu.memory_space<vmem>>, %arg2: memref<1x11025x121xbf16, #tpu.memory_space<vmem>>, %arg3: memref<16x1xf32, #tpu.memory_space<vmem>>, %arg4: memref<1x16x121xf32, #tpu.memory_space<vmem>>) attributes {dimension_semantics = [#tpu.dimension_semantics<parallel>], iteration_bounds = array<i64: 2>, scalar_prefetch = 0 : i64, scratch_operands = 0 : i64, tpu.core_type = #tpu.core_type<tc>, window_params = [{pipeline_mode = #tpu.pipeline_mode<synchronous>, transform_indices = @transform_0, window_bounds = array<i64: 16, 11025>}, {transform_indices = @transform_1, window_bounds = array<i64: 1, 11025, 121>}, {pipeline_mode = #tpu.pipeline_mode<synchronous>, transform_indices = @transform_2, window_bounds = array<i64: 16, 1>}, {transform_indices = @transform_3, window_bounds = array<i64: 1, 16, 121>}]} {
    %c0 = arith.constant 0 : index
    %c0_0 = arith.constant 0 : index
    %0 = vector.load %arg1[%c0, %c0_0] : memref<16x11025xbf16, #tpu.memory_space<vmem>>, vector<16x11025xbf16>
    %c0_1 = arith.constant 0 : index
    %c0_2 = arith.constant 0 : index
    %c0_3 = arith.constant 0 : index
    %1 = vector.load %arg2[%c0_1, %c0_2, %c0_3] : memref<1x11025x121xbf16, #tpu.memory_space<vmem>>, vector<1x11025x121xbf16>
    %2 = vector.shape_cast %1 : vector<1x11025x121xbf16> to vector<11025x121xbf16>
    %cst = arith.constant dense<0.000000e+00> : vector<16x121xf32>
    %3 = tpu.matmul %0, %2, %cst {dimension_numbers = #tpu.dot_dimension_numbers<[1], [0], [0], [1], [0, 0, 1, 1], [], []>} : vector<16x11025xbf16>, vector<11025x121xbf16>, vector<16x121xf32> -> vector<16x121xf32>
    %c0_4 = arith.constant 0 : index
    %c0_5 = arith.constant 0 : index
    %4 = vector.load %arg3[%c0_4, %c0_5] : memref<16x1xf32, #tpu.memory_space<vmem>>, vector<16x1xf32>
    %5 = vector.broadcast %4 : vector<16x1xf32> to vector<16x121xf32>
    %6 = arith.addf %3, %5 : vector<16x121xf32>
    %c0_6 = arith.constant 0 : index
    %c0_7 = arith.constant 0 : index
    %c0_8 = arith.constant 0 : index
    %7 = vector.load %arg4[%c0_6, %c0_7, %c0_8] : memref<1x16x121xf32, #tpu.memory_space<vmem>>, vector<1x16x121xf32>
    %8 = vector.shape_cast %7 : vector<1x16x121xf32> to vector<16x121xf32>
    %9 = vector.shape_cast %6 : vector<16x121xf32> to vector<1x16x121xf32>
    tpu.vector_store %arg4[%c0_6, %c0_7, %c0_8], %9 {strides = array<i32>} : memref<1x16x121xf32, #tpu.memory_space<vmem>>, vector<1x16x121xf32>,
    return
  }
  func.func @transform_0(%arg0: i32) -> (i32, i32) {
    %c0_i32 = arith.constant 0 : i32
    %c0_i32_0 = arith.constant 0 : i32
    %c0_i32_1 = arith.constant 0 : i32
    return %c0_i32, %c0_i32_0 : i32, i32
  }
  func.func @transform_1(%arg0: i32) -> (i32, i32, i32) {
    %c0_i32 = arith.constant 0 : i32
    %c0_i32_0 = arith.constant 0 : i32
    %c0_i32_1 = arith.constant 0 : i32
    return %arg0, %c0_i32, %c0_i32_0 : i32, i32, i32
  }
  func.func @transform_2(%arg0: i32) -> (i32, i32) {
    %c0_i32 = arith.constant 0 : i32
    %c0_i32_0 = arith.constant 0 : i32
    %c0_i32_1 = arith.constant 0 : i32
    return %c0_i32, %c0_i32_0 : i32, i32
  }
  func.func @transform_3(%arg0: i32) -> (i32, i32, i32) {
    %c0_i32 = arith.constant 0 : i32
    %c0_i32_0 = arith.constant 0 : i32
    %c0_i32_1 = arith.constant 0 : i32
    return %arg0, %c0_i32, %c0_i32_0 : i32, i32, i32
  }
}

module attributes {stable_mosaic.version = 11 : i64} {
  func.func @_conv_gemm_kernel(%arg0: i32, %arg1: memref<32x225xbf16, #tpu.memory_space<vmem>>, %arg2: memref<1x225x49xbf16, #tpu.memory_space<vmem>>, %arg3: memref<32x1xf32, #tpu.memory_space<vmem>>, %arg4: memref<1x32x49xf32, #tpu.memory_space<vmem>>) attributes {dimension_semantics = [#tpu.dimension_semantics<parallel>], iteration_bounds = array<i64: 2>, scalar_prefetch = 0 : i64, scratch_operands = 0 : i64, tpu.core_type = #tpu.core_type<tc>, window_params = [{pipeline_mode = #tpu.pipeline_mode<synchronous>, transform_indices = @transform_0, window_bounds = array<i64: 32, 225>}, {transform_indices = @transform_1, window_bounds = array<i64: 1, 225, 49>}, {pipeline_mode = #tpu.pipeline_mode<synchronous>, transform_indices = @transform_2, window_bounds = array<i64: 32, 1>}, {transform_indices = @transform_3, window_bounds = array<i64: 1, 32, 49>}]} {
    %c0 = arith.constant 0 : index
    %c0_0 = arith.constant 0 : index
    %0 = vector.load %arg1[%c0, %c0_0] : memref<32x225xbf16, #tpu.memory_space<vmem>>, vector<32x225xbf16>
    %c0_1 = arith.constant 0 : index
    %c0_2 = arith.constant 0 : index
    %c0_3 = arith.constant 0 : index
    %1 = vector.load %arg2[%c0_1, %c0_2, %c0_3] : memref<1x225x49xbf16, #tpu.memory_space<vmem>>, vector<1x225x49xbf16>
    %2 = vector.shape_cast %1 : vector<1x225x49xbf16> to vector<225x49xbf16>
    %cst = arith.constant dense<0.000000e+00> : vector<32x49xf32>
    %3 = tpu.matmul %0, %2, %cst {dimension_numbers = #tpu.dot_dimension_numbers<[1], [0], [0], [1], [0, 0, 1, 1], [], []>} : vector<32x225xbf16>, vector<225x49xbf16>, vector<32x49xf32> -> vector<32x49xf32>
    %c0_4 = arith.constant 0 : index
    %c0_5 = arith.constant 0 : index
    %4 = vector.load %arg3[%c0_4, %c0_5] : memref<32x1xf32, #tpu.memory_space<vmem>>, vector<32x1xf32>
    %5 = vector.broadcast %4 : vector<32x1xf32> to vector<32x49xf32>
    %6 = arith.addf %3, %5 : vector<32x49xf32>
    %c0_6 = arith.constant 0 : index
    %c0_7 = arith.constant 0 : index
    %c0_8 = arith.constant 0 : index
    %7 = vector.load %arg4[%c0_6, %c0_7, %c0_8] : memref<1x32x49xf32, #tpu.memory_space<vmem>>, vector<1x32x49xf32>
    %8 = vector.shape_cast %7 : vector<1x32x49xf32> to vector<32x49xf32>
    %9 = vector.shape_cast %6 : vector<32x49xf32> to vector<1x32x49xf32>
    tpu.vector_store %arg4[%c0_6, %c0_7, %c0_8], %9 {strides = array<i32>} : memref<1x32x49xf32, #tpu.memory_space<vmem>>, vector<1x32x49xf32>,
    return
  }
  func.func @transform_0(%arg0: i32) -> (i32, i32) {
    %c0_i32 = arith.constant 0 : i32
    %c0_i32_0 = arith.constant 0 : i32
    %c0_i32_1 = arith.constant 0 : i32
    return %c0_i32, %c0_i32_0 : i32, i32
  }
  func.func @transform_1(%arg0: i32) -> (i32, i32, i32) {
    %c0_i32 = arith.constant 0 : i32
    %c0_i32_0 = arith.constant 0 : i32
    %c0_i32_1 = arith.constant 0 : i32
    return %arg0, %c0_i32, %c0_i32_0 : i32, i32, i32
  }
  func.func @transform_2(%arg0: i32) -> (i32, i32) {
    %c0_i32 = arith.constant 0 : i32
    %c0_i32_0 = arith.constant 0 : i32
    %c0_i32_1 = arith.constant 0 : i32
    return %c0_i32, %c0_i32_0 : i32, i32
  }
  func.func @transform_3(%arg0: i32) -> (i32, i32, i32) {
    %c0_i32 = arith.constant 0 : i32
    %c0_i32_0 = arith.constant 0 : i32
    %c0_i32_1 = arith.constant 0 : i32
    return %arg0, %c0_i32, %c0_i32_0 : i32, i32, i32
  }
}

module attributes {stable_mosaic.version = 11 : i64} {
  func.func @_conv_gemm_kernel(%arg0: i32, %arg1: memref<40x289xbf16, #tpu.memory_space<vmem>>, %arg2: memref<1x289x121xbf16, #tpu.memory_space<vmem>>, %arg3: memref<40x1xf32, #tpu.memory_space<vmem>>, %arg4: memref<1x40x121xf32, #tpu.memory_space<vmem>>) attributes {dimension_semantics = [#tpu.dimension_semantics<parallel>], iteration_bounds = array<i64: 2>, scalar_prefetch = 0 : i64, scratch_operands = 0 : i64, tpu.core_type = #tpu.core_type<tc>, window_params = [{pipeline_mode = #tpu.pipeline_mode<synchronous>, transform_indices = @transform_0, window_bounds = array<i64: 40, 289>}, {transform_indices = @transform_1, window_bounds = array<i64: 1, 289, 121>}, {pipeline_mode = #tpu.pipeline_mode<synchronous>, transform_indices = @transform_2, window_bounds = array<i64: 40, 1>}, {transform_indices = @transform_3, window_bounds = array<i64: 1, 40, 121>}]} {
    %c0 = arith.constant 0 : index
    %c0_0 = arith.constant 0 : index
    %0 = vector.load %arg1[%c0, %c0_0] : memref<40x289xbf16, #tpu.memory_space<vmem>>, vector<40x289xbf16>
    %c0_1 = arith.constant 0 : index
    %c0_2 = arith.constant 0 : index
    %c0_3 = arith.constant 0 : index
    %1 = vector.load %arg2[%c0_1, %c0_2, %c0_3] : memref<1x289x121xbf16, #tpu.memory_space<vmem>>, vector<1x289x121xbf16>
    %2 = vector.shape_cast %1 : vector<1x289x121xbf16> to vector<289x121xbf16>
    %cst = arith.constant dense<0.000000e+00> : vector<40x121xf32>
    %3 = tpu.matmul %0, %2, %cst {dimension_numbers = #tpu.dot_dimension_numbers<[1], [0], [0], [1], [0, 0, 1, 1], [], []>} : vector<40x289xbf16>, vector<289x121xbf16>, vector<40x121xf32> -> vector<40x121xf32>
    %c0_4 = arith.constant 0 : index
    %c0_5 = arith.constant 0 : index
    %4 = vector.load %arg3[%c0_4, %c0_5] : memref<40x1xf32, #tpu.memory_space<vmem>>, vector<40x1xf32>
    %5 = vector.broadcast %4 : vector<40x1xf32> to vector<40x121xf32>
    %6 = arith.addf %3, %5 : vector<40x121xf32>
    %c0_6 = arith.constant 0 : index
    %c0_7 = arith.constant 0 : index
    %c0_8 = arith.constant 0 : index
    %7 = vector.load %arg4[%c0_6, %c0_7, %c0_8] : memref<1x40x121xf32, #tpu.memory_space<vmem>>, vector<1x40x121xf32>
    %8 = vector.shape_cast %7 : vector<1x40x121xf32> to vector<40x121xf32>
    %9 = vector.shape_cast %6 : vector<40x121xf32> to vector<1x40x121xf32>
    tpu.vector_store %arg4[%c0_6, %c0_7, %c0_8], %9 {strides = array<i32>} : memref<1x40x121xf32, #tpu.memory_space<vmem>>, vector<1x40x121xf32>,
    return
  }
  func.func @transform_0(%arg0: i32) -> (i32, i32) {
    %c0_i32 = arith.constant 0 : i32
    %c0_i32_0 = arith.constant 0 : i32
    %c0_i32_1 = arith.constant 0 : i32
    return %c0_i32, %c0_i32_0 : i32, i32
  }
  func.func @transform_1(%arg0: i32) -> (i32, i32, i32) {
    %c0_i32 = arith.constant 0 : i32
    %c0_i32_0 = arith.constant 0 : i32
    %c0_i32_1 = arith.constant 0 : i32
    return %arg0, %c0_i32, %c0_i32_0 : i32, i32, i32
  }
  func.func @transform_2(%arg0: i32) -> (i32, i32) {
    %c0_i32 = arith.constant 0 : i32
    %c0_i32_0 = arith.constant 0 : i32
    %c0_i32_1 = arith.constant 0 : i32
    return %c0_i32, %c0_i32_0 : i32, i32
  }
  func.func @transform_3(%arg0: i32) -> (i32, i32, i32) {
    %c0_i32 = arith.constant 0 : i32
    %c0_i32_0 = arith.constant 0 : i32
    %c0_i32_1 = arith.constant 0 : i32
    return %arg0, %c0_i32, %c0_i32_0 : i32, i32, i32
  }
}

module attributes {stable_mosaic.version = 11 : i64} {
  func.func @_conv_gemm_kernel(%arg0: i32, %arg1: memref<40x10404xbf16, #tpu.memory_space<vmem>>, %arg2: memref<1x10404x121xbf16, #tpu.memory_space<vmem>>, %arg3: memref<40x1xf32, #tpu.memory_space<vmem>>, %arg4: memref<1x40x121xf32, #tpu.memory_space<vmem>>) attributes {dimension_semantics = [#tpu.dimension_semantics<parallel>], iteration_bounds = array<i64: 2>, scalar_prefetch = 0 : i64, scratch_operands = 0 : i64, tpu.core_type = #tpu.core_type<tc>, window_params = [{pipeline_mode = #tpu.pipeline_mode<synchronous>, transform_indices = @transform_0, window_bounds = array<i64: 40, 10404>}, {transform_indices = @transform_1, window_bounds = array<i64: 1, 10404, 121>}, {pipeline_mode = #tpu.pipeline_mode<synchronous>, transform_indices = @transform_2, window_bounds = array<i64: 40, 1>}, {transform_indices = @transform_3, window_bounds = array<i64: 1, 40, 121>}]} {
    %c0 = arith.constant 0 : index
    %c0_0 = arith.constant 0 : index
    %0 = vector.load %arg1[%c0, %c0_0] : memref<40x10404xbf16, #tpu.memory_space<vmem>>, vector<40x10404xbf16>
    %c0_1 = arith.constant 0 : index
    %c0_2 = arith.constant 0 : index
    %c0_3 = arith.constant 0 : index
    %1 = vector.load %arg2[%c0_1, %c0_2, %c0_3] : memref<1x10404x121xbf16, #tpu.memory_space<vmem>>, vector<1x10404x121xbf16>
    %2 = vector.shape_cast %1 : vector<1x10404x121xbf16> to vector<10404x121xbf16>
    %cst = arith.constant dense<0.000000e+00> : vector<40x121xf32>
    %3 = tpu.matmul %0, %2, %cst {dimension_numbers = #tpu.dot_dimension_numbers<[1], [0], [0], [1], [0, 0, 1, 1], [], []>} : vector<40x10404xbf16>, vector<10404x121xbf16>, vector<40x121xf32> -> vector<40x121xf32>
    %c0_4 = arith.constant 0 : index
    %c0_5 = arith.constant 0 : index
    %4 = vector.load %arg3[%c0_4, %c0_5] : memref<40x1xf32, #tpu.memory_space<vmem>>, vector<40x1xf32>
    %5 = vector.broadcast %4 : vector<40x1xf32> to vector<40x121xf32>
    %6 = arith.addf %3, %5 : vector<40x121xf32>
    %c0_6 = arith.constant 0 : index
    %c0_7 = arith.constant 0 : index
    %c0_8 = arith.constant 0 : index
    %7 = vector.load %arg4[%c0_6, %c0_7, %c0_8] : memref<1x40x121xf32, #tpu.memory_space<vmem>>, vector<1x40x121xf32>
    %8 = vector.shape_cast %7 : vector<1x40x121xf32> to vector<40x121xf32>
    %9 = vector.shape_cast %6 : vector<40x121xf32> to vector<1x40x121xf32>
    tpu.vector_store %arg4[%c0_6, %c0_7, %c0_8], %9 {strides = array<i32>} : memref<1x40x121xf32, #tpu.memory_space<vmem>>, vector<1x40x121xf32>,
    return
  }
  func.func @transform_0(%arg0: i32) -> (i32, i32) {
    %c0_i32 = arith.constant 0 : i32
    %c0_i32_0 = arith.constant 0 : i32
    %c0_i32_1 = arith.constant 0 : i32
    return %c0_i32, %c0_i32_0 : i32, i32
  }
  func.func @transform_1(%arg0: i32) -> (i32, i32, i32) {
    %c0_i32 = arith.constant 0 : i32
    %c0_i32_0 = arith.constant 0 : i32
    %c0_i32_1 = arith.constant 0 : i32
    return %arg0, %c0_i32, %c0_i32_0 : i32, i32, i32
  }
  func.func @transform_2(%arg0: i32) -> (i32, i32) {
    %c0_i32 = arith.constant 0 : i32
    %c0_i32_0 = arith.constant 0 : i32
    %c0_i32_1 = arith.constant 0 : i32
    return %c0_i32, %c0_i32_0 : i32, i32
  }
  func.func @transform_3(%arg0: i32) -> (i32, i32, i32) {
    %c0_i32 = arith.constant 0 : i32
    %c0_i32_0 = arith.constant 0 : i32
    %c0_i32_1 = arith.constant 0 : i32
    return %arg0, %c0_i32, %c0_i32_0 : i32, i32, i32
  }
}

module attributes {stable_mosaic.version = 11 : i64} {
  func.func @_conv_gemm_kernel(%arg0: i32, %arg1: memref<32x900xbf16, #tpu.memory_space<vmem>>, %arg2: memref<1x900x49xbf16, #tpu.memory_space<vmem>>, %arg3: memref<32x1xf32, #tpu.memory_space<vmem>>, %arg4: memref<1x32x49xf32, #tpu.memory_space<vmem>>) attributes {dimension_semantics = [#tpu.dimension_semantics<parallel>], iteration_bounds = array<i64: 2>, scalar_prefetch = 0 : i64, scratch_operands = 0 : i64, tpu.core_type = #tpu.core_type<tc>, window_params = [{pipeline_mode = #tpu.pipeline_mode<synchronous>, transform_indices = @transform_0, window_bounds = array<i64: 32, 900>}, {transform_indices = @transform_1, window_bounds = array<i64: 1, 900, 49>}, {pipeline_mode = #tpu.pipeline_mode<synchronous>, transform_indices = @transform_2, window_bounds = array<i64: 32, 1>}, {transform_indices = @transform_3, window_bounds = array<i64: 1, 32, 49>}]} {
    %c0 = arith.constant 0 : index
    %c0_0 = arith.constant 0 : index
    %0 = vector.load %arg1[%c0, %c0_0] : memref<32x900xbf16, #tpu.memory_space<vmem>>, vector<32x900xbf16>
    %c0_1 = arith.constant 0 : index
    %c0_2 = arith.constant 0 : index
    %c0_3 = arith.constant 0 : index
    %1 = vector.load %arg2[%c0_1, %c0_2, %c0_3] : memref<1x900x49xbf16, #tpu.memory_space<vmem>>, vector<1x900x49xbf16>
    %2 = vector.shape_cast %1 : vector<1x900x49xbf16> to vector<900x49xbf16>
    %cst = arith.constant dense<0.000000e+00> : vector<32x49xf32>
    %3 = tpu.matmul %0, %2, %cst {dimension_numbers = #tpu.dot_dimension_numbers<[1], [0], [0], [1], [0, 0, 1, 1], [], []>} : vector<32x900xbf16>, vector<900x49xbf16>, vector<32x49xf32> -> vector<32x49xf32>
    %c0_4 = arith.constant 0 : index
    %c0_5 = arith.constant 0 : index
    %4 = vector.load %arg3[%c0_4, %c0_5] : memref<32x1xf32, #tpu.memory_space<vmem>>, vector<32x1xf32>
    %5 = vector.broadcast %4 : vector<32x1xf32> to vector<32x49xf32>
    %6 = arith.addf %3, %5 : vector<32x49xf32>
    %c0_6 = arith.constant 0 : index
    %c0_7 = arith.constant 0 : index
    %c0_8 = arith.constant 0 : index
    %7 = vector.load %arg4[%c0_6, %c0_7, %c0_8] : memref<1x32x49xf32, #tpu.memory_space<vmem>>, vector<1x32x49xf32>
    %8 = vector.shape_cast %7 : vector<1x32x49xf32> to vector<32x49xf32>
    %9 = vector.shape_cast %6 : vector<32x49xf32> to vector<1x32x49xf32>
    tpu.vector_store %arg4[%c0_6, %c0_7, %c0_8], %9 {strides = array<i32>} : memref<1x32x49xf32, #tpu.memory_space<vmem>>, vector<1x32x49xf32>,
    return
  }
  func.func @transform_0(%arg0: i32) -> (i32, i32) {
    %c0_i32 = arith.constant 0 : i32
    %c0_i32_0 = arith.constant 0 : i32
    %c0_i32_1 = arith.constant 0 : i32
    return %c0_i32, %c0_i32_0 : i32, i32
  }
  func.func @transform_1(%arg0: i32) -> (i32, i32, i32) {
    %c0_i32 = arith.constant 0 : i32
    %c0_i32_0 = arith.constant 0 : i32
    %c0_i32_1 = arith.constant 0 : i32
    return %arg0, %c0_i32, %c0_i32_0 : i32, i32, i32
  }
  func.func @transform_2(%arg0: i32) -> (i32, i32) {
    %c0_i32 = arith.constant 0 : i32
    %c0_i32_0 = arith.constant 0 : i32
    %c0_i32_1 = arith.constant 0 : i32
    return %c0_i32, %c0_i32_0 : i32, i32
  }
  func.func @transform_3(%arg0: i32) -> (i32, i32, i32) {
    %c0_i32 = arith.constant 0 : i32
    %c0_i32_0 = arith.constant 0 : i32
    %c0_i32_1 = arith.constant 0 : i32
    return %arg0, %c0_i32, %c0_i32_0 : i32, i32, i32
  }
}

module attributes {stable_mosaic.version = 11 : i64} {
  func.func @_conv_gemm_kernel(%arg0: i32, %arg1: memref<16x49xbf16, #tpu.memory_space<vmem>>, %arg2: memref<1x49x121xbf16, #tpu.memory_space<vmem>>, %arg3: memref<16x1xf32, #tpu.memory_space<vmem>>, %arg4: memref<1x16x121xf32, #tpu.memory_space<vmem>>) attributes {dimension_semantics = [#tpu.dimension_semantics<parallel>], iteration_bounds = array<i64: 2>, scalar_prefetch = 0 : i64, scratch_operands = 0 : i64, tpu.core_type = #tpu.core_type<tc>, window_params = [{pipeline_mode = #tpu.pipeline_mode<synchronous>, transform_indices = @transform_0, window_bounds = array<i64: 16, 49>}, {transform_indices = @transform_1, window_bounds = array<i64: 1, 49, 121>}, {pipeline_mode = #tpu.pipeline_mode<synchronous>, transform_indices = @transform_2, window_bounds = array<i64: 16, 1>}, {transform_indices = @transform_3, window_bounds = array<i64: 1, 16, 121>}]} {
    %c0 = arith.constant 0 : index
    %c0_0 = arith.constant 0 : index
    %0 = vector.load %arg1[%c0, %c0_0] : memref<16x49xbf16, #tpu.memory_space<vmem>>, vector<16x49xbf16>
    %c0_1 = arith.constant 0 : index
    %c0_2 = arith.constant 0 : index
    %c0_3 = arith.constant 0 : index
    %1 = vector.load %arg2[%c0_1, %c0_2, %c0_3] : memref<1x49x121xbf16, #tpu.memory_space<vmem>>, vector<1x49x121xbf16>
    %2 = vector.shape_cast %1 : vector<1x49x121xbf16> to vector<49x121xbf16>
    %cst = arith.constant dense<0.000000e+00> : vector<16x121xf32>
    %3 = tpu.matmul %0, %2, %cst {dimension_numbers = #tpu.dot_dimension_numbers<[1], [0], [0], [1], [0, 0, 1, 1], [], []>} : vector<16x49xbf16>, vector<49x121xbf16>, vector<16x121xf32> -> vector<16x121xf32>
    %c0_4 = arith.constant 0 : index
    %c0_5 = arith.constant 0 : index
    %4 = vector.load %arg3[%c0_4, %c0_5] : memref<16x1xf32, #tpu.memory_space<vmem>>, vector<16x1xf32>
    %5 = vector.broadcast %4 : vector<16x1xf32> to vector<16x121xf32>
    %6 = arith.addf %3, %5 : vector<16x121xf32>
    %c0_6 = arith.constant 0 : index
    %c0_7 = arith.constant 0 : index
    %c0_8 = arith.constant 0 : index
    %7 = vector.load %arg4[%c0_6, %c0_7, %c0_8] : memref<1x16x121xf32, #tpu.memory_space<vmem>>, vector<1x16x121xf32>
    %8 = vector.shape_cast %7 : vector<1x16x121xf32> to vector<16x121xf32>
    %9 = vector.shape_cast %6 : vector<16x121xf32> to vector<1x16x121xf32>
    tpu.vector_store %arg4[%c0_6, %c0_7, %c0_8], %9 {strides = array<i32>} : memref<1x16x121xf32, #tpu.memory_space<vmem>>, vector<1x16x121xf32>,
    return
  }
  func.func @transform_0(%arg0: i32) -> (i32, i32) {
    %c0_i32 = arith.constant 0 : i32
    %c0_i32_0 = arith.constant 0 : i32
    %c0_i32_1 = arith.constant 0 : i32
    return %c0_i32, %c0_i32_0 : i32, i32
  }
  func.func @transform_1(%arg0: i32) -> (i32, i32, i32) {
    %c0_i32 = arith.constant 0 : i32
    %c0_i32_0 = arith.constant 0 : i32
    %c0_i32_1 = arith.constant 0 : i32
    return %arg0, %c0_i32, %c0_i32_0 : i32, i32, i32
  }
  func.func @transform_2(%arg0: i32) -> (i32, i32) {
    %c0_i32 = arith.constant 0 : i32
    %c0_i32_0 = arith.constant 0 : i32
    %c0_i32_1 = arith.constant 0 : i32
    return %c0_i32, %c0_i32_0 : i32, i32
  }
  func.func @transform_3(%arg0: i32) -> (i32, i32, i32) {
    %c0_i32 = arith.constant 0 : i32
    %c0_i32_0 = arith.constant 0 : i32
    %c0_i32_1 = arith.constant 0 : i32
    return %arg0, %c0_i32, %c0_i32_0 : i32, i32, i32
  }
}

module attributes {stable_mosaic.version = 11 : i64} {
  func.func @_conv_gemm_kernel(%arg0: i32, %arg1: memref<16x441xbf16, #tpu.memory_space<vmem>>, %arg2: memref<1x441x121xbf16, #tpu.memory_space<vmem>>, %arg3: memref<16x1xf32, #tpu.memory_space<vmem>>, %arg4: memref<1x16x121xf32, #tpu.memory_space<vmem>>) attributes {dimension_semantics = [#tpu.dimension_semantics<parallel>], iteration_bounds = array<i64: 2>, scalar_prefetch = 0 : i64, scratch_operands = 0 : i64, tpu.core_type = #tpu.core_type<tc>, window_params = [{pipeline_mode = #tpu.pipeline_mode<synchronous>, transform_indices = @transform_0, window_bounds = array<i64: 16, 441>}, {transform_indices = @transform_1, window_bounds = array<i64: 1, 441, 121>}, {pipeline_mode = #tpu.pipeline_mode<synchronous>, transform_indices = @transform_2, window_bounds = array<i64: 16, 1>}, {transform_indices = @transform_3, window_bounds = array<i64: 1, 16, 121>}]} {
    %c0 = arith.constant 0 : index
    %c0_0 = arith.constant 0 : index
    %0 = vector.load %arg1[%c0, %c0_0] : memref<16x441xbf16, #tpu.memory_space<vmem>>, vector<16x441xbf16>
    %c0_1 = arith.constant 0 : index
    %c0_2 = arith.constant 0 : index
    %c0_3 = arith.constant 0 : index
    %1 = vector.load %arg2[%c0_1, %c0_2, %c0_3] : memref<1x441x121xbf16, #tpu.memory_space<vmem>>, vector<1x441x121xbf16>
    %2 = vector.shape_cast %1 : vector<1x441x121xbf16> to vector<441x121xbf16>
    %cst = arith.constant dense<0.000000e+00> : vector<16x121xf32>
    %3 = tpu.matmul %0, %2, %cst {dimension_numbers = #tpu.dot_dimension_numbers<[1], [0], [0], [1], [0, 0, 1, 1], [], []>} : vector<16x441xbf16>, vector<441x121xbf16>, vector<16x121xf32> -> vector<16x121xf32>
    %c0_4 = arith.constant 0 : index
    %c0_5 = arith.constant 0 : index
    %4 = vector.load %arg3[%c0_4, %c0_5] : memref<16x1xf32, #tpu.memory_space<vmem>>, vector<16x1xf32>
    %5 = vector.broadcast %4 : vector<16x1xf32> to vector<16x121xf32>
    %6 = arith.addf %3, %5 : vector<16x121xf32>
    %c0_6 = arith.constant 0 : index
    %c0_7 = arith.constant 0 : index
    %c0_8 = arith.constant 0 : index
    %7 = vector.load %arg4[%c0_6, %c0_7, %c0_8] : memref<1x16x121xf32, #tpu.memory_space<vmem>>, vector<1x16x121xf32>
    %8 = vector.shape_cast %7 : vector<1x16x121xf32> to vector<16x121xf32>
    %9 = vector.shape_cast %6 : vector<16x121xf32> to vector<1x16x121xf32>
    tpu.vector_store %arg4[%c0_6, %c0_7, %c0_8], %9 {strides = array<i32>} : memref<1x16x121xf32, #tpu.memory_space<vmem>>, vector<1x16x121xf32>,
    return
  }
  func.func @transform_0(%arg0: i32) -> (i32, i32) {
    %c0_i32 = arith.constant 0 : i32
    %c0_i32_0 = arith.constant 0 : i32
    %c0_i32_1 = arith.constant 0 : i32
    return %c0_i32, %c0_i32_0 : i32, i32
  }
  func.func @transform_1(%arg0: i32) -> (i32, i32, i32) {
    %c0_i32 = arith.constant 0 : i32
    %c0_i32_0 = arith.constant 0 : i32
    %c0_i32_1 = arith.constant 0 : i32
    return %arg0, %c0_i32, %c0_i32_0 : i32, i32, i32
  }
  func.func @transform_2(%arg0: i32) -> (i32, i32) {
    %c0_i32 = arith.constant 0 : i32
    %c0_i32_0 = arith.constant 0 : i32
    %c0_i32_1 = arith.constant 0 : i32
    return %c0_i32, %c0_i32_0 : i32, i32
  }
  func.func @transform_3(%arg0: i32) -> (i32, i32, i32) {
    %c0_i32 = arith.constant 0 : i32
    %c0_i32_0 = arith.constant 0 : i32
    %c0_i32_1 = arith.constant 0 : i32
    return %arg0, %c0_i32, %c0_i32_0 : i32, i32, i32
  }
}

</mosaic_0001>

<bundles_post_ra>
// kernel: co3net_forward.9
= control target key start
LH: loop header
LB: loop body
LE: loop exit
PB: predicated region body
PF: predicated region fallthrough
CT: control target
= control target key end

     0   :  { %s1556_s12 = smov 0   ;;  %s1723_s0 = inlined_call_operand.vmem [shape: bf16[16,1225], index: 0, kind: input, shape index: {}]   ;;  %s1724_s1 = inlined_call_operand.vmem [shape: bf16[2,1225,121], index: 1, kind: input, shape index: {}]   ;;  %s1725_s2 = inlined_call_operand.vmem [shape: f32[16,1], index: 2, kind: input, shape index: {}]   ;;  %s1726_s3 = inlined_call_operand.vmem [shape: f32[2,16,121], index: 3, kind: output, shape index: {}]  }
   0x1 LB: > { %s1067_s13 = sadd.s32 4294967295, %s1532_s12   ;;  %p1071_p0 = scmp.ge.s32.totalorder %s1532_s12, 1  ;;  %s1532_s12 = sphi %s1556_s12, %s13_s12  }
   0x2   : > { %p137_p1 = scmp.lt.s32.totalorder %s1532_s12, 3 }
   0x4   : > { %p138_p2 = pnand %p1071_p0, %p137_p1 }
   0x5   : > { %p161_p3 = scmp.lt.s32.totalorder (!%p138_p2), %s1067_s13, 1 }
   0x6   : > { %141 = sbr.rel (%p138_p2) target bundleno = 250 (0xfa), region = 32 }
   0xb   : > { %s1728_s13 = smov (!%p161_p3, %s1067_s13), 1  ;;  %v1077_v34 = vld [vmem:[%s1723_s0] sm:$0xf]  ;;  %v1432_v35 = vld [vmem:[%s1723_s0 + $0x24] sm:$0xf0]  ;;  %v1534_v44 = vmov 0  }
   0xc   : > { %s1514_s14 = smul.u32 616, %s1728_s13  ;;  %v1085_v36 = vld [vmem:[%s1723_s0 + $0x8] sm:$0xf]  ;;  %v1433_v37 = vld [vmem:[%s1723_s0 + $0x2c] sm:$0xf0]  ;;  %1525 = vset.pattern.permute.xlu0 %v1534_v44  ;;  %v1078_v45 = vor.u32 %v1432_v35, %v1077_v34  ;;  %v336_v55 = vld [vmem:[%s1725_s2] sm:$0xff] }
   0xd   : > { %v1427_v40 = vld [vmem:[%s1723_s0 + $0x4] sm:$0xf]  ;;  %v1079_v41 = vld [vmem:[%s1723_s0 + $0x28] sm:$0xf0]  ;;  %v1087_v43 = vld [vmem:[%s1723_s0 + $0x30] sm:$0xf0]  ;;  %v1086_v46 = vor.u32 %v1433_v37, %v1085_v36  ;;  %340 = vperm.xlu0 %1525, %v336_v55  }
   0xe   : > { %s1570_s17 = scalar_lea.vmem %s1724_s1, %s1514_s14  ;;  %v1428_v42 = vld [vmem:[%s1723_s0 + $0xc] sm:$0xf]  ;;  %v1082_v49 = vor.u32 %v1427_v40, %v1079_v41  ;;  %vm862_vm0 = vcmask 1043456   ;;  %vm863_vm1 = vcmask 1044480   ;;  %vm858_vm2 = vcmask 596992  }
   0xf   : > { %v1444_v0 = vld [vmem:[%s1570_s17 + $0x38] sm:$0xff]  ;;  %v1443_v4 = vld [vmem:[%s1570_s17 + $0x30] sm:$0xff]  ;;  %v1442_v8 = vld [vmem:[%s1570_s17 + $0x28] sm:$0xff]  ;;  %v1090_v50 = vor.u32 %v1428_v42, %v1087_v43  ;;  %vm1009_vm3 = vcmask 990208  }
  0x10   : > { %v1460_v1 = vld [vmem:[%s1570_s17 + $0xb8] sm:$0xff]  ;;  %869 = vmatpush.bf16.msra.mxu0 %v1444_v0  ;;  %v1459_v5 = vld [vmem:[%s1570_s17 + $0xb0] sm:$0xff]  ;;  %v1458_v9 = vld [vmem:[%s1570_s17 + $0xa8] sm:$0xff] }
  0x11   : > { %v1452_v2 = vld [vmem:[%s1570_s17 + $0x78] sm:$0xff]  ;;  %897 = vmatpush.bf16.msra.mxu2 %v1460_v1  ;;  %v1451_v6 = vld [vmem:[%s1570_s17 + $0x70] sm:$0xff]  ;;  %v1450_v10 = vld [vmem:[%s1570_s17 + $0x68] sm:$0xff] }
  0x12   : > { %v1468_v3 = vld [vmem:[%s1570_s17 + $0xf8] sm:$0xff]  ;;  %883 = vmatpush.bf16.msra.mxu1 %v1452_v2  ;;  %v1467_v7 = vld [vmem:[%s1570_s17 + $0xf0] sm:$0xff]  ;;  %v1466_v11 = vld [vmem:[%s1570_s17 + $0xe8] sm:$0xff] }
  0x13   : > { %911 = vmatpush.bf16.msra.mxu3 %v1468_v3  ;;  %v1441_v12 = vld [vmem:[%s1570_s17 + $0x20] sm:$0xff]  ;;  %v1440_v16 = vld [vmem:[%s1570_s17 + $0x18] sm:$0xff]  ;;  %v1439_v20 = vld [vmem:[%s1570_s17 + $0x10] sm:$0xff] }
  0x14   : > { %870 = vmatpush.bf16.msra.mxu0 %v1443_v4  ;;  %v1457_v13 = vld [vmem:[%s1570_s17 + $0xa0] sm:$0xff]  ;;  %v1456_v17 = vld [vmem:[%s1570_s17 + $0x98] sm:$0xff]  ;;  %v1455_v21 = vld [vmem:[%s1570_s17 + $0x90] sm:$0xff] }
  0x15   : > { %898 = vmatpush.bf16.msra.mxu2 %v1459_v5  ;;  %v1449_v14 = vld [vmem:[%s1570_s17 + $0x60] sm:$0xff]  ;;  %v1448_v18 = vld [vmem:[%s1570_s17 + $0x58] sm:$0xff]  ;;  %v1447_v22 = vld [vmem:[%s1570_s17 + $0x50] sm:$0xff] }
  0x16   : > { %884 = vmatpush.bf16.msra.mxu1 %v1451_v6  ;;  %v1465_v15 = vld [vmem:[%s1570_s17 + $0xe0] sm:$0xff]  ;;  %v1464_v19 = vld [vmem:[%s1570_s17 + $0xd8] sm:$0xff]  ;;  %v1463_v23 = vld [vmem:[%s1570_s17 + $0xd0] sm:$0xff] }
  0x17   : > { %912 = vmatpush.bf16.msra.mxu3 %v1467_v7  ;;  %v1438_v24 = vld [vmem:[%s1570_s17 + $0x8] sm:$0xff]  ;;  %v1437_v28 = vld [vmem:[%s1570_s17] sm:$0xff]  ;;  %v1476_v30 = vld [vmem:[%s1570_s17 + $0x138] sm:$0xff] }
  0x18   : > { %871 = vmatpush.bf16.msra.mxu0 %v1442_v8  ;;  %v1454_v25 = vld [vmem:[%s1570_s17 + $0x88] sm:$0xff]  ;;  %v1453_v29 = vld [vmem:[%s1570_s17 + $0x80] sm:$0xff]  ;;  %v1492_v31 = vld [vmem:[%s1570_s17 + $0x1b8] sm:$0xff] }
  0x19   : > { %899 = vmatpush.bf16.msra.mxu2 %v1458_v9  ;;  %v1446_v26 = vld [vmem:[%s1570_s17 + $0x48] sm:$0xff]  ;;  %v1445_v32 = vld [vmem:[%s1570_s17 + $0x40] sm:$0xff]  ;;  %v1484_v38 = vld [vmem:[%s1570_s17 + $0x178] sm:$0xff] }
  0x1a   : > { %885 = vmatpush.bf16.msra.mxu1 %v1450_v10  ;;  %v1462_v27 = vld [vmem:[%s1570_s17 + $0xc8] sm:$0xff]  ;;  %v1461_v33 = vld [vmem:[%s1570_s17 + $0xc0] sm:$0xff]  ;;  %v1500_v39 = vld [vmem:[%s1570_s17 + $0x1f8] sm:$0xff] }
  0x1b   : > { %913 = vmatpush.bf16.msra.mxu3 %v1466_v11  ;;  %v1475_v47 = vld [vmem:[%s1570_s17 + $0x130] sm:$0xff]  ;;  %v1474_v53 = vld [vmem:[%s1570_s17 + $0x128] sm:$0xff]  ;;  %v1473_v58 = vld [vmem:[%s1570_s17 + $0x120] sm:$0xff] }
  0x1c   : > { %872 = vmatpush.bf16.msra.mxu0 %v1441_v12  ;;  %v1491_v48 = vld [vmem:[%s1570_s17 + $0x1b0] sm:$0xff]  ;;  %v1490_v54 = vld [vmem:[%s1570_s17 + $0x1a8] sm:$0xff]  ;;  %v1489_v59 = vld [vmem:[%s1570_s17 + $0x1a0] sm:$0xff] }
  0x1d   : > { %900 = vmatpush.bf16.msra.mxu2 %v1457_v13  ;;  %v1483_v51 = vld [vmem:[%s1570_s17 + $0x170] sm:$0xff]  ;;  %v1482_v56 = vld [vmem:[%s1570_s17 + $0x168] sm:$0xff]  ;;  %v1481_v60 = vld [vmem:[%s1570_s17 + $0x160] sm:$0xff] }
  0x1e   : > { %886 = vmatpush.bf16.msra.mxu1 %v1449_v14  ;;  %v1499_v52 = vld [vmem:[%s1570_s17 + $0x1f0] sm:$0xff]  ;;  %v1498_v57 = vld [vmem:[%s1570_s17 + $0x1e8] sm:$0xff]  ;;  %v1497_v61 = vld [vmem:[%s1570_s17 + $0x1e0] sm:$0xff]  ;;  %v1535_v14 = vmov 65535  }
  0x1f   : > { %914 = vmatpush.bf16.msra.mxu3 %v1465_v15  ;;  %v1472_v62 = vld [vmem:[%s1570_s17 + $0x118] sm:$0xff]  ;;  %v337_v0 = vld [vmem:[%s1725_s2 + $0x8] sm:$0xff]  ;;  %v1471_v3 = vld [vmem:[%s1570_s17 + $0x110] sm:$0xff]  ;;  %v864_v15 = vsel %vm862_vm0, 4294967295, %v1535_v14 }
  0x20   : > { %873 = vmatpush.bf16.msra.mxu0 %v1440_v16  ;;  %v1488_v63 = vld [vmem:[%s1570_s17 + $0x198] sm:$0xff]  ;;  %345 = vperm.xlu0 %1525, %v337_v0   ;;  %v1487_v4 = vld [vmem:[%s1570_s17 + $0x190] sm:$0xff]  ;;  %v1470_v7 = vld [vmem:[%s1570_s17 + $0x108] sm:$0xff] }
  0x21   : > { %901 = vmatpush.bf16.msra.mxu2 %v1456_v17  ;;  %v1480_v1 = vld [vmem:[%s1570_s17 + $0x158] sm:$0xff]  ;;  %v1479_v5 = vld [vmem:[%s1570_s17 + $0x150] sm:$0xff]  ;;  %v1486_v8 = vld [vmem:[%s1570_s17 + $0x188] sm:$0xff] }
  0x22   : > { %887 = vmatpush.bf16.msra.mxu1 %v1448_v18  ;;  %v1496_v2 = vld [vmem:[%s1570_s17 + $0x1d8] sm:$0xff]  ;;  %v1495_v6 = vld [vmem:[%s1570_s17 + $0x1d0] sm:$0xff]  ;;  %v1421_v9 = vld [vmem:[%s1570_s17 + $0x260] sm:$0xf] }
  0x23   : > { %915 = vmatpush.bf16.msra.mxu3 %v1464_v19  ;;  %v1513_v10 = vld [vmem:[%s1570_s17 + $0x260] sm:$0x10]  ;;  %v1478_v11 = vld [vmem:[%s1570_s17 + $0x148] sm:$0xff]  ;;  %v1508_v17 = vld [vmem:[%s1570_s17 + $0x238] sm:$0xff] }
  0x24   : > { %874 = vmatpush.bf16.msra.mxu0 %v1439_v20  ;;  %v1494_v12 = vld [vmem:[%s1570_s17 + $0x1c8] sm:$0xff]  ;;  %v1469_v13 = vld [vmem:[%s1570_s17 + $0x100] sm:$0xff]  ;;  %v1093_v18 = vld [vmem:[%s1723_s0 + $0x10] sm:$0xf] }
  0x25   : > { %902 = vmatpush.bf16.msra.mxu2 %v1455_v21  ;;  %v1485_v16 = vld [vmem:[%s1570_s17 + $0x180] sm:$0xff]  ;;  %v1434_v19 = vld [vmem:[%s1723_s0 + $0x34] sm:$0xf0]  ;;  %v1507_v35 = vld [vmem:[%s1570_s17 + $0x230] sm:$0xff] }
  0x26   : > { %888 = vmatpush.bf16.msra.mxu1 %v1447_v22  ;;  %v1101_v20 = vld [vmem:[%s1723_s0 + $0x18] sm:$0xf]  ;;  %v1435_v21 = vld [vmem:[%s1723_s0 + $0x3c] sm:$0xf0]  ;;  %v1422_v22 = vor.u32 %v1513_v10, %v1421_v9  ;;  %v1506_v37 = vld [vmem:[%s1570_s17 + $0x228] sm:$0xff] }
  0x27   : > { %916 = vmatpush.bf16.msra.mxu3 %v1463_v23  ;;  %v1477_v23 = vld [vmem:[%s1570_s17 + $0x140] sm:$0xff]  ;;  %v1512_v36 = vld [vmem:[%s1570_s17 + $0x258] sm:$0xff]  ;;  %v1510_v40 = vld [vmem:[%s1570_s17 + $0x248] sm:$0xff] }
  0x28   : > { %875 = vmatpush.bf16.msra.mxu0 %v1438_v24  ;;  %v1493_v24 = vld [vmem:[%s1570_s17 + $0x1c0] sm:$0xff]  ;;  %v1504_v41 = vld [vmem:[%s1570_s17 + $0x218] sm:$0xff]  ;;  %v1111_v44 = vld [vmem:[%s1723_s0 + $0x48] sm:$0xf0] }
  0x29   : > { %903 = vmatpush.bf16.msra.mxu2 %v1454_v25  ;;  %v1429_v25 = vld [vmem:[%s1723_s0 + $0x14] sm:$0xf]  ;;  %v1509_v42 = vld [vmem:[%s1570_s17 + $0x240] sm:$0xff] }
  0x2a   : > { %889 = vmatpush.bf16.msra.mxu1 %v1446_v26  ;;  %v865_v26 = vsel %vm863_vm1, %v864_v15, 0  ;;  %v1431_v43 = vld [vmem:[%s1723_s0 + $0x24] sm:$0xf] }
  0x2b   : > { %917 = vmatpush.bf16.msra.mxu3 %v1462_v27  ;;  %v1095_v27 = vld [vmem:[%s1723_s0 + $0x38] sm:$0xf0] }
  0x2c   : > { %876 = vmatpush.bf16.msra.mxu0 %v1437_v28  ;;  %v1430_v28 = vld [vmem:[%s1723_s0 + $0x1c] sm:$0xf] }
  0x2d   : > { %904 = vmatpush.bf16.msra.mxu2 %v1453_v29  ;;  %v1103_v29 = vld [vmem:[%s1723_s0 + $0x40] sm:$0xf0] }
  0x2e   : > { %890 = vmatpush.bf16.msra.mxu1 %v1445_v32  ;;  %v867_v32 = vand.u32 %v1422_v22, %v865_v26  ;;  %v1106_v34 = vor.u32 %v1430_v28, %v1103_v29 }
  0x2f   : > { %918 = vmatpush.bf16.msra.mxu3 %v1461_v33  ;;  %877 = vmatmul.bf16.vlgmr.msra.gmra.mxu0 %v1078_v45  ;;  %v1098_v33 = vor.u32 %v1429_v25, %v1095_v27  ;;  %v1503_v45 = vld [vmem:[%s1570_s17 + $0x210] sm:$0xff] }
  0x30   : > { %925 = vmatpush.bf16.msrb.mxu0 %v1476_v30  ;;  %905 = vmatmul.bf16.vlgmr.msra.gmra.mxu2 %v1086_v46  ;;  %v1094_v30 = vor.u32 %v1434_v19, %v1093_v18  ;;  %v1114_v46 = vor.u32 %v1431_v43, %v1111_v44 }
  0x31   : > { %953 = vmatpush.bf16.msrb.mxu2 %v1492_v31  ;;  %891 = vmatmul.bf16.vlgmr.msra.gmra.mxu1 %v1082_v49  ;;  %v1102_v31 = vor.u32 %v1435_v21, %v1101_v20  ;;  %v1109_v49 = vld [vmem:[%s1723_s0 + $0x20] sm:$0xf] }
  0x32   : > { %939 = vmatpush.bf16.msrb.mxu1 %v1484_v38  ;;  %919 = vmatmul.bf16.vlgmr.msra.gmra.mxu3 %v1090_v50  ;;  %v1511_v38 = vld [vmem:[%s1570_s17 + $0x250] sm:$0xff]  ;;  %v1436_v50 = vld [vmem:[%s1723_s0 + $0x44] sm:$0xf0] }
  0x33   : > { %967 = vmatpush.bf16.msrb.mxu3 %v1500_v39  ;;  %v1505_v39 = vld [vmem:[%s1570_s17 + $0x220] sm:$0xff] }
  0x34   : > { %926 = vmatpush.bf16.msrb.mxu0 %v1475_v47  ;;  %v1502_v47 = vld [vmem:[%s1570_s17 + $0x208] sm:$0xff] }
  0x35   : > { %954 = vmatpush.bf16.msrb.mxu2 %v1491_v48  ;;  %v1501_v48 = vld [vmem:[%s1570_s17 + $0x200] sm:$0xff]  ;;  %s1426_s17 = sshll.u32 %s1728_s13, 4 }
  0x36   : > { %940 = vmatpush.bf16.msrb.mxu1 %v1483_v51  ;;  %v1110_v51 = vor.u32 %v1436_v50, %v1109_v49  ;;  %s170_s15 = scalar_lea.vmem %s1726_s3, %s1426_s17 }
  0x37   : > { %968 = vmatpush.bf16.msrb.mxu3 %v1499_v52 }
  0x38   : > { %927 = vmatpush.bf16.msrb.mxu0 %v1474_v53 }
  0x39   : > { %955 = vmatpush.bf16.msrb.mxu2 %v1490_v54 }
  0x3a   : > { %941 = vmatpush.bf16.msrb.mxu1 %v1482_v56 }
  0x3b   : > { %969 = vmatpush.bf16.msrb.mxu3 %v1498_v57 }
  0x3c   : > { %928 = vmatpush.bf16.msrb.mxu0 %v1473_v58 }
  0x3d   : > { %956 = vmatpush.bf16.msrb.mxu2 %v1489_v59 }
  0x3e   : > { %942 = vmatpush.bf16.msrb.mxu1 %v1481_v60 }
  0x3f   : > { %970 = vmatpush.bf16.msrb.mxu3 %v1497_v61 }
  0x40   : > { %929 = vmatpush.bf16.msrb.mxu0 %v1472_v62 }
  0x41   : > { %957 = vmatpush.bf16.msrb.mxu2 %v1488_v63 }
  0x42   : > { %943 = vmatpush.bf16.msrb.mxu1 %v1480_v1 }
  0x43   : > { %971 = vmatpush.bf16.msrb.mxu3 %v1496_v2 }
  0x44   : > { %930 = vmatpush.bf16.msrb.mxu0 %v1471_v3 }
  0x45   : > { %958 = vmatpush.bf16.msrb.mxu2 %v1487_v4 }
  0x46   : > { %944 = vmatpush.bf16.msrb.mxu1 %v1479_v5 }
  0x47   : > { %972 = vmatpush.bf16.msrb.mxu3 %v1495_v6 }
  0x48   : > { %931 = vmatpush.bf16.msrb.mxu0 %v1470_v7 }
  0x49   : > { %959 = vmatpush.bf16.msrb.mxu2 %v1486_v8 }
  0x4a   : > { %945 = vmatpush.bf16.msrb.mxu1 %v1478_v11 }
  0x4b   : > { %973 = vmatpush.bf16.msrb.mxu3 %v1494_v12 }
  0x4c   : > { %932 = vmatpush.bf16.msrb.mxu0 %v1469_v13 }
  0x4d   : > { %960 = vmatpush.bf16.msrb.mxu2 %v1485_v16 }
  0x4e   : > { %946 = vmatpush.bf16.msrb.mxu1 %v1477_v23 }
  0x4f   : > { %974 = vmatpush.bf16.msrb.mxu3 %v1493_v24  ;;  %933 = vmatmul.bf16.vlgmr.msrb.gmra.mxu0 %v1094_v30 }
  0x50   : > { %981 = vmatpush.bf16.msra.mxu0 %v1508_v17  ;;  %961 = vmatmul.bf16.vlgmr.msrb.gmra.mxu2 %v1102_v31 }
  0x51   : > { %947 = vmatmul.bf16.vlgmr.msrb.gmra.mxu1 %v1098_v33 }
  0x52   : > { %998 = vmatpush.bf16.msra.mxu1 %v867_v32  ;;  %975 = vmatmul.bf16.vlgmr.msrb.gmra.mxu3 %v1106_v34 }
  0x54   : > { %982 = vmatpush.bf16.msra.mxu0 %v1507_v35 }
  0x56   : > { %999 = vmatpush.bf16.msra.mxu1 %v1512_v36 }
  0x58   : > { %983 = vmatpush.bf16.msra.mxu0 %v1506_v37 }
  0x5a   : > { %1000 = vmatpush.bf16.msra.mxu1 %v1511_v38 }
  0x5c   : > { %984 = vmatpush.bf16.msra.mxu0 %v1505_v39 }
  0x5e   : > { %1001 = vmatpush.bf16.msra.mxu1 %v1510_v40 }
  0x60   : > { %985 = vmatpush.bf16.msra.mxu0 %v1504_v41 }
  0x62   : > { %1002 = vmatpush.bf16.msra.mxu1 %v1509_v42 }
  0x64   : > { %986 = vmatpush.bf16.msra.mxu0 %v1503_v45 }
  0x65   : > { %1423 = vmatmul.msk.bf16.vlgmr.msra.gmra.mxu1 %vm858_vm2, %v1114_v46 }
  0x68   : > { %987 = vmatpush.bf16.msra.mxu0 %v1502_v47 }
  0x6c   : > { %988 = vmatpush.bf16.msra.mxu0 %v1501_v48 }
  0x6f   : > { %989 = vmatmul.bf16.vlgmr.msra.gmra.mxu0 %v1110_v51 }
  0x7f   : > { %v341_v55 = vpop.permute.xlu0 %340 }
  0x92   : > { %v346_v63 = vpop.permute.xlu0 %345 }
  0xac   : > { %v878_v52 = vpop.f32.mrf.mxu0 }
  0xad   : > { %v879_v56 = vadd.f32 %v878_v52, %v341_v55 }
  0xae   : > { %v892_v53 = vpop.f32.mrf.mxu1 }
  0xaf   : > { %v893_v60 = vadd.f32 %v892_v53, %v879_v56 }
  0xb3   : > { %v906_v54 = vpop.f32.mrf.mxu2 }
  0xb4   : > { %v880_v57 = vpop.f32.mrf.mxu0  ;;  %v907_v61 = vadd.f32 %v906_v54, %v893_v60 }
  0xb5   : > { %v920_v59 = vpop.f32.mrf.mxu3  ;;  %v881_v3 = vadd.f32 %v880_v57, %v346_v63 }
  0xb6   : > { %v894_v58 = vpop.f32.mrf.mxu1  ;;  %v921_v2 = vadd.f32 %v920_v59, %v907_v61 }
  0xb7   : > { %v895_v5 = vadd.f32 %v894_v58, %v881_v3 }
  0xbb   : > { %v908_v62 = vpop.f32.mrf.mxu2 }
  0xbc   : > { %v909_v8 = vadd.f32 %v908_v62, %v895_v5 }
  0xbd   : > { %v922_v4 = vpop.f32.mrf.mxu3 }
  0xbe   : > { %v923_v13 = vadd.f32 %v922_v4, %v909_v8 }
  0xcc   : > { %v934_v0 = vpop.f32.mrf.mxu0 }
  0xcd   : > { %v935_v6 = vadd.f32 %v934_v0, %v921_v2 }
  0xce   : > { %v948_v1 = vpop.f32.mrf.mxu1 }
  0xcf   : > { %v949_v9 = vadd.f32 %v948_v1, %v935_v6 }
  0xd3   : > { %v962_v7 = vpop.f32.mrf.mxu2 }
  0xd4   : > { %v936_v10 = vpop.f32.mrf.mxu0  ;;  %v963_v14 = vadd.f32 %v962_v7, %v949_v9 }
  0xd5   : > { %v976_v12 = vpop.f32.mrf.mxu3  ;;  %v937_v15 = vadd.f32 %v936_v10, %v923_v13 }
  0xd6   : > { %v950_v11 = vpop.f32.mrf.mxu1  ;;  %v977_v16 = vadd.f32 %v976_v12, %v963_v14 }
  0xd7   : > { %v951_v20 = vadd.f32 %v950_v11, %v937_v15 }
  0xdb   : > { %v964_v17 = vpop.f32.mrf.mxu2 }
  0xdc   : > { %v965_v22 = vadd.f32 %v964_v17, %v951_v20 }
  0xdd   : > { %v978_v24 = vpop.f32.mrf.mxu3 }
  0xde   : > { %v979_v25 = vadd.f32 %v978_v24, %v965_v22 }
  0xe2   : > { %v1004_v18 = vpop.f32.mrf.mxu1 }
  0xea   : > { %v1006_v28 = vpop.f32.mrf.mxu1 }
  0xec   : > { %v990_v19 = vpop.f32.mrf.mxu0 }
  0xed   : > { %v991_v21 = vadd.f32 %v990_v19, %v977_v16 }
  0xef   : > { %v1005_v23 = vadd.f32 %v1004_v18, %v991_v21 }
  0xf1   : > { %1010 = vst.msk [vmem:[%s170_s15] sm:$0xff] %vm1009_vm3, %v1005_v23 }
  0xf4   : > { %v992_v26 = vpop.f32.mrf.mxu0 }
  0xf5   : > { %v993_v27 = vadd.f32 %v992_v26, %v979_v25 }
  0xf7   : > { %v1007_v29 = vadd.f32 %v1006_v28, %v993_v27 }
  0xf9   : > { %1011 = vst.msk [vmem:[%s170_s15 + $0x8] sm:$0xff] %vm1009_vm3, %v1007_v29 }
  0xfa PF: > { %s13_s12 = sadd.s32 1, %s1532_s12  }
  0xfb   : > { %p10_p4 = scmp.ge.s32.totalorder %s13_s12, 4  }
  0xfd   :  { %12 = sbr.rel (!%p10_p4) target bundleno = 1 (0x1), region = 62 }

// kernel: mul.355
= control target key start
LH: loop header
LB: loop body
LE: loop exit
PB: predicated region body
PF: predicated region fallthrough
CT: control target
= control target key end

     0   :  { %s350_s0 = inlined_call_operand.vmem [shape: f32[2,9,11], index: 0, kind: input, shape index: {}]   ;;  %s351_s1 = inlined_call_operand.vmem [shape: f32[2,9,11,11], index: 1, kind: output, shape index: {}]  }
   0x1   :  { %v4_v0 = vld [vmem:[%s350_s0] ss:$0 sm:$0xff]  ;;  %v126_v1 = vld [vmem:[%s350_s0 + $0x2] ss:$0 sm:$0xff]  ;;  %v128_v2 = vld [vmem:[%s350_s0 + $0x4] ss:$0 sm:$0xff] }
   0x2   :  { %5 = vst [vmem:[%s351_s1] sm:$0xff] %v4_v0  ;;  %v130_v3 = vld [vmem:[%s350_s0 + $0x6] ss:$0 sm:$0xff]  ;;  %v132_v4 = vld [vmem:[%s350_s0 + $0x8] ss:$0 sm:$0xff]  ;;  %v134_v5 = vld [vmem:[%s350_s0 + $0xa] ss:$0 sm:$0xff] }
   0x3   :  { %127 = vst [vmem:[%s351_s1 + $0x20] sm:$0xff] %v126_v1  ;;  %v136_v6 = vld [vmem:[%s350_s0 + $0xc] ss:$0 sm:$0xff]  ;;  %v138_v7 = vld [vmem:[%s350_s0 + $0xe] ss:$0 sm:$0xff] }
   0x4   :  { %129 = vst [vmem:[%s351_s1 + $0x40] sm:$0xff] %v128_v2  ;;  %v140_v8 = vld [vmem:[%s350_s0 + $0x10] ss:$0 sm:$0xff]  ;;  %v142_v9 = vld [vmem:[%s350_s0 + $0x1] ss:$0 sm:$0xff] }
   0x5   :  { %131 = vst [vmem:[%s351_s1 + $0x60] sm:$0xff] %v130_v3  ;;  %v144_v10 = vld [vmem:[%s350_s0 + $0x3] ss:$0 sm:$0xff]  ;;  %v146_v11 = vld [vmem:[%s350_s0 + $0x5] ss:$0 sm:$0xff] }
   0x6   :  { %133 = vst [vmem:[%s351_s1 + $0x80] sm:$0xff] %v132_v4  ;;  %v148_v12 = vld [vmem:[%s350_s0 + $0x7] ss:$0 sm:$0xff]  ;;  %v150_v13 = vld [vmem:[%s350_s0 + $0x9] ss:$0 sm:$0xff] }
   0x7   :  { %135 = vst [vmem:[%s351_s1 + $0xa0] sm:$0xff] %v134_v5  ;;  %v152_v14 = vld [vmem:[%s350_s0 + $0xb] ss:$0 sm:$0xff]  ;;  %v154_v15 = vld [vmem:[%s350_s0 + $0xd] ss:$0 sm:$0xff] }
   0x8   :  { %137 = vst [vmem:[%s351_s1 + $0xc0] sm:$0xff] %v136_v6  ;;  %v156_v16 = vld [vmem:[%s350_s0 + $0xf] ss:$0 sm:$0xff]  ;;  %v158_v17 = vld [vmem:[%s350_s0 + $0x11] ss:$0 sm:$0xff] }
   0x9   :  { %139 = vst [vmem:[%s351_s1 + $0xe0] sm:$0xff] %v138_v7 }
   0xa   :  { %141 = vst [vmem:[%s351_s1 + $0x100] sm:$0xff] %v140_v8 }
   0xb   :  { %143 = vst [vmem:[%s351_s1 + $0x10] sm:$0xff] %v142_v9 }
   0xc   :  { %145 = vst [vmem:[%s351_s1 + $0x30] sm:$0xff] %v144_v10 }
   0xd   :  { %147 = vst [vmem:[%s351_s1 + $0x50] sm:$0xff] %v146_v11 }
   0xe   :  { %149 = vst [vmem:[%s351_s1 + $0x70] sm:$0xff] %v148_v12 }
   0xf   :  { %151 = vst [vmem:[%s351_s1 + $0x90] sm:$0xff] %v150_v13 }
  0x10   :  { %153 = vst [vmem:[%s351_s1 + $0xb0] sm:$0xff] %v152_v14 }
  0x11   :  { %155 = vst [vmem:[%s351_s1 + $0xd0] sm:$0xff] %v154_v15 }
  0x12   :  { %157 = vst [vmem:[%s351_s1 + $0xf0] sm:$0xff] %v156_v16 }
  0x13   :  { %159 = vst [vmem:[%s351_s1 + $0x110] sm:$0xff] %v158_v17 }
  0x14   :  { %160 = vst [vmem:[%s351_s1 + $0x8] sm:$0xff] %v4_v0 }
  0x15   :  { %161 = vst [vmem:[%s351_s1 + $0x28] sm:$0xff] %v126_v1 }
  0x16   :  { %162 = vst [vmem:[%s351_s1 + $0x48] sm:$0xff] %v128_v2 }
  0x17   :  { %163 = vst [vmem:[%s351_s1 + $0x68] sm:$0xff] %v130_v3 }
  0x18   :  { %164 = vst [vmem:[%s351_s1 + $0x88] sm:$0xff] %v132_v4 }
  0x19   :  { %165 = vst [vmem:[%s351_s1 + $0xa8] sm:$0xff] %v134_v5 }
  0x1a   :  { %166 = vst [vmem:[%s351_s1 + $0xc8] sm:$0xff] %v136_v6 }
  0x1b   :  { %167 = vst [vmem:[%s351_s1 + $0xe8] sm:$0xff] %v138_v7 }
  0x1c   :  { %168 = vst [vmem:[%s351_s1 + $0x108] sm:$0xff] %v140_v8 }
  0x1d   :  { %169 = vst [vmem:[%s351_s1 + $0x18] sm:$0xff] %v142_v9 }
  0x1e   :  { %170 = vst [vmem:[%s351_s1 + $0x38] sm:$0xff] %v144_v10 }
  0x1f   :  { %171 = vst [vmem:[%s351_s1 + $0x58] sm:$0xff] %v146_v11 }
  0x20   :  { %172 = vst [vmem:[%s351_s1 + $0x78] sm:$0xff] %v148_v12 }
  0x21   :  { %173 = vst [vmem:[%s351_s1 + $0x98] sm:$0xff] %v150_v13 }
  0x22   :  { %174 = vst [vmem:[%s351_s1 + $0xb8] sm:$0xff] %v152_v14 }
  0x23   :  { %175 = vst [vmem:[%s351_s1 + $0xd8] sm:$0xff] %v154_v15 }
  0x24   :  { %176 = vst [vmem:[%s351_s1 + $0xf8] sm:$0xff] %v156_v16 }
  0x25   :  { %177 = vst [vmem:[%s351_s1 + $0x118] sm:$0xff] %v158_v17 }

// kernel: mul.359
= control target key start
LH: loop header
LB: loop body
LE: loop exit
PB: predicated region body
PF: predicated region fallthrough
CT: control target
= control target key end

     0   :  { %v5_v0 = vlaneseq  ;;  %s640_s0 = inlined_call_operand.vmem [shape: f32[2,9,11], index: 0, kind: input, shape index: {}]   ;;  %s641_s1 = inlined_call_operand.vmem [shape: f32[2,9,11,11], index: 1, kind: output, shape index: {}]  }
   0x1   :  { %v399_v2 = vld [vmem:[%s640_s0 + $0x8] ss:$0 sm:$0xff]  ;;  %v395_v3 = vld [vmem:[%s640_s0 + $0x4] ss:$0 sm:$0xff]  ;;  %v4_v4 = vld [vmem:[%s640_s0] ss:$0 sm:$0xff] }
   0x2   :  { %v6_v1 = vshrl.u32 %v5_v0, 7  ;;  %v401_v5 = vld [vmem:[%s640_s0 + $0xa] ss:$0 sm:$0xff]  ;;  %v397_v6 = vld [vmem:[%s640_s0 + $0x6] ss:$0 sm:$0xff] }
   0x3   :  { %v393_v7 = vld [vmem:[%s640_s0 + $0x2] ss:$0 sm:$0xff]  ;;  %v407_v8 = vld [vmem:[%s640_s0 + $0x10] ss:$0 sm:$0xff]  ;;  %v405_v9 = vld [vmem:[%s640_s0 + $0xe] ss:$0 sm:$0xff] }
   0x4   :  { %464 = vset.pattern.permute.xlu2 %v6_v1  ;;  %463 = vset.pattern.permute.xlu1 %v6_v1  ;;  %v403_v10 = vld [vmem:[%s640_s0 + $0xc] ss:$0 sm:$0xff]  ;;  %v413_v11 = vld [vmem:[%s640_s0 + $0x5] ss:$0 sm:$0xff]  ;;  %v411_v12 = vld [vmem:[%s640_s0 + $0x3] ss:$0 sm:$0xff] }
   0x5   :  { %462 = vset.pattern.permute.xlu0 %v6_v1  ;;  %v409_v13 = vld [vmem:[%s640_s0 + $0x1] ss:$0 sm:$0xff]  ;;  %v419_v14 = vld [vmem:[%s640_s0 + $0xb] ss:$0 sm:$0xff]  ;;  %v417_v15 = vld [vmem:[%s640_s0 + $0x9] ss:$0 sm:$0xff] }
   0x6   :  { %v415_v16 = vld [vmem:[%s640_s0 + $0x7] ss:$0 sm:$0xff]  ;;  %v425_v17 = vld [vmem:[%s640_s0 + $0x11] ss:$0 sm:$0xff]  ;;  %v423_v18 = vld [vmem:[%s640_s0 + $0xf] ss:$0 sm:$0xff] }
   0x7   :  { %v421_v19 = vld [vmem:[%s640_s0 + $0xd] ss:$0 sm:$0xff]  ;;  %v193_v20 = vadd.s32 8, %v6_v1 }
   0xc   :  { %48 = vperm.xlu2 %464, %v399_v2   ;;  %28 = vperm.xlu1 %463, %v395_v3  }
   0xd   :  { %9 = vperm.xlu0 %462, %v4_v4  }
  0x14   :  { %58 = vperm.xlu2 %464, %v401_v5   ;;  %38 = vperm.xlu1 %463, %v397_v6  }
  0x15   :  { %18 = vperm.xlu0 %462, %v393_v7  }
  0x1c   :  { %88 = vperm.xlu2 %464, %v407_v8   ;;  %78 = vperm.xlu1 %463, %v405_v9  }
  0x1d   :  { %68 = vperm.xlu0 %462, %v403_v10  }
  0x24   :  { %120 = vperm.xlu2 %464, %v413_v11   ;;  %109 = vperm.xlu1 %463, %v411_v12  }
  0x25   :  { %98 = vperm.xlu0 %462, %v409_v13  }
  0x2c   :  { %153 = vperm.xlu2 %464, %v419_v14   ;;  %142 = vperm.xlu1 %463, %v417_v15  }
  0x2d   :  { %131 = vperm.xlu0 %462, %v415_v16  }
  0x34   :  { %186 = vperm.xlu2 %464, %v425_v17   ;;  %175 = vperm.xlu1 %463, %v423_v18  }
  0x35   :  { %164 = vperm.xlu0 %462, %v421_v19  }
  0x3c   :  { %467 = vset.pattern.permute.xlu2 %v193_v20  ;;  %466 = vset.pattern.permute.xlu1 %v193_v20 }
  0x3d   :  { %465 = vset.pattern.permute.xlu0 %v193_v20 }
  0x44   :  { %215 = vperm.xlu2 %467, %v395_v3   ;;  %205 = vperm.xlu1 %466, %v393_v7  }
  0x45   :  { %195 = vperm.xlu0 %465, %v4_v4  }
  0x4c   :  { %235 = vperm.xlu2 %467, %v399_v2   ;;  %225 = vperm.xlu1 %466, %v397_v6  }
  0x4d   :  { %245 = vperm.xlu0 %465, %v401_v5  }
  0x54   :  { %265 = vperm.xlu2 %467, %v405_v9   ;;  %255 = vperm.xlu1 %466, %v403_v10  }
  0x55   :  { %275 = vperm.xlu0 %465, %v407_v8  }
  0x5c   :  { %296 = vperm.xlu2 %467, %v411_v12   ;;  %285 = vperm.xlu1 %466, %v409_v13  }
  0x5d   :  { %307 = vperm.xlu0 %465, %v413_v11  }
  0x64   :  { %329 = vperm.xlu2 %467, %v417_v15   ;;  %318 = vperm.xlu1 %466, %v415_v16  }
  0x65   :  { %340 = vperm.xlu0 %465, %v419_v14  }
  0x66   :  { %v49_v21 = vpop.permute.xlu2 %48 }
  0x67   :  { %400 = vst [vmem:[%s641_s1 + $0x80] sm:$0xff] %v49_v21 }
  0x6c   :  { %362 = vperm.xlu2 %467, %v423_v18   ;;  %351 = vperm.xlu1 %466, %v421_v19  }
  0x6d   :  { %373 = vperm.xlu0 %465, %v425_v17  }
  0x6e   :  { %v59_v22 = vpop.permute.xlu2 %58 }
  0x6f   :  { %402 = vst [vmem:[%s641_s1 + $0xa0] sm:$0xff] %v59_v22 }
  0x76   :  { %v89_v23 = vpop.permute.xlu2 %88 }
  0x77   :  { %408 = vst [vmem:[%s641_s1 + $0x100] sm:$0xff] %v89_v23 }
  0x7e   :  { %v121_v24 = vpop.permute.xlu2 %120  ;;  %v29_v25 = vpop.permute.xlu1 %28 }
  0x7f   :  { %414 = vst [vmem:[%s641_s1 + $0x50] sm:$0xff] %v121_v24  ;;  %v10_v26 = vpop.permute.xlu0 %9 }
  0x80   :  { %396 = vst [vmem:[%s641_s1 + $0x40] sm:$0xff] %v29_v25 }
  0x81   :  { %11 = vst [vmem:[%s641_s1] sm:$0xff] %v10_v26 }
  0x86   :  { %v154_v27 = vpop.permute.xlu2 %153  ;;  %v39_v28 = vpop.permute.xlu1 %38 }
  0x87   :  { %420 = vst [vmem:[%s641_s1 + $0xb0] sm:$0xff] %v154_v27  ;;  %v19_v29 = vpop.permute.xlu0 %18 }
  0x88   :  { %398 = vst [vmem:[%s641_s1 + $0x60] sm:$0xff] %v39_v28 }
  0x89   :  { %394 = vst [vmem:[%s641_s1 + $0x20] sm:$0xff] %v19_v29 }
  0x8e   :  { %v187_v30 = vpop.permute.xlu2 %186  ;;  %v79_v31 = vpop.permute.xlu1 %78 }
  0x8f   :  { %426 = vst [vmem:[%s641_s1 + $0x110] sm:$0xff] %v187_v30  ;;  %v69_v32 = vpop.permute.xlu0 %68 }
  0x90   :  { %406 = vst [vmem:[%s641_s1 + $0xe0] sm:$0xff] %v79_v31 }
  0x91   :  { %404 = vst [vmem:[%s641_s1 + $0xc0] sm:$0xff] %v69_v32 }
  0x96   :  { %v110_v33 = vpop.permute.xlu1 %109 }
  0x97   :  { %412 = vst [vmem:[%s641_s1 + $0x30] sm:$0xff] %v110_v33  ;;  %v99_v34 = vpop.permute.xlu0 %98 }
  0x98   :  { %410 = vst [vmem:[%s641_s1 + $0x10] sm:$0xff] %v99_v34 }
  0x9e   :  { %v216_v35 = vpop.permute.xlu2 %215  ;;  %v143_v36 = vpop.permute.xlu1 %142 }
  0x9f   :  { %431 = vst [vmem:[%s641_s1 + $0x48] sm:$0xff] %v216_v35  ;;  %v132_v37 = vpop.permute.xlu0 %131 }
  0xa0   :  { %418 = vst [vmem:[%s641_s1 + $0x90] sm:$0xff] %v143_v36 }
  0xa1   :  { %416 = vst [vmem:[%s641_s1 + $0x70] sm:$0xff] %v132_v37 }
  0xa6   :  { %v236_v38 = vpop.permute.xlu2 %235  ;;  %v176_v39 = vpop.permute.xlu1 %175 }
  0xa7   :  { %435 = vst [vmem:[%s641_s1 + $0x88] sm:$0xff] %v236_v38  ;;  %v165_v40 = vpop.permute.xlu0 %164 }
  0xa8   :  { %424 = vst [vmem:[%s641_s1 + $0xf0] sm:$0xff] %v176_v39 }
  0xa9   :  { %422 = vst [vmem:[%s641_s1 + $0xd0] sm:$0xff] %v165_v40 }
  0xae   :  { %v266_v41 = vpop.permute.xlu2 %265 }
  0xaf   :  { %441 = vst [vmem:[%s641_s1 + $0xe8] sm:$0xff] %v266_v41 }
  0xb6   :  { %v297_v42 = vpop.permute.xlu2 %296  ;;  %v206_v43 = vpop.permute.xlu1 %205 }
  0xb7   :  { %447 = vst [vmem:[%s641_s1 + $0x38] sm:$0xff] %v297_v42  ;;  %v196_v44 = vpop.permute.xlu0 %195 }
  0xb8   :  { %429 = vst [vmem:[%s641_s1 + $0x28] sm:$0xff] %v206_v43 }
  0xb9   :  { %427 = vst [vmem:[%s641_s1 + $0x8] sm:$0xff] %v196_v44 }
  0xbe   :  { %v330_v45 = vpop.permute.xlu2 %329  ;;  %v226_v46 = vpop.permute.xlu1 %225 }
  0xbf   :  { %453 = vst [vmem:[%s641_s1 + $0x98] sm:$0xff] %v330_v45  ;;  %v246_v47 = vpop.permute.xlu0 %245 }
  0xc0   :  { %433 = vst [vmem:[%s641_s1 + $0x68] sm:$0xff] %v226_v46 }
  0xc1   :  { %437 = vst [vmem:[%s641_s1 + $0xa8] sm:$0xff] %v246_v47 }
  0xc6   :  { %v363_v48 = vpop.permute.xlu2 %362  ;;  %v256_v49 = vpop.permute.xlu1 %255 }
  0xc7   :  { %459 = vst [vmem:[%s641_s1 + $0xf8] sm:$0xff] %v363_v48  ;;  %v276_v50 = vpop.permute.xlu0 %275 }
  0xc8   :  { %439 = vst [vmem:[%s641_s1 + $0xc8] sm:$0xff] %v256_v49 }
  0xc9   :  { %443 = vst [vmem:[%s641_s1 + $0x108] sm:$0xff] %v276_v50 }
  0xce   :  { %v286_v51 = vpop.permute.xlu1 %285 }
  0xcf   :  { %445 = vst [vmem:[%s641_s1 + $0x18] sm:$0xff] %v286_v51  ;;  %v308_v52 = vpop.permute.xlu0 %307 }
  0xd0   :  { %449 = vst [vmem:[%s641_s1 + $0x58] sm:$0xff] %v308_v52 }
  0xd6   :  { %v319_v53 = vpop.permute.xlu1 %318 }
  0xd7   :  { %451 = vst [vmem:[%s641_s1 + $0x78] sm:$0xff] %v319_v53  ;;  %v341_v54 = vpop.permute.xlu0 %340 }
  0xd8   :  { %455 = vst [vmem:[%s641_s1 + $0xb8] sm:$0xff] %v341_v54 }
  0xde   :  { %v352_v55 = vpop.permute.xlu1 %351 }
  0xdf   :  { %457 = vst [vmem:[%s641_s1 + $0xd8] sm:$0xff] %v352_v55  ;;  %v374_v56 = vpop.permute.xlu0 %373 }
  0xe0   :  { %461 = vst [vmem:[%s641_s1 + $0x118] sm:$0xff] %v374_v56 }

// kernel: div.145
= control target key start
LH: loop header
LB: loop body
LE: loop exit
PB: predicated region body
PF: predicated region fallthrough
CT: control target
= control target key end

     0   :  { %s90_s8 = smov 95   ;;  %s91_s9 = smov 73   ;;  %vm7_vm0 = vcmask 89088   ;;  %s156_s0 = inlined_call_operand.vmem [shape: f32[2,121], index: 0, kind: input, shape index: {}]   ;;  %s157_s1 = inlined_call_operand.vmem [shape: f32[2,11,11], index: 1, kind: output, shape index: {}]  }
   0x1   :  { %v4_v0 = vld [vmem:[%s156_s0] sm:$0x3]  ;;  %s89_s0 = smov 117   ;;  %s92_s10 = smov 106  }
   0x2   :  { %5 = vst [vmem:[#allocation0] sm:$0x3] %v4_v0  ;;  %s93_s11 = smov 84   ;;  %s94_s12 = smov 62  }
   0x3   :  { %s95_s13 = smov 51   ;;  %s96_s14 = smov 40  }
   0x4   :  { %s97_s15 = smov 29   ;;  %s98_s16 = smov 18  }
   0x9   :  { %v9_v1 = vld [vmem:[#allocation0] sm:$0x3]  }
   0xa   :  { %v21_v2 = vld [vmem:[#allocation0] sm:$0x3]   ;;  %10 = vrot.lane.b32.xlu0 %v9_v1, %s89_s0 }
   0xb   :  { %22 = vrot.lane.b32.xlu1 %v21_v2, %s90_s8  ;;  %v33_v3 = vld [vmem:[#allocation0] sm:$0x3]  }
   0xc   :  { %34 = vrot.lane.b32.xlu2 %v33_v3, %s91_s9  ;;  %v15_v4 = vld [vmem:[#allocation0] sm:$0x3]  }
   0xd   :  { %v27_v5 = vld [vmem:[#allocation0] sm:$0x3]  }
   0xe   :  { %v39_v6 = vld [vmem:[#allocation0] sm:$0x3]  }
   0xf   :  { %v45_v7 = vld [vmem:[#allocation0] sm:$0x3]  }
  0x10   :  { %v51_v8 = vld [vmem:[#allocation0] sm:$0x3]  }
  0x11   :  { %v57_v9 = vld [vmem:[#allocation0] sm:$0x3]  }
  0x12   :  { %16 = vrot.lane.b32.xlu0 %v15_v4, %s92_s10  ;;  %v63_v10 = vld [vmem:[#allocation0] sm:$0x3]  }
  0x13   :  { %28 = vrot.lane.b32.xlu1 %v27_v5, %s93_s11  ;;  %v6_v11 = vld [vmem:[#allocation0] sm:$0x3]  }
  0x14   :  { %40 = vrot.lane.b32.xlu2 %v39_v6, %s94_s12  ;;  %8 = vst.msk [vmem:[%s157_s1] ss:$16 sm:$0x3] %vm7_vm0, %v6_v11  }
  0x1a   :  { %46 = vrot.lane.b32.xlu0 %v45_v7, %s95_s13 }
  0x1b   :  { %52 = vrot.lane.b32.xlu1 %v51_v8, %s96_s14 }
  0x1c   :  { %58 = vrot.lane.b32.xlu2 %v57_v9, %s97_s15 }
  0x22   :  { %64 = vrot.lane.b32.xlu0 %v63_v10, %s98_s16 }
  0x66   :  { %v35_v12 = vpop.permute.xlu2 %34  }
  0x67   :  { %73 = vst.msk [vmem:[%s157_s1 + $0x5] ss:$16 sm:$0x3] %vm7_vm0, %v35_v12  }
  0x6e   :  { %v41_v13 = vpop.permute.xlu2 %40  }
  0x6f   :  { %74 = vst.msk [vmem:[%s157_s1 + $0x6] ss:$16 sm:$0x3] %vm7_vm0, %v41_v13  }
  0x76   :  { %v59_v14 = vpop.permute.xlu2 %58  }
  0x77   :  { %77 = vst.msk [vmem:[%s157_s1 + $0x9] ss:$16 sm:$0x3] %vm7_vm0, %v59_v14  }
  0x7c   :  { %v11_v15 = vpop.permute.xlu0 %10  }
  0x7d   :  { %v23_v16 = vpop.permute.xlu1 %22   ;;  %69 = vst.msk [vmem:[%s157_s1 + $0x1] ss:$16 sm:$0x3] %vm7_vm0, %v11_v15  }
  0x7e   :  { %71 = vst.msk [vmem:[%s157_s1 + $0x3] ss:$16 sm:$0x3] %vm7_vm0, %v23_v16  }
  0x84   :  { %v17_v17 = vpop.permute.xlu0 %16  }
  0x85   :  { %v29_v18 = vpop.permute.xlu1 %28   ;;  %70 = vst.msk [vmem:[%s157_s1 + $0x2] ss:$16 sm:$0x3] %vm7_vm0, %v17_v17  }
  0x86   :  { %72 = vst.msk [vmem:[%s157_s1 + $0x4] ss:$16 sm:$0x3] %vm7_vm0, %v29_v18  }
  0x8c   :  { %v47_v19 = vpop.permute.xlu0 %46  }
  0x8d   :  { %v53_v20 = vpop.permute.xlu1 %52   ;;  %75 = vst.msk [vmem:[%s157_s1 + $0x7] ss:$16 sm:$0x3] %vm7_vm0, %v47_v19  }
  0x8e   :  { %76 = vst.msk [vmem:[%s157_s1 + $0x8] ss:$16 sm:$0x3] %vm7_vm0, %v53_v20  }
  0x94   :  { %v65_v21 = vpop.permute.xlu0 %64  }
  0x95   :  { %78 = vst.msk [vmem:[%s157_s1 + $0xa] ss:$16 sm:$0x3] %vm7_vm0, %v65_v21  }

// kernel: co3net_forward.10
= control target key start
LH: loop header
LB: loop body
LE: loop exit
PB: predicated region body
PF: predicated region fallthrough
CT: control target
= control target key end

     0   :  { %s11441_s12 = smov 0   ;;  %s12846_s0 = inlined_call_operand.vmem [shape: bf16[16,11025], index: 0, kind: input, shape index: {}]   ;;  %s12847_s1 = inlined_call_operand.vmem [shape: bf16[2,11025,121], index: 1, kind: input, shape index: {}]   ;;  %s12848_s2 = inlined_call_operand.vmem [shape: f32[16,1], index: 2, kind: input, shape index: {}]   ;;  %s12849_s3 = inlined_call_operand.vmem [shape: f32[2,16,121], index: 3, kind: output, shape index: {}]  }
   0x1 LB: > { %s7509_s13 = sadd.s32 4294967295, %s11418_s12   ;;  %p7513_p0 = scmp.ge.s32.totalorder %s11418_s12, 1  ;;  %s11418_s12 = sphi %s11441_s12, %s13_s12  }
   0x2   : > { %p137_p1 = scmp.lt.s32.totalorder %s11418_s12, 3 }
   0x4   : > { %p138_p2 = pnand %p7513_p0, %p137_p1 }
   0x5   : > { %p161_p3 = scmp.lt.s32.totalorder (!%p138_p2), %s7509_s13, 1 }
   0x6   : > { %141 = sbr.rel (%p138_p2) target bundleno = 860 (0x35c), region = 32 }
   0xb   : > { %s12851_s13 = smov (!%p161_p3, %s7509_s13), 1  ;;  %v7519_v32 = vld [vmem:[%s12846_s0] sm:$0xf]  ;;  %v10668_v33 = vld [vmem:[%s12846_s0 + $0x158] sm:$0xf0]  ;;  %v11420_v56 = vmov 0  }
   0xc   : > { %s11401_s14 = smul.u32 5516, %s12851_s13  ;;  %v7527_v35 = vld [vmem:[%s12846_s0 + $0x8] sm:$0xf]  ;;  %v10669_v36 = vld [vmem:[%s12846_s0 + $0x160] sm:$0xf0]  ;;  %v7520_v41 = vor.u32 %v10668_v33, %v7519_v32  ;;  %11411 = vset.pattern.permute.xlu0 %v11420_v56  ;;  %vm6227_vm0 = vcmask 1040384  }
   0xd   : > { %v10625_v38 = vld [vmem:[%s12846_s0 + $0x4] sm:$0xf]  ;;  %v7521_v39 = vld [vmem:[%s12846_s0 + $0x15c] sm:$0xf0]  ;;  %v7528_v43 = vor.u32 %v10669_v36, %v7527_v35  ;;  %v10626_v44 = vld [vmem:[%s12846_s0 + $0xc] sm:$0xf] }
   0xe   : > { %s11455_s17 = scalar_lea.vmem %s12847_s1, %s11401_s14  ;;  %v7529_v45 = vld [vmem:[%s12846_s0 + $0x164] sm:$0xf0]  ;;  %v7524_v47 = vor.u32 %v10625_v38, %v7521_v39  ;;  %v1639_v53 = vld [vmem:[%s12848_s2] sm:$0xff]  ;;  %vm6223_vm1 = vcmask 138240   ;;  %vm7451_vm2 = vcmask 990208  }
   0xf   : > { %v10719_v0 = vld [vmem:[%s11455_s17 + $0x38] sm:$0xff]  ;;  %v10718_v4 = vld [vmem:[%s11455_s17 + $0x30] sm:$0xff]  ;;  %v10717_v8 = vld [vmem:[%s11455_s17 + $0x28] sm:$0xff]  ;;  %v7532_v50 = vor.u32 %v10626_v44, %v7529_v45  ;;  %1643 = vperm.xlu0 %11411, %v1639_v53  }
  0x10   : > { %v10727_v1 = vld [vmem:[%s11455_s17 + $0x78] sm:$0xff]  ;;  %6233 = vmatpush.bf16.msra.mxu0 %v10719_v0  ;;  %v10726_v5 = vld [vmem:[%s11455_s17 + $0x70] sm:$0xff]  ;;  %v10725_v9 = vld [vmem:[%s11455_s17 + $0x68] sm:$0xff] }
  0x11   : > { %v10735_v2 = vld [vmem:[%s11455_s17 + $0xb8] sm:$0xff]  ;;  %6247 = vmatpush.bf16.msra.mxu1 %v10727_v1  ;;  %v10734_v6 = vld [vmem:[%s11455_s17 + $0xb0] sm:$0xff]  ;;  %v10733_v10 = vld [vmem:[%s11455_s17 + $0xa8] sm:$0xff] }
  0x12   : > { %v10743_v3 = vld [vmem:[%s11455_s17 + $0xf8] sm:$0xff]  ;;  %6261 = vmatpush.bf16.msra.mxu2 %v10735_v2  ;;  %v10742_v7 = vld [vmem:[%s11455_s17 + $0xf0] sm:$0xff]  ;;  %v10741_v11 = vld [vmem:[%s11455_s17 + $0xe8] sm:$0xff] }
  0x13   : > { %6275 = vmatpush.bf16.msra.mxu3 %v10743_v3  ;;  %v10716_v12 = vld [vmem:[%s11455_s17 + $0x20] sm:$0xff]  ;;  %v10715_v16 = vld [vmem:[%s11455_s17 + $0x18] sm:$0xff]  ;;  %v10714_v20 = vld [vmem:[%s11455_s17 + $0x10] sm:$0xff] }
  0x14   : > { %6234 = vmatpush.bf16.msra.mxu0 %v10718_v4  ;;  %v10724_v13 = vld [vmem:[%s11455_s17 + $0x60] sm:$0xff]  ;;  %v10723_v17 = vld [vmem:[%s11455_s17 + $0x58] sm:$0xff]  ;;  %v10722_v21 = vld [vmem:[%s11455_s17 + $0x50] sm:$0xff] }
  0x15   : > { %6248 = vmatpush.bf16.msra.mxu1 %v10726_v5  ;;  %v10732_v14 = vld [vmem:[%s11455_s17 + $0xa0] sm:$0xff]  ;;  %v10731_v18 = vld [vmem:[%s11455_s17 + $0x98] sm:$0xff]  ;;  %v10730_v22 = vld [vmem:[%s11455_s17 + $0x90] sm:$0xff] }
  0x16   : > { %6262 = vmatpush.bf16.msra.mxu2 %v10734_v6  ;;  %v10740_v15 = vld [vmem:[%s11455_s17 + $0xe0] sm:$0xff]  ;;  %v10739_v19 = vld [vmem:[%s11455_s17 + $0xd8] sm:$0xff]  ;;  %v10738_v23 = vld [vmem:[%s11455_s17 + $0xd0] sm:$0xff] }
  0x17   : > { %6276 = vmatpush.bf16.msra.mxu3 %v10742_v7  ;;  %v10713_v24 = vld [vmem:[%s11455_s17 + $0x8] sm:$0xff]  ;;  %v10712_v28 = vld [vmem:[%s11455_s17] sm:$0xff]  ;;  %v10751_v31 = vld [vmem:[%s11455_s17 + $0x138] sm:$0xff] }
  0x18   : > { %6235 = vmatpush.bf16.msra.mxu0 %v10717_v8  ;;  %v10721_v25 = vld [vmem:[%s11455_s17 + $0x48] sm:$0xff]  ;;  %v10720_v29 = vld [vmem:[%s11455_s17 + $0x40] sm:$0xff]  ;;  %v10759_v34 = vld [vmem:[%s11455_s17 + $0x178] sm:$0xff] }
  0x19   : > { %6249 = vmatpush.bf16.msra.mxu1 %v10725_v9  ;;  %v10729_v26 = vld [vmem:[%s11455_s17 + $0x88] sm:$0xff]  ;;  %v10728_v30 = vld [vmem:[%s11455_s17 + $0x80] sm:$0xff]  ;;  %v10767_v37 = vld [vmem:[%s11455_s17 + $0x1b8] sm:$0xff] }
  0x1a   : > { %6263 = vmatpush.bf16.msra.mxu2 %v10733_v10  ;;  %v10737_v27 = vld [vmem:[%s11455_s17 + $0xc8] sm:$0xff]  ;;  %v10736_v40 = vld [vmem:[%s11455_s17 + $0xc0] sm:$0xff]  ;;  %v10775_v42 = vld [vmem:[%s11455_s17 + $0x1f8] sm:$0xff] }
  0x1b   : > { %6277 = vmatpush.bf16.msra.mxu3 %v10741_v11  ;;  %v10750_v46 = vld [vmem:[%s11455_s17 + $0x130] sm:$0xff]  ;;  %v10749_v52 = vld [vmem:[%s11455_s17 + $0x128] sm:$0xff]  ;;  %v10748_v58 = vld [vmem:[%s11455_s17 + $0x120] sm:$0xff] }
  0x1c   : > { %6236 = vmatpush.bf16.msra.mxu0 %v10716_v12  ;;  %v10758_v48 = vld [vmem:[%s11455_s17 + $0x170] sm:$0xff]  ;;  %v10757_v54 = vld [vmem:[%s11455_s17 + $0x168] sm:$0xff]  ;;  %v10756_v59 = vld [vmem:[%s11455_s17 + $0x160] sm:$0xff] }
  0x1d   : > { %6250 = vmatpush.bf16.msra.mxu1 %v10724_v13  ;;  %v10766_v49 = vld [vmem:[%s11455_s17 + $0x1b0] sm:$0xff]  ;;  %v10765_v55 = vld [vmem:[%s11455_s17 + $0x1a8] sm:$0xff]  ;;  %v10764_v60 = vld [vmem:[%s11455_s17 + $0x1a0] sm:$0xff] }
  0x1e   : > { %6264 = vmatpush.bf16.msra.mxu2 %v10732_v14  ;;  %v10774_v51 = vld [vmem:[%s11455_s17 + $0x1f0] sm:$0xff]  ;;  %v10773_v57 = vld [vmem:[%s11455_s17 + $0x1e8] sm:$0xff]  ;;  %v10772_v61 = vld [vmem:[%s11455_s17 + $0x1e0] sm:$0xff] }
  0x1f   : > { %6278 = vmatpush.bf16.msra.mxu3 %v10740_v15  ;;  %v10747_v62 = vld [vmem:[%s11455_s17 + $0x118] sm:$0xff]  ;;  %v1640_v63 = vld [vmem:[%s12848_s2 + $0x8] sm:$0xff]  ;;  %v10746_v3 = vld [vmem:[%s11455_s17 + $0x110] sm:$0xff] }
  0x20   : > { %6237 = vmatpush.bf16.msra.mxu0 %v10715_v16  ;;  %v10755_v0 = vld [vmem:[%s11455_s17 + $0x158] sm:$0xff]  ;;  %1648 = vperm.xlu0 %11411, %v1640_v63   ;;  %v10754_v4 = vld [vmem:[%s11455_s17 + $0x150] sm:$0xff]  ;;  %v10745_v7 = vld [vmem:[%s11455_s17 + $0x108] sm:$0xff] }
  0x21   : > { %6251 = vmatpush.bf16.msra.mxu1 %v10723_v17  ;;  %v10763_v1 = vld [vmem:[%s11455_s17 + $0x198] sm:$0xff]  ;;  %v10762_v5 = vld [vmem:[%s11455_s17 + $0x190] sm:$0xff]  ;;  %v10753_v8 = vld [vmem:[%s11455_s17 + $0x148] sm:$0xff] }
  0x22   : > { %6265 = vmatpush.bf16.msra.mxu2 %v10731_v18  ;;  %v10771_v2 = vld [vmem:[%s11455_s17 + $0x1d8] sm:$0xff]  ;;  %v10770_v6 = vld [vmem:[%s11455_s17 + $0x1d0] sm:$0xff]  ;;  %v10761_v9 = vld [vmem:[%s11455_s17 + $0x188] sm:$0xff] }
  0x23   : > { %6279 = vmatpush.bf16.msra.mxu3 %v10739_v19  ;;  %v10769_v10 = vld [vmem:[%s11455_s17 + $0x1c8] sm:$0xff]  ;;  %v10744_v11 = vld [vmem:[%s11455_s17 + $0x100] sm:$0xff]  ;;  %v10783_v14 = vld [vmem:[%s11455_s17 + $0x238] sm:$0xff] }
  0x24   : > { %6238 = vmatpush.bf16.msra.mxu0 %v10714_v20  ;;  %v10752_v12 = vld [vmem:[%s11455_s17 + $0x140] sm:$0xff]  ;;  %v10791_v15 = vld [vmem:[%s11455_s17 + $0x278] sm:$0xff]  ;;  %v7535_v16 = vld [vmem:[%s12846_s0 + $0x10] sm:$0xf] }
  0x25   : > { %6252 = vmatpush.bf16.msra.mxu1 %v10722_v21  ;;  %v10760_v13 = vld [vmem:[%s11455_s17 + $0x180] sm:$0xff]  ;;  %v10670_v17 = vld [vmem:[%s12846_s0 + $0x168] sm:$0xf0]  ;;  %v7543_v18 = vld [vmem:[%s12846_s0 + $0x18] sm:$0xf] }
  0x26   : > { %6266 = vmatpush.bf16.msra.mxu2 %v10730_v22  ;;  %v10671_v19 = vld [vmem:[%s12846_s0 + $0x170] sm:$0xf0]  ;;  %v10799_v20 = vld [vmem:[%s11455_s17 + $0x2b8] sm:$0xff]  ;;  %v7537_v22 = vld [vmem:[%s12846_s0 + $0x16c] sm:$0xf0] }
  0x27   : > { %6280 = vmatpush.bf16.msra.mxu3 %v10738_v23  ;;  %v10627_v21 = vld [vmem:[%s12846_s0 + $0x14] sm:$0xf]  ;;  %v10768_v23 = vld [vmem:[%s11455_s17 + $0x1c0] sm:$0xff]  ;;  %v10781_v35 = vld [vmem:[%s11455_s17 + $0x228] sm:$0xff] }
  0x28   : > { %6239 = vmatpush.bf16.msra.mxu0 %v10713_v24  ;;  %v10628_v24 = vld [vmem:[%s12846_s0 + $0x1c] sm:$0xf]  ;;  %v10790_v32 = vld [vmem:[%s11455_s17 + $0x270] sm:$0xff]  ;;  %v10789_v36 = vld [vmem:[%s11455_s17 + $0x268] sm:$0xff] }
  0x29   : > { %6253 = vmatpush.bf16.msra.mxu1 %v10721_v25  ;;  %v7545_v25 = vld [vmem:[%s12846_s0 + $0x174] sm:$0xf0]  ;;  %v10798_v33 = vld [vmem:[%s11455_s17 + $0x2b0] sm:$0xff]  ;;  %v10805_v38 = vld [vmem:[%s11455_s17 + $0x2e8] sm:$0xff] }
  0x2a   : > { %6267 = vmatpush.bf16.msra.mxu2 %v10729_v26  ;;  %v7536_v26 = vor.u32 %v10670_v17, %v7535_v16  ;;  %v10780_v39 = vld [vmem:[%s11455_s17 + $0x220] sm:$0xff]  ;;  %v10787_v44 = vld [vmem:[%s11455_s17 + $0x258] sm:$0xff]  ;;  %v10793_v53 = vld [vmem:[%s11455_s17 + $0x288] sm:$0xff] }
  0x2b   : > { %6281 = vmatpush.bf16.msra.mxu3 %v10737_v27  ;;  %v7544_v27 = vor.u32 %v10671_v19, %v7543_v18  ;;  %v10795_v45 = vld [vmem:[%s11455_s17 + $0x298] sm:$0xff]  ;;  %v7559_v63 = vld [vmem:[%s12846_s0 + $0x28] sm:$0xf] }
  0x2c   : > { %6240 = vmatpush.bf16.msra.mxu0 %v10712_v28  ;;  %v10807_v28 = vld [vmem:[%s11455_s17 + $0x2f8] sm:$0xff]  ;;  %v10813_v16 = vld [vmem:[%s11455_s17 + $0x328] sm:$0xff] }
  0x2d   : > { %6254 = vmatpush.bf16.msra.mxu1 %v10720_v29  ;;  %v7540_v29 = vor.u32 %v10627_v21, %v7537_v22  ;;  %v10821_v17 = vld [vmem:[%s11455_s17 + $0x368] sm:$0xff]  ;;  %v10820_v21 = vld [vmem:[%s11455_s17 + $0x360] sm:$0xff] }
  0x2e   : > { %6268 = vmatpush.bf16.msra.mxu2 %v10728_v30  ;;  %v7548_v30 = vor.u32 %v10628_v24, %v7545_v25  ;;  %v10829_v18 = vld [vmem:[%s11455_s17 + $0x3a8] sm:$0xff]  ;;  %v10828_v22 = vld [vmem:[%s11455_s17 + $0x3a0] sm:$0xff]  ;;  %v10811_v24 = vld [vmem:[%s11455_s17 + $0x318] sm:$0xff] }
  0x2f   : > { %6282 = vmatpush.bf16.msra.mxu3 %v10736_v40  ;;  %6241 = vmatmul.bf16.vlgmr.msra.gmra.mxu0 %v7520_v41  ;;  %v10788_v40 = vld [vmem:[%s11455_s17 + $0x260] sm:$0xff]  ;;  %v10837_v19 = vld [vmem:[%s11455_s17 + $0x3e8] sm:$0xff]  ;;  %v10819_v25 = vld [vmem:[%s11455_s17 + $0x358] sm:$0xff] }
  0x30   : > { %6289 = vmatpush.bf16.msrb.mxu0 %v10751_v31  ;;  %6255 = vmatmul.bf16.vlgmr.msra.gmra.mxu1 %v7524_v47  ;;  %v10782_v31 = vld [vmem:[%s11455_s17 + $0x230] sm:$0xff]  ;;  %v10796_v41 = vld [vmem:[%s11455_s17 + $0x2a0] sm:$0xff] }
  0x31   : > { %6303 = vmatpush.bf16.msrb.mxu1 %v10759_v34  ;;  %6269 = vmatmul.bf16.vlgmr.msra.gmra.mxu2 %v7528_v43  ;;  %v10806_v34 = vld [vmem:[%s11455_s17 + $0x2f0] sm:$0xff]  ;;  %v10779_v43 = vld [vmem:[%s11455_s17 + $0x218] sm:$0xff] }
  0x32   : > { %6317 = vmatpush.bf16.msrb.mxu2 %v10767_v37  ;;  %6283 = vmatmul.bf16.vlgmr.msra.gmra.mxu3 %v7532_v50  ;;  %v10797_v37 = vld [vmem:[%s11455_s17 + $0x2a8] sm:$0xff]  ;;  %v10778_v47 = vld [vmem:[%s11455_s17 + $0x210] sm:$0xff] }
  0x33   : > { %6331 = vmatpush.bf16.msrb.mxu3 %v10775_v42  ;;  %v10804_v42 = vld [vmem:[%s11455_s17 + $0x2e0] sm:$0xff]  ;;  %v10802_v50 = vld [vmem:[%s11455_s17 + $0x2d0] sm:$0xff] }
  0x34   : > { %6290 = vmatpush.bf16.msrb.mxu0 %v10750_v46  ;;  %v10803_v46 = vld [vmem:[%s11455_s17 + $0x2d8] sm:$0xff] }
  0x35   : > { %6304 = vmatpush.bf16.msrb.mxu1 %v10758_v48  ;;  %v10786_v48 = vld [vmem:[%s11455_s17 + $0x250] sm:$0xff] }
  0x36   : > { %6318 = vmatpush.bf16.msrb.mxu2 %v10766_v49  ;;  %v10794_v49 = vld [vmem:[%s11455_s17 + $0x290] sm:$0xff] }
  0x37   : > { %6332 = vmatpush.bf16.msrb.mxu3 %v10774_v51  ;;  %v10777_v51 = vld [vmem:[%s11455_s17 + $0x208] sm:$0xff] }
  0x38   : > { %6291 = vmatpush.bf16.msrb.mxu0 %v10749_v52  ;;  %v10785_v52 = vld [vmem:[%s11455_s17 + $0x248] sm:$0xff] }
  0x39   : > { %6305 = vmatpush.bf16.msrb.mxu1 %v10757_v54  ;;  %v10801_v54 = vld [vmem:[%s11455_s17 + $0x2c8] sm:$0xff] }
  0x3a   : > { %6319 = vmatpush.bf16.msrb.mxu2 %v10765_v55  ;;  %v10776_v55 = vld [vmem:[%s11455_s17 + $0x200] sm:$0xff] }
  0x3b   : > { %6333 = vmatpush.bf16.msrb.mxu3 %v10773_v57  ;;  %v10784_v57 = vld [vmem:[%s11455_s17 + $0x240] sm:$0xff] }
  0x3c   : > { %6292 = vmatpush.bf16.msrb.mxu0 %v10748_v58  ;;  %v10792_v58 = vld [vmem:[%s11455_s17 + $0x280] sm:$0xff] }
  0x3d   : > { %6306 = vmatpush.bf16.msrb.mxu1 %v10756_v59  ;;  %v10815_v59 = vld [vmem:[%s11455_s17 + $0x338] sm:$0xff] }
  0x3e   : > { %6320 = vmatpush.bf16.msrb.mxu2 %v10764_v60  ;;  %v10823_v60 = vld [vmem:[%s11455_s17 + $0x378] sm:$0xff] }
  0x3f   : > { %6334 = vmatpush.bf16.msrb.mxu3 %v10772_v61  ;;  %v7551_v61 = vld [vmem:[%s12846_s0 + $0x20] sm:$0xf] }
  0x40   : > { %6293 = vmatpush.bf16.msrb.mxu0 %v10747_v62  ;;  %v10672_v62 = vld [vmem:[%s12846_s0 + $0x178] sm:$0xf0] }
  0x41   : > { %6307 = vmatpush.bf16.msrb.mxu1 %v10755_v0  ;;  %v10673_v0 = vld [vmem:[%s12846_s0 + $0x180] sm:$0xf0] }
  0x42   : > { %6321 = vmatpush.bf16.msrb.mxu2 %v10763_v1  ;;  %v10831_v1 = vld [vmem:[%s11455_s17 + $0x3b8] sm:$0xff] }
  0x43   : > { %6335 = vmatpush.bf16.msrb.mxu3 %v10771_v2  ;;  %v10629_v2 = vld [vmem:[%s12846_s0 + $0x24] sm:$0xf] }
  0x44   : > { %6294 = vmatpush.bf16.msrb.mxu0 %v10746_v3  ;;  %v7553_v3 = vld [vmem:[%s12846_s0 + $0x17c] sm:$0xf0] }
  0x45   : > { %6308 = vmatpush.bf16.msrb.mxu1 %v10754_v4  ;;  %v10800_v4 = vld [vmem:[%s11455_s17 + $0x2c0] sm:$0xff] }
  0x46   : > { %6322 = vmatpush.bf16.msrb.mxu2 %v10762_v5  ;;  %v10630_v5 = vld [vmem:[%s12846_s0 + $0x2c] sm:$0xf] }
  0x47   : > { %6336 = vmatpush.bf16.msrb.mxu3 %v10770_v6  ;;  %v7561_v6 = vld [vmem:[%s12846_s0 + $0x184] sm:$0xf0] }
  0x48   : > { %6295 = vmatpush.bf16.msrb.mxu0 %v10745_v7  ;;  %v7552_v7 = vor.u32 %v10672_v62, %v7551_v61  ;;  %v10845_v61 = vld [vmem:[%s11455_s17 + $0x428] sm:$0xff] }
  0x49   : > { %6309 = vmatpush.bf16.msrb.mxu1 %v10753_v8  ;;  %v7560_v8 = vor.u32 %v10673_v0, %v7559_v63  ;;  %v10853_v62 = vld [vmem:[%s11455_s17 + $0x468] sm:$0xff] }
  0x4a   : > { %6323 = vmatpush.bf16.msrb.mxu2 %v10761_v9  ;;  %v10839_v9 = vld [vmem:[%s11455_s17 + $0x3f8] sm:$0xff]  ;;  %v10861_v63 = vld [vmem:[%s11455_s17 + $0x4a8] sm:$0xff] }
  0x4b   : > { %6337 = vmatpush.bf16.msrb.mxu3 %v10769_v10  ;;  %v7556_v10 = vor.u32 %v10629_v2, %v7553_v3  ;;  %v10869_v0 = vld [vmem:[%s11455_s17 + $0x4e8] sm:$0xff]  ;;  %v10852_v2 = vld [vmem:[%s11455_s17 + $0x460] sm:$0xff] }
  0x4c   : > { %6296 = vmatpush.bf16.msrb.mxu0 %v10744_v11  ;;  %v7564_v11 = vor.u32 %v10630_v5, %v7561_v6  ;;  %v10860_v3 = vld [vmem:[%s11455_s17 + $0x4a0] sm:$0xff]  ;;  %v10843_v5 = vld [vmem:[%s11455_s17 + $0x418] sm:$0xff] }
  0x4d   : > { %6310 = vmatpush.bf16.msrb.mxu1 %v10752_v12  ;;  %v10814_v12 = vld [vmem:[%s11455_s17 + $0x330] sm:$0xff]  ;;  %v10851_v6 = vld [vmem:[%s11455_s17 + $0x458] sm:$0xff] }
  0x4e   : > { %6324 = vmatpush.bf16.msrb.mxu2 %v10760_v13  ;;  %v10822_v13 = vld [vmem:[%s11455_s17 + $0x370] sm:$0xff] }
  0x4f   : > { %6338 = vmatpush.bf16.msrb.mxu3 %v10768_v23  ;;  %6297 = vmatmul.bf16.vlgmr.msrb.gmra.mxu0 %v7536_v26  ;;  %v10836_v23 = vld [vmem:[%s11455_s17 + $0x3e0] sm:$0xff]  ;;  %v10827_v26 = vld [vmem:[%s11455_s17 + $0x398] sm:$0xff] }
  0x50   : > { %6345 = vmatpush.bf16.msra.mxu0 %v10783_v14  ;;  %6311 = vmatmul.bf16.vlgmr.msrb.gmra.mxu1 %v7540_v29  ;;  %v10830_v14 = vld [vmem:[%s11455_s17 + $0x3b0] sm:$0xff] }
  0x51   : > { %6359 = vmatpush.bf16.msra.mxu1 %v10791_v15  ;;  %6325 = vmatmul.bf16.vlgmr.msrb.gmra.mxu2 %v7544_v27  ;;  %v10838_v15 = vld [vmem:[%s11455_s17 + $0x3f0] sm:$0xff]  ;;  %v10835_v27 = vld [vmem:[%s11455_s17 + $0x3d8] sm:$0xff] }
  0x52   : > { %6373 = vmatpush.bf16.msra.mxu2 %v10799_v20  ;;  %6339 = vmatmul.bf16.vlgmr.msrb.gmra.mxu3 %v7548_v30  ;;  %v10812_v20 = vld [vmem:[%s11455_s17 + $0x320] sm:$0xff]  ;;  %v10818_v29 = vld [vmem:[%s11455_s17 + $0x350] sm:$0xff] }
  0x53   : > { %6387 = vmatpush.bf16.msra.mxu3 %v10807_v28  ;;  %v10810_v28 = vld [vmem:[%s11455_s17 + $0x310] sm:$0xff] }
  0x54   : > { %6346 = vmatpush.bf16.msra.mxu0 %v10782_v31  ;;  %v10826_v30 = vld [vmem:[%s11455_s17 + $0x390] sm:$0xff] }
  0x55   : > { %6360 = vmatpush.bf16.msra.mxu1 %v10790_v32  ;;  %v10834_v31 = vld [vmem:[%s11455_s17 + $0x3d0] sm:$0xff]  ;;  %v10809_v32 = vld [vmem:[%s11455_s17 + $0x308] sm:$0xff] }
  0x56   : > { %6374 = vmatpush.bf16.msra.mxu2 %v10798_v33  ;;  %v10817_v33 = vld [vmem:[%s11455_s17 + $0x348] sm:$0xff] }
  0x57   : > { %6388 = vmatpush.bf16.msra.mxu3 %v10806_v34  ;;  %v10825_v34 = vld [vmem:[%s11455_s17 + $0x388] sm:$0xff] }
  0x58   : > { %6347 = vmatpush.bf16.msra.mxu0 %v10781_v35  ;;  %v10833_v35 = vld [vmem:[%s11455_s17 + $0x3c8] sm:$0xff] }
  0x59   : > { %6361 = vmatpush.bf16.msra.mxu1 %v10789_v36  ;;  %v10808_v36 = vld [vmem:[%s11455_s17 + $0x300] sm:$0xff] }
  0x5a   : > { %6375 = vmatpush.bf16.msra.mxu2 %v10797_v37  ;;  %v10816_v37 = vld [vmem:[%s11455_s17 + $0x340] sm:$0xff] }
  0x5b   : > { %6389 = vmatpush.bf16.msra.mxu3 %v10805_v38  ;;  %v10824_v38 = vld [vmem:[%s11455_s17 + $0x380] sm:$0xff] }
  0x5c   : > { %6348 = vmatpush.bf16.msra.mxu0 %v10780_v39  ;;  %v10847_v39 = vld [vmem:[%s11455_s17 + $0x438] sm:$0xff] }
  0x5d   : > { %6362 = vmatpush.bf16.msra.mxu1 %v10788_v40  ;;  %v10855_v40 = vld [vmem:[%s11455_s17 + $0x478] sm:$0xff] }
  0x5e   : > { %6376 = vmatpush.bf16.msra.mxu2 %v10796_v41  ;;  %v7567_v41 = vld [vmem:[%s12846_s0 + $0x30] sm:$0xf] }
  0x5f   : > { %6390 = vmatpush.bf16.msra.mxu3 %v10804_v42  ;;  %v10674_v42 = vld [vmem:[%s12846_s0 + $0x188] sm:$0xf0] }
  0x60   : > { %6349 = vmatpush.bf16.msra.mxu0 %v10779_v43  ;;  %v7575_v43 = vld [vmem:[%s12846_s0 + $0x38] sm:$0xf] }
  0x61   : > { %6363 = vmatpush.bf16.msra.mxu1 %v10787_v44  ;;  %v10675_v44 = vld [vmem:[%s12846_s0 + $0x190] sm:$0xf0] }
  0x62   : > { %6377 = vmatpush.bf16.msra.mxu2 %v10795_v45  ;;  %v10863_v45 = vld [vmem:[%s11455_s17 + $0x4b8] sm:$0xff] }
  0x63   : > { %6391 = vmatpush.bf16.msra.mxu3 %v10803_v46  ;;  %v10631_v46 = vld [vmem:[%s12846_s0 + $0x34] sm:$0xf] }
  0x64   : > { %6350 = vmatpush.bf16.msra.mxu0 %v10778_v47  ;;  %v7569_v47 = vld [vmem:[%s12846_s0 + $0x18c] sm:$0xf0] }
  0x65   : > { %6364 = vmatpush.bf16.msra.mxu1 %v10786_v48  ;;  %v10832_v48 = vld [vmem:[%s11455_s17 + $0x3c0] sm:$0xff] }
  0x66   : > { %6378 = vmatpush.bf16.msra.mxu2 %v10794_v49  ;;  %v10632_v49 = vld [vmem:[%s12846_s0 + $0x3c] sm:$0xf] }
  0x67   : > { %6392 = vmatpush.bf16.msra.mxu3 %v10802_v50  ;;  %v7577_v50 = vld [vmem:[%s12846_s0 + $0x194] sm:$0xf0] }
  0x68   : > { %6351 = vmatpush.bf16.msra.mxu0 %v10777_v51  ;;  %v7568_v51 = vor.u32 %v10674_v42, %v7567_v41  ;;  %v10877_v41 = vld [vmem:[%s11455_s17 + $0x528] sm:$0xff] }
  0x69   : > { %6365 = vmatpush.bf16.msra.mxu1 %v10785_v52  ;;  %v7576_v52 = vor.u32 %v10675_v44, %v7575_v43  ;;  %v10885_v42 = vld [vmem:[%s11455_s17 + $0x568] sm:$0xff] }
  0x6a   : > { %6379 = vmatpush.bf16.msra.mxu2 %v10793_v53  ;;  %v10871_v53 = vld [vmem:[%s11455_s17 + $0x4f8] sm:$0xff]  ;;  %v10893_v43 = vld [vmem:[%s11455_s17 + $0x5a8] sm:$0xff] }
  0x6b   : > { %6393 = vmatpush.bf16.msra.mxu3 %v10801_v54  ;;  %v7572_v54 = vor.u32 %v10631_v46, %v7569_v47  ;;  %v10901_v44 = vld [vmem:[%s11455_s17 + $0x5e8] sm:$0xff]  ;;  %v10876_v47 = vld [vmem:[%s11455_s17 + $0x520] sm:$0xff] }
  0x6c   : > { %6352 = vmatpush.bf16.msra.mxu0 %v10776_v55  ;;  %v7580_v55 = vor.u32 %v10632_v49, %v7577_v50  ;;  %v10884_v49 = vld [vmem:[%s11455_s17 + $0x560] sm:$0xff] }
  0x6d   : > { %6366 = vmatpush.bf16.msra.mxu1 %v10784_v57  ;;  %v10846_v57 = vld [vmem:[%s11455_s17 + $0x430] sm:$0xff]  ;;  %v10892_v50 = vld [vmem:[%s11455_s17 + $0x5a0] sm:$0xff] }
  0x6e   : > { %6380 = vmatpush.bf16.msra.mxu2 %v10792_v58  ;;  %v10854_v58 = vld [vmem:[%s11455_s17 + $0x470] sm:$0xff] }
  0x6f   : > { %6394 = vmatpush.bf16.msra.mxu3 %v10800_v4  ;;  %6353 = vmatmul.bf16.vlgmr.msra.gmra.mxu0 %v7552_v7  ;;  %v10868_v4 = vld [vmem:[%s11455_s17 + $0x4e0] sm:$0xff]  ;;  %v10859_v7 = vld [vmem:[%s11455_s17 + $0x498] sm:$0xff] }
  0x70   : > { %6401 = vmatpush.bf16.msrb.mxu0 %v10815_v59  ;;  %6367 = vmatmul.bf16.vlgmr.msra.gmra.mxu1 %v7556_v10  ;;  %v10862_v59 = vld [vmem:[%s11455_s17 + $0x4b0] sm:$0xff] }
  0x71   : > { %6415 = vmatpush.bf16.msrb.mxu1 %v10823_v60  ;;  %6381 = vmatmul.bf16.vlgmr.msra.gmra.mxu2 %v7560_v8  ;;  %v10870_v60 = vld [vmem:[%s11455_s17 + $0x4f0] sm:$0xff]  ;;  %v10867_v8 = vld [vmem:[%s11455_s17 + $0x4d8] sm:$0xff] }
  0x72   : > { %6429 = vmatpush.bf16.msrb.mxu2 %v10831_v1  ;;  %6395 = vmatmul.bf16.vlgmr.msra.gmra.mxu3 %v7564_v11  ;;  %v10844_v1 = vld [vmem:[%s11455_s17 + $0x420] sm:$0xff]  ;;  %v10850_v10 = vld [vmem:[%s11455_s17 + $0x450] sm:$0xff] }
  0x73   : > { %6443 = vmatpush.bf16.msrb.mxu3 %v10839_v9  ;;  %v10842_v9 = vld [vmem:[%s11455_s17 + $0x410] sm:$0xff] }
  0x74   : > { %6402 = vmatpush.bf16.msrb.mxu0 %v10814_v12  ;;  %v10858_v11 = vld [vmem:[%s11455_s17 + $0x490] sm:$0xff] }
  0x75   : > { %6416 = vmatpush.bf16.msrb.mxu1 %v10822_v13  ;;  %v10866_v12 = vld [vmem:[%s11455_s17 + $0x4d0] sm:$0xff]  ;;  %v10841_v13 = vld [vmem:[%s11455_s17 + $0x408] sm:$0xff] }
  0x76   : > { %6430 = vmatpush.bf16.msrb.mxu2 %v10830_v14  ;;  %v10849_v14 = vld [vmem:[%s11455_s17 + $0x448] sm:$0xff] }
  0x77   : > { %6444 = vmatpush.bf16.msrb.mxu3 %v10838_v15  ;;  %v10857_v15 = vld [vmem:[%s11455_s17 + $0x488] sm:$0xff] }
  0x78   : > { %6403 = vmatpush.bf16.msrb.mxu0 %v10813_v16  ;;  %v10865_v16 = vld [vmem:[%s11455_s17 + $0x4c8] sm:$0xff] }
  0x79   : > { %6417 = vmatpush.bf16.msrb.mxu1 %v10821_v17  ;;  %v10840_v17 = vld [vmem:[%s11455_s17 + $0x400] sm:$0xff] }
  0x7a   : > { %6431 = vmatpush.bf16.msrb.mxu2 %v10829_v18  ;;  %v10848_v18 = vld [vmem:[%s11455_s17 + $0x440] sm:$0xff] }
  0x7b   : > { %6445 = vmatpush.bf16.msrb.mxu3 %v10837_v19  ;;  %v10856_v19 = vld [vmem:[%s11455_s17 + $0x480] sm:$0xff] }
  0x7c   : > { %6404 = vmatpush.bf16.msrb.mxu0 %v10812_v20  ;;  %v10879_v20 = vld [vmem:[%s11455_s17 + $0x538] sm:$0xff] }
  0x7d   : > { %6418 = vmatpush.bf16.msrb.mxu1 %v10820_v21  ;;  %v10887_v21 = vld [vmem:[%s11455_s17 + $0x578] sm:$0xff] }
  0x7e   : > { %6432 = vmatpush.bf16.msrb.mxu2 %v10828_v22  ;;  %v7583_v22 = vld [vmem:[%s12846_s0 + $0x40] sm:$0xf] }
  0x7f   : > { %6446 = vmatpush.bf16.msrb.mxu3 %v10836_v23  ;;  %v10676_v23 = vld [vmem:[%s12846_s0 + $0x198] sm:$0xf0] }
  0x80   : > { %6405 = vmatpush.bf16.msrb.mxu0 %v10811_v24  ;;  %v7591_v24 = vld [vmem:[%s12846_s0 + $0x48] sm:$0xf] }
  0x81   : > { %6419 = vmatpush.bf16.msrb.mxu1 %v10819_v25  ;;  %v10677_v25 = vld [vmem:[%s12846_s0 + $0x1a0] sm:$0xf0]  ;;  %v1644_v46 = vpop.permute.xlu0 %1643 }
  0x82   : > { %6433 = vmatpush.bf16.msrb.mxu2 %v10827_v26  ;;  %v10895_v26 = vld [vmem:[%s11455_s17 + $0x5b8] sm:$0xff] }
  0x83   : > { %6447 = vmatpush.bf16.msrb.mxu3 %v10835_v27  ;;  %v10633_v27 = vld [vmem:[%s12846_s0 + $0x44] sm:$0xf] }
  0x84   : > { %6406 = vmatpush.bf16.msrb.mxu0 %v10810_v28  ;;  %v7585_v28 = vld [vmem:[%s12846_s0 + $0x19c] sm:$0xf0] }
  0x85   : > { %6420 = vmatpush.bf16.msrb.mxu1 %v10818_v29  ;;  %v10864_v29 = vld [vmem:[%s11455_s17 + $0x4c0] sm:$0xff] }
  0x86   : > { %6434 = vmatpush.bf16.msrb.mxu2 %v10826_v30  ;;  %v10634_v30 = vld [vmem:[%s12846_s0 + $0x4c] sm:$0xf] }
  0x87   : > { %6448 = vmatpush.bf16.msrb.mxu3 %v10834_v31  ;;  %v7593_v31 = vld [vmem:[%s12846_s0 + $0x1a4] sm:$0xf0] }
  0x88   : > { %6407 = vmatpush.bf16.msrb.mxu0 %v10809_v32  ;;  %v7584_v32 = vor.u32 %v10676_v23, %v7583_v22  ;;  %v7609_v22 = vld [vmem:[%s12846_s0 + $0x1b4] sm:$0xf0] }
  0x89   : > { %6421 = vmatpush.bf16.msrb.mxu1 %v10817_v33  ;;  %v7592_v33 = vor.u32 %v10677_v25, %v7591_v24  ;;  %v10935_v25 = vld [vmem:[%s11455_s17 + $0x6f8] sm:$0xff] }
  0x8a   : > { %6435 = vmatpush.bf16.msrb.mxu2 %v10825_v34  ;;  %v10903_v34 = vld [vmem:[%s11455_s17 + $0x5f8] sm:$0xff] }
  0x8b   : > { %6449 = vmatpush.bf16.msrb.mxu3 %v10833_v35  ;;  %v7588_v35 = vor.u32 %v10633_v27, %v7585_v28 }
  0x8c   : > { %6408 = vmatpush.bf16.msrb.mxu0 %v10808_v36  ;;  %v7596_v36 = vor.u32 %v10634_v30, %v7593_v31  ;;  %v10918_v30 = vld [vmem:[%s11455_s17 + $0x670] sm:$0xff] }
  0x8d   : > { %6422 = vmatpush.bf16.msrb.mxu1 %v10816_v37  ;;  %v10878_v37 = vld [vmem:[%s11455_s17 + $0x530] sm:$0xff] }
  0x8e   : > { %6436 = vmatpush.bf16.msrb.mxu2 %v10824_v38  ;;  %v10886_v38 = vld [vmem:[%s11455_s17 + $0x570] sm:$0xff] }
  0x8f   : > { %6450 = vmatpush.bf16.msrb.mxu3 %v10832_v48  ;;  %6409 = vmatmul.bf16.vlgmr.msrb.gmra.mxu0 %v7568_v51  ;;  %v10926_v31 = vld [vmem:[%s11455_s17 + $0x6b0] sm:$0xff] }
  0x90   : > { %6457 = vmatpush.bf16.msra.mxu0 %v10847_v39  ;;  %6423 = vmatmul.bf16.vlgmr.msrb.gmra.mxu1 %v7572_v54  ;;  %v10894_v39 = vld [vmem:[%s11455_s17 + $0x5b0] sm:$0xff]  ;;  %v10875_v54 = vld [vmem:[%s11455_s17 + $0x518] sm:$0xff] }
  0x91   : > { %6471 = vmatpush.bf16.msra.mxu1 %v10855_v40  ;;  %6437 = vmatmul.bf16.vlgmr.msrb.gmra.mxu2 %v7576_v52  ;;  %v10902_v40 = vld [vmem:[%s11455_s17 + $0x5f0] sm:$0xff] }
  0x92   : > { %6485 = vmatpush.bf16.msra.mxu2 %v10863_v45  ;;  %6451 = vmatmul.bf16.vlgmr.msrb.gmra.mxu3 %v7580_v55  ;;  %v10883_v55 = vld [vmem:[%s11455_s17 + $0x558] sm:$0xff] }
  0x93   : > { %6499 = vmatpush.bf16.msra.mxu3 %v10871_v53  ;;  %v10900_v53 = vld [vmem:[%s11455_s17 + $0x5e0] sm:$0xff] }
  0x94   : > { %6458 = vmatpush.bf16.msra.mxu0 %v10846_v57  ;;  %v10891_v57 = vld [vmem:[%s11455_s17 + $0x598] sm:$0xff] }
  0x95   : > { %6472 = vmatpush.bf16.msra.mxu1 %v10854_v58 }
  0x96   : > { %6486 = vmatpush.bf16.msra.mxu2 %v10862_v59  ;;  %v10899_v59 = vld [vmem:[%s11455_s17 + $0x5d8] sm:$0xff] }
  0x97   : > { %6500 = vmatpush.bf16.msra.mxu3 %v10870_v60 }
  0x98   : > { %6459 = vmatpush.bf16.msra.mxu0 %v10845_v61  ;;  %v10874_v61 = vld [vmem:[%s11455_s17 + $0x510] sm:$0xff] }
  0x99   : > { %6473 = vmatpush.bf16.msra.mxu1 %v10853_v62  ;;  %v10882_v62 = vld [vmem:[%s11455_s17 + $0x550] sm:$0xff] }
  0x9a   : > { %6487 = vmatpush.bf16.msra.mxu2 %v10861_v63  ;;  %v10890_v63 = vld [vmem:[%s11455_s17 + $0x590] sm:$0xff] }
  0x9b   : > { %6501 = vmatpush.bf16.msra.mxu3 %v10869_v0 }
  0x9c   : > { %6460 = vmatpush.bf16.msra.mxu0 %v10844_v1 }
  0x9d   : > { %6474 = vmatpush.bf16.msra.mxu1 %v10852_v2  ;;  %v10898_v2 = vld [vmem:[%s11455_s17 + $0x5d0] sm:$0xff] }
  0x9e   : > { %6488 = vmatpush.bf16.msra.mxu2 %v10860_v3  ;;  %v10873_v3 = vld [vmem:[%s11455_s17 + $0x508] sm:$0xff] }
  0x9f   : > { %6502 = vmatpush.bf16.msra.mxu3 %v10868_v4  ;;  %v10881_v4 = vld [vmem:[%s11455_s17 + $0x548] sm:$0xff] }
  0xa0   : > { %6461 = vmatpush.bf16.msra.mxu0 %v10843_v5  ;;  %v10889_v5 = vld [vmem:[%s11455_s17 + $0x588] sm:$0xff] }
  0xa1   : > { %6475 = vmatpush.bf16.msra.mxu1 %v10851_v6  ;;  %v10897_v6 = vld [vmem:[%s11455_s17 + $0x5c8] sm:$0xff] }
  0xa2   : > { %6489 = vmatpush.bf16.msra.mxu2 %v10859_v7  ;;  %v10872_v7 = vld [vmem:[%s11455_s17 + $0x500] sm:$0xff] }
  0xa3   : > { %6503 = vmatpush.bf16.msra.mxu3 %v10867_v8  ;;  %v10880_v8 = vld [vmem:[%s11455_s17 + $0x540] sm:$0xff] }
  0xa4   : > { %6462 = vmatpush.bf16.msra.mxu0 %v10842_v9  ;;  %v10888_v9 = vld [vmem:[%s11455_s17 + $0x580] sm:$0xff] }
  0xa5   : > { %6476 = vmatpush.bf16.msra.mxu1 %v10850_v10  ;;  %v10911_v10 = vld [vmem:[%s11455_s17 + $0x638] sm:$0xff] }
  0xa6   : > { %6490 = vmatpush.bf16.msra.mxu2 %v10858_v11  ;;  %v10919_v11 = vld [vmem:[%s11455_s17 + $0x678] sm:$0xff] }
  0xa7   : > { %6504 = vmatpush.bf16.msra.mxu3 %v10866_v12  ;;  %v7599_v12 = vld [vmem:[%s12846_s0 + $0x50] sm:$0xf] }
  0xa8   : > { %6463 = vmatpush.bf16.msra.mxu0 %v10841_v13  ;;  %v10678_v13 = vld [vmem:[%s12846_s0 + $0x1a8] sm:$0xf0] }
  0xa9   : > { %6477 = vmatpush.bf16.msra.mxu1 %v10849_v14  ;;  %v7607_v14 = vld [vmem:[%s12846_s0 + $0x58] sm:$0xf]  ;;  %v7600_v23 = vor.u32 %v10678_v13, %v7599_v12  ;;  %v10928_v12 = vld [vmem:[%s11455_s17 + $0x6c0] sm:$0xff]  ;;  %v10638_v13 = vld [vmem:[%s12846_s0 + $0x6c] sm:$0xf] }
  0xaa   : > { %6491 = vmatpush.bf16.msra.mxu2 %v10857_v15  ;;  %v10679_v15 = vld [vmem:[%s12846_s0 + $0x1b0] sm:$0xf0] }
  0xab   : > { %6505 = vmatpush.bf16.msra.mxu3 %v10865_v16  ;;  %v10927_v16 = vld [vmem:[%s11455_s17 + $0x6b8] sm:$0xff]  ;;  %v7608_v24 = vor.u32 %v10679_v15, %v7607_v14  ;;  %v7625_v14 = vld [vmem:[%s12846_s0 + $0x1c4] sm:$0xf0] }
  0xac   : > { %6464 = vmatpush.bf16.msra.mxu0 %v10840_v17  ;;  %v6242_v45 = vpop.f32.mrf.mxu0  ;;  %v10635_v17 = vld [vmem:[%s12846_s0 + $0x54] sm:$0xf] }
  0xad   : > { %6478 = vmatpush.bf16.msra.mxu1 %v10848_v18  ;;  %v6243_v48 = vadd.f32 %v6242_v45, %v1644_v46  ;;  %v6256_v51 = vpop.f32.mrf.mxu1  ;;  %v7601_v18 = vld [vmem:[%s12846_s0 + $0x1ac] sm:$0xf0]  ;;  %v10932_v46 = vld [vmem:[%s11455_s17 + $0x6e0] sm:$0xff] }
  0xae   : > { %6492 = vmatpush.bf16.msra.mxu2 %v10856_v19  ;;  %v10896_v19 = vld [vmem:[%s11455_s17 + $0x5c0] sm:$0xff] }
  0xaf   : > { %6506 = vmatpush.bf16.msra.mxu3 %v10864_v29  ;;  %6465 = vmatmul.bf16.vlgmr.msra.gmra.mxu0 %v7584_v32  ;;  %v6257_v52 = vadd.f32 %v6256_v51, %v6243_v48  ;;  %v10910_v29 = vld [vmem:[%s11455_s17 + $0x630] sm:$0xff]  ;;  %v10915_v48 = vld [vmem:[%s11455_s17 + $0x658] sm:$0xff] }
  0xb0   : > { %6513 = vmatpush.bf16.msrb.mxu0 %v10879_v20  ;;  %6479 = vmatmul.bf16.vlgmr.msra.gmra.mxu1 %v7588_v35  ;;  %v10934_v32 = vld [vmem:[%s11455_s17 + $0x6f0] sm:$0xff]  ;;  %v10917_v35 = vld [vmem:[%s11455_s17 + $0x668] sm:$0xff] }
  0xb1   : > { %6527 = vmatpush.bf16.msrb.mxu1 %v10887_v21  ;;  %6493 = vmatmul.bf16.vlgmr.msra.gmra.mxu2 %v7592_v33  ;;  %v10636_v21 = vld [vmem:[%s12846_s0 + $0x5c] sm:$0xf] }
  0xb2   : > { %6541 = vmatpush.bf16.msrb.mxu2 %v10895_v26  ;;  %6507 = vmatmul.bf16.vlgmr.msra.gmra.mxu3 %v7596_v36  ;;  %v7604_v26 = vor.u32 %v10635_v17, %v7601_v18  ;;  %v7612_v28 = vor.u32 %v10636_v21, %v7609_v22  ;;  %v10925_v36 = vld [vmem:[%s11455_s17 + $0x6a8] sm:$0xff]  ;;  %v10967_v18 = vld [vmem:[%s11455_s17 + $0x7f8] sm:$0xff]  ;;  %v7628_v22 = vor.u32 %v10638_v13, %v7625_v14 }
  0xb3   : > { %6555 = vmatpush.bf16.msrb.mxu3 %v10903_v34  ;;  %v10909_v34 = vld [vmem:[%s11455_s17 + $0x628] sm:$0xff] }
  0xb4   : > { %6514 = vmatpush.bf16.msrb.mxu0 %v10878_v37  ;;  %v6270_v58 = vpop.f32.mrf.mxu2  ;;  %v11799_v20 = vpop.f32.mrf.mxu0 }
  0xb5   : > { %6528 = vmatpush.bf16.msrb.mxu1 %v10886_v38  ;;  %v6271_v60 = vadd.f32 %v6270_v58, %v6257_v52  ;;  %v6284_v0 = vpop.f32.mrf.mxu3  ;;  %v11808_v27 = vpop.f32.mrf.mxu1  ;;  %v10933_v38 = vld [vmem:[%s11455_s17 + $0x6e8] sm:$0xff]  ;;  %v10931_v52 = vld [vmem:[%s11455_s17 + $0x6d8] sm:$0xff]  ;;  %v10922_v58 = vld [vmem:[%s11455_s17 + $0x690] sm:$0xff] }
  0xb6   : > { %6542 = vmatpush.bf16.msrb.mxu2 %v10894_v39 }
  0xb7   : > { %6556 = vmatpush.bf16.msrb.mxu3 %v10902_v40  ;;  %v11767_v1 = vadd.f32 %v6284_v0, %v6271_v60  ;;  %v10905_v60 = vld [vmem:[%s11455_s17 + $0x608] sm:$0xff]  ;;  %v10904_v0 = vld [vmem:[%s11455_s17 + $0x600] sm:$0xff] }
  0xb8   : > { %6515 = vmatpush.bf16.msrb.mxu0 %v10877_v41  ;;  %v10908_v41 = vld [vmem:[%s11455_s17 + $0x620] sm:$0xff] }
  0xb9   : > { %6529 = vmatpush.bf16.msrb.mxu1 %v10885_v42  ;;  %v10916_v42 = vld [vmem:[%s11455_s17 + $0x660] sm:$0xff] }
  0xba   : > { %6543 = vmatpush.bf16.msrb.mxu2 %v10893_v43  ;;  %v10924_v43 = vld [vmem:[%s11455_s17 + $0x6a0] sm:$0xff] }
  0xbb   : > { %6557 = vmatpush.bf16.msrb.mxu3 %v10901_v44 }
  0xbc   : > { %6516 = vmatpush.bf16.msrb.mxu0 %v10876_v47  ;;  %v11814_v33 = vpop.f32.mrf.mxu2  ;;  %v10907_v47 = vld [vmem:[%s11455_s17 + $0x618] sm:$0xff] }
  0xbd   : > { %6530 = vmatpush.bf16.msrb.mxu1 %v10884_v49  ;;  %v11819_v37 = vpop.f32.mrf.mxu3  ;;  %v10923_v49 = vld [vmem:[%s11455_s17 + $0x698] sm:$0xff] }
  0xbe   : > { %6544 = vmatpush.bf16.msrb.mxu2 %v10892_v50 }
  0xbf   : > { %6558 = vmatpush.bf16.msrb.mxu3 %v10900_v53 }
  0xc0   : > { %6517 = vmatpush.bf16.msrb.mxu0 %v10875_v54 }
  0xc1   : > { %6531 = vmatpush.bf16.msrb.mxu1 %v10883_v55  ;;  %v10906_v55 = vld [vmem:[%s11455_s17 + $0x610] sm:$0xff] }
  0xc2   : > { %6545 = vmatpush.bf16.msrb.mxu2 %v10891_v57  ;;  %v10914_v57 = vld [vmem:[%s11455_s17 + $0x650] sm:$0xff] }
  0xc3   : > { %6559 = vmatpush.bf16.msrb.mxu3 %v10899_v59  ;;  %v10930_v59 = vld [vmem:[%s11455_s17 + $0x6d0] sm:$0xff] }
  0xc4   : > { %6518 = vmatpush.bf16.msrb.mxu0 %v10874_v61  ;;  %v10913_v61 = vld [vmem:[%s11455_s17 + $0x648] sm:$0xff] }
  0xc5   : > { %6532 = vmatpush.bf16.msrb.mxu1 %v10882_v62  ;;  %v10921_v62 = vld [vmem:[%s11455_s17 + $0x688] sm:$0xff] }
  0xc6   : > { %6546 = vmatpush.bf16.msrb.mxu2 %v10890_v63  ;;  %v10929_v63 = vld [vmem:[%s11455_s17 + $0x6c8] sm:$0xff] }
  0xc7   : > { %6560 = vmatpush.bf16.msrb.mxu3 %v10898_v2  ;;  %v10920_v2 = vld [vmem:[%s11455_s17 + $0x680] sm:$0xff] }
  0xc8   : > { %6519 = vmatpush.bf16.msrb.mxu0 %v10873_v3  ;;  %v10943_v3 = vld [vmem:[%s11455_s17 + $0x738] sm:$0xff] }
  0xc9   : > { %6533 = vmatpush.bf16.msrb.mxu1 %v10881_v4  ;;  %v10951_v4 = vld [vmem:[%s11455_s17 + $0x778] sm:$0xff] }
  0xca   : > { %6547 = vmatpush.bf16.msrb.mxu2 %v10889_v5  ;;  %v7615_v5 = vld [vmem:[%s12846_s0 + $0x60] sm:$0xf] }
  0xcb   : > { %6561 = vmatpush.bf16.msrb.mxu3 %v10897_v6  ;;  %v10680_v6 = vld [vmem:[%s12846_s0 + $0x1b8] sm:$0xf0] }
  0xcc   : > { %6520 = vmatpush.bf16.msrb.mxu0 %v10872_v7  ;;  %v6298_v39 = vpop.f32.mrf.mxu0  ;;  %v7623_v7 = vld [vmem:[%s12846_s0 + $0x68] sm:$0xf]  ;;  %v7616_v15 = vor.u32 %v10680_v6, %v7615_v5  ;;  %v10683_v5 = vld [vmem:[%s12846_s0 + $0x1d0] sm:$0xf0]  ;;  %v10991_v6 = vld [vmem:[%s11455_s17 + $0x8b8] sm:$0xff] }
  0xcd   : > { %6534 = vmatpush.bf16.msrb.mxu1 %v10880_v8  ;;  %v6299_v40 = vadd.f32 %v6298_v39, %v11767_v1  ;;  %v6312_v44 = vpop.f32.mrf.mxu1  ;;  %v10912_v1 = vld [vmem:[%s11455_s17 + $0x640] sm:$0xff] }
  0xce   : > { %6548 = vmatpush.bf16.msrb.mxu2 %v10888_v9  ;;  %v10681_v8 = vld [vmem:[%s12846_s0 + $0x1c0] sm:$0xf0]  ;;  %v10959_v9 = vld [vmem:[%s11455_s17 + $0x7b8] sm:$0xff] }
  0xcf   : > { %6562 = vmatpush.bf16.msrb.mxu3 %v10896_v19  ;;  %6521 = vmatmul.bf16.vlgmr.msrb.gmra.mxu0 %v7600_v23  ;;  %v6313_v45 = vadd.f32 %v6312_v44, %v6299_v40  ;;  %v10942_v23 = vld [vmem:[%s11455_s17 + $0x730] sm:$0xff]  ;;  %v10948_v40 = vld [vmem:[%s11455_s17 + $0x760] sm:$0xff]  ;;  %v10939_v44 = vld [vmem:[%s11455_s17 + $0x718] sm:$0xff] }
  0xd0   : > { %6569 = vmatpush.bf16.msra.mxu0 %v10911_v10  ;;  %6535 = vmatmul.bf16.vlgmr.msrb.gmra.mxu1 %v7604_v26  ;;  %v10637_v10 = vld [vmem:[%s12846_s0 + $0x64] sm:$0xf]  ;;  %v10966_v26 = vld [vmem:[%s11455_s17 + $0x7f0] sm:$0xff] }
  0xd1   : > { %6583 = vmatpush.bf16.msra.mxu1 %v10919_v11  ;;  %6549 = vmatmul.bf16.vlgmr.msrb.gmra.mxu2 %v7608_v24  ;;  %v7617_v11 = vld [vmem:[%s12846_s0 + $0x1bc] sm:$0xf0]  ;;  %v10950_v24 = vld [vmem:[%s11455_s17 + $0x770] sm:$0xff] }
  0xd2   : > { %6597 = vmatpush.bf16.msra.mxu2 %v10927_v16  ;;  %6563 = vmatmul.bf16.vlgmr.msrb.gmra.mxu3 %v7612_v28  ;;  %v7624_v16 = vor.u32 %v10681_v8, %v7623_v7  ;;  %v7620_v19 = vor.u32 %v10637_v10, %v7617_v11  ;;  %v10941_v28 = vld [vmem:[%s11455_s17 + $0x728] sm:$0xff]  ;;  %v10639_v7 = vld [vmem:[%s12846_s0 + $0x74] sm:$0xf]  ;;  %v7633_v8 = vld [vmem:[%s12846_s0 + $0x1cc] sm:$0xf0] }
  0xd3   : > { %6611 = vmatpush.bf16.msra.mxu3 %v10935_v25  ;;  %v10958_v25 = vld [vmem:[%s11455_s17 + $0x7b0] sm:$0xff]  ;;  %v10640_v10 = vld [vmem:[%s12846_s0 + $0x7c] sm:$0xf]  ;;  %v7641_v11 = vld [vmem:[%s12846_s0 + $0x1d4] sm:$0xf0] }
  0xd4   : > { %6570 = vmatpush.bf16.msra.mxu0 %v10910_v29  ;;  %v6326_v50 = vpop.f32.mrf.mxu2  ;;  %v11872_v17 = vpop.f32.mrf.mxu0 }
  0xd5   : > { %6584 = vmatpush.bf16.msra.mxu1 %v10918_v30  ;;  %v6327_v51 = vadd.f32 %v6326_v50, %v6313_v45  ;;  %v6340_v53 = vpop.f32.mrf.mxu3  ;;  %v11875_v21 = vpop.f32.mrf.mxu1  ;;  %v10949_v30 = vld [vmem:[%s11455_s17 + $0x768] sm:$0xff]  ;;  %v10947_v45 = vld [vmem:[%s11455_s17 + $0x758] sm:$0xff] }
  0xd6   : > { %6598 = vmatpush.bf16.msra.mxu2 %v10926_v31  ;;  %v10957_v31 = vld [vmem:[%s11455_s17 + $0x7a8] sm:$0xff] }
  0xd7   : > { %6612 = vmatpush.bf16.msra.mxu3 %v10934_v32  ;;  %v11831_v54 = vadd.f32 %v6340_v53, %v6327_v51  ;;  %v10946_v53 = vld [vmem:[%s11455_s17 + $0x750] sm:$0xff] }
  0xd8   : > { %6571 = vmatpush.bf16.msra.mxu0 %v10909_v34  ;;  %v10965_v34 = vld [vmem:[%s11455_s17 + $0x7e8] sm:$0xff] }
  0xd9   : > { %6585 = vmatpush.bf16.msra.mxu1 %v10917_v35 }
  0xda   : > { %6599 = vmatpush.bf16.msra.mxu2 %v10925_v36 }
  0xdb   : > { %6613 = vmatpush.bf16.msra.mxu3 %v10933_v38  ;;  %v10940_v38 = vld [vmem:[%s11455_s17 + $0x720] sm:$0xff] }
  0xdc   : > { %6572 = vmatpush.bf16.msra.mxu0 %v10908_v41  ;;  %v11882_v29 = vpop.f32.mrf.mxu2  ;;  %v10956_v41 = vld [vmem:[%s11455_s17 + $0x7a0] sm:$0xff] }
  0xdd   : > { %6586 = vmatpush.bf16.msra.mxu1 %v10916_v42  ;;  %v11886_v32 = vpop.f32.mrf.mxu3 }
  0xde   : > { %6600 = vmatpush.bf16.msra.mxu2 %v10924_v43  ;;  %v10964_v43 = vld [vmem:[%s11455_s17 + $0x7e0] sm:$0xff] }
  0xdf   : > { %6614 = vmatpush.bf16.msra.mxu3 %v10932_v46  ;;  %v10955_v46 = vld [vmem:[%s11455_s17 + $0x798] sm:$0xff] }
  0xe0   : > { %6573 = vmatpush.bf16.msra.mxu0 %v10907_v47 }
  0xe1   : > { %6587 = vmatpush.bf16.msra.mxu1 %v10915_v48 }
  0xe2   : > { %6601 = vmatpush.bf16.msra.mxu2 %v10923_v49  ;;  %v10963_v49 = vld [vmem:[%s11455_s17 + $0x7d8] sm:$0xff] }
  0xe3   : > { %6615 = vmatpush.bf16.msra.mxu3 %v10931_v52  ;;  %v10938_v52 = vld [vmem:[%s11455_s17 + $0x710] sm:$0xff] }
  0xe4   : > { %6574 = vmatpush.bf16.msra.mxu0 %v10906_v55  ;;  %v10962_v55 = vld [vmem:[%s11455_s17 + $0x7d0] sm:$0xff] }
  0xe5   : > { %6588 = vmatpush.bf16.msra.mxu1 %v10914_v57  ;;  %v10937_v57 = vld [vmem:[%s11455_s17 + $0x708] sm:$0xff] }
  0xe6   : > { %6602 = vmatpush.bf16.msra.mxu2 %v10922_v58  ;;  %v10945_v58 = vld [vmem:[%s11455_s17 + $0x748] sm:$0xff] }
  0xe7   : > { %6616 = vmatpush.bf16.msra.mxu3 %v10930_v59  ;;  %v10953_v59 = vld [vmem:[%s11455_s17 + $0x788] sm:$0xff] }
  0xe8   : > { %6575 = vmatpush.bf16.msra.mxu0 %v10905_v60  ;;  %v10961_v60 = vld [vmem:[%s11455_s17 + $0x7c8] sm:$0xff] }
  0xe9   : > { %6589 = vmatpush.bf16.msra.mxu1 %v10913_v61  ;;  %v10936_v61 = vld [vmem:[%s11455_s17 + $0x700] sm:$0xff] }
  0xea   : > { %6603 = vmatpush.bf16.msra.mxu2 %v10921_v62  ;;  %v10944_v62 = vld [vmem:[%s11455_s17 + $0x740] sm:$0xff] }
  0xeb   : > { %6617 = vmatpush.bf16.msra.mxu3 %v10929_v63  ;;  %v10952_v63 = vld [vmem:[%s11455_s17 + $0x780] sm:$0xff] }
  0xec   : > { %6576 = vmatpush.bf16.msra.mxu0 %v10904_v0  ;;  %v6354_v35 = vpop.f32.mrf.mxu0  ;;  %v10975_v0 = vld [vmem:[%s11455_s17 + $0x838] sm:$0xff] }
  0xed   : > { %6590 = vmatpush.bf16.msra.mxu1 %v10912_v1  ;;  %v6355_v36 = vadd.f32 %v6354_v35, %v11831_v54  ;;  %v6368_v39 = vpop.f32.mrf.mxu1  ;;  %v10954_v54 = vld [vmem:[%s11455_s17 + $0x790] sm:$0xff]  ;;  %v10983_v1 = vld [vmem:[%s11455_s17 + $0x878] sm:$0xff]  ;;  %v10997_v35 = vld [vmem:[%s11455_s17 + $0x8e8] sm:$0xff] }
  0xee   : > { %6604 = vmatpush.bf16.msra.mxu2 %v10920_v2  ;;  %v7631_v2 = vld [vmem:[%s12846_s0 + $0x70] sm:$0xf] }
  0xef   : > { %6618 = vmatpush.bf16.msra.mxu3 %v10928_v12  ;;  %6577 = vmatmul.bf16.vlgmr.msra.gmra.mxu0 %v7616_v15  ;;  %v6369_v42 = vadd.f32 %v6368_v39, %v6355_v36  ;;  %v10999_v15 = vld [vmem:[%s11455_s17 + $0x8f8] sm:$0xff]  ;;  %v10972_v39 = vld [vmem:[%s11455_s17 + $0x820] sm:$0xff] }
  0xf0   : > { %6625 = vmatpush.bf16.msrb.mxu0 %v10943_v3  ;;  %6591 = vmatmul.bf16.vlgmr.msra.gmra.mxu1 %v7620_v19  ;;  %v10682_v3 = vld [vmem:[%s12846_s0 + $0x1c8] sm:$0xf0]  ;;  %v7644_v19 = vor.u32 %v10640_v10, %v7641_v11  ;;  %v10992_v10 = vld [vmem:[%s11455_s17 + $0x8c0] sm:$0xff] }
  0xf1   : > { %6639 = vmatpush.bf16.msrb.mxu1 %v10951_v4  ;;  %6605 = vmatmul.bf16.vlgmr.msra.gmra.mxu2 %v7624_v16  ;;  %v7639_v4 = vld [vmem:[%s12846_s0 + $0x78] sm:$0xf]  ;;  %v7632_v12 = vor.u32 %v10682_v3, %v7631_v2  ;;  %v7636_v16 = vor.u32 %v10639_v7, %v7633_v8  ;;  %v7647_v3 = vld [vmem:[%s12846_s0 + $0x80] sm:$0xf]  ;;  %v10641_v8 = vld [vmem:[%s12846_s0 + $0x84] sm:$0xf] }
  0xf2   : > { %6653 = vmatpush.bf16.msrb.mxu2 %v10959_v9  ;;  %6619 = vmatmul.bf16.vlgmr.msra.gmra.mxu3 %v7628_v22  ;;  %v10960_v9 = vld [vmem:[%s11455_s17 + $0x7c0] sm:$0xff]  ;;  %v7640_v13 = vor.u32 %v10683_v5, %v7639_v4  ;;  %v10974_v22 = vld [vmem:[%s11455_s17 + $0x830] sm:$0xff]  ;;  %v11015_v2 = vld [vmem:[%s11455_s17 + $0x978] sm:$0xff] }
  0xf3   : > { %6667 = vmatpush.bf16.msrb.mxu3 %v10967_v18  ;;  %v10684_v4 = vld [vmem:[%s12846_s0 + $0x1d8] sm:$0xf0]  ;;  %v7655_v5 = vld [vmem:[%s12846_s0 + $0x88] sm:$0xf]  ;;  %v10642_v11 = vld [vmem:[%s12846_s0 + $0x8c] sm:$0xf] }
  0xf4   : > { %6626 = vmatpush.bf16.msrb.mxu0 %v10942_v23  ;;  %v6382_v47 = vpop.f32.mrf.mxu2  ;;  %v11939_v14 = vpop.f32.mrf.mxu0  ;;  %v10982_v23 = vld [vmem:[%s11455_s17 + $0x870] sm:$0xff]  ;;  %v11023_v7 = vld [vmem:[%s11455_s17 + $0x9b8] sm:$0xff] }
  0xf5   : > { %6640 = vmatpush.bf16.msrb.mxu1 %v10950_v24  ;;  %v6383_v48 = vadd.f32 %v6382_v47, %v6369_v42  ;;  %v6396_v50 = vpop.f32.mrf.mxu3  ;;  %v11942_v18 = vpop.f32.mrf.mxu1  ;;  %v10990_v24 = vld [vmem:[%s11455_s17 + $0x8b0] sm:$0xff]  ;;  %v10988_v42 = vld [vmem:[%s11455_s17 + $0x8a0] sm:$0xff]  ;;  %v10987_v47 = vld [vmem:[%s11455_s17 + $0x898] sm:$0xff] }
  0xf6   : > { %6654 = vmatpush.bf16.msrb.mxu2 %v10958_v25  ;;  %v10998_v25 = vld [vmem:[%s11455_s17 + $0x8f0] sm:$0xff] }
  0xf7   : > { %6668 = vmatpush.bf16.msrb.mxu3 %v10966_v26  ;;  %v11898_v51 = vadd.f32 %v6396_v50, %v6383_v48  ;;  %v10973_v26 = vld [vmem:[%s11455_s17 + $0x828] sm:$0xff]  ;;  %v10995_v50 = vld [vmem:[%s11455_s17 + $0x8d8] sm:$0xff] }
  0xf8   : > { %6627 = vmatpush.bf16.msrb.mxu0 %v10941_v28 }
  0xf9   : > { %6641 = vmatpush.bf16.msrb.mxu1 %v10949_v30  ;;  %v10981_v30 = vld [vmem:[%s11455_s17 + $0x868] sm:$0xff] }
  0xfa   : > { %6655 = vmatpush.bf16.msrb.mxu2 %v10957_v31  ;;  %v10989_v31 = vld [vmem:[%s11455_s17 + $0x8a8] sm:$0xff] }
  0xfb   : > { %6669 = vmatpush.bf16.msrb.mxu3 %v10965_v34 }
  0xfc   : > { %6628 = vmatpush.bf16.msrb.mxu0 %v10940_v38  ;;  %v11949_v28 = vpop.f32.mrf.mxu2 }
  0xfd   : > { %6642 = vmatpush.bf16.msrb.mxu1 %v10948_v40  ;;  %v11953_v34 = vpop.f32.mrf.mxu3 }
  0xfe   : > { %6656 = vmatpush.bf16.msrb.mxu2 %v10956_v41  ;;  %v10980_v41 = vld [vmem:[%s11455_s17 + $0x860] sm:$0xff] }
  0xff   : > { %6670 = vmatpush.bf16.msrb.mxu3 %v10964_v43 }
 0x100   : > { %6629 = vmatpush.bf16.msrb.mxu0 %v10939_v44  ;;  %v10996_v44 = vld [vmem:[%s11455_s17 + $0x8e0] sm:$0xff] }
 0x101   : > { %6643 = vmatpush.bf16.msrb.mxu1 %v10947_v45  ;;  %v10971_v45 = vld [vmem:[%s11455_s17 + $0x818] sm:$0xff] }
 0x102   : > { %6657 = vmatpush.bf16.msrb.mxu2 %v10955_v46  ;;  %v10979_v46 = vld [vmem:[%s11455_s17 + $0x858] sm:$0xff] }
 0x103   : > { %6671 = vmatpush.bf16.msrb.mxu3 %v10963_v49 }
 0x104   : > { %6630 = vmatpush.bf16.msrb.mxu0 %v10938_v52 }
 0x105   : > { %6644 = vmatpush.bf16.msrb.mxu1 %v10946_v53  ;;  %v10970_v53 = vld [vmem:[%s11455_s17 + $0x810] sm:$0xff] }
 0x106   : > { %6658 = vmatpush.bf16.msrb.mxu2 %v10954_v54  ;;  %v10978_v54 = vld [vmem:[%s11455_s17 + $0x850] sm:$0xff] }
 0x107   : > { %6672 = vmatpush.bf16.msrb.mxu3 %v10962_v55  ;;  %v10986_v55 = vld [vmem:[%s11455_s17 + $0x890] sm:$0xff] }
 0x108   : > { %6631 = vmatpush.bf16.msrb.mxu0 %v10937_v57  ;;  %v10994_v57 = vld [vmem:[%s11455_s17 + $0x8d0] sm:$0xff] }
 0x109   : > { %6645 = vmatpush.bf16.msrb.mxu1 %v10945_v58  ;;  %v10969_v58 = vld [vmem:[%s11455_s17 + $0x808] sm:$0xff] }
 0x10a   : > { %6659 = vmatpush.bf16.msrb.mxu2 %v10953_v59  ;;  %v10977_v59 = vld [vmem:[%s11455_s17 + $0x848] sm:$0xff] }
 0x10b   : > { %6673 = vmatpush.bf16.msrb.mxu3 %v10961_v60  ;;  %v10985_v60 = vld [vmem:[%s11455_s17 + $0x888] sm:$0xff] }
 0x10c   : > { %6632 = vmatpush.bf16.msrb.mxu0 %v10936_v61  ;;  %v6410_v36 = vpop.f32.mrf.mxu0  ;;  %v10993_v61 = vld [vmem:[%s11455_s17 + $0x8c8] sm:$0xff] }
 0x10d   : > { %6646 = vmatpush.bf16.msrb.mxu1 %v10944_v62  ;;  %v6411_v38 = vadd.f32 %v6410_v36, %v11898_v51  ;;  %v6424_v40 = vpop.f32.mrf.mxu1  ;;  %v10968_v62 = vld [vmem:[%s11455_s17 + $0x800] sm:$0xff] }
 0x10e   : > { %6660 = vmatpush.bf16.msrb.mxu2 %v10952_v63  ;;  %v10976_v63 = vld [vmem:[%s11455_s17 + $0x840] sm:$0xff] }
 0x10f   : > { %6674 = vmatpush.bf16.msrb.mxu3 %v10960_v9  ;;  %6633 = vmatmul.bf16.vlgmr.msrb.gmra.mxu0 %v7632_v12  ;;  %v6425_v43 = vadd.f32 %v6424_v40, %v6411_v38  ;;  %v7649_v9 = vld [vmem:[%s12846_s0 + $0x1dc] sm:$0xf0]  ;;  %v7657_v12 = vld [vmem:[%s12846_s0 + $0x1e4] sm:$0xf0] }
 0x110   : > { %6681 = vmatpush.bf16.msra.mxu0 %v10975_v0  ;;  %6647 = vmatmul.bf16.vlgmr.msrb.gmra.mxu1 %v7636_v16  ;;  %v10984_v0 = vld [vmem:[%s11455_s17 + $0x880] sm:$0xff]  ;;  %v11013_v38 = vld [vmem:[%s11455_s17 + $0x968] sm:$0xff] }
 0x111   : > { %6695 = vmatpush.bf16.msra.mxu1 %v10983_v1  ;;  %6661 = vmatmul.bf16.vlgmr.msrb.gmra.mxu2 %v7640_v13  ;;  %v11007_v1 = vld [vmem:[%s11455_s17 + $0x938] sm:$0xff]  ;;  %v7648_v13 = vor.u32 %v10684_v4, %v7647_v3  ;;  %v11000_v3 = vld [vmem:[%s11455_s17 + $0x900] sm:$0xff] }
 0x112   : > { %6709 = vmatpush.bf16.msra.mxu2 %v10991_v6  ;;  %6675 = vmatmul.bf16.vlgmr.msrb.gmra.mxu3 %v7644_v19  ;;  %v10685_v6 = vld [vmem:[%s12846_s0 + $0x1e0] sm:$0xf0]  ;;  %v11031_v19 = vld [vmem:[%s11455_s17 + $0x9f8] sm:$0xff] }
 0x113   : > { %6723 = vmatpush.bf16.msra.mxu3 %v10999_v15  ;;  %v7656_v15 = vor.u32 %v10685_v6, %v7655_v5  ;;  %v11008_v4 = vld [vmem:[%s11455_s17 + $0x940] sm:$0xff]  ;;  %v11039_v6 = vld [vmem:[%s11455_s17 + $0xa38] sm:$0xff] }
 0x114   : > { %6682 = vmatpush.bf16.msra.mxu0 %v10974_v22  ;;  %v6438_v48 = vpop.f32.mrf.mxu2  ;;  %v12006_v16 = vpop.f32.mrf.mxu0  ;;  %v7652_v22 = vor.u32 %v10641_v8, %v7649_v9  ;;  %v11016_v5 = vld [vmem:[%s11455_s17 + $0x980] sm:$0xff]  ;;  %v7663_v8 = vld [vmem:[%s12846_s0 + $0x90] sm:$0xf]  ;;  %v10686_v9 = vld [vmem:[%s12846_s0 + $0x1e8] sm:$0xf0] }
 0x115   : > { %6696 = vmatpush.bf16.msra.mxu1 %v10982_v23  ;;  %v6439_v49 = vadd.f32 %v6438_v48, %v6425_v43  ;;  %v6452_v51 = vpop.f32.mrf.mxu3  ;;  %v12009_v23 = vpop.f32.mrf.mxu1 }
 0x116   : > { %6710 = vmatpush.bf16.msra.mxu2 %v10990_v24  ;;  %v7660_v24 = vor.u32 %v10642_v11, %v7657_v12  ;;  %v10687_v11 = vld [vmem:[%s12846_s0 + $0x1f0] sm:$0xf0]  ;;  %v11055_v12 = vld [vmem:[%s11455_s17 + $0xab8] sm:$0xff] }
 0x117   : > { %6724 = vmatpush.bf16.msra.mxu3 %v10998_v25  ;;  %v11965_v52 = vadd.f32 %v6452_v51, %v6439_v49  ;;  %v11006_v25 = vld [vmem:[%s11455_s17 + $0x930] sm:$0xff]  ;;  %v11028_v49 = vld [vmem:[%s11455_s17 + $0x9e0] sm:$0xff]  ;;  %v11011_v51 = vld [vmem:[%s11455_s17 + $0x958] sm:$0xff] }
 0x118   : > { %6683 = vmatpush.bf16.msra.mxu0 %v10973_v26  ;;  %v11014_v26 = vld [vmem:[%s11455_s17 + $0x970] sm:$0xff] }
 0x119   : > { %6697 = vmatpush.bf16.msra.mxu1 %v10981_v30  ;;  %v11022_v30 = vld [vmem:[%s11455_s17 + $0x9b0] sm:$0xff] }
 0x11a   : > { %6711 = vmatpush.bf16.msra.mxu2 %v10989_v31  ;;  %v11030_v31 = vld [vmem:[%s11455_s17 + $0x9f0] sm:$0xff] }
 0x11b   : > { %6725 = vmatpush.bf16.msra.mxu3 %v10997_v35  ;;  %v11005_v35 = vld [vmem:[%s11455_s17 + $0x928] sm:$0xff] }
 0x11c   : > { %6684 = vmatpush.bf16.msra.mxu0 %v10972_v39  ;;  %v12016_v36 = vpop.f32.mrf.mxu2  ;;  %v11021_v39 = vld [vmem:[%s11455_s17 + $0x9a8] sm:$0xff] }
 0x11d   : > { %6698 = vmatpush.bf16.msra.mxu1 %v10980_v41  ;;  %v12020_v40 = vpop.f32.mrf.mxu3  ;;  %v11029_v41 = vld [vmem:[%s11455_s17 + $0x9e8] sm:$0xff] }
 0x11e   : > { %6712 = vmatpush.bf16.msra.mxu2 %v10988_v42 }
 0x11f   : > { %6726 = vmatpush.bf16.msra.mxu3 %v10996_v44  ;;  %v11004_v44 = vld [vmem:[%s11455_s17 + $0x920] sm:$0xff] }
 0x120   : > { %6685 = vmatpush.bf16.msra.mxu0 %v10971_v45 }
 0x121   : > { %6699 = vmatpush.bf16.msra.mxu1 %v10979_v46  ;;  %v11012_v46 = vld [vmem:[%s11455_s17 + $0x960] sm:$0xff] }
 0x122   : > { %6713 = vmatpush.bf16.msra.mxu2 %v10987_v47  ;;  %v11020_v47 = vld [vmem:[%s11455_s17 + $0x9a0] sm:$0xff] }
 0x123   : > { %6727 = vmatpush.bf16.msra.mxu3 %v10995_v50  ;;  %v11003_v50 = vld [vmem:[%s11455_s17 + $0x918] sm:$0xff] }
 0x124   : > { %6686 = vmatpush.bf16.msra.mxu0 %v10970_v53 }
 0x125   : > { %6700 = vmatpush.bf16.msra.mxu1 %v10978_v54 }
 0x126   : > { %6714 = vmatpush.bf16.msra.mxu2 %v10986_v55  ;;  %v11027_v55 = vld [vmem:[%s11455_s17 + $0x9d8] sm:$0xff] }
 0x127   : > { %6728 = vmatpush.bf16.msra.mxu3 %v10994_v57 }
 0x128   : > { %6687 = vmatpush.bf16.msra.mxu0 %v10969_v58 }
 0x129   : > { %6701 = vmatpush.bf16.msra.mxu1 %v10977_v59  ;;  %v11002_v59 = vld [vmem:[%s11455_s17 + $0x910] sm:$0xff] }
 0x12a   : > { %6715 = vmatpush.bf16.msra.mxu2 %v10985_v60  ;;  %v11010_v60 = vld [vmem:[%s11455_s17 + $0x950] sm:$0xff] }
 0x12b   : > { %6729 = vmatpush.bf16.msra.mxu3 %v10993_v61  ;;  %v11018_v61 = vld [vmem:[%s11455_s17 + $0x990] sm:$0xff] }
 0x12c   : > { %6688 = vmatpush.bf16.msra.mxu0 %v10968_v62  ;;  %v6466_v42 = vpop.f32.mrf.mxu0  ;;  %v11026_v62 = vld [vmem:[%s11455_s17 + $0x9d0] sm:$0xff] }
 0x12d   : > { %6702 = vmatpush.bf16.msra.mxu1 %v10976_v63  ;;  %v6467_v43 = vadd.f32 %v6466_v42, %v11965_v52  ;;  %v6480_v45 = vpop.f32.mrf.mxu1  ;;  %v11019_v52 = vld [vmem:[%s11455_s17 + $0x998] sm:$0xff]  ;;  %v11001_v63 = vld [vmem:[%s11455_s17 + $0x908] sm:$0xff]  ;;  %v11046_v42 = vld [vmem:[%s11455_s17 + $0xa70] sm:$0xff] }
 0x12e   : > { %6716 = vmatpush.bf16.msra.mxu2 %v10984_v0  ;;  %v11009_v0 = vld [vmem:[%s11455_s17 + $0x948] sm:$0xff] }
 0x12f   : > { %6730 = vmatpush.bf16.msra.mxu3 %v10992_v10  ;;  %6689 = vmatmul.bf16.vlgmr.msra.gmra.mxu0 %v7648_v13  ;;  %v6481_v48 = vadd.f32 %v6480_v45, %v6467_v43  ;;  %v7671_v10 = vld [vmem:[%s12846_s0 + $0x98] sm:$0xf]  ;;  %v10643_v13 = vld [vmem:[%s12846_s0 + $0x94] sm:$0xf]  ;;  %v11037_v45 = vld [vmem:[%s11455_s17 + $0xa28] sm:$0xff] }
 0x130   : > { %6737 = vmatpush.bf16.msrb.mxu0 %v11007_v1  ;;  %6703 = vmatmul.bf16.vlgmr.msra.gmra.mxu1 %v7652_v22  ;;  %v11017_v1 = vld [vmem:[%s11455_s17 + $0x988] sm:$0xff]  ;;  %v10644_v22 = vld [vmem:[%s12846_s0 + $0x9c] sm:$0xf]  ;;  %v11054_v43 = vld [vmem:[%s11455_s17 + $0xab0] sm:$0xff] }
 0x131   : > { %6751 = vmatpush.bf16.msrb.mxu1 %v11015_v2  ;;  %6717 = vmatmul.bf16.vlgmr.msra.gmra.mxu2 %v7656_v15  ;;  %v11025_v2 = vld [vmem:[%s11455_s17 + $0x9c8] sm:$0xff]  ;;  %v7665_v15 = vld [vmem:[%s12846_s0 + $0x1ec] sm:$0xf0] }
 0x132   : > { %6765 = vmatpush.bf16.msrb.mxu2 %v11023_v7  ;;  %6731 = vmatmul.bf16.vlgmr.msra.gmra.mxu3 %v7660_v24  ;;  %v11047_v7 = vld [vmem:[%s11455_s17 + $0xa78] sm:$0xff] }
 0x133   : > { %6779 = vmatpush.bf16.msrb.mxu3 %v11031_v19  ;;  %v11024_v19 = vld [vmem:[%s11455_s17 + $0x9c0] sm:$0xff]  ;;  %v7673_v24 = vld [vmem:[%s12846_s0 + $0x1f4] sm:$0xf0] }
 0x134   : > { %6738 = vmatpush.bf16.msrb.mxu0 %v11006_v25  ;;  %v6494_v53 = vpop.f32.mrf.mxu2  ;;  %v7664_v25 = vor.u32 %v10686_v9, %v7663_v8  ;;  %v11033_v8 = vld [vmem:[%s11455_s17 + $0xa08] sm:$0xff] }
 0x135   : > { %6752 = vmatpush.bf16.msrb.mxu1 %v11014_v26  ;;  %v6495_v54 = vadd.f32 %v6494_v53, %v6481_v48  ;;  %v6508_v57 = vpop.f32.mrf.mxu3  ;;  %v7672_v26 = vor.u32 %v10687_v11, %v7671_v10  ;;  %v11053_v48 = vld [vmem:[%s11455_s17 + $0xaa8] sm:$0xff]  ;;  %v11036_v53 = vld [vmem:[%s11455_s17 + $0xa20] sm:$0xff] }
 0x136   : > { %6766 = vmatpush.bf16.msrb.mxu2 %v11022_v30  ;;  %v12073_v30 = vpop.f32.mrf.mxu0  ;;  %v11041_v9 = vld [vmem:[%s11455_s17 + $0xa48] sm:$0xff] }
 0x137   : > { %6780 = vmatpush.bf16.msrb.mxu3 %v11030_v31  ;;  %v12032_v58 = vadd.f32 %v6508_v57, %v6495_v54  ;;  %v11063_v31 = vld [vmem:[%s11455_s17 + $0xaf8] sm:$0xff]  ;;  %v11052_v57 = vld [vmem:[%s11455_s17 + $0xaa0] sm:$0xff]  ;;  %v11049_v10 = vld [vmem:[%s11455_s17 + $0xa88] sm:$0xff] }
 0x138   : > { %6739 = vmatpush.bf16.msrb.mxu0 %v11005_v35  ;;  %v7668_v35 = vor.u32 %v10643_v13, %v7665_v15  ;;  %v11057_v11 = vld [vmem:[%s11455_s17 + $0xac8] sm:$0xff]  ;;  %v11040_v13 = vld [vmem:[%s11455_s17 + $0xa40] sm:$0xff] }
 0x139   : > { %6753 = vmatpush.bf16.msrb.mxu1 %v11013_v38  ;;  %v12076_v38 = vpop.f32.mrf.mxu1  ;;  %v11048_v15 = vld [vmem:[%s11455_s17 + $0xa80] sm:$0xff] }
 0x13a   : > { %6767 = vmatpush.bf16.msrb.mxu2 %v11021_v39  ;;  %v7676_v39 = vor.u32 %v10644_v22, %v7673_v24  ;;  %v11079_v22 = vld [vmem:[%s11455_s17 + $0xb78] sm:$0xff]  ;;  %v7679_v24 = vld [vmem:[%s12846_s0 + $0xa0] sm:$0xf] }
 0x13b   : > { %6781 = vmatpush.bf16.msrb.mxu3 %v11029_v41  ;;  %v11038_v41 = vld [vmem:[%s11455_s17 + $0xa30] sm:$0xff] }
 0x13c   : > { %6740 = vmatpush.bf16.msrb.mxu0 %v11004_v44  ;;  %v11062_v44 = vld [vmem:[%s11455_s17 + $0xaf0] sm:$0xff] }
 0x13d   : > { %6754 = vmatpush.bf16.msrb.mxu1 %v11012_v46  ;;  %v12083_v46 = vpop.f32.mrf.mxu2 }
 0x13e   : > { %6768 = vmatpush.bf16.msrb.mxu2 %v11020_v47  ;;  %v11045_v47 = vld [vmem:[%s11455_s17 + $0xa68] sm:$0xff] }
 0x13f   : > { %6782 = vmatpush.bf16.msrb.mxu3 %v11028_v49  ;;  %v12087_v49 = vpop.f32.mrf.mxu3 }
 0x140   : > { %6741 = vmatpush.bf16.msrb.mxu0 %v11003_v50  ;;  %v11061_v50 = vld [vmem:[%s11455_s17 + $0xae8] sm:$0xff] }
 0x141   : > { %6755 = vmatpush.bf16.msrb.mxu1 %v11011_v51 }
 0x142   : > { %6769 = vmatpush.bf16.msrb.mxu2 %v11019_v52 }
 0x143   : > { %6783 = vmatpush.bf16.msrb.mxu3 %v11027_v55  ;;  %v11044_v55 = vld [vmem:[%s11455_s17 + $0xa60] sm:$0xff] }
 0x144   : > { %6742 = vmatpush.bf16.msrb.mxu0 %v11002_v59 }
 0x145   : > { %6756 = vmatpush.bf16.msrb.mxu1 %v11010_v60  ;;  %v11060_v60 = vld [vmem:[%s11455_s17 + $0xae0] sm:$0xff] }
 0x146   : > { %6770 = vmatpush.bf16.msrb.mxu2 %v11018_v61  ;;  %v11035_v61 = vld [vmem:[%s11455_s17 + $0xa18] sm:$0xff] }
 0x147   : > { %6784 = vmatpush.bf16.msrb.mxu3 %v11026_v62  ;;  %v11043_v62 = vld [vmem:[%s11455_s17 + $0xa58] sm:$0xff] }
 0x148   : > { %6743 = vmatpush.bf16.msrb.mxu0 %v11001_v63 }
 0x149   : > { %6757 = vmatpush.bf16.msrb.mxu1 %v11009_v0 }
 0x14a   : > { %6771 = vmatpush.bf16.msrb.mxu2 %v11017_v1  ;;  %v11059_v1 = vld [vmem:[%s11455_s17 + $0xad8] sm:$0xff] }
 0x14b   : > { %6785 = vmatpush.bf16.msrb.mxu3 %v11025_v2 }
 0x14c   : > { %6744 = vmatpush.bf16.msrb.mxu0 %v11000_v3  ;;  %v6522_v51 = vpop.f32.mrf.mxu0 }
 0x14d   : > { %6758 = vmatpush.bf16.msrb.mxu1 %v11008_v4  ;;  %v6523_v52 = vadd.f32 %v6522_v51, %v12032_v58  ;;  %v6536_v54 = vpop.f32.mrf.mxu1  ;;  %v11051_v58 = vld [vmem:[%s11455_s17 + $0xa98] sm:$0xff]  ;;  %v11034_v4 = vld [vmem:[%s11455_s17 + $0xa10] sm:$0xff] }
 0x14e   : > { %6772 = vmatpush.bf16.msrb.mxu2 %v11016_v5  ;;  %v11042_v5 = vld [vmem:[%s11455_s17 + $0xa50] sm:$0xff] }
 0x14f   : > { %6786 = vmatpush.bf16.msrb.mxu3 %v11024_v19  ;;  %6745 = vmatmul.bf16.vlgmr.msrb.gmra.mxu0 %v7664_v25  ;;  %v6537_v59 = vadd.f32 %v6536_v54, %v6523_v52  ;;  %v11071_v19 = vld [vmem:[%s11455_s17 + $0xb38] sm:$0xff]  ;;  %v11070_v54 = vld [vmem:[%s11455_s17 + $0xb30] sm:$0xff] }
 0x150   : > { %6793 = vmatpush.bf16.msra.mxu0 %v11039_v6  ;;  %6759 = vmatmul.bf16.vlgmr.msrb.gmra.mxu1 %v7668_v35  ;;  %v11050_v6 = vld [vmem:[%s11455_s17 + $0xa90] sm:$0xff]  ;;  %v10688_v25 = vld [vmem:[%s12846_s0 + $0x1f8] sm:$0xf0] }
 0x151   : > { %6807 = vmatpush.bf16.msra.mxu1 %v11047_v7  ;;  %6773 = vmatmul.bf16.vlgmr.msrb.gmra.mxu2 %v7672_v26  ;;  %v11058_v7 = vld [vmem:[%s11455_s17 + $0xad0] sm:$0xff]  ;;  %v7687_v26 = vld [vmem:[%s12846_s0 + $0xa8] sm:$0xf]  ;;  %v11087_v35 = vld [vmem:[%s11455_s17 + $0xbb8] sm:$0xff] }
 0x152   : > { %6821 = vmatpush.bf16.msra.mxu2 %v11055_v12  ;;  %6787 = vmatmul.bf16.vlgmr.msrb.gmra.mxu3 %v7676_v39  ;;  %v11032_v12 = vld [vmem:[%s11455_s17 + $0xa00] sm:$0xff] }
 0x153   : > { %6835 = vmatpush.bf16.msra.mxu3 %v11063_v31  ;;  %v10689_v31 = vld [vmem:[%s12846_s0 + $0x200] sm:$0xf0] }
 0x154   : > { %6794 = vmatpush.bf16.msra.mxu0 %v11038_v41  ;;  %v6550_v63 = vpop.f32.mrf.mxu2  ;;  %v10645_v39 = vld [vmem:[%s12846_s0 + $0xa4] sm:$0xf]  ;;  %v7681_v41 = vld [vmem:[%s12846_s0 + $0x1fc] sm:$0xf0] }
 0x155   : > { %6808 = vmatpush.bf16.msra.mxu1 %v11046_v42  ;;  %v6551_v0 = vadd.f32 %v6550_v63, %v6537_v59  ;;  %v6564_v2 = vpop.f32.mrf.mxu3  ;;  %v11056_v42 = vld [vmem:[%s11455_s17 + $0xac0] sm:$0xff]  ;;  %v7684_v51 = vor.u32 %v10645_v39, %v7681_v41  ;;  %v12143_v52 = vpop.f32.mrf.mxu1  ;;  %v11094_v59 = vld [vmem:[%s11455_s17 + $0xbf0] sm:$0xff]  ;;  %v11065_v41 = vld [vmem:[%s11455_s17 + $0xb08] sm:$0xff] }
 0x156   : > { %6822 = vmatpush.bf16.msra.mxu2 %v11054_v43  ;;  %v10646_v43 = vld [vmem:[%s12846_s0 + $0xac] sm:$0xf]  ;;  %v11090_v39 = vld [vmem:[%s11455_s17 + $0xbd0] sm:$0xff] }
 0x157   : > { %6836 = vmatpush.bf16.msra.mxu3 %v11062_v44  ;;  %v12099_v3 = vadd.f32 %v6564_v2, %v6551_v0  ;;  %v7689_v44 = vld [vmem:[%s12846_s0 + $0x204] sm:$0xf0] }
 0x158   : > { %6795 = vmatpush.bf16.msra.mxu0 %v11037_v45  ;;  %v7680_v45 = vor.u32 %v10688_v25, %v7679_v24  ;;  %v11093_v0 = vld [vmem:[%s11455_s17 + $0xbe8] sm:$0xff] }
 0x159   : > { %6809 = vmatpush.bf16.msra.mxu1 %v11045_v47  ;;  %v7688_v47 = vor.u32 %v10689_v31, %v7687_v26  ;;  %v11066_v26 = vld [vmem:[%s11455_s17 + $0xb10] sm:$0xff] }
 0x15a   : > { %6823 = vmatpush.bf16.msra.mxu2 %v11053_v48  ;;  %v12140_v48 = vpop.f32.mrf.mxu0  ;;  %v11074_v31 = vld [vmem:[%s11455_s17 + $0xb50] sm:$0xff] }
 0x15b   : > { %6837 = vmatpush.bf16.msra.mxu3 %v11061_v50  ;;  %v11095_v50 = vld [vmem:[%s11455_s17 + $0xbf8] sm:$0xff] }
 0x15c   : > { %6796 = vmatpush.bf16.msra.mxu0 %v11036_v53  ;;  %v7692_v53 = vor.u32 %v10646_v43, %v7689_v44  ;;  %v11081_v43 = vld [vmem:[%s11455_s17 + $0xb88] sm:$0xff] }
 0x15d   : > { %6810 = vmatpush.bf16.msra.mxu1 %v11044_v55  ;;  %v11078_v55 = vld [vmem:[%s11455_s17 + $0xb70] sm:$0xff]  ;;  %v12154_v63 = vpop.f32.mrf.mxu3 }
 0x15e   : > { %6824 = vmatpush.bf16.msra.mxu2 %v11052_v57  ;;  %v11086_v57 = vld [vmem:[%s11455_s17 + $0xbb0] sm:$0xff] }
 0x15f   : > { %6838 = vmatpush.bf16.msra.mxu3 %v11060_v60  ;;  %v11069_v60 = vld [vmem:[%s11455_s17 + $0xb28] sm:$0xff] }
 0x160   : > { %6797 = vmatpush.bf16.msra.mxu0 %v11035_v61  ;;  %v12150_v61 = vpop.f32.mrf.mxu2 }
 0x161   : > { %6811 = vmatpush.bf16.msra.mxu1 %v11043_v62  ;;  %v11077_v62 = vld [vmem:[%s11455_s17 + $0xb68] sm:$0xff] }
 0x162   : > { %6825 = vmatpush.bf16.msra.mxu2 %v11051_v58  ;;  %v11085_v58 = vld [vmem:[%s11455_s17 + $0xba8] sm:$0xff] }
 0x163   : > { %6839 = vmatpush.bf16.msra.mxu3 %v11059_v1 }
 0x164   : > { %6798 = vmatpush.bf16.msra.mxu0 %v11034_v4  ;;  %v11068_v4 = vld [vmem:[%s11455_s17 + $0xb20] sm:$0xff] }
 0x165   : > { %6812 = vmatpush.bf16.msra.mxu1 %v11042_v5 }
 0x166   : > { %6826 = vmatpush.bf16.msra.mxu2 %v11050_v6  ;;  %v11076_v6 = vld [vmem:[%s11455_s17 + $0xb60] sm:$0xff] }
 0x167   : > { %6840 = vmatpush.bf16.msra.mxu3 %v11058_v7  ;;  %v11084_v7 = vld [vmem:[%s11455_s17 + $0xba0] sm:$0xff] }
 0x168   : > { %6799 = vmatpush.bf16.msra.mxu0 %v11033_v8 }
 0x169   : > { %6813 = vmatpush.bf16.msra.mxu1 %v11041_v9  ;;  %v1649_v9 = vpop.permute.xlu0 %1648 }
 0x16a   : > { %6827 = vmatpush.bf16.msra.mxu2 %v11049_v10  ;;  %v11092_v10 = vld [vmem:[%s11455_s17 + $0xbe0] sm:$0xff] }
 0x16b   : > { %6841 = vmatpush.bf16.msra.mxu3 %v11057_v11  ;;  %v11067_v11 = vld [vmem:[%s11455_s17 + $0xb18] sm:$0xff] }
 0x16c   : > { %6800 = vmatpush.bf16.msra.mxu0 %v11032_v12  ;;  %v6578_v1 = vpop.f32.mrf.mxu0  ;;  %v11083_v12 = vld [vmem:[%s11455_s17 + $0xb98] sm:$0xff] }
 0x16d   : > { %6814 = vmatpush.bf16.msra.mxu1 %v11040_v13  ;;  %v6579_v2 = vadd.f32 %v6578_v1, %v12099_v3  ;;  %v6592_v5 = vpop.f32.mrf.mxu1  ;;  %v11075_v3 = vld [vmem:[%s11455_s17 + $0xb58] sm:$0xff] }
 0x16e   : > { %6828 = vmatpush.bf16.msra.mxu2 %v11048_v15  ;;  %v6245_v15 = vadd.f32 %v11799_v20, %v1649_v9  ;;  %v10648_v1 = vld [vmem:[%s12846_s0 + $0xbc] sm:$0xf] }
 0x16f   : > { %6842 = vmatpush.bf16.msra.mxu3 %v11056_v42  ;;  %6801 = vmatmul.bf16.vlgmr.msra.gmra.mxu0 %v7680_v45  ;;  %v6593_v8 = vadd.f32 %v6592_v5, %v6579_v2  ;;  %v11073_v42 = vld [vmem:[%s11455_s17 + $0xb48] sm:$0xff] }
 0x170   : > { %6849 = vmatpush.bf16.msrb.mxu0 %v11071_v19  ;;  %6815 = vmatmul.bf16.vlgmr.msra.gmra.mxu1 %v7684_v51  ;;  %v6259_v20 = vadd.f32 %v11808_v27, %v6245_v15  ;;  %v11089_v45 = vld [vmem:[%s11455_s17 + $0xbc8] sm:$0xff]  ;;  %v11080_v51 = vld [vmem:[%s11455_s17 + $0xb80] sm:$0xff]  ;;  %v11103_v27 = vld [vmem:[%s11455_s17 + $0xc38] sm:$0xff] }
 0x171   : > { %6863 = vmatpush.bf16.msrb.mxu1 %v11079_v22  ;;  %6829 = vmatmul.bf16.vlgmr.msra.gmra.mxu2 %v7688_v47  ;;  %v11091_v22 = vld [vmem:[%s11455_s17 + $0xbd8] sm:$0xff]  ;;  %v11064_v47 = vld [vmem:[%s11455_s17 + $0xb00] sm:$0xff] }
 0x172   : > { %6877 = vmatpush.bf16.msrb.mxu2 %v11087_v35  ;;  %6843 = vmatmul.bf16.vlgmr.msra.gmra.mxu3 %v7692_v53  ;;  %v11082_v35 = vld [vmem:[%s11455_s17 + $0xb90] sm:$0xff]  ;;  %v6273_v44 = vadd.f32 %v11814_v33, %v6259_v20  ;;  %v11111_v53 = vld [vmem:[%s11455_s17 + $0xc78] sm:$0xff]  ;;  %v10690_v33 = vld [vmem:[%s12846_s0 + $0x208] sm:$0xf0] }
 0x173   : > { %6891 = vmatpush.bf16.msrb.mxu3 %v11095_v50  ;;  %v11072_v50 = vld [vmem:[%s11455_s17 + $0xb40] sm:$0xff] }
 0x174   : > { %6850 = vmatpush.bf16.msrb.mxu0 %v11070_v54  ;;  %v6606_v13 = vpop.f32.mrf.mxu2  ;;  %v7695_v54 = vld [vmem:[%s12846_s0 + $0xb0] sm:$0xf] }
 0x175   : > { %6864 = vmatpush.bf16.msrb.mxu1 %v11078_v55  ;;  %v6607_v19 = vadd.f32 %v6606_v13, %v6593_v8  ;;  %v6620_v24 = vpop.f32.mrf.mxu3  ;;  %v7703_v55 = vld [vmem:[%s12846_s0 + $0xb8] sm:$0xf]  ;;  %v12215_v9 = vpop.f32.mrf.mxu1  ;;  %v11126_v13 = vld [vmem:[%s11455_s17 + $0xcf0] sm:$0xff] }
 0x176   : > { %6878 = vmatpush.bf16.msrb.mxu2 %v11086_v57  ;;  %v10691_v57 = vld [vmem:[%s12846_s0 + $0x210] sm:$0xf0] }
 0x177   : > { %6892 = vmatpush.bf16.msrb.mxu3 %v11094_v59  ;;  %v12167_v25 = vadd.f32 %v6620_v24, %v6607_v19  ;;  %v6287_v59 = vadd.f32 %v11819_v37, %v6273_v44  ;;  %v7705_v37 = vld [vmem:[%s12846_s0 + $0x214] sm:$0xf0]  ;;  %v7704_v5 = vor.u32 %v10691_v57, %v7703_v55  ;;  %v11101_v19 = vld [vmem:[%s11455_s17 + $0xc28] sm:$0xff]  ;;  %v11098_v57 = vld [vmem:[%s11455_s17 + $0xc10] sm:$0xff] }
 0x178   : > { %6851 = vmatpush.bf16.msrb.mxu0 %v11069_v60  ;;  %v11119_v60 = vld [vmem:[%s11455_s17 + $0xcb8] sm:$0xff]  ;;  %v11109_v24 = vld [vmem:[%s11455_s17 + $0xc68] sm:$0xff] }
 0x179   : > { %6865 = vmatpush.bf16.msrb.mxu1 %v11077_v62  ;;  %v10647_v62 = vld [vmem:[%s12846_s0 + $0xb4] sm:$0xf]  ;;  %v6301_v2 = vadd.f32 %v11872_v17, %v6287_v59 }
 0x17a   : > { %6879 = vmatpush.bf16.msrb.mxu2 %v11085_v58  ;;  %v7697_v58 = vld [vmem:[%s12846_s0 + $0x20c] sm:$0xf0] }
 0x17b   : > { %6893 = vmatpush.bf16.msrb.mxu3 %v11093_v0  ;;  %v11088_v0 = vld [vmem:[%s11455_s17 + $0xbc0] sm:$0xff]  ;;  %v7700_v8 = vor.u32 %v10647_v62, %v7697_v58  ;;  %v11110_v17 = vld [vmem:[%s11455_s17 + $0xc70] sm:$0xff]  ;;  %v11105_v58 = vld [vmem:[%s11455_s17 + $0xc48] sm:$0xff] }
 0x17c   : > { %6852 = vmatpush.bf16.msrb.mxu0 %v11068_v4  ;;  %v7696_v4 = vor.u32 %v10690_v33, %v7695_v54  ;;  %v11106_v59 = vld [vmem:[%s11455_s17 + $0xc50] sm:$0xff] }
 0x17d   : > { %6866 = vmatpush.bf16.msrb.mxu1 %v11076_v6  ;;  %v12212_v6 = vpop.f32.mrf.mxu0 }
 0x17e   : > { %6880 = vmatpush.bf16.msrb.mxu2 %v11084_v7  ;;  %v11127_v7 = vld [vmem:[%s11455_s17 + $0xcf8] sm:$0xff] }
 0x17f   : > { %6894 = vmatpush.bf16.msrb.mxu3 %v11092_v10  ;;  %v7708_v10 = vor.u32 %v10648_v1, %v7705_v37  ;;  %v11121_v37 = vld [vmem:[%s11455_s17 + $0xcc8] sm:$0xff] }
 0x180   : > { %6853 = vmatpush.bf16.msrb.mxu0 %v11067_v11  ;;  %v11102_v11 = vld [vmem:[%s11455_s17 + $0xc30] sm:$0xff] }
 0x181   : > { %6867 = vmatpush.bf16.msrb.mxu1 %v11075_v3  ;;  %v11118_v3 = vld [vmem:[%s11455_s17 + $0xcb0] sm:$0xff] }
 0x182   : > { %6881 = vmatpush.bf16.msrb.mxu2 %v11083_v12  ;;  %v6315_v12 = vadd.f32 %v11875_v21, %v6301_v2  ;;  %v11117_v21 = vld [vmem:[%s11455_s17 + $0xca8] sm:$0xff]  ;;  %v11096_v2 = vld [vmem:[%s11455_s17 + $0xc00] sm:$0xff] }
 0x183   : > { %6895 = vmatpush.bf16.msrb.mxu3 %v11091_v22  ;;  %v12224_v22 = vpop.f32.mrf.mxu2 }
 0x184   : > { %6854 = vmatpush.bf16.msrb.mxu0 %v11066_v26  ;;  %v6329_v15 = vadd.f32 %v11882_v29, %v6315_v12  ;;  %v12228_v26 = vpop.f32.mrf.mxu3  ;;  %v10649_v12 = vld [vmem:[%s12846_s0 + $0xc4] sm:$0xf] }
 0x185   : > { %6868 = vmatpush.bf16.msrb.mxu1 %v11074_v31  ;;  %v11125_v31 = vld [vmem:[%s11455_s17 + $0xce8] sm:$0xff] }
 0x186   : > { %6882 = vmatpush.bf16.msrb.mxu2 %v11082_v35  ;;  %v6343_v29 = vadd.f32 %v11886_v32, %v6329_v15  ;;  %v11099_v32 = vld [vmem:[%s11455_s17 + $0xc18] sm:$0xff]  ;;  %v11120_v15 = vld [vmem:[%s11455_s17 + $0xcc0] sm:$0xff] }
 0x187   : > { %6896 = vmatpush.bf16.msrb.mxu3 %v11090_v39  ;;  %v11100_v39 = vld [vmem:[%s11455_s17 + $0xc20] sm:$0xff] }
 0x188   : > { %6855 = vmatpush.bf16.msrb.mxu0 %v11065_v41  ;;  %v6357_v44 = vadd.f32 %v11939_v14, %v6343_v29  ;;  %v11123_v14 = vld [vmem:[%s11455_s17 + $0xcd8] sm:$0xff] }
 0x189   : > { %6869 = vmatpush.bf16.msrb.mxu1 %v11073_v42  ;;  %v11108_v42 = vld [vmem:[%s11455_s17 + $0xc60] sm:$0xff]  ;;  %v11159_v29 = vld [vmem:[%s11455_s17 + $0xdf8] sm:$0xff] }
 0x18a   : > { %6883 = vmatpush.bf16.msrb.mxu2 %v11081_v43  ;;  %v11116_v43 = vld [vmem:[%s11455_s17 + $0xca0] sm:$0xff] }
 0x18b   : > { %6897 = vmatpush.bf16.msrb.mxu3 %v11089_v45 }
 0x18c   : > { %6856 = vmatpush.bf16.msrb.mxu0 %v11064_v47  ;;  %v6634_v35 = vpop.f32.mrf.mxu0  ;;  %v11124_v47 = vld [vmem:[%s11455_s17 + $0xce0] sm:$0xff] }
 0x18d   : > { %6870 = vmatpush.bf16.msrb.mxu1 %v11072_v50  ;;  %v6635_v20 = vadd.f32 %v6634_v35, %v12167_v25  ;;  %v6648_v41 = vpop.f32.mrf.mxu1  ;;  %v11107_v25 = vld [vmem:[%s11455_s17 + $0xc58] sm:$0xff] }
 0x18e   : > { %6884 = vmatpush.bf16.msrb.mxu2 %v11080_v51  ;;  %v11115_v50 = vld [vmem:[%s11455_s17 + $0xc98] sm:$0xff] }
 0x18f   : > { %6898 = vmatpush.bf16.msrb.mxu3 %v11088_v0  ;;  %6857 = vmatmul.bf16.vlgmr.msrb.gmra.mxu0 %v7696_v4  ;;  %v6649_v45 = vadd.f32 %v6648_v41, %v6635_v20  ;;  %v11113_v0 = vld [vmem:[%s11455_s17 + $0xc88] sm:$0xff]  ;;  %v11104_v4 = vld [vmem:[%s11455_s17 + $0xc40] sm:$0xff] }
 0x190   : > { %6905 = vmatpush.bf16.msra.mxu0 %v11103_v27  ;;  %6871 = vmatmul.bf16.vlgmr.msrb.gmra.mxu1 %v7700_v8  ;;  %v6371_v27 = vadd.f32 %v11942_v18, %v6357_v44  ;;  %v11114_v18 = vld [vmem:[%s11455_s17 + $0xc90] sm:$0xff]  ;;  %v11143_v8 = vld [vmem:[%s11455_s17 + $0xd78] sm:$0xff] }
 0x191   : > { %6919 = vmatpush.bf16.msra.mxu1 %v11111_v53  ;;  %6885 = vmatmul.bf16.vlgmr.msrb.gmra.mxu2 %v7704_v5  ;;  %v11112_v5 = vld [vmem:[%s11455_s17 + $0xc80] sm:$0xff] }
 0x192   : > { %6933 = vmatpush.bf16.msra.mxu2 %v11119_v60  ;;  %6899 = vmatmul.bf16.vlgmr.msrb.gmra.mxu3 %v7708_v10  ;;  %v6385_v33 = vadd.f32 %v11949_v28, %v6371_v27  ;;  %v11122_v60 = vld [vmem:[%s11455_s17 + $0xcd0] sm:$0xff]  ;;  %v11097_v28 = vld [vmem:[%s11455_s17 + $0xc08] sm:$0xff] }
 0x193   : > { %6947 = vmatpush.bf16.msra.mxu3 %v11127_v7  ;;  %v11135_v7 = vld [vmem:[%s11455_s17 + $0xd38] sm:$0xff]  ;;  %v7719_v10 = vld [vmem:[%s12846_s0 + $0xc8] sm:$0xf] }
 0x194   : > { %6906 = vmatpush.bf16.msra.mxu0 %v11102_v11  ;;  %v6662_v51 = vpop.f32.mrf.mxu2  ;;  %v6399_v62 = vadd.f32 %v11953_v34, %v6385_v33  ;;  %v7711_v34 = vld [vmem:[%s12846_s0 + $0xc0] sm:$0xf]  ;;  %v10693_v11 = vld [vmem:[%s12846_s0 + $0x220] sm:$0xf0]  ;;  %v12289_v35 = vpop.f32.mrf.mxu0  ;;  %v11157_v27 = vld [vmem:[%s11455_s17 + $0xde8] sm:$0xff] }
 0x195   : > { %6920 = vmatpush.bf16.msra.mxu1 %v11110_v17  ;;  %v6663_v53 = vadd.f32 %v6662_v51, %v6649_v45  ;;  %v6676_v54 = vpop.f32.mrf.mxu3  ;;  %v11158_v45 = vld [vmem:[%s11455_s17 + $0xdf0] sm:$0xff] }
 0x196   : > { %6934 = vmatpush.bf16.msra.mxu2 %v11118_v3  ;;  %v6413_v1 = vadd.f32 %v12006_v16, %v6399_v62  ;;  %v10692_v16 = vld [vmem:[%s12846_s0 + $0x218] sm:$0xf0]  ;;  %v11156_v62 = vld [vmem:[%s11455_s17 + $0xde0] sm:$0xff] }
 0x197   : > { %6948 = vmatpush.bf16.msra.mxu3 %v11126_v13  ;;  %v12244_v55 = vadd.f32 %v6676_v54, %v6663_v53  ;;  %v11151_v3 = vld [vmem:[%s11455_s17 + $0xdb8] sm:$0xff]  ;;  %v7713_v13 = vld [vmem:[%s12846_s0 + $0x21c] sm:$0xf0] }
 0x198   : > { %6907 = vmatpush.bf16.msra.mxu0 %v11101_v19  ;;  %v6427_v17 = vadd.f32 %v12009_v23, %v6413_v1  ;;  %v10650_v19 = vld [vmem:[%s12846_s0 + $0xcc] sm:$0xf]  ;;  %v7721_v23 = vld [vmem:[%s12846_s0 + $0x224] sm:$0xf0]  ;;  %v7716_v20 = vor.u32 %v10649_v12, %v7713_v13  ;;  %v11132_v54 = vld [vmem:[%s11455_s17 + $0xd20] sm:$0xff] }
 0x199   : > { %6921 = vmatpush.bf16.msra.mxu1 %v11109_v24  ;;  %v7724_v41 = vor.u32 %v10650_v19, %v7721_v23  ;;  %v11136_v12 = vld [vmem:[%s11455_s17 + $0xd40] sm:$0xff]  ;;  %v11175_v19 = vld [vmem:[%s11455_s17 + $0xe78] sm:$0xff] }
 0x19a   : > { %6935 = vmatpush.bf16.msra.mxu2 %v11117_v21  ;;  %v6441_v24 = vadd.f32 %v12016_v36, %v6427_v17  ;;  %v7712_v21 = vor.u32 %v10692_v16, %v7711_v34  ;;  %v11142_v36 = vld [vmem:[%s11455_s17 + $0xd70] sm:$0xff]  ;;  %v11137_v16 = vld [vmem:[%s11455_s17 + $0xd48] sm:$0xff]  ;;  %v11144_v13 = vld [vmem:[%s11455_s17 + $0xd80] sm:$0xff] }
 0x19b   : > { %6949 = vmatpush.bf16.msra.mxu3 %v11125_v31  ;;  %v7720_v31 = vor.u32 %v10693_v11, %v7719_v10  ;;  %v11145_v10 = vld [vmem:[%s11455_s17 + $0xd88] sm:$0xff]  ;;  %v7735_v23 = vld [vmem:[%s12846_s0 + $0xd8] sm:$0xf] }
 0x19c   : > { %6908 = vmatpush.bf16.msra.mxu0 %v11100_v39  ;;  %v12292_v39 = vpop.f32.mrf.mxu1  ;;  %v6455_v44 = vadd.f32 %v12020_v40, %v6441_v24  ;;  %v11149_v40 = vld [vmem:[%s11455_s17 + $0xda8] sm:$0xff]  ;;  %v10695_v24 = vld [vmem:[%s12846_s0 + $0x230] sm:$0xf0] }
 0x19d   : > { %6922 = vmatpush.bf16.msra.mxu1 %v11108_v42  ;;  %v11134_v42 = vld [vmem:[%s11455_s17 + $0xd30] sm:$0xff]  ;;  %v12305_v51 = vpop.f32.mrf.mxu3  ;;  %v11153_v17 = vld [vmem:[%s11455_s17 + $0xdc8] sm:$0xff] }
 0x19e   : > { %6936 = vmatpush.bf16.msra.mxu2 %v11116_v43  ;;  %v11150_v43 = vld [vmem:[%s11455_s17 + $0xdb0] sm:$0xff] }
 0x19f   : > { %6950 = vmatpush.bf16.msra.mxu3 %v11124_v47  ;;  %v6469_v47 = vadd.f32 %v12073_v30, %v6455_v44  ;;  %v7736_v44 = vor.u32 %v10695_v24, %v7735_v23  ;;  %v11199_v23 = vld [vmem:[%s11455_s17 + $0xf38] sm:$0xff] }
 0x1a0   : > { %6909 = vmatpush.bf16.msra.mxu0 %v11099_v32  ;;  %v11133_v32 = vld [vmem:[%s11455_s17 + $0xd28] sm:$0xff]  ;;  %v11207_v24 = vld [vmem:[%s11455_s17 + $0xf78] sm:$0xff] }
 0x1a1   : > { %6923 = vmatpush.bf16.msra.mxu1 %v11107_v25  ;;  %v12301_v25 = vpop.f32.mrf.mxu2  ;;  %v6483_v30 = vadd.f32 %v12076_v38, %v6469_v47  ;;  %v11131_v38 = vld [vmem:[%s11455_s17 + $0xd18] sm:$0xff] }
 0x1a2   : > { %6937 = vmatpush.bf16.msra.mxu2 %v11115_v50  ;;  %v11141_v50 = vld [vmem:[%s11455_s17 + $0xd68] sm:$0xff]  ;;  %v11191_v47 = vld [vmem:[%s11455_s17 + $0xef8] sm:$0xff] }
 0x1a3   : > { %6951 = vmatpush.bf16.msra.mxu3 %v11123_v14 }
 0x1a4   : > { %6910 = vmatpush.bf16.msra.mxu0 %v11098_v57  ;;  %v11140_v57 = vld [vmem:[%s11455_s17 + $0xd60] sm:$0xff] }
 0x1a5   : > { %6924 = vmatpush.bf16.msra.mxu1 %v11106_v59  ;;  %v11148_v59 = vld [vmem:[%s11455_s17 + $0xda0] sm:$0xff] }
 0x1a6   : > { %6938 = vmatpush.bf16.msra.mxu2 %v11114_v18  ;;  %v6497_v18 = vadd.f32 %v12083_v46, %v6483_v30  ;;  %v11155_v46 = vld [vmem:[%s11455_s17 + $0xdd8] sm:$0xff] }
 0x1a7   : > { %6952 = vmatpush.bf16.msra.mxu3 %v11122_v60 }
 0x1a8   : > { %6911 = vmatpush.bf16.msra.mxu0 %v11097_v28  ;;  %v11147_v28 = vld [vmem:[%s11455_s17 + $0xd98] sm:$0xff] }
 0x1a9   : > { %6925 = vmatpush.bf16.msra.mxu1 %v11105_v58 }
 0x1aa   : > { %6939 = vmatpush.bf16.msra.mxu2 %v11113_v0  ;;  %v6511_v0 = vadd.f32 %v12087_v49, %v6497_v18  ;;  %v11146_v49 = vld [vmem:[%s11455_s17 + $0xd90] sm:$0xff] }
 0x1ab   : > { %6953 = vmatpush.bf16.msra.mxu3 %v11121_v37 }
 0x1ac   : > { %6912 = vmatpush.bf16.msra.mxu0 %v11096_v2  ;;  %v6690_v53 = vpop.f32.mrf.mxu0  ;;  %v6525_v2 = vadd.f32 %v12140_v48, %v6511_v0  ;;  %v11129_v48 = vld [vmem:[%s11455_s17 + $0xd08] sm:$0xff]  ;;  %v11180_v0 = vld [vmem:[%s11455_s17 + $0xea0] sm:$0xff] }
 0x1ad   : > { %6926 = vmatpush.bf16.msra.mxu1 %v11104_v4  ;;  %v6691_v14 = vadd.f32 %v6690_v53, %v12244_v55  ;;  %v6704_v33 = vpop.f32.mrf.mxu1  ;;  %v11139_v55 = vld [vmem:[%s11455_s17 + $0xd58] sm:$0xff]  ;;  %v11182_v53 = vld [vmem:[%s11455_s17 + $0xeb0] sm:$0xff] }
 0x1ae   : > { %6940 = vmatpush.bf16.msra.mxu2 %v11112_v5  ;;  %v11130_v5 = vld [vmem:[%s11455_s17 + $0xd10] sm:$0xff]  ;;  %v6539_v34 = vadd.f32 %v12143_v52, %v6525_v2  ;;  %v11171_v2 = vld [vmem:[%s11455_s17 + $0xe58] sm:$0xff] }
 0x1af   : > { %6954 = vmatpush.bf16.msra.mxu3 %v11120_v15  ;;  %6913 = vmatmul.bf16.vlgmr.msra.gmra.mxu0 %v7712_v21  ;;  %v6705_v60 = vadd.f32 %v6704_v33, %v6691_v14  ;;  %v11167_v15 = vld [vmem:[%s11455_s17 + $0xe38] sm:$0xff]  ;;  %v7727_v52 = vld [vmem:[%s12846_s0 + $0xd0] sm:$0xf]  ;;  %v11165_v33 = vld [vmem:[%s11455_s17 + $0xe28] sm:$0xff] }
 0x1b0   : > { %6961 = vmatpush.bf16.msrb.mxu0 %v11135_v7  ;;  %6927 = vmatmul.bf16.vlgmr.msra.gmra.mxu1 %v7716_v20  ;;  %v11138_v7 = vld [vmem:[%s11455_s17 + $0xd50] sm:$0xff]  ;;  %v6553_v11 = vadd.f32 %v12150_v61, %v6539_v34  ;;  %v10694_v61 = vld [vmem:[%s12846_s0 + $0x228] sm:$0xf0] }
 0x1b1   : > { %6975 = vmatpush.bf16.msrb.mxu1 %v11143_v8  ;;  %6941 = vmatmul.bf16.vlgmr.msra.gmra.mxu2 %v7720_v31  ;;  %v11154_v8 = vld [vmem:[%s11455_s17 + $0xdd0] sm:$0xff]  ;;  %v11183_v31 = vld [vmem:[%s11455_s17 + $0xeb8] sm:$0xff] }
 0x1b2   : > { %6989 = vmatpush.bf16.msrb.mxu2 %v11151_v3  ;;  %6955 = vmatmul.bf16.vlgmr.msra.gmra.mxu3 %v7724_v41  ;;  %v11128_v3 = vld [vmem:[%s11455_s17 + $0xd00] sm:$0xff]  ;;  %v6567_v21 = vadd.f32 %v12154_v63, %v6553_v11  ;;  %v7729_v20 = vld [vmem:[%s12846_s0 + $0x22c] sm:$0xf0]  ;;  %v7737_v63 = vld [vmem:[%s12846_s0 + $0x234] sm:$0xf0] }
 0x1b3   : > { %7003 = vmatpush.bf16.msrb.mxu3 %v11159_v29  ;;  %v10651_v29 = vld [vmem:[%s12846_s0 + $0xd4] sm:$0xf]  ;;  %v11152_v41 = vld [vmem:[%s11455_s17 + $0xdc0] sm:$0xff] }
 0x1b4   : > { %6962 = vmatpush.bf16.msrb.mxu0 %v11134_v42  ;;  %v6718_v58 = vpop.f32.mrf.mxu2  ;;  %v10652_v42 = vld [vmem:[%s12846_s0 + $0xdc] sm:$0xf]  ;;  %v11190_v14 = vld [vmem:[%s11455_s17 + $0xef0] sm:$0xff] }
 0x1b5   : > { %6976 = vmatpush.bf16.msrb.mxu1 %v11142_v36  ;;  %v6719_v1 = vadd.f32 %v6718_v58, %v6705_v60  ;;  %v6732_v37 = vpop.f32.mrf.mxu3  ;;  %v6581_v36 = vadd.f32 %v12212_v6, %v6567_v21  ;;  %v11174_v6 = vld [vmem:[%s11455_s17 + $0xe70] sm:$0xff]  ;;  %v11189_v60 = vld [vmem:[%s11455_s17 + $0xee8] sm:$0xff]  ;;  %v11172_v58 = vld [vmem:[%s11455_s17 + $0xe60] sm:$0xff] }
 0x1b6   : > { %6990 = vmatpush.bf16.msrb.mxu2 %v11150_v43  ;;  %v7728_v43 = vor.u32 %v10694_v61, %v7727_v52  ;;  %v11186_v11 = vld [vmem:[%s11455_s17 + $0xed0] sm:$0xff]  ;;  %v11168_v52 = vld [vmem:[%s11455_s17 + $0xe40] sm:$0xff]  ;;  %v10696_v21 = vld [vmem:[%s12846_s0 + $0x238] sm:$0xf0] }
 0x1b7   : > { %7004 = vmatpush.bf16.msrb.mxu3 %v11158_v45  ;;  %v12321_v4 = vadd.f32 %v6732_v37, %v6719_v1  ;;  %v12366_v45 = vpop.f32.mrf.mxu0  ;;  %v6595_v30 = vadd.f32 %v12215_v9, %v6581_v36  ;;  %v11181_v9 = vld [vmem:[%s11455_s17 + $0xea8] sm:$0xff]  ;;  %v11188_v37 = vld [vmem:[%s11455_s17 + $0xee0] sm:$0xff] }
 0x1b8   : > { %6963 = vmatpush.bf16.msrb.mxu0 %v11133_v32  ;;  %v7732_v32 = vor.u32 %v10651_v29, %v7729_v20  ;;  %v11176_v61 = vld [vmem:[%s11455_s17 + $0xe80] sm:$0xff] }
 0x1b9   : > { %6977 = vmatpush.bf16.msrb.mxu1 %v11141_v50  ;;  %v12369_v50 = vpop.f32.mrf.mxu1  ;;  %v10697_v29 = vld [vmem:[%s12846_s0 + $0x240] sm:$0xf0] }
 0x1ba   : > { %6991 = vmatpush.bf16.msrb.mxu2 %v11149_v40  ;;  %v7740_v40 = vor.u32 %v10652_v42, %v7737_v63  ;;  %v10653_v42 = vld [vmem:[%s12846_s0 + $0xe4] sm:$0xf]  ;;  %v7745_v63 = vld [vmem:[%s12846_s0 + $0x23c] sm:$0xf0] }
 0x1bb   : > { %7005 = vmatpush.bf16.msrb.mxu3 %v11157_v27  ;;  %v11166_v27 = vld [vmem:[%s11455_s17 + $0xe30] sm:$0xff]  ;;  %v11184_v36 = vld [vmem:[%s11455_s17 + $0xec0] sm:$0xff] }
 0x1bc   : > { %6964 = vmatpush.bf16.msrb.mxu0 %v11132_v54  ;;  %v6609_v54 = vadd.f32 %v12224_v22, %v6595_v30  ;;  %v11198_v30 = vld [vmem:[%s11455_s17 + $0xf30] sm:$0xff] }
 0x1bd   : > { %6978 = vmatpush.bf16.msrb.mxu1 %v11140_v57  ;;  %v12378_v57 = vpop.f32.mrf.mxu2  ;;  %v12382_v18 = vpop.f32.mrf.mxu3 }
 0x1be   : > { %6992 = vmatpush.bf16.msrb.mxu2 %v11148_v59  ;;  %v11173_v59 = vld [vmem:[%s11455_s17 + $0xe68] sm:$0xff]  ;;  %v6623_v22 = vadd.f32 %v12228_v26, %v6609_v54  ;;  %v11163_v26 = vld [vmem:[%s11455_s17 + $0xe18] sm:$0xff]  ;;  %v11214_v54 = vld [vmem:[%s11455_s17 + $0xfb0] sm:$0xff] }
 0x1bf   : > { %7006 = vmatpush.bf16.msrb.mxu3 %v11156_v62 }
 0x1c0   : > { %6965 = vmatpush.bf16.msrb.mxu0 %v11131_v38  ;;  %v6637_v1 = vadd.f32 %v12289_v35, %v6623_v22  ;;  %v11187_v35 = vld [vmem:[%s11455_s17 + $0xed8] sm:$0xff]  ;;  %v11213_v22 = vld [vmem:[%s11455_s17 + $0xfa8] sm:$0xff] }
 0x1c1   : > { %6979 = vmatpush.bf16.msrb.mxu1 %v11139_v55  ;;  %v11164_v55 = vld [vmem:[%s11455_s17 + $0xe20] sm:$0xff] }
 0x1c2   : > { %6993 = vmatpush.bf16.msrb.mxu2 %v11147_v28 }
 0x1c3   : > { %7007 = vmatpush.bf16.msrb.mxu3 %v11155_v46 }
 0x1c4   : > { %6966 = vmatpush.bf16.msrb.mxu0 %v11130_v5 }
 0x1c5   : > { %6980 = vmatpush.bf16.msrb.mxu1 %v11138_v7  ;;  %v6651_v7 = vadd.f32 %v12292_v39, %v6637_v1  ;;  %v11178_v39 = vld [vmem:[%s11455_s17 + $0xe90] sm:$0xff] }
 0x1c6   : > { %6994 = vmatpush.bf16.msrb.mxu2 %v11146_v49 }
 0x1c7   : > { %7008 = vmatpush.bf16.msrb.mxu3 %v11154_v8  ;;  %v6665_v34 = vadd.f32 %v12301_v25, %v6651_v7  ;;  %v11161_v25 = vld [vmem:[%s11455_s17 + $0xe08] sm:$0xff]  ;;  %v11203_v7 = vld [vmem:[%s11455_s17 + $0xf58] sm:$0xff] }
 0x1c8   : > { %6967 = vmatpush.bf16.msrb.mxu0 %v11129_v48 }
 0x1c9   : > { %6981 = vmatpush.bf16.msrb.mxu1 %v11137_v16  ;;  %v11162_v16 = vld [vmem:[%s11455_s17 + $0xe10] sm:$0xff] }
 0x1ca   : > { %6995 = vmatpush.bf16.msrb.mxu2 %v11145_v10  ;;  %v11170_v10 = vld [vmem:[%s11455_s17 + $0xe50] sm:$0xff] }
 0x1cb   : > { %7009 = vmatpush.bf16.msrb.mxu3 %v11153_v17  ;;  %v6679_v17 = vadd.f32 %v12305_v51, %v6665_v34  ;;  %v7743_v51 = vld [vmem:[%s12846_s0 + $0xe0] sm:$0xf] }
 0x1cc   : > { %6968 = vmatpush.bf16.msrb.mxu0 %v11128_v3  ;;  %v6746_v62 = vpop.f32.mrf.mxu0  ;;  %v11169_v3 = vld [vmem:[%s11455_s17 + $0xe48] sm:$0xff] }
 0x1cd   : > { %6982 = vmatpush.bf16.msrb.mxu1 %v11136_v12  ;;  %v6747_v38 = vadd.f32 %v6746_v62, %v12321_v4  ;;  %v6760_v28 = vpop.f32.mrf.mxu1  ;;  %v11179_v4 = vld [vmem:[%s11455_s17 + $0xe98] sm:$0xff]  ;;  %v11177_v12 = vld [vmem:[%s11455_s17 + $0xe88] sm:$0xff] }
 0x1ce   : > { %6996 = vmatpush.bf16.msrb.mxu2 %v11144_v13  ;;  %v6693_v13 = vadd.f32 %v12366_v45, %v6679_v17  ;;  %v11205_v62 = vld [vmem:[%s11455_s17 + $0xf68] sm:$0xff]  ;;  %v11194_v17 = vld [vmem:[%s11455_s17 + $0xf10] sm:$0xff] }
 0x1cf   : > { %7010 = vmatpush.bf16.msrb.mxu3 %v11152_v41  ;;  %6969 = vmatmul.bf16.vlgmr.msrb.gmra.mxu0 %v7728_v43  ;;  %v6761_v46 = vadd.f32 %v6760_v28, %v6747_v38  ;;  %v11215_v41 = vld [vmem:[%s11455_s17 + $0xfb8] sm:$0xff]  ;;  %v10654_v43 = vld [vmem:[%s12846_s0 + $0xec] sm:$0xf] }
 0x1d0   : > { %7017 = vmatpush.bf16.msra.mxu0 %v11167_v15  ;;  %6983 = vmatmul.bf16.vlgmr.msrb.gmra.mxu1 %v7732_v32  ;;  %v11185_v15 = vld [vmem:[%s11455_s17 + $0xec8] sm:$0xff]  ;;  %v6707_v20 = vadd.f32 %v12369_v50, %v6693_v13 }
 0x1d1   : > { %7031 = vmatpush.bf16.msra.mxu1 %v11175_v19  ;;  %6997 = vmatmul.bf16.vlgmr.msrb.gmra.mxu2 %v7736_v44  ;;  %v11160_v19 = vld [vmem:[%s11455_s17 + $0xe00] sm:$0xff]  ;;  %v7753_v44 = vld [vmem:[%s12846_s0 + $0x244] sm:$0xf0] }
 0x1d2   : > { %7045 = vmatpush.bf16.msra.mxu2 %v11183_v31  ;;  %7011 = vmatmul.bf16.vlgmr.msrb.gmra.mxu3 %v7740_v40  ;;  %v7751_v31 = vld [vmem:[%s12846_s0 + $0xe8] sm:$0xf]  ;;  %v6721_v45 = vadd.f32 %v12378_v57, %v6707_v20  ;;  %v11223_v40 = vld [vmem:[%s11455_s17 + $0xff8] sm:$0xff]  ;;  %v11222_v57 = vld [vmem:[%s11455_s17 + $0xff0] sm:$0xff] }
 0x1d3   : > { %7059 = vmatpush.bf16.msra.mxu3 %v11191_v47  ;;  %v7744_v47 = vor.u32 %v10696_v21, %v7743_v51  ;;  %v7752_v32 = vor.u32 %v10697_v29, %v7751_v31  ;;  %v11217_v51 = vld [vmem:[%s11455_s17 + $0xfc8] sm:$0xff]  ;;  %v11192_v31 = vld [vmem:[%s11455_s17 + $0xf00] sm:$0xff] }
 0x1d4   : > { %7018 = vmatpush.bf16.msra.mxu0 %v11166_v27  ;;  %v6774_v5 = vpop.f32.mrf.mxu2  ;;  %v6748_v50 = vpop.f32.mrf.mxu0  ;;  %v7748_v27 = vor.u32 %v10653_v42, %v7745_v63  ;;  %v11200_v29 = vld [vmem:[%s11455_s17 + $0xf40] sm:$0xff]  ;;  %v11231_v42 = vld [vmem:[%s11455_s17 + $0x1038] sm:$0xff] }
 0x1d5   : > { %7032 = vmatpush.bf16.msra.mxu1 %v11174_v6  ;;  %v6775_v49 = vadd.f32 %v6774_v5, %v6761_v46  ;;  %v6788_v8 = vpop.f32.mrf.mxu3  ;;  %v6762_v6 = vpop.f32.mrf.mxu1  ;;  %v11204_v46 = vld [vmem:[%s11455_s17 + $0xf60] sm:$0xff]  ;;  %v11195_v5 = vld [vmem:[%s11455_s17 + $0xf18] sm:$0xff] }
 0x1d6   : > { %7046 = vmatpush.bf16.msra.mxu2 %v11182_v53  ;;  %v7756_v53 = vor.u32 %v10654_v43, %v7753_v44  ;;  %v11208_v20 = vld [vmem:[%s11455_s17 + $0xf80] sm:$0xff]  ;;  %v11239_v63 = vld [vmem:[%s11455_s17 + $0x1078] sm:$0xff]  ;;  %v10698_v43 = vld [vmem:[%s12846_s0 + $0x248] sm:$0xf0] }
 0x1d7   : > { %7060 = vmatpush.bf16.msra.mxu3 %v11190_v14  ;;  %v12398_v48 = vadd.f32 %v6788_v8, %v6775_v49  ;;  %v11206_v14 = vld [vmem:[%s11455_s17 + $0xf70] sm:$0xff]  ;;  %v11211_v49 = vld [vmem:[%s11455_s17 + $0xf98] sm:$0xff] }
 0x1d8   : > { %7019 = vmatpush.bf16.msra.mxu0 %v11165_v33  ;;  %v6735_v33 = vadd.f32 %v12382_v18, %v6721_v45  ;;  %v11221_v18 = vld [vmem:[%s11455_s17 + $0xfe8] sm:$0xff]  ;;  %v7767_v44 = vld [vmem:[%s12846_s0 + $0xf8] sm:$0xf]  ;;  %v10699_v45 = vld [vmem:[%s12846_s0 + $0x250] sm:$0xf0] }
 0x1d9   : > { %7033 = vmatpush.bf16.msra.mxu1 %v11173_v59 }
 0x1da   : > { %7047 = vmatpush.bf16.msra.mxu2 %v11181_v9  ;;  %v6749_v59 = vadd.f32 %v6748_v50, %v6735_v33  ;;  %v11197_v9 = vld [vmem:[%s11455_s17 + $0xf28] sm:$0xff]  ;;  %v7761_v50 = vld [vmem:[%s12846_s0 + $0x24c] sm:$0xf0] }
 0x1db   : > { %7061 = vmatpush.bf16.msra.mxu3 %v11189_v60 }
 0x1dc   : > { %7020 = vmatpush.bf16.msra.mxu0 %v11164_v55  ;;  %v6776_v60 = vpop.f32.mrf.mxu2  ;;  %v6763_v28 = vadd.f32 %v6762_v6, %v6749_v59  ;;  %v7769_v6 = vld [vmem:[%s12846_s0 + $0x254] sm:$0xf0]  ;;  %v11238_v59 = vld [vmem:[%s11455_s17 + $0x1070] sm:$0xff] }
 0x1dd   : > { %7034 = vmatpush.bf16.msra.mxu1 %v11172_v58  ;;  %v6790_v38 = vpop.f32.mrf.mxu3 }
 0x1de   : > { %7048 = vmatpush.bf16.msra.mxu2 %v11180_v0  ;;  %v11196_v0 = vld [vmem:[%s11455_s17 + $0xf20] sm:$0xff] }
 0x1df   : > { %7062 = vmatpush.bf16.msra.mxu3 %v11188_v37  ;;  %v11212_v37 = vld [vmem:[%s11455_s17 + $0xfa0] sm:$0xff] }
 0x1e0   : > { %7021 = vmatpush.bf16.msra.mxu0 %v11163_v26  ;;  %v6777_v26 = vadd.f32 %v6776_v60, %v6763_v28  ;;  %v11254_v60 = vld [vmem:[%s11455_s17 + $0x10f0] sm:$0xff] }
 0x1e1   : > { %7035 = vmatpush.bf16.msra.mxu1 %v11171_v2 }
 0x1e2   : > { %7049 = vmatpush.bf16.msra.mxu2 %v11179_v4  ;;  %v11220_v4 = vld [vmem:[%s11455_s17 + $0xfe0] sm:$0xff]  ;;  %v6791_v8 = vadd.f32 %v6790_v38, %v6777_v26  ;;  %v11245_v38 = vld [vmem:[%s11455_s17 + $0x10a8] sm:$0xff] }
 0x1e3   : > { %7063 = vmatpush.bf16.msra.mxu3 %v11187_v35  ;;  %v11252_v26 = vld [vmem:[%s11455_s17 + $0x10e0] sm:$0xff] }
 0x1e4   : > { %7022 = vmatpush.bf16.msra.mxu0 %v11162_v16 }
 0x1e5   : > { %7036 = vmatpush.bf16.msra.mxu1 %v11170_v10 }
 0x1e6   : > { %7050 = vmatpush.bf16.msra.mxu2 %v11178_v39 }
 0x1e7   : > { %7064 = vmatpush.bf16.msra.mxu3 %v11186_v11 }
 0x1e8   : > { %7023 = vmatpush.bf16.msra.mxu0 %v11161_v25 }
 0x1e9   : > { %7037 = vmatpush.bf16.msra.mxu1 %v11169_v3  ;;  %v11202_v3 = vld [vmem:[%s11455_s17 + $0xf50] sm:$0xff] }
 0x1ea   : > { %7051 = vmatpush.bf16.msra.mxu2 %v11177_v12  ;;  %v11210_v12 = vld [vmem:[%s11455_s17 + $0xf90] sm:$0xff] }
 0x1eb   : > { %7065 = vmatpush.bf16.msra.mxu3 %v11185_v15  ;;  %v11218_v15 = vld [vmem:[%s11455_s17 + $0xfd0] sm:$0xff] }
 0x1ec   : > { %7024 = vmatpush.bf16.msra.mxu0 %v11160_v19  ;;  %v6802_v55 = vpop.f32.mrf.mxu0  ;;  %v11193_v19 = vld [vmem:[%s11455_s17 + $0xf08] sm:$0xff] }
 0x1ed   : > { %7038 = vmatpush.bf16.msra.mxu1 %v11168_v52  ;;  %v6803_v58 = vadd.f32 %v6802_v55, %v12398_v48  ;;  %v6816_v1 = vpop.f32.mrf.mxu1  ;;  %v11219_v48 = vld [vmem:[%s11455_s17 + $0xfd8] sm:$0xff]  ;;  %v11201_v52 = vld [vmem:[%s11455_s17 + $0xf48] sm:$0xff] }
 0x1ee   : > { %7052 = vmatpush.bf16.msra.mxu2 %v11176_v61  ;;  %v11209_v61 = vld [vmem:[%s11455_s17 + $0xf88] sm:$0xff] }
 0x1ef   : > { %7066 = vmatpush.bf16.msra.mxu3 %v11184_v36  ;;  %7025 = vmatmul.bf16.vlgmr.msra.gmra.mxu0 %v7744_v47  ;;  %v6817_v2 = vadd.f32 %v6816_v1, %v6803_v58  ;;  %v7759_v36 = vld [vmem:[%s12846_s0 + $0xf0] sm:$0xf]  ;;  %v11247_v47 = vld [vmem:[%s11455_s17 + $0x10b8] sm:$0xff]  ;;  %v11228_v58 = vld [vmem:[%s11455_s17 + $0x1020] sm:$0xff] }
 0x1f0   : > { %7073 = vmatpush.bf16.msrb.mxu0 %v11199_v23  ;;  %7039 = vmatmul.bf16.vlgmr.msra.gmra.mxu1 %v7748_v27  ;;  %v10656_v27 = vld [vmem:[%s12846_s0 + $0xfc] sm:$0xf]  ;;  %v11236_v1 = vld [vmem:[%s11455_s17 + $0x1060] sm:$0xff] }
 0x1f1   : > { %7087 = vmatpush.bf16.msrb.mxu1 %v11207_v24  ;;  %7053 = vmatmul.bf16.vlgmr.msra.gmra.mxu2 %v7752_v32  ;;  %v10655_v32 = vld [vmem:[%s12846_s0 + $0xf4] sm:$0xf]  ;;  %v7772_v33 = vor.u32 %v10656_v27, %v7769_v6  ;;  %v11287_v6 = vld [vmem:[%s11455_s17 + $0x11f8] sm:$0xff] }
 0x1f2   : > { %7101 = vmatpush.bf16.msrb.mxu2 %v11215_v41  ;;  %7067 = vmatmul.bf16.vlgmr.msra.gmra.mxu3 %v7756_v53  ;;  %v7760_v53 = vor.u32 %v10698_v43, %v7759_v36  ;;  %v10701_v36 = vld [vmem:[%s12846_s0 + $0x260] sm:$0xf0]  ;;  %v11279_v43 = vld [vmem:[%s11455_s17 + $0x11b8] sm:$0xff] }
 0x1f3   : > { %7115 = vmatpush.bf16.msrb.mxu3 %v11223_v40  ;;  %v11216_v40 = vld [vmem:[%s11455_s17 + $0xfc0] sm:$0xff] }
 0x1f4   : > { %7074 = vmatpush.bf16.msrb.mxu0 %v11198_v30  ;;  %v6830_v35 = vpop.f32.mrf.mxu2  ;;  %v6804_v16 = vpop.f32.mrf.mxu0  ;;  %v7768_v30 = vor.u32 %v10699_v45, %v7767_v44  ;;  %v10657_v44 = vld [vmem:[%s12846_s0 + $0x104] sm:$0xf]  ;;  %v7777_v45 = vld [vmem:[%s12846_s0 + $0x25c] sm:$0xf0] }
 0x1f5   : > { %7088 = vmatpush.bf16.msrb.mxu1 %v11206_v14  ;;  %v6831_v34 = vadd.f32 %v6830_v35, %v6817_v2  ;;  %v6844_v10 = vpop.f32.mrf.mxu3  ;;  %v6805_v39 = vadd.f32 %v6804_v16, %v6791_v8  ;;  %v6818_v25 = vpop.f32.mrf.mxu1  ;;  %v11255_v14 = vld [vmem:[%s11455_s17 + $0x10f8] sm:$0xff] }
 0x1f6   : > { %7102 = vmatpush.bf16.msrb.mxu2 %v11214_v54  ;;  %v7764_v54 = vor.u32 %v10655_v32, %v7761_v50  ;;  %v11227_v2 = vld [vmem:[%s11455_s17 + $0x1018] sm:$0xff]  ;;  %v10658_v32 = vld [vmem:[%s12846_s0 + $0x10c] sm:$0xf]  ;;  %v7785_v50 = vld [vmem:[%s12846_s0 + $0x264] sm:$0xf0] }
 0x1f7   : > { %7116 = vmatpush.bf16.msrb.mxu3 %v11222_v57  ;;  %v12462_v11 = vadd.f32 %v6844_v10, %v6831_v34  ;;  %v6819_v13 = vadd.f32 %v6818_v25, %v6805_v39  ;;  %v11230_v57 = vld [vmem:[%s11455_s17 + $0x1030] sm:$0xff]  ;;  %v11251_v35 = vld [vmem:[%s11455_s17 + $0x10d8] sm:$0xff] }
 0x1f8   : > { %7075 = vmatpush.bf16.msrb.mxu0 %v11197_v9  ;;  %v11246_v9 = vld [vmem:[%s11455_s17 + $0x10b0] sm:$0xff] }
 0x1f9   : > { %7089 = vmatpush.bf16.msrb.mxu1 %v11205_v62  ;;  %v11229_v62 = vld [vmem:[%s11455_s17 + $0x1028] sm:$0xff]  ;;  %v11226_v10 = vld [vmem:[%s11455_s17 + $0x1010] sm:$0xff] }
 0x1fa   : > { %7103 = vmatpush.bf16.msrb.mxu2 %v11213_v22  ;;  %v11237_v22 = vld [vmem:[%s11455_s17 + $0x1068] sm:$0xff] }
 0x1fb   : > { %7117 = vmatpush.bf16.msrb.mxu3 %v11221_v18  ;;  %v11253_v18 = vld [vmem:[%s11455_s17 + $0x10e8] sm:$0xff] }
 0x1fc   : > { %7076 = vmatpush.bf16.msrb.mxu0 %v11196_v0  ;;  %v6832_v23 = vpop.f32.mrf.mxu2 }
 0x1fd   : > { %7090 = vmatpush.bf16.msrb.mxu1 %v11204_v46  ;;  %v6833_v24 = vadd.f32 %v6832_v23, %v6819_v13  ;;  %v6846_v21 = vpop.f32.mrf.mxu3  ;;  %v11244_v46 = vld [vmem:[%s11455_s17 + $0x10a0] sm:$0xff]  ;;  %v11233_v13 = vld [vmem:[%s11455_s17 + $0x1048] sm:$0xff] }
 0x1fe   : > { %7104 = vmatpush.bf16.msrb.mxu2 %v11212_v37 }
 0x1ff   : > { %7118 = vmatpush.bf16.msrb.mxu3 %v11220_v4  ;;  %v12475_v41 = vadd.f32 %v6846_v21, %v6833_v24  ;;  %v11235_v4 = vld [vmem:[%s11455_s17 + $0x1058] sm:$0xff]  ;;  %v11224_v24 = vld [vmem:[%s11455_s17 + $0x1000] sm:$0xff] }
 0x200   : > { %7077 = vmatpush.bf16.msrb.mxu0 %v11195_v5  ;;  %v11243_v5 = vld [vmem:[%s11455_s17 + $0x1098] sm:$0xff]  ;;  %v11240_v21 = vld [vmem:[%s11455_s17 + $0x1080] sm:$0xff] }
 0x201   : > { %7091 = vmatpush.bf16.msrb.mxu1 %v11203_v7 }
 0x202   : > { %7105 = vmatpush.bf16.msrb.mxu2 %v11211_v49 }
 0x203   : > { %7119 = vmatpush.bf16.msrb.mxu3 %v11219_v48 }
 0x204   : > { %7078 = vmatpush.bf16.msrb.mxu0 %v11194_v17  ;;  %v11242_v17 = vld [vmem:[%s11455_s17 + $0x1090] sm:$0xff] }
 0x205   : > { %7092 = vmatpush.bf16.msrb.mxu1 %v11202_v3  ;;  %v11250_v3 = vld [vmem:[%s11455_s17 + $0x10d0] sm:$0xff] }
 0x206   : > { %7106 = vmatpush.bf16.msrb.mxu2 %v11210_v12  ;;  %v11225_v12 = vld [vmem:[%s11455_s17 + $0x1008] sm:$0xff] }
 0x207   : > { %7120 = vmatpush.bf16.msrb.mxu3 %v11218_v15  ;;  %v11241_v15 = vld [vmem:[%s11455_s17 + $0x1088] sm:$0xff] }
 0x208   : > { %7079 = vmatpush.bf16.msrb.mxu0 %v11193_v19 }
 0x209   : > { %7093 = vmatpush.bf16.msrb.mxu1 %v11201_v52 }
 0x20a   : > { %7107 = vmatpush.bf16.msrb.mxu2 %v11209_v61  ;;  %v11249_v61 = vld [vmem:[%s11455_s17 + $0x10c8] sm:$0xff] }
 0x20b   : > { %7121 = vmatpush.bf16.msrb.mxu3 %v11217_v51  ;;  %v11232_v51 = vld [vmem:[%s11455_s17 + $0x1040] sm:$0xff] }
 0x20c   : > { %7080 = vmatpush.bf16.msrb.mxu0 %v11192_v31  ;;  %v6858_v55 = vpop.f32.mrf.mxu0 }
 0x20d   : > { %7094 = vmatpush.bf16.msrb.mxu1 %v11200_v29  ;;  %v6859_v28 = vadd.f32 %v6858_v55, %v12462_v11  ;;  %v6872_v0 = vpop.f32.mrf.mxu1  ;;  %v11234_v11 = vld [vmem:[%s11455_s17 + $0x1050] sm:$0xff]  ;;  %v11263_v29 = vld [vmem:[%s11455_s17 + $0x1138] sm:$0xff] }
 0x20e   : > { %7108 = vmatpush.bf16.msrb.mxu2 %v11208_v20  ;;  %v11271_v20 = vld [vmem:[%s11455_s17 + $0x1178] sm:$0xff] }
 0x20f   : > { %7122 = vmatpush.bf16.msrb.mxu3 %v11216_v40  ;;  %7081 = vmatmul.bf16.vlgmr.msrb.gmra.mxu0 %v7760_v53  ;;  %v6873_v37 = vadd.f32 %v6872_v0, %v6859_v28  ;;  %v7780_v53 = vor.u32 %v10657_v44, %v7777_v45  ;;  %v11268_v28 = vld [vmem:[%s11455_s17 + $0x1160] sm:$0xff]  ;;  %v10660_v44 = vld [vmem:[%s12846_s0 + $0x11c] sm:$0xf]  ;;  %v7801_v45 = vld [vmem:[%s12846_s0 + $0x274] sm:$0xf0] }
 0x210   : > { %7129 = vmatpush.bf16.msra.mxu0 %v11231_v42  ;;  %7095 = vmatmul.bf16.vlgmr.msrb.gmra.mxu1 %v7764_v54  ;;  %v10700_v42 = vld [vmem:[%s12846_s0 + $0x258] sm:$0xf0]  ;;  %v11270_v54 = vld [vmem:[%s11455_s17 + $0x1170] sm:$0xff] }
 0x211   : > { %7143 = vmatpush.bf16.msra.mxu1 %v11239_v63  ;;  %7109 = vmatmul.bf16.vlgmr.msrb.gmra.mxu2 %v7768_v30  ;;  %v7783_v63 = vld [vmem:[%s12846_s0 + $0x108] sm:$0xf]  ;;  %v7788_v30 = vor.u32 %v10658_v32, %v7785_v50  ;;  %v11319_v50 = vld [vmem:[%s11455_s17 + $0x12f8] sm:$0xff] }
 0x212   : > { %7157 = vmatpush.bf16.msra.mxu2 %v11247_v47  ;;  %7123 = vmatmul.bf16.vlgmr.msrb.gmra.mxu3 %v7772_v33  ;;  %v11248_v47 = vld [vmem:[%s11455_s17 + $0x10c0] sm:$0xff]  ;;  %v7784_v27 = vor.u32 %v10701_v36, %v7783_v63  ;;  %v11278_v33 = vld [vmem:[%s11455_s17 + $0x11b0] sm:$0xff] }
 0x213   : > { %7171 = vmatpush.bf16.msra.mxu3 %v11255_v14  ;;  %v11262_v14 = vld [vmem:[%s11455_s17 + $0x1130] sm:$0xff] }
 0x214   : > { %7130 = vmatpush.bf16.msra.mxu0 %v11230_v57  ;;  %v6886_v7 = vpop.f32.mrf.mxu2  ;;  %v6860_v8 = vpop.f32.mrf.mxu0  ;;  %v11286_v57 = vld [vmem:[%s11455_s17 + $0x11f0] sm:$0xff] }
 0x215   : > { %7144 = vmatpush.bf16.msra.mxu1 %v11238_v59  ;;  %v6887_v49 = vadd.f32 %v6886_v7, %v6873_v37  ;;  %v6900_v34 = vpop.f32.mrf.mxu3  ;;  %v6861_v48 = vadd.f32 %v6860_v8, %v12475_v41  ;;  %v6874_v39 = vpop.f32.mrf.mxu1  ;;  %v7775_v41 = vld [vmem:[%s12846_s0 + $0x100] sm:$0xf]  ;;  %v11261_v59 = vld [vmem:[%s11455_s17 + $0x1128] sm:$0xff]  ;;  %v11267_v37 = vld [vmem:[%s11455_s17 + $0x1158] sm:$0xff] }
 0x216   : > { %7158 = vmatpush.bf16.msra.mxu2 %v11246_v9  ;;  %v7776_v40 = vor.u32 %v10700_v42, %v7775_v41  ;;  %v11269_v9 = vld [vmem:[%s11455_s17 + $0x1168] sm:$0xff]  ;;  %v10703_v41 = vld [vmem:[%s12846_s0 + $0x270] sm:$0xf0]  ;;  %v11311_v42 = vld [vmem:[%s11455_s17 + $0x12b8] sm:$0xff] }
 0x217   : > { %7172 = vmatpush.bf16.msra.mxu3 %v11254_v60  ;;  %v12524_v16 = vadd.f32 %v6900_v34, %v6887_v49  ;;  %v6875_v25 = vadd.f32 %v6874_v39, %v6861_v48  ;;  %v11277_v60 = vld [vmem:[%s11455_s17 + $0x11a8] sm:$0xff]  ;;  %v11258_v34 = vld [vmem:[%s11455_s17 + $0x1110] sm:$0xff] }
 0x218   : > { %7131 = vmatpush.bf16.msra.mxu0 %v11229_v62  ;;  %v11285_v62 = vld [vmem:[%s11455_s17 + $0x11e8] sm:$0xff]  ;;  %v10659_v63 = vld [vmem:[%s12846_s0 + $0x114] sm:$0xf]  ;;  %v7793_v36 = vld [vmem:[%s12846_s0 + $0x26c] sm:$0xf0] }
 0x219   : > { %7145 = vmatpush.bf16.msra.mxu1 %v11237_v22 }
 0x21a   : > { %7159 = vmatpush.bf16.msra.mxu2 %v11245_v38 }
 0x21b   : > { %7173 = vmatpush.bf16.msra.mxu3 %v11253_v18  ;;  %v11260_v18 = vld [vmem:[%s11455_s17 + $0x1120] sm:$0xff] }
 0x21c   : > { %7132 = vmatpush.bf16.msra.mxu0 %v11228_v58  ;;  %v6888_v19 = vpop.f32.mrf.mxu2  ;;  %v11276_v58 = vld [vmem:[%s11455_s17 + $0x11a0] sm:$0xff] }
 0x21d   : > { %7146 = vmatpush.bf16.msra.mxu1 %v11236_v1  ;;  %v6889_v52 = vadd.f32 %v6888_v19, %v6875_v25  ;;  %v6902_v23 = vpop.f32.mrf.mxu3  ;;  %v11284_v1 = vld [vmem:[%s11455_s17 + $0x11e0] sm:$0xff]  ;;  %v11265_v25 = vld [vmem:[%s11455_s17 + $0x1148] sm:$0xff] }
 0x21e   : > { %7160 = vmatpush.bf16.msra.mxu2 %v11244_v46  ;;  %v11259_v46 = vld [vmem:[%s11455_s17 + $0x1118] sm:$0xff] }
 0x21f   : > { %7174 = vmatpush.bf16.msra.mxu3 %v11252_v26  ;;  %v12537_v31 = vadd.f32 %v6902_v23, %v6889_v52  ;;  %v11275_v26 = vld [vmem:[%s11455_s17 + $0x1198] sm:$0xff]  ;;  %v11256_v52 = vld [vmem:[%s11455_s17 + $0x1100] sm:$0xff] }
 0x220   : > { %7133 = vmatpush.bf16.msra.mxu0 %v11227_v2  ;;  %v11272_v23 = vld [vmem:[%s11455_s17 + $0x1180] sm:$0xff] }
 0x221   : > { %7147 = vmatpush.bf16.msra.mxu1 %v11235_v4 }
 0x222   : > { %7161 = vmatpush.bf16.msra.mxu2 %v11243_v5  ;;  %v11283_v5 = vld [vmem:[%s11455_s17 + $0x11d8] sm:$0xff] }
 0x223   : > { %7175 = vmatpush.bf16.msra.mxu3 %v11251_v35 }
 0x224   : > { %7134 = vmatpush.bf16.msra.mxu0 %v11226_v10  ;;  %v11274_v10 = vld [vmem:[%s11455_s17 + $0x1190] sm:$0xff] }
 0x225   : > { %7148 = vmatpush.bf16.msra.mxu1 %v11234_v11  ;;  %v11282_v11 = vld [vmem:[%s11455_s17 + $0x11d0] sm:$0xff] }
 0x226   : > { %7162 = vmatpush.bf16.msra.mxu2 %v11242_v17  ;;  %v11257_v17 = vld [vmem:[%s11455_s17 + $0x1108] sm:$0xff] }
 0x227   : > { %7176 = vmatpush.bf16.msra.mxu3 %v11250_v3  ;;  %v11273_v3 = vld [vmem:[%s11455_s17 + $0x1188] sm:$0xff] }
 0x228   : > { %7135 = vmatpush.bf16.msra.mxu0 %v11225_v12 }
 0x229   : > { %7149 = vmatpush.bf16.msra.mxu1 %v11233_v13 }
 0x22a   : > { %7163 = vmatpush.bf16.msra.mxu2 %v11241_v15  ;;  %v11281_v15 = vld [vmem:[%s11455_s17 + $0x11c8] sm:$0xff] }
 0x22b   : > { %7177 = vmatpush.bf16.msra.mxu3 %v11249_v61  ;;  %v11264_v61 = vld [vmem:[%s11455_s17 + $0x1140] sm:$0xff] }
 0x22c   : > { %7136 = vmatpush.bf16.msra.mxu0 %v11224_v24  ;;  %v6914_v22 = vpop.f32.mrf.mxu0 }
 0x22d   : > { %7150 = vmatpush.bf16.msra.mxu1 %v11232_v51  ;;  %v6915_v38 = vadd.f32 %v6914_v22, %v12524_v16  ;;  %v6928_v55 = vpop.f32.mrf.mxu1  ;;  %v11266_v16 = vld [vmem:[%s11455_s17 + $0x1150] sm:$0xff]  ;;  %v11295_v51 = vld [vmem:[%s11455_s17 + $0x1238] sm:$0xff] }
 0x22e   : > { %7164 = vmatpush.bf16.msra.mxu2 %v11240_v21  ;;  %v11303_v21 = vld [vmem:[%s11455_s17 + $0x1278] sm:$0xff] }
 0x22f   : > { %7178 = vmatpush.bf16.msra.mxu3 %v11248_v47  ;;  %7137 = vmatmul.bf16.vlgmr.msra.gmra.mxu0 %v7776_v40  ;;  %v6929_v0 = vadd.f32 %v6928_v55, %v6915_v38  ;;  %v7796_v40 = vor.u32 %v10659_v63, %v7793_v36  ;;  %v11300_v38 = vld [vmem:[%s11455_s17 + $0x1260] sm:$0xff]  ;;  %v11351_v63 = vld [vmem:[%s11455_s17 + $0x13f8] sm:$0xff] }
 0x230   : > { %7185 = vmatpush.bf16.msrb.mxu0 %v11263_v29  ;;  %7151 = vmatmul.bf16.vlgmr.msra.gmra.mxu1 %v7780_v53  ;;  %v10702_v29 = vld [vmem:[%s12846_s0 + $0x268] sm:$0xf0]  ;;  %v11302_v53 = vld [vmem:[%s11455_s17 + $0x1270] sm:$0xff] }
 0x231   : > { %7199 = vmatpush.bf16.msrb.mxu1 %v11271_v20  ;;  %7165 = vmatmul.bf16.vlgmr.msra.gmra.mxu2 %v7784_v27  ;;  %v7799_v20 = vld [vmem:[%s12846_s0 + $0x118] sm:$0xf]  ;;  %v7804_v27 = vor.u32 %v10660_v44, %v7801_v45  ;;  %v11326_v44 = vld [vmem:[%s11455_s17 + $0x1330] sm:$0xff] }
 0x232   : > { %7213 = vmatpush.bf16.msrb.mxu2 %v11279_v43  ;;  %7179 = vmatmul.bf16.vlgmr.msra.gmra.mxu3 %v7788_v30  ;;  %v11280_v43 = vld [vmem:[%s11455_s17 + $0x11c0] sm:$0xff]  ;;  %v7800_v32 = vor.u32 %v10703_v41, %v7799_v20  ;;  %v11310_v30 = vld [vmem:[%s11455_s17 + $0x12b0] sm:$0xff]  ;;  %v7817_v20 = vld [vmem:[%s12846_s0 + $0x284] sm:$0xf0] }
 0x233   : > { %7227 = vmatpush.bf16.msrb.mxu3 %v11287_v6  ;;  %v11294_v6 = vld [vmem:[%s11455_s17 + $0x1230] sm:$0xff] }
 0x234   : > { %7186 = vmatpush.bf16.msrb.mxu0 %v11262_v14  ;;  %v6942_v2 = vpop.f32.mrf.mxu2  ;;  %v6916_v7 = vpop.f32.mrf.mxu0  ;;  %v11318_v14 = vld [vmem:[%s11455_s17 + $0x12f0] sm:$0xff] }
 0x235   : > { %7200 = vmatpush.bf16.msrb.mxu1 %v11270_v54  ;;  %v6943_v4 = vadd.f32 %v6942_v2, %v6929_v0  ;;  %v6956_v49 = vpop.f32.mrf.mxu3  ;;  %v6917_v35 = vadd.f32 %v6916_v7, %v12537_v31  ;;  %v6930_v48 = vpop.f32.mrf.mxu1  ;;  %v7791_v31 = vld [vmem:[%s12846_s0 + $0x110] sm:$0xf]  ;;  %v11293_v54 = vld [vmem:[%s11455_s17 + $0x1228] sm:$0xff]  ;;  %v11299_v0 = vld [vmem:[%s11455_s17 + $0x1258] sm:$0xff] }
 0x236   : > { %7214 = vmatpush.bf16.msrb.mxu2 %v11278_v33  ;;  %v7792_v47 = vor.u32 %v10702_v29, %v7791_v31  ;;  %v11301_v33 = vld [vmem:[%s11455_s17 + $0x1268] sm:$0xff]  ;;  %v11312_v31 = vld [vmem:[%s11455_s17 + $0x12c0] sm:$0xff]  ;;  %v11334_v45 = vld [vmem:[%s11455_s17 + $0x1370] sm:$0xff] }
 0x237   : > { %7228 = vmatpush.bf16.msrb.mxu3 %v11286_v57  ;;  %v12586_v8 = vadd.f32 %v6956_v49, %v6943_v4  ;;  %v6931_v39 = vadd.f32 %v6930_v48, %v6917_v35  ;;  %v11309_v57 = vld [vmem:[%s11455_s17 + $0x12a8] sm:$0xff]  ;;  %v11298_v49 = vld [vmem:[%s11455_s17 + $0x1250] sm:$0xff] }
 0x238   : > { %7187 = vmatpush.bf16.msrb.mxu0 %v11261_v59  ;;  %v11317_v59 = vld [vmem:[%s11455_s17 + $0x12e8] sm:$0xff]  ;;  %v11306_v35 = vld [vmem:[%s11455_s17 + $0x1290] sm:$0xff] }
 0x239   : > { %7201 = vmatpush.bf16.msrb.mxu1 %v11269_v9  ;;  %v11289_v48 = vld [vmem:[%s11455_s17 + $0x1208] sm:$0xff] }
 0x23a   : > { %7215 = vmatpush.bf16.msrb.mxu2 %v11277_v60  ;;  %v10662_v29 = vld [vmem:[%s12846_s0 + $0x12c] sm:$0xf] }
 0x23b   : > { %7229 = vmatpush.bf16.msrb.mxu3 %v11285_v62  ;;  %v11292_v62 = vld [vmem:[%s11455_s17 + $0x1220] sm:$0xff] }
 0x23c   : > { %7188 = vmatpush.bf16.msrb.mxu0 %v11260_v18  ;;  %v6944_v12 = vpop.f32.mrf.mxu2  ;;  %v11308_v18 = vld [vmem:[%s11455_s17 + $0x12a0] sm:$0xff] }
 0x23d   : > { %7202 = vmatpush.bf16.msrb.mxu1 %v11268_v28  ;;  %v6945_v13 = vadd.f32 %v6944_v12, %v6931_v39  ;;  %v6958_v19 = vpop.f32.mrf.mxu3  ;;  %v11316_v28 = vld [vmem:[%s11455_s17 + $0x12e0] sm:$0xff] }
 0x23e   : > { %7216 = vmatpush.bf16.msrb.mxu2 %v11276_v58  ;;  %v11291_v58 = vld [vmem:[%s11455_s17 + $0x1218] sm:$0xff]  ;;  %v11304_v12 = vld [vmem:[%s11455_s17 + $0x1280] sm:$0xff] }
 0x23f   : > { %7230 = vmatpush.bf16.msrb.mxu3 %v11284_v1  ;;  %v12599_v24 = vadd.f32 %v6958_v19, %v6945_v13  ;;  %v11307_v1 = vld [vmem:[%s11455_s17 + $0x1298] sm:$0xff]  ;;  %v7807_v19 = vld [vmem:[%s12846_s0 + $0x120] sm:$0xf] }
 0x240   : > { %7189 = vmatpush.bf16.msrb.mxu0 %v11259_v46  ;;  %v11327_v13 = vld [vmem:[%s11455_s17 + $0x1338] sm:$0xff] }
 0x241   : > { %7203 = vmatpush.bf16.msrb.mxu1 %v11267_v37 }
 0x242   : > { %7217 = vmatpush.bf16.msrb.mxu2 %v11275_v26  ;;  %v11315_v26 = vld [vmem:[%s11455_s17 + $0x12d8] sm:$0xff] }
 0x243   : > { %7231 = vmatpush.bf16.msrb.mxu3 %v11283_v5  ;;  %v11290_v5 = vld [vmem:[%s11455_s17 + $0x1210] sm:$0xff] }
 0x244   : > { %7190 = vmatpush.bf16.msrb.mxu0 %v11258_v34  ;;  %v11314_v34 = vld [vmem:[%s11455_s17 + $0x12d0] sm:$0xff] }
 0x245   : > { %7204 = vmatpush.bf16.msrb.mxu1 %v11266_v16  ;;  %v11297_v16 = vld [vmem:[%s11455_s17 + $0x1248] sm:$0xff] }
 0x246   : > { %7218 = vmatpush.bf16.msrb.mxu2 %v11274_v10  ;;  %v11305_v10 = vld [vmem:[%s11455_s17 + $0x1288] sm:$0xff] }
 0x247   : > { %7232 = vmatpush.bf16.msrb.mxu3 %v11282_v11 }
 0x248   : > { %7191 = vmatpush.bf16.msrb.mxu0 %v11257_v17  ;;  %v11313_v17 = vld [vmem:[%s11455_s17 + $0x12c8] sm:$0xff] }
 0x249   : > { %7205 = vmatpush.bf16.msrb.mxu1 %v11265_v25  ;;  %v11288_v25 = vld [vmem:[%s11455_s17 + $0x1200] sm:$0xff] }
 0x24a   : > { %7219 = vmatpush.bf16.msrb.mxu2 %v11273_v3  ;;  %v11296_v3 = vld [vmem:[%s11455_s17 + $0x1240] sm:$0xff] }
 0x24b   : > { %7233 = vmatpush.bf16.msrb.mxu3 %v11281_v15  ;;  %v11335_v15 = vld [vmem:[%s11455_s17 + $0x1378] sm:$0xff] }
 0x24c   : > { %7192 = vmatpush.bf16.msrb.mxu0 %v11256_v52  ;;  %v6970_v9 = vpop.f32.mrf.mxu0  ;;  %v10704_v52 = vld [vmem:[%s12846_s0 + $0x278] sm:$0xf0] }
 0x24d   : > { %7206 = vmatpush.bf16.msrb.mxu1 %v11264_v61  ;;  %v6971_v60 = vadd.f32 %v6970_v9, %v12586_v8  ;;  %v6984_v22 = vpop.f32.mrf.mxu1  ;;  %v7815_v61 = vld [vmem:[%s12846_s0 + $0x128] sm:$0xf]  ;;  %v7808_v41 = vor.u32 %v10704_v52, %v7807_v19  ;;  %v11347_v9 = vld [vmem:[%s11455_s17 + $0x13d8] sm:$0xff]  ;;  %v11374_v19 = vld [vmem:[%s11455_s17 + $0x14b0] sm:$0xff] }
 0x24e   : > { %7220 = vmatpush.bf16.msrb.mxu2 %v11272_v23  ;;  %v10705_v23 = vld [vmem:[%s12846_s0 + $0x280] sm:$0xf0]  ;;  %v11382_v52 = vld [vmem:[%s11455_s17 + $0x14f0] sm:$0xff] }
 0x24f   : > { %7234 = vmatpush.bf16.msrb.mxu3 %v11280_v43  ;;  %7193 = vmatmul.bf16.vlgmr.msrb.gmra.mxu0 %v7792_v47  ;;  %v6985_v55 = vadd.f32 %v6984_v22, %v6971_v60  ;;  %v7820_v43 = vor.u32 %v10662_v29, %v7817_v20  ;;  %v11342_v47 = vld [vmem:[%s11455_s17 + $0x13b0] sm:$0xff]  ;;  %v11372_v29 = vld [vmem:[%s11455_s17 + $0x14a0] sm:$0xff] }
 0x250   : > { %7241 = vmatpush.bf16.msra.mxu0 %v11295_v51  ;;  %7207 = vmatmul.bf16.vlgmr.msrb.gmra.mxu1 %v7796_v40  ;;  %v10661_v51 = vld [vmem:[%s12846_s0 + $0x124] sm:$0xf]  ;;  %v11333_v40 = vld [vmem:[%s11455_s17 + $0x1368] sm:$0xff]  ;;  %v11322_v60 = vld [vmem:[%s11455_s17 + $0x1310] sm:$0xff] }
 0x251   : > { %7255 = vmatpush.bf16.msra.mxu1 %v11303_v21  ;;  %7221 = vmatmul.bf16.vlgmr.msrb.gmra.mxu2 %v7800_v32  ;;  %v7809_v21 = vld [vmem:[%s12846_s0 + $0x27c] sm:$0xf0]  ;;  %v11350_v32 = vld [vmem:[%s11455_s17 + $0x13f0] sm:$0xff] }
 0x252   : > { %7269 = vmatpush.bf16.msra.mxu2 %v11311_v42  ;;  %7235 = vmatmul.bf16.vlgmr.msrb.gmra.mxu3 %v7804_v27  ;;  %v7816_v42 = vor.u32 %v10705_v23, %v7815_v61  ;;  %v7812_v36 = vor.u32 %v10661_v51, %v7809_v21  ;;  %v11341_v27 = vld [vmem:[%s11455_s17 + $0x13a8] sm:$0xff]  ;;  %v11338_v22 = vld [vmem:[%s11455_s17 + $0x1390] sm:$0xff]  ;;  %v11356_v21 = vld [vmem:[%s11455_s17 + $0x1420] sm:$0xff] }
 0x253   : > { %7283 = vmatpush.bf16.msra.mxu3 %v11319_v50  ;;  %v11325_v50 = vld [vmem:[%s11455_s17 + $0x1328] sm:$0xff]  ;;  %v11380_v20 = vld [vmem:[%s11455_s17 + $0x14e0] sm:$0xff] }
 0x254   : > { %7242 = vmatpush.bf16.msra.mxu0 %v11294_v6  ;;  %v6998_v46 = vpop.f32.mrf.mxu2  ;;  %v6972_v2 = vpop.f32.mrf.mxu0  ;;  %v11349_v6 = vld [vmem:[%s11455_s17 + $0x13e8] sm:$0xff] }
 0x255   : > { %7256 = vmatpush.bf16.msra.mxu1 %v11302_v53  ;;  %v12646_v37 = vadd.f32 %v6998_v46, %v6985_v55  ;;  %v6973_v4 = vadd.f32 %v6972_v2, %v12599_v24  ;;  %v6986_v7 = vpop.f32.mrf.mxu1  ;;  %v11343_v24 = vld [vmem:[%s11455_s17 + $0x13b8] sm:$0xff]  ;;  %v11324_v53 = vld [vmem:[%s11455_s17 + $0x1320] sm:$0xff]  ;;  %v11329_v55 = vld [vmem:[%s11455_s17 + $0x1348] sm:$0xff] }
 0x256   : > { %7270 = vmatpush.bf16.msra.mxu2 %v11310_v30  ;;  %v11332_v30 = vld [vmem:[%s11455_s17 + $0x1360] sm:$0xff]  ;;  %v11367_v2 = vld [vmem:[%s11455_s17 + $0x1478] sm:$0xff]  ;;  %v11357_v61 = vld [vmem:[%s11455_s17 + $0x1428] sm:$0xff] }
 0x257   : > { %7284 = vmatpush.bf16.msra.mxu3 %v11318_v14  ;;  %v6987_v8 = vadd.f32 %v6986_v7, %v6973_v4  ;;  %v11340_v14 = vld [vmem:[%s11455_s17 + $0x13a0] sm:$0xff]  ;;  %v7823_v4 = vld [vmem:[%s12846_s0 + $0x130] sm:$0xf]  ;;  %v7831_v7 = vld [vmem:[%s12846_s0 + $0x138] sm:$0xf] }
 0x258   : > { %7243 = vmatpush.bf16.msra.mxu0 %v11293_v54  ;;  %v11348_v54 = vld [vmem:[%s11455_s17 + $0x13e0] sm:$0xff]  ;;  %v11365_v23 = vld [vmem:[%s11455_s17 + $0x1468] sm:$0xff] }
 0x259   : > { %7257 = vmatpush.bf16.msra.mxu1 %v11301_v33  ;;  %v11323_v33 = vld [vmem:[%s11455_s17 + $0x1318] sm:$0xff]  ;;  %v11336_v46 = vld [vmem:[%s11455_s17 + $0x1380] sm:$0xff]  ;;  %v11381_v51 = vld [vmem:[%s11455_s17 + $0x14e8] sm:$0xff] }
 0x25a   : > { %7271 = vmatpush.bf16.msra.mxu2 %v11309_v57  ;;  %v11331_v57 = vld [vmem:[%s11455_s17 + $0x1358] sm:$0xff] }
 0x25b   : > { %7285 = vmatpush.bf16.msra.mxu3 %v11317_v59  ;;  %v11339_v59 = vld [vmem:[%s11455_s17 + $0x1398] sm:$0xff] }
 0x25c   : > { %7244 = vmatpush.bf16.msra.mxu0 %v11292_v62  ;;  %v7000_v39 = vpop.f32.mrf.mxu2  ;;  %v11330_v62 = vld [vmem:[%s11455_s17 + $0x1350] sm:$0xff] }
 0x25d   : > { %7258 = vmatpush.bf16.msra.mxu1 %v11300_v38  ;;  %v12657_v11 = vadd.f32 %v7000_v39, %v6987_v8  ;;  %v11346_v38 = vld [vmem:[%s11455_s17 + $0x13d0] sm:$0xff] }
 0x25e   : > { %7272 = vmatpush.bf16.msra.mxu2 %v11308_v18  ;;  %v11321_v18 = vld [vmem:[%s11455_s17 + $0x1308] sm:$0xff]  ;;  %v10663_v8 = vld [vmem:[%s12846_s0 + $0x134] sm:$0xf] }
 0x25f   : > { %7286 = vmatpush.bf16.msra.mxu3 %v11316_v28  ;;  %v11337_v28 = vld [vmem:[%s11455_s17 + $0x1388] sm:$0xff] }
 0x260   : > { %7245 = vmatpush.bf16.msra.mxu0 %v11291_v58  ;;  %v11345_v58 = vld [vmem:[%s11455_s17 + $0x13c8] sm:$0xff] }
 0x261   : > { %7259 = vmatpush.bf16.msra.mxu1 %v11299_v0  ;;  %v11320_v0 = vld [vmem:[%s11455_s17 + $0x1300] sm:$0xff] }
 0x262   : > { %7273 = vmatpush.bf16.msra.mxu2 %v11307_v1  ;;  %v11328_v1 = vld [vmem:[%s11455_s17 + $0x1340] sm:$0xff] }
 0x263   : > { %7287 = vmatpush.bf16.msra.mxu3 %v11315_v26  ;;  %v11359_v26 = vld [vmem:[%s11455_s17 + $0x1438] sm:$0xff] }
 0x264   : > { %7246 = vmatpush.bf16.msra.mxu0 %v11290_v5  ;;  %v10706_v5 = vld [vmem:[%s12846_s0 + $0x288] sm:$0xf0] }
 0x265   : > { %7260 = vmatpush.bf16.msra.mxu1 %v11298_v49  ;;  %v10707_v49 = vld [vmem:[%s12846_s0 + $0x290] sm:$0xf0]  ;;  %v7824_v39 = vor.u32 %v10706_v5, %v7823_v4 }
 0x266   : > { %7274 = vmatpush.bf16.msra.mxu2 %v11306_v35  ;;  %v11375_v35 = vld [vmem:[%s11455_s17 + $0x14b8] sm:$0xff]  ;;  %v11390_v4 = vld [vmem:[%s11455_s17 + $0x1530] sm:$0xff] }
 0x267   : > { %7288 = vmatpush.bf16.msra.mxu3 %v11314_v34  ;;  %v7825_v34 = vld [vmem:[%s12846_s0 + $0x28c] sm:$0xf0] }
 0x268   : > { %7247 = vmatpush.bf16.msra.mxu0 %v11289_v48  ;;  %v11344_v48 = vld [vmem:[%s11455_s17 + $0x13c0] sm:$0xff]  ;;  %v11398_v5 = vld [vmem:[%s11455_s17 + $0x1570] sm:$0xff] }
 0x269   : > { %7261 = vmatpush.bf16.msra.mxu1 %v11297_v16  ;;  %v10664_v16 = vld [vmem:[%s12846_s0 + $0x13c] sm:$0xf] }
 0x26a   : > { %7275 = vmatpush.bf16.msra.mxu2 %v11305_v10  ;;  %v7833_v10 = vld [vmem:[%s12846_s0 + $0x294] sm:$0xf0] }
 0x26b   : > { %7289 = vmatpush.bf16.msra.mxu3 %v11313_v17  ;;  %v7832_v17 = vor.u32 %v10707_v49, %v7831_v7  ;;  %v11400_v7 = vld [vmem:[%s11455_s17 + $0x1580] sm:$0xff]  ;;  %v11389_v49 = vld [vmem:[%s11455_s17 + $0x1528] sm:$0xff] }
 0x26c   : > { %7248 = vmatpush.bf16.msra.mxu0 %v11288_v25  ;;  %v11383_v25 = vld [vmem:[%s11455_s17 + $0x14f8] sm:$0xff] }
 0x26d   : > { %7262 = vmatpush.bf16.msra.mxu1 %v11296_v3  ;;  %v7828_v3 = vor.u32 %v10663_v8, %v7825_v34  ;;  %v11388_v8 = vld [vmem:[%s11455_s17 + $0x1520] sm:$0xff] }
 0x26e   : > { %7276 = vmatpush.bf16.msra.mxu2 %v11304_v12  ;;  %v7836_v12 = vor.u32 %v10664_v16, %v7833_v10  ;;  %v11396_v34 = vld [vmem:[%s11455_s17 + $0x1560] sm:$0xff]  ;;  %v10711_v16 = vld [vmem:[%s12846_s0 + $0x2b0] sm:$0xf0]  ;;  %v11387_v10 = vld [vmem:[%s11455_s17 + $0x1518] sm:$0xff] }
 0x26f   : > { %7290 = vmatpush.bf16.msra.mxu3 %v11312_v31  ;;  %7249 = vmatmul.bf16.vlgmr.msra.gmra.mxu0 %v7808_v41  ;;  %v11364_v31 = vld [vmem:[%s11455_s17 + $0x1460] sm:$0xff]  ;;  %v11355_v41 = vld [vmem:[%s11455_s17 + $0x1418] sm:$0xff] }
 0x270   : > { %7297 = vmatpush.bf16.msrb.mxu0 %v11327_v13  ;;  %7263 = vmatmul.bf16.vlgmr.msra.gmra.mxu1 %v7812_v36  ;;  %v11358_v13 = vld [vmem:[%s11455_s17 + $0x1430] sm:$0xff]  ;;  %v11379_v36 = vld [vmem:[%s11455_s17 + $0x14d8] sm:$0xff] }
 0x271   : > { %7311 = vmatpush.bf16.msrb.mxu1 %v11335_v15  ;;  %7277 = vmatmul.bf16.vlgmr.msra.gmra.mxu2 %v7816_v42  ;;  %v11366_v15 = vld [vmem:[%s11455_s17 + $0x1470] sm:$0xff]  ;;  %v11363_v42 = vld [vmem:[%s11455_s17 + $0x1458] sm:$0xff] }
 0x272   : > { %7325 = vmatpush.bf16.msrb.mxu2 %v11343_v24  ;;  %7291 = vmatmul.bf16.vlgmr.msra.gmra.mxu3 %v7820_v43  ;;  %v11373_v24 = vld [vmem:[%s11455_s17 + $0x14a8] sm:$0xff]  ;;  %v11354_v43 = vld [vmem:[%s11455_s17 + $0x1410] sm:$0xff] }
 0x273   : > { %7339 = vmatpush.bf16.msrb.mxu3 %v11351_v63  ;;  %v11371_v63 = vld [vmem:[%s11455_s17 + $0x1498] sm:$0xff] }
 0x274   : > { %7298 = vmatpush.bf16.msrb.mxu0 %v11326_v44  ;;  %v11362_v44 = vld [vmem:[%s11455_s17 + $0x1450] sm:$0xff] }
 0x275   : > { %7312 = vmatpush.bf16.msrb.mxu1 %v11334_v45  ;;  %v11370_v45 = vld [vmem:[%s11455_s17 + $0x1490] sm:$0xff] }
 0x276   : > { %7326 = vmatpush.bf16.msrb.mxu2 %v11342_v47  ;;  %v1638_v47 = vld [vmem:[%s11455_s17 + $0x1588] sm:$0x1] }
 0x277   : > { %7340 = vmatpush.bf16.msrb.mxu3 %v11350_v32  ;;  %v11378_v32 = vld [vmem:[%s11455_s17 + $0x14d0] sm:$0xff] }
 0x278   : > { %7299 = vmatpush.bf16.msrb.mxu0 %v11325_v50  ;;  %v11353_v50 = vld [vmem:[%s11455_s17 + $0x1408] sm:$0xff] }
 0x279   : > { %7313 = vmatpush.bf16.msrb.mxu1 %v11333_v40  ;;  %v4843_v40 = vunpack.c.l.b16 %v1638_v47 }
 0x27a   : > { %7327 = vmatpush.bf16.msrb.mxu2 %v11341_v27  ;;  %v11361_v27 = vld [vmem:[%s11455_s17 + $0x1448] sm:$0xff] }
 0x27b   : > { %7341 = vmatpush.bf16.msrb.mxu3 %v11349_v6  ;;  %v11369_v6 = vld [vmem:[%s11455_s17 + $0x1488] sm:$0xff] }
 0x27c   : > { %7300 = vmatpush.bf16.msrb.mxu0 %v11324_v53  ;;  %v11377_v53 = vld [vmem:[%s11455_s17 + $0x14c8] sm:$0xff] }
 0x27d   : > { %7314 = vmatpush.bf16.msrb.mxu1 %v11332_v30  ;;  %v11352_v30 = vld [vmem:[%s11455_s17 + $0x1400] sm:$0xff] }
 0x27e   : > { %7328 = vmatpush.bf16.msrb.mxu2 %v11340_v14  ;;  %v11360_v14 = vld [vmem:[%s11455_s17 + $0x1440] sm:$0xff] }
 0x27f   : > { %7342 = vmatpush.bf16.msrb.mxu3 %v11348_v54  ;;  %v11368_v54 = vld [vmem:[%s11455_s17 + $0x1480] sm:$0xff] }
 0x280   : > { %7301 = vmatpush.bf16.msrb.mxu0 %v11323_v33  ;;  %v7839_v33 = vld [vmem:[%s12846_s0 + $0x140] sm:$0xf] }
 0x281   : > { %7315 = vmatpush.bf16.msrb.mxu1 %v11331_v57  ;;  %v10708_v57 = vld [vmem:[%s12846_s0 + $0x298] sm:$0xf0] }
 0x282   : > { %7329 = vmatpush.bf16.msrb.mxu2 %v11339_v59  ;;  %v7847_v59 = vld [vmem:[%s12846_s0 + $0x148] sm:$0xf] }
 0x283   : > { %7343 = vmatpush.bf16.msrb.mxu3 %v11347_v9  ;;  %v5533_v9 = vpack.c.b16 %v4843_v40, %v4843_v40 }
 0x284   : > { %7302 = vmatpush.bf16.msrb.mxu0 %v11322_v60  ;;  %v10709_v60 = vld [vmem:[%s12846_s0 + $0x2a0] sm:$0xf0] }
 0x285   : > { %7316 = vmatpush.bf16.msrb.mxu1 %v11330_v62  ;;  %v10665_v62 = vld [vmem:[%s12846_s0 + $0x144] sm:$0xf] }
 0x286   : > { %7330 = vmatpush.bf16.msrb.mxu2 %v11338_v22  ;;  %v7841_v22 = vld [vmem:[%s12846_s0 + $0x29c] sm:$0xf0] }
 0x287   : > { %7344 = vmatpush.bf16.msrb.mxu3 %v11346_v38  ;;  %v6229_v38 = vsel %vm6227_vm0, 65535, %v11420_v56 }
 0x288   : > { %7303 = vmatpush.bf16.msrb.mxu0 %v11321_v18  ;;  %v11391_v18 = vld [vmem:[%s11455_s17 + $0x1538] sm:$0xff]  ;;  %v6231_v56 = vand.u32 %v6229_v38, %v5533_v9 }
 0x289   : > { %7317 = vmatpush.bf16.msrb.mxu1 %v11329_v55  ;;  %v11399_v55 = vld [vmem:[%s11455_s17 + $0x1578] sm:$0xff] }
 0x28a   : > { %7331 = vmatpush.bf16.msrb.mxu2 %v11337_v28  ;;  %v11376_v28 = vld [vmem:[%s11455_s17 + $0x14c0] sm:$0xff] }
 0x28b   : > { %7345 = vmatpush.bf16.msrb.mxu3 %v11345_v58  ;;  %v7840_v58 = vor.u32 %v10708_v57, %v7839_v33 }
 0x28c   : > { %7304 = vmatpush.bf16.msrb.mxu0 %v11320_v0  ;;  %v10666_v0 = vld [vmem:[%s12846_s0 + $0x14c] sm:$0xf] }
 0x28d   : > { %7318 = vmatpush.bf16.msrb.mxu1 %v11328_v1  ;;  %v7849_v1 = vld [vmem:[%s12846_s0 + $0x2a4] sm:$0xf0] }
 0x28e   : > { %7332 = vmatpush.bf16.msrb.mxu2 %v11336_v46  ;;  %v7848_v46 = vor.u32 %v10709_v60, %v7847_v59 }
 0x28f   : > { %7346 = vmatpush.bf16.msrb.mxu3 %v11344_v48  ;;  %7305 = vmatmul.bf16.vlgmr.msrb.gmra.mxu0 %v7824_v39  ;;  %v7863_v48 = vld [vmem:[%s12846_s0 + $0x158] sm:$0xf] }
 0x290   : > { %7353 = vmatpush.bf16.msra.mxu0 %v11359_v26  ;;  %7319 = vmatmul.bf16.vlgmr.msrb.gmra.mxu1 %v7828_v3  ;;  %v7844_v26 = vor.u32 %v10665_v62, %v7841_v22  ;;  %v11395_v39 = vld [vmem:[%s11455_s17 + $0x1558] sm:$0xff]  ;;  %v11394_v3 = vld [vmem:[%s11455_s17 + $0x1550] sm:$0xff] }
 0x291   : > { %7367 = vmatpush.bf16.msra.mxu1 %v11367_v2  ;;  %7333 = vmatmul.bf16.vlgmr.msrb.gmra.mxu2 %v7832_v17  ;;  %v7852_v2 = vor.u32 %v10666_v0, %v7849_v1  ;;  %v7864_v17 = vor.u32 %v10711_v16, %v7863_v48 }
 0x292   : > { %7381 = vmatpush.bf16.msra.mxu2 %v11375_v35  ;;  %7347 = vmatmul.bf16.vlgmr.msrb.gmra.mxu3 %v7836_v12  ;;  %v11397_v35 = vld [vmem:[%s11455_s17 + $0x1568] sm:$0xff] }
 0x293   : > { %7395 = vmatpush.bf16.msra.mxu3 %v11383_v25  ;;  %v11386_v25 = vld [vmem:[%s11455_s17 + $0x1510] sm:$0xff]  ;;  %v11385_v12 = vld [vmem:[%s11455_s17 + $0x1508] sm:$0xff] }
 0x294   : > { %7354 = vmatpush.bf16.msra.mxu0 %v11358_v13  ;;  %v11393_v13 = vld [vmem:[%s11455_s17 + $0x1548] sm:$0xff] }
 0x295   : > { %7368 = vmatpush.bf16.msra.mxu1 %v11366_v15  ;;  %v7012_v15 = vpop.f32.mrf.mxu3 }
 0x296   : > { %7382 = vmatpush.bf16.msra.mxu2 %v11374_v19  ;;  %v11384_v19 = vld [vmem:[%s11455_s17 + $0x1500] sm:$0xff]  ;;  %v7013_v57 = vadd.f32 %v7012_v15, %v12646_v37 }
 0x297   : > { %7396 = vmatpush.bf16.msra.mxu3 %v11382_v52  ;;  %v7855_v52 = vld [vmem:[%s12846_s0 + $0x150] sm:$0xf] }
 0x298   : > { %7355 = vmatpush.bf16.msra.mxu0 %v11357_v61  ;;  %v10710_v61 = vld [vmem:[%s12846_s0 + $0x2a8] sm:$0xf0] }
 0x299   : > { %7369 = vmatpush.bf16.msra.mxu1 %v11365_v23  ;;  %v11392_v23 = vld [vmem:[%s11455_s17 + $0x1540] sm:$0xff]  ;;  %s10624_s17 = sshll.u32 %s12851_s13, 4 }
 0x29a   : > { %7383 = vmatpush.bf16.msra.mxu2 %v11373_v24  ;;  %v10667_v24 = vld [vmem:[%s12846_s0 + $0x154] sm:$0xf]  ;;  %s170_s9 = scalar_lea.vmem %s12849_s3, %s10624_s17 }
 0x29b   : > { %7397 = vmatpush.bf16.msra.mxu3 %v11381_v51  ;;  %v7857_v51 = vld [vmem:[%s12846_s0 + $0x2ac] sm:$0xf0] }
 0x29c   : > { %7356 = vmatpush.bf16.msra.mxu0 %v11356_v21  ;;  %v7856_v21 = vor.u32 %v10710_v61, %v7855_v52 }
 0x29d   : > { %7370 = vmatpush.bf16.msra.mxu1 %v11364_v31  ;;  %v7860_v31 = vor.u32 %v10667_v24, %v7857_v51 }
 0x29e   : > { %7384 = vmatpush.bf16.msra.mxu2 %v11372_v29  ;;  %v7026_v29 = vpop.f32.mrf.mxu0 }
 0x29f   : > { %7398 = vmatpush.bf16.msra.mxu3 %v11380_v20  ;;  %v7040_v20 = vpop.f32.mrf.mxu1  ;;  %v7027_v59 = vadd.f32 %v7026_v29, %v7013_v57 }
 0x2a0   : > { %7357 = vmatpush.bf16.msra.mxu0 %v11355_v41  ;;  %v7054_v41 = vpop.f32.mrf.mxu2 }
 0x2a1   : > { %7371 = vmatpush.bf16.msra.mxu1 %v11363_v42  ;;  %v7014_v42 = vpop.f32.mrf.mxu3  ;;  %v7041_v60 = vadd.f32 %v7040_v20, %v7027_v59 }
 0x2a2   : > { %7385 = vmatpush.bf16.msra.mxu2 %v11371_v63 }
 0x2a3   : > { %7399 = vmatpush.bf16.msra.mxu3 %v11379_v36 }
 0x2a4   : > { %7358 = vmatpush.bf16.msra.mxu0 %v11354_v43 }
 0x2a5   : > { %7372 = vmatpush.bf16.msra.mxu1 %v11362_v44 }
 0x2a6   : > { %7386 = vmatpush.bf16.msra.mxu2 %v11370_v45  ;;  %v7028_v63 = vpop.f32.mrf.mxu0 }
 0x2a7   : > { %7400 = vmatpush.bf16.msra.mxu3 %v11378_v32  ;;  %v7042_v36 = vpop.f32.mrf.mxu1 }
 0x2a8   : > { %7359 = vmatpush.bf16.msra.mxu0 %v11353_v50  ;;  %v7056_v44 = vpop.f32.mrf.mxu2 }
 0x2a9   : > { %7373 = vmatpush.bf16.msra.mxu1 %v11361_v27  ;;  %v7068_v43 = vpop.f32.mrf.mxu3 }
 0x2aa   : > { %7387 = vmatpush.bf16.msra.mxu2 %v11369_v6 }
 0x2ab   : > { %7401 = vmatpush.bf16.msra.mxu3 %v11377_v53 }
 0x2ac   : > { %7360 = vmatpush.bf16.msra.mxu0 %v11352_v30 }
 0x2ad   : > { %7374 = vmatpush.bf16.msra.mxu1 %v11360_v14 }
 0x2ae   : > { %7388 = vmatpush.bf16.msra.mxu2 %v11368_v54  ;;  %v7082_v45 = vpop.f32.mrf.mxu0 }
 0x2af   : > { %7402 = vmatpush.bf16.msra.mxu3 %v11376_v28  ;;  %7361 = vmatmul.bf16.vlgmr.msra.gmra.mxu0 %v7840_v58  ;;  %v7096_v47 = vpop.f32.mrf.mxu1 }
 0x2b0   : > { %7409 = vmatpush.bf16.msrb.mxu0 %v11391_v18  ;;  %7375 = vmatmul.bf16.vlgmr.msra.gmra.mxu1 %v7844_v26  ;;  %v7110_v32 = vpop.f32.mrf.mxu2  ;;  %v7015_v18 = vadd.f32 %v7014_v42, %v12657_v11 }
 0x2b1   : > { %7423 = vmatpush.bf16.msrb.mxu1 %v11399_v55  ;;  %7389 = vmatmul.bf16.vlgmr.msra.gmra.mxu2 %v7848_v46  ;;  %v7070_v50 = vpop.f32.mrf.mxu3  ;;  %v7055_v55 = vadd.f32 %v7054_v41, %v7041_v60 }
 0x2b2   : > { %7443 = vmatpush.bf16.msrb.mxu2 %v6231_v56  ;;  %7403 = vmatmul.bf16.vlgmr.msra.gmra.mxu3 %v7852_v2  ;;  %v7029_v28 = vadd.f32 %v7028_v63, %v7015_v18 }
 0x2b3   : > { %v7069_v58 = vadd.f32 %v7068_v43, %v7055_v55 }
 0x2b4   : > { %7410 = vmatpush.bf16.msrb.mxu0 %v11390_v4  ;;  %v7043_v1 = vadd.f32 %v7042_v36, %v7029_v28 }
 0x2b5   : > { %7424 = vmatpush.bf16.msrb.mxu1 %v11398_v5  ;;  %v7083_v46 = vadd.f32 %v7082_v45, %v7069_v58 }
 0x2b6   : > { %7444 = vmatpush.bf16.msrb.mxu2 %v11400_v7  ;;  %v7084_v40 = vpop.f32.mrf.mxu0  ;;  %v7057_v2 = vadd.f32 %v7056_v44, %v7043_v1 }
 0x2b7   : > { %v7098_v27 = vpop.f32.mrf.mxu1  ;;  %v7097_v5 = vadd.f32 %v7096_v47, %v7083_v46 }
 0x2b8   : > { %7411 = vmatpush.bf16.msrb.mxu0 %v11389_v49  ;;  %v7112_v53 = vpop.f32.mrf.mxu2  ;;  %v7071_v37 = vadd.f32 %v7070_v50, %v7057_v2 }
 0x2b9   : > { %7425 = vmatpush.bf16.msrb.mxu1 %v11397_v35  ;;  %v7124_v6 = vpop.f32.mrf.mxu3  ;;  %v7111_v7 = vadd.f32 %v7110_v32, %v7097_v5 }
 0x2ba   : > { %v7085_v49 = vadd.f32 %v7084_v40, %v7071_v37 }
 0x2bc   : > { %7412 = vmatpush.bf16.msrb.mxu0 %v11388_v8  ;;  %v7125_v8 = vadd.f32 %v7124_v6, %v7111_v7  ;;  %v7099_v11 = vadd.f32 %v7098_v27, %v7085_v49 }
 0x2bd   : > { %7426 = vmatpush.bf16.msrb.mxu1 %v11396_v34 }
 0x2be   : > { %v7138_v30 = vpop.f32.mrf.mxu0 }
 0x2bf   : > { %v7152_v14 = vpop.f32.mrf.mxu1 }
 0x2c0   : > { %7413 = vmatpush.bf16.msrb.mxu0 %v11387_v10  ;;  %v7166_v54 = vpop.f32.mrf.mxu2  ;;  %v7139_v10 = vadd.f32 %v7138_v30, %v7125_v8 }
 0x2c1   : > { %7427 = vmatpush.bf16.msrb.mxu1 %v11395_v39  ;;  %10621 = vmatmul.msk.bf16.vlgmr.msrb.gmra.mxu2 %vm6223_vm1, %v7864_v17  ;;  %v7126_v33 = vpop.f32.mrf.mxu3  ;;  %v7113_v39 = vadd.f32 %v7112_v53, %v7099_v11 }
 0x2c2   : > { %v7153_v17 = vadd.f32 %v7152_v14, %v7139_v10 }
 0x2c4   : > { %7414 = vmatpush.bf16.msrb.mxu0 %v11386_v25 }
 0x2c5   : > { %7428 = vmatpush.bf16.msrb.mxu1 %v11394_v3  ;;  %v7127_v3 = vadd.f32 %v7126_v33, %v7113_v39 }
 0x2c6   : > { %v7140_v9 = vpop.f32.mrf.mxu0 }
 0x2c7   : > { %v7154_v62 = vpop.f32.mrf.mxu1 }
 0x2c8   : > { %7415 = vmatpush.bf16.msrb.mxu0 %v11385_v12  ;;  %v7168_v38 = vpop.f32.mrf.mxu2  ;;  %v7167_v12 = vadd.f32 %v7166_v54, %v7153_v17 }
 0x2c9   : > { %7429 = vmatpush.bf16.msrb.mxu1 %v11393_v13  ;;  %v7180_v22 = vpop.f32.mrf.mxu3 }
 0x2ca   : > { %v7181_v61 = vadd.f32 %v7180_v22, %v7167_v12 }
 0x2cc   : > { %7416 = vmatpush.bf16.msrb.mxu0 %v11384_v19  ;;  %v7141_v19 = vadd.f32 %v7140_v9, %v7127_v3 }
 0x2cd   : > { %7430 = vmatpush.bf16.msrb.mxu1 %v11392_v23 }
 0x2ce   : > { %v7194_v0 = vpop.f32.mrf.mxu0  ;;  %v7155_v23 = vadd.f32 %v7154_v62, %v7141_v19 }
 0x2cf   : > { %7417 = vmatmul.bf16.vlgmr.msrb.gmra.mxu0 %v7856_v21  ;;  %v7208_v26 = vpop.f32.mrf.mxu1  ;;  %v7195_v24 = vadd.f32 %v7194_v0, %v7181_v61 }
 0x2d0   : > { %7431 = vmatmul.bf16.vlgmr.msrb.gmra.mxu1 %v7860_v31  ;;  %v7169_v51 = vadd.f32 %v7168_v38, %v7155_v23 }
 0x2d1   : > { %v7182_v4 = vpop.f32.mrf.mxu3  ;;  %v7209_v31 = vadd.f32 %v7208_v26, %v7195_v24 }
 0x2d2   : > { %v7183_v42 = vadd.f32 %v7182_v4, %v7169_v51 }
 0x2d4   : > { %v7222_v56 = vpop.f32.mrf.mxu2 }
 0x2d5   : > { %v7223_v63 = vadd.f32 %v7222_v56, %v7209_v31 }
 0x2d6   : > { %v7196_v35 = vpop.f32.mrf.mxu0 }
 0x2d7   : > { %v7210_v34 = vpop.f32.mrf.mxu1  ;;  %v7197_v36 = vadd.f32 %v7196_v35, %v7183_v42 }
 0x2d9   : > { %v7236_v48 = vpop.f32.mrf.mxu3  ;;  %v7211_v45 = vadd.f32 %v7210_v34, %v7197_v36 }
 0x2da   : > { %v7237_v43 = vadd.f32 %v7236_v48, %v7223_v63 }
 0x2dc   : > { %v7224_v16 = vpop.f32.mrf.mxu2 }
 0x2dd   : > { %v7225_v40 = vadd.f32 %v7224_v16, %v7211_v45 }
 0x2e1   : > { %v7238_v52 = vpop.f32.mrf.mxu3 }
 0x2e2   : > { %v7239_v53 = vadd.f32 %v7238_v52, %v7225_v40 }
 0x2ec   : > { %v7250_v25 = vpop.f32.mrf.mxu0 }
 0x2ed   : > { %v7264_v13 = vpop.f32.mrf.mxu1  ;;  %v7251_v47 = vadd.f32 %v7250_v25, %v7237_v43 }
 0x2ef   : > { %v7265_v6 = vadd.f32 %v7264_v13, %v7251_v47 }
 0x2f4   : > { %v7278_v15 = vpop.f32.mrf.mxu2  ;;  %v7252_v21 = vpop.f32.mrf.mxu0 }
 0x2f5   : > { %v7266_v29 = vpop.f32.mrf.mxu1  ;;  %v7292_v20 = vpop.f32.mrf.mxu3  ;;  %v7279_v30 = vadd.f32 %v7278_v15, %v7265_v6  ;;  %v7253_v14 = vadd.f32 %v7252_v21, %v7239_v53 }
 0x2f7   : > { %v7293_v33 = vadd.f32 %v7292_v20, %v7279_v30  ;;  %v7267_v60 = vadd.f32 %v7266_v29, %v7253_v14 }
 0x2fc   : > { %v7280_v41 = vpop.f32.mrf.mxu2 }
 0x2fd   : > { %v7294_v27 = vpop.f32.mrf.mxu3  ;;  %v7281_v22 = vadd.f32 %v7280_v41, %v7267_v60 }
 0x2ff   : > { %v7295_v55 = vadd.f32 %v7294_v27, %v7281_v22 }
 0x30c   : > { %v7306_v44 = vpop.f32.mrf.mxu0 }
 0x30d   : > { %v7320_v32 = vpop.f32.mrf.mxu1  ;;  %v7307_v62 = vadd.f32 %v7306_v44, %v7293_v33 }
 0x30f   : > { %v7321_v38 = vadd.f32 %v7320_v32, %v7307_v62 }
 0x314   : > { %v7334_v50 = vpop.f32.mrf.mxu2  ;;  %v7308_v54 = vpop.f32.mrf.mxu0 }
 0x315   : > { %v7322_v57 = vpop.f32.mrf.mxu1  ;;  %v7348_v59 = vpop.f32.mrf.mxu3  ;;  %v7335_v28 = vadd.f32 %v7334_v50, %v7321_v38  ;;  %v7309_v1 = vadd.f32 %v7308_v54, %v7295_v55 }
 0x317   : > { %v7349_v26 = vadd.f32 %v7348_v59, %v7335_v28  ;;  %v7323_v56 = vadd.f32 %v7322_v57, %v7309_v1 }
 0x31c   : > { %v7336_v9 = vpop.f32.mrf.mxu2 }
 0x31d   : > { %v7350_v46 = vpop.f32.mrf.mxu3  ;;  %v7337_v4 = vadd.f32 %v7336_v9, %v7323_v56 }
 0x31f   : > { %v7351_v8 = vadd.f32 %v7350_v46, %v7337_v4 }
 0x32c   : > { %v7362_v18 = vpop.f32.mrf.mxu0 }
 0x32d   : > { %v7376_v58 = vpop.f32.mrf.mxu1  ;;  %v7363_v2 = vadd.f32 %v7362_v18, %v7349_v26 }
 0x32f   : > { %v7377_v37 = vadd.f32 %v7376_v58, %v7363_v2 }
 0x334   : > { %v7390_v0 = vpop.f32.mrf.mxu2  ;;  %v7364_v5 = vpop.f32.mrf.mxu0 }
 0x335   : > { %v7378_v7 = vpop.f32.mrf.mxu1  ;;  %v7404_v49 = vpop.f32.mrf.mxu3  ;;  %v7391_v34 = vadd.f32 %v7390_v0, %v7377_v37  ;;  %v7365_v48 = vadd.f32 %v7364_v5, %v7351_v8 }
 0x337   : > { %v7405_v16 = vadd.f32 %v7404_v49, %v7391_v34  ;;  %v7379_v10 = vadd.f32 %v7378_v7, %v7365_v48 }
 0x33c   : > { %v7392_v35 = vpop.f32.mrf.mxu2 }
 0x33d   : > { %v7393_v3 = vadd.f32 %v7392_v35, %v7379_v10  ;;  %v7406_v13 = vpop.f32.mrf.mxu3 }
 0x33f   : > { %v7407_v19 = vadd.f32 %v7406_v13, %v7393_v3 }
 0x344   : > { %v7446_v25 = vpop.f32.mrf.mxu2 }
 0x34c   : > { %v7418_v11 = vpop.f32.mrf.mxu0  ;;  %v7448_v51 = vpop.f32.mrf.mxu2 }
 0x34d   : > { %v7419_v39 = vadd.f32 %v7418_v11, %v7405_v16  ;;  %v7432_v17 = vpop.f32.mrf.mxu1 }
 0x34f   : > { %v7433_v12 = vadd.f32 %v7432_v17, %v7419_v39 }
 0x351   : > { %v7447_v15 = vadd.f32 %v7446_v25, %v7433_v12 }
 0x353   : > { %7452 = vst.msk [vmem:[%s170_s9] sm:$0xff] %vm7451_vm2, %v7447_v15 }
 0x354   : > { %v7420_v52 = vpop.f32.mrf.mxu0 }
 0x355   : > { %v7421_v61 = vadd.f32 %v7420_v52, %v7407_v19  ;;  %v7434_v23 = vpop.f32.mrf.mxu1 }
 0x357   : > { %v7435_v24 = vadd.f32 %v7434_v23, %v7421_v61 }
 0x359   : > { %v7449_v21 = vadd.f32 %v7448_v51, %v7435_v24 }
 0x35b   : > { %7453 = vst.msk [vmem:[%s170_s9 + $0x8] sm:$0xff] %vm7451_vm2, %v7449_v21 }
 0x35c PF: > { %s13_s12 = sadd.s32 1, %s11418_s12  }
 0x35d   : > { %p10_p4 = scmp.ge.s32.totalorder %s13_s12, 4  }
 0x35f   :  { %12 = sbr.rel (!%p10_p4) target bundleno = 1 (0x1), region = 62 }

// kernel: co3net_forward.11
= control target key start
LH: loop header
LB: loop body
LE: loop exit
PB: predicated region body
PF: predicated region fallthrough
CT: control target
= control target key end

     0   :  { %s604_s12 = smov 0   ;;  %s682_s0 = inlined_call_operand.vmem [shape: bf16[32,225], index: 0, kind: input, shape index: {}]   ;;  %s683_s1 = inlined_call_operand.vmem [shape: bf16[2,225,49], index: 1, kind: input, shape index: {}]   ;;  %s684_s2 = inlined_call_operand.vmem [shape: f32[32,1], index: 2, kind: input, shape index: {}]   ;;  %s685_s3 = inlined_call_operand.vmem [shape: f32[2,32,49], index: 3, kind: output, shape index: {}]  }
   0x1 LB: > { %s445_s13 = sadd.s32 4294967295, %s581_s12   ;;  %p449_p0 = scmp.ge.s32.totalorder %s581_s12, 1  ;;  %s581_s12 = sphi %s604_s12, %s13_s12  }
   0x2   : > { %p137_p1 = scmp.lt.s32.totalorder %s581_s12, 3 }
   0x4   : > { %p138_p2 = pnand %p449_p0, %p137_p1 }
   0x5   : > { %p161_p3 = scmp.lt.s32.totalorder (!%p138_p2), %s445_s13, 1 }
   0x6   : > { %141 = sbr.rel (%p138_p2) target bundleno = 192 (0xc0), region = 32 }
   0xb   : > { %v583_v0 = vmov 0   ;;  %s687_s13 = smov (!%p161_p3, %s445_s13), 1  ;;  %vm341_vm0 = vcmask 1040384   ;;  %v207_v8 = vld [vmem:[%s684_s2 + $0x10] sm:$0xff]  ;;  %v205_v10 = vld [vmem:[%s684_s2] sm:$0xff]  ;;  %v208_v14 = vld [vmem:[%s684_s2 + $0x18] sm:$0xff] }
   0xc   : > { %574 = vset.pattern.permute.xlu1 %v583_v0  ;;  %573 = vset.pattern.permute.xlu0 %v583_v0  ;;  %s563_s14 = smul.u32 116, %s687_s13  ;;  %v343_v5 = vsel %vm341_vm0, 65535, %v583_v0  ;;  %v206_v15 = vld [vmem:[%s684_s2 + $0x8] sm:$0xff]  ;;  %v455_v22 = vld [vmem:[%s682_s0] sm:$0xf]  ;;  %vm334_vm1 = vcmask 793600  }
   0xd   : > { %221 = vperm.xlu1 %574, %v207_v8   ;;  %211 = vperm.xlu0 %573, %v205_v10   ;;  %v531_v23 = vld [vmem:[%s682_s0 + $0x4] sm:$0xf0]  ;;  %v463_v24 = vld [vmem:[%s682_s0 + $0x10] sm:$0xf]  ;;  %v533_v25 = vld [vmem:[%s682_s0 + $0x14] sm:$0xf0] }
   0xe   : > { %s618_s17 = scalar_lea.vmem %s683_s1, %s563_s14  ;;  %v530_v27 = vld [vmem:[%s682_s0 + $0x4] sm:$0xf]  ;;  %v457_v28 = vld [vmem:[%s682_s0 + $0x8] sm:$0xf0]  ;;  %v532_v30 = vld [vmem:[%s682_s0 + $0x14] sm:$0xf]  ;;  %v456_v32 = vor.u32 %v531_v23, %v455_v22  ;;  %v464_v33 = vor.u32 %v533_v25, %v463_v24 }
   0xf   : > { %v541_v1 = vld [vmem:[%s618_s17 + $0x38] sm:$0xff]  ;;  %v204_v2 = vld [vmem:[%s618_s17 + $0x70] sm:$0x1]  ;;  %v539_v9 = vld [vmem:[%s618_s17 + $0x28] sm:$0xff]  ;;  %v460_v34 = vor.u32 %v530_v27, %v457_v28  ;;  %vm385_vm2 = vcmask 400384  }
  0x10   : > { %v304_v3 = vunpack.c.l.b16 %v204_v2  ;;  %347 = vmatpush.bf16.msra.mxu0 %v541_v1  ;;  %548 = vmatpush.bf16.msra.mxu2 %v541_v1  ;;  %v540_v4 = vld [vmem:[%s618_s17 + $0x30] sm:$0xff]  ;;  %v547_v11 = vld [vmem:[%s618_s17 + $0x68] sm:$0xff]  ;;  %v538_v12 = vld [vmem:[%s618_s17 + $0x20] sm:$0xff] }
  0x11   : > { %v546_v13 = vld [vmem:[%s618_s17 + $0x60] sm:$0xff]  ;;  %v537_v16 = vld [vmem:[%s618_s17 + $0x18] sm:$0xff]  ;;  %v536_v18 = vld [vmem:[%s618_s17 + $0x10] sm:$0xff] }
  0x12   : > { %v319_v6 = vpack.c.b16 %v304_v3, %v304_v3  ;;  %v545_v17 = vld [vmem:[%s618_s17 + $0x58] sm:$0xff]  ;;  %v544_v19 = vld [vmem:[%s618_s17 + $0x50] sm:$0xff]  ;;  %v535_v20 = vld [vmem:[%s618_s17 + $0x8] sm:$0xff] }
  0x13   : > { %v543_v21 = vld [vmem:[%s618_s17 + $0x48] sm:$0xff]  ;;  %v534_v26 = vld [vmem:[%s618_s17] sm:$0xff]  ;;  %v465_v31 = vld [vmem:[%s682_s0 + $0x18] sm:$0xf0] }
  0x14   : > { %v345_v7 = vand.u32 %v343_v5, %v319_v6  ;;  %348 = vmatpush.bf16.msra.mxu0 %v540_v4  ;;  %549 = vmatpush.bf16.msra.mxu2 %v540_v4  ;;  %v542_v29 = vld [vmem:[%s618_s17 + $0x40] sm:$0xff]  ;;  %v468_v35 = vor.u32 %v532_v30, %v465_v31  ;;  %s529_s17 = sshll.u32 %s687_s13, 5 }
  0x15   : > { %226 = vperm.xlu1 %574, %v208_v14   ;;  %216 = vperm.xlu0 %573, %v206_v15   ;;  %s170_s20 = scalar_lea.vmem %s685_s3, %s529_s17 }
  0x16   : > { %367 = vmatpush.bf16.msra.mxu1 %v345_v7  ;;  %556 = vmatpush.bf16.msra.mxu3 %v345_v7 }
  0x18   : > { %349 = vmatpush.bf16.msra.mxu0 %v539_v9  ;;  %550 = vmatpush.bf16.msra.mxu2 %v539_v9 }
  0x1a   : > { %368 = vmatpush.bf16.msra.mxu1 %v547_v11  ;;  %557 = vmatpush.bf16.msra.mxu3 %v547_v11 }
  0x1c   : > { %350 = vmatpush.bf16.msra.mxu0 %v538_v12  ;;  %551 = vmatpush.bf16.msra.mxu2 %v538_v12 }
  0x1e   : > { %369 = vmatpush.bf16.msra.mxu1 %v546_v13  ;;  %558 = vmatpush.bf16.msra.mxu3 %v546_v13 }
  0x20   : > { %351 = vmatpush.bf16.msra.mxu0 %v537_v16  ;;  %552 = vmatpush.bf16.msra.mxu2 %v537_v16 }
  0x22   : > { %370 = vmatpush.bf16.msra.mxu1 %v545_v17  ;;  %559 = vmatpush.bf16.msra.mxu3 %v545_v17 }
  0x24   : > { %352 = vmatpush.bf16.msra.mxu0 %v536_v18  ;;  %553 = vmatpush.bf16.msra.mxu2 %v536_v18 }
  0x26   : > { %371 = vmatpush.bf16.msra.mxu1 %v544_v19  ;;  %560 = vmatpush.bf16.msra.mxu3 %v544_v19 }
  0x28   : > { %353 = vmatpush.bf16.msra.mxu0 %v535_v20  ;;  %554 = vmatpush.bf16.msra.mxu2 %v535_v20 }
  0x2a   : > { %372 = vmatpush.bf16.msra.mxu1 %v543_v21  ;;  %561 = vmatpush.bf16.msra.mxu3 %v543_v21 }
  0x2c   : > { %354 = vmatpush.bf16.msra.mxu0 %v534_v26  ;;  %555 = vmatpush.bf16.msra.mxu2 %v534_v26 }
  0x2e   : > { %373 = vmatpush.bf16.msra.mxu1 %v542_v29  ;;  %562 = vmatpush.bf16.msra.mxu3 %v542_v29 }
  0x2f   : > { %355 = vmatmul.bf16.vlgmr.msra.gmra.mxu0 %v456_v32  ;;  %360 = vmatmul.bf16.vlgmr.msra.gmra.mxu2 %v464_v33 }
  0x31   : > { %525 = vmatmul.msk.bf16.vlgmr.msra.gmra.mxu1 %vm334_vm1, %v460_v34  ;;  %526 = vmatmul.msk.bf16.vlgmr.msra.gmra.mxu3 %vm334_vm1, %v468_v35 }
  0x7f   : > { %v212_v36 = vpop.permute.xlu0 %211  ;;  %v222_v41 = vpop.permute.xlu1 %221 }
  0x87   : > { %v217_v45 = vpop.permute.xlu0 %216  ;;  %v227_v51 = vpop.permute.xlu1 %226 }
  0xac   : > { %v356_v37 = vpop.f32.mrf.mxu0 }
  0xad   : > { %v357_v38 = vadd.f32 %v356_v37, %v212_v36 }
  0xae   : > { %v375_v39 = vpop.f32.mrf.mxu1 }
  0xaf   : > { %v376_v40 = vadd.f32 %v375_v39, %v357_v38 }
  0xb1   : > { %386 = vst.msk [vmem:[%s170_s20] sm:$0xff] %vm385_vm2, %v376_v40 }
  0xb2   : > { %v361_v42 = vpop.f32.mrf.mxu2 }
  0xb3   : > { %v362_v43 = vadd.f32 %v361_v42, %v222_v41 }
  0xb4   : > { %v380_v44 = vpop.f32.mrf.mxu3  ;;  %v358_v46 = vpop.f32.mrf.mxu0 }
  0xb5   : > { %v381_v47 = vadd.f32 %v380_v44, %v362_v43  ;;  %v359_v48 = vadd.f32 %v358_v46, %v217_v45 }
  0xb6   : > { %v377_v49 = vpop.f32.mrf.mxu1 }
  0xb7   : > { %388 = vst.msk [vmem:[%s170_s20 + $0x10] sm:$0xff] %vm385_vm2, %v381_v47  ;;  %v378_v50 = vadd.f32 %v377_v49, %v359_v48 }
  0xb9   : > { %387 = vst.msk [vmem:[%s170_s20 + $0x8] sm:$0xff] %vm385_vm2, %v378_v50 }
  0xba   : > { %v363_v52 = vpop.f32.mrf.mxu2 }
  0xbb   : > { %v364_v53 = vadd.f32 %v363_v52, %v227_v51 }
  0xbc   : > { %v382_v54 = vpop.f32.mrf.mxu3 }
  0xbd   : > { %v383_v55 = vadd.f32 %v382_v54, %v364_v53 }
  0xbf   : > { %389 = vst.msk [vmem:[%s170_s20 + $0x18] sm:$0xff] %vm385_vm2, %v383_v55 }
  0xc0 PF: > { %s13_s12 = sadd.s32 1, %s581_s12  }
  0xc1   : > { %p10_p4 = scmp.ge.s32.totalorder %s13_s12, 4  }
  0xc3   :  { %12 = sbr.rel (!%p10_p4) target bundleno = 1 (0x1), region = 62 }

// kernel: co3net_forward.12
= control target key start
LH: loop header
LB: loop body
LE: loop exit
PB: predicated region body
PF: predicated region fallthrough
CT: control target
= control target key end

     0   :  { %s729_s12 = smov 0   ;;  %s843_s0 = inlined_call_operand.vmem [shape: bf16[40,289], index: 0, kind: input, shape index: {}]   ;;  %s844_s1 = inlined_call_operand.vmem [shape: bf16[2,289,121], index: 1, kind: input, shape index: {}]   ;;  %s845_s2 = inlined_call_operand.vmem [shape: f32[40,1], index: 2, kind: input, shape index: {}]   ;;  %s846_s3 = inlined_call_operand.vmem [shape: f32[2,40,121], index: 3, kind: output, shape index: {}]  }
   0x1 LB: > { %s546_s13 = sadd.s32 4294967295, %s706_s12   ;;  %p550_p0 = scmp.ge.s32.totalorder %s706_s12, 1  ;;  %s706_s12 = sphi %s729_s12, %s13_s12  }
   0x2   : > { %p137_p1 = scmp.lt.s32.totalorder %s706_s12, 3 }
   0x4   : > { %p138_p2 = pnand %p550_p0, %p137_p1 }
   0x5   : > { %p161_p3 = scmp.lt.s32.totalorder (!%p138_p2), %s546_s13, 1 }
   0x6   : > { %141 = sbr.rel (%p138_p2) target bundleno = 214 (0xd6), region = 32 }
   0xb   : > { %v708_v0 = vmov 0   ;;  %s848_s13 = smov (!%p161_p3, %s546_s13), 1  ;;  %vm410_vm0 = vcmask 1040384   ;;  %v219_v12 = vld [vmem:[%s845_s2] sm:$0xff]  ;;  %v563_v17 = vld [vmem:[%s843_s0 + $0x8] sm:$0xf] }
   0xc   : > { %697 = vset.pattern.permute.xlu0 %v708_v0  ;;  %698 = vset.pattern.permute.xlu1 %v708_v0  ;;  %s686_s14 = smul.u32 148, %s848_s13  ;;  %v412_v7 = vsel %vm410_vm0, 65535, %v708_v0  ;;  %v656_v18 = vld [vmem:[%s843_s0 + $0x10] sm:$0xf0]  ;;  %vm400_vm1 = vcmask 269312   ;;  %v220_v25 = vld [vmem:[%s845_s2 + $0x8] sm:$0xff] }
   0xd   : > { %699 = vset.pattern.permute.xlu2 %v708_v0  ;;  %226 = vperm.xlu0 %697, %v219_v12   ;;  %v564_v21 = vor.u32 %v656_v18, %v563_v17  ;;  %v221_v24 = vld [vmem:[%s845_s2 + $0x10] sm:$0xff]  ;;  %v555_v28 = vld [vmem:[%s843_s0] sm:$0xf]  ;;  %v655_v29 = vld [vmem:[%s843_s0 + $0x8] sm:$0xf0]  ;;  %s687_s4 = smul.u32 40, %s848_s13 }
   0xe   : > { %s743_s17 = scalar_lea.vmem %s844_s1, %s686_s14  ;;  %236 = vperm.xlu1 %698, %v221_v24   ;;  %v654_v30 = vld [vmem:[%s843_s0 + $0x4] sm:$0xf]  ;;  %v222_v31 = vld [vmem:[%s845_s2 + $0x18] sm:$0xff]  ;;  %v557_v34 = vld [vmem:[%s843_s0 + $0xc] sm:$0xf0]  ;;  %v556_v39 = vor.u32 %v655_v29, %v555_v28  ;;  %vm485_vm2 = vcmask 990208  }
   0xf   : > { %v667_v1 = vld [vmem:[%s743_s17 + $0x38] sm:$0xff]  ;;  %v218_v3 = vld [vmem:[%s743_s17 + $0x90] sm:$0x1]  ;;  %v665_v10 = vld [vmem:[%s743_s17 + $0x28] sm:$0xff]  ;;  %v560_v40 = vor.u32 %v654_v30, %v557_v34  ;;  %s828_s7 = scalar_lea.vmem %s846_s3, %s687_s4 }
  0x10   : > { %v675_v2 = vld [vmem:[%s743_s17 + $0x78] sm:$0xff]  ;;  %416 = vmatpush.bf16.msra.mxu0 %v667_v1  ;;  %v666_v4 = vld [vmem:[%s743_s17 + $0x30] sm:$0xff]  ;;  %v362_v6 = vunpack.c.l.b16 %v218_v3  ;;  %678 = vmatpush.bf16.msra.mxu3 %v667_v1  ;;  %v673_v11 = vld [vmem:[%s743_s17 + $0x68] sm:$0xff] }
  0x11   : > { %439 = vmatpush.bf16.msra.mxu1 %v675_v2  ;;  %v674_v5 = vld [vmem:[%s743_s17 + $0x70] sm:$0xff]  ;;  %v677_v13 = vld [vmem:[%s743_s17 + $0x88] sm:$0xff]  ;;  %v664_v14 = vld [vmem:[%s743_s17 + $0x20] sm:$0xff] }
  0x12   : > { %v381_v8 = vpack.c.b16 %v362_v6, %v362_v6  ;;  %v672_v15 = vld [vmem:[%s743_s17 + $0x60] sm:$0xff]  ;;  %v663_v19 = vld [vmem:[%s743_s17 + $0x18] sm:$0xff]  ;;  %v662_v22 = vld [vmem:[%s743_s17 + $0x10] sm:$0xff] }
  0x13   : > { %v676_v16 = vld [vmem:[%s743_s17 + $0x80] sm:$0xff]  ;;  %v671_v20 = vld [vmem:[%s743_s17 + $0x58] sm:$0xff]  ;;  %v670_v23 = vld [vmem:[%s743_s17 + $0x50] sm:$0xff] }
  0x14   : > { %417 = vmatpush.bf16.msra.mxu0 %v666_v4  ;;  %v414_v9 = vand.u32 %v412_v7, %v381_v8  ;;  %679 = vmatpush.bf16.msra.mxu3 %v666_v4  ;;  %v661_v26 = vld [vmem:[%s743_s17 + $0x8] sm:$0xff]  ;;  %v660_v32 = vld [vmem:[%s743_s17] sm:$0xff]  ;;  %v567_v35 = vld [vmem:[%s843_s0 + $0x18] sm:$0xf] }
  0x15   : > { %440 = vmatpush.bf16.msra.mxu1 %v674_v5  ;;  %231 = vperm.xlu0 %697, %v220_v25   ;;  %v669_v27 = vld [vmem:[%s743_s17 + $0x48] sm:$0xff]  ;;  %v668_v33 = vld [vmem:[%s743_s17 + $0x40] sm:$0xff]  ;;  %v180_v44 = vld [vmem:[%s843_s0 + $0x30] sm:$0xff] }
  0x16   : > { %467 = vmatpush.bf16.msra.mxu2 %v414_v9  ;;  %v658_v36 = vld [vmem:[%s843_s0 + $0x20] sm:$0xf0]  ;;  %v575_v37 = vld [vmem:[%s843_s0 + $0x20] sm:$0xf]  ;;  %v659_v38 = vld [vmem:[%s843_s0 + $0x28] sm:$0xf0]  ;;  %241 = vperm.xlu1 %698, %v222_v31   ;;  %v271_v48 = vunpack.c.l.b16 %v180_v44  ;;  %v272_v53 = vunpack.c.h.b16 %v180_v44 }
  0x17   : > { %v568_v41 = vor.u32 %v658_v36, %v567_v35  ;;  %v576_v42 = vor.u32 %v659_v38, %v575_v37  ;;  %v223_v43 = vld [vmem:[%s845_s2 + $0x20] sm:$0xff]  ;;  %v181_v45 = vld [vmem:[%s843_s0 + $0x38] sm:$0xf]  ;;  %v657_v46 = vld [vmem:[%s843_s0 + $0x1c] sm:$0xf] }
  0x18   : > { %418 = vmatpush.bf16.msra.mxu0 %v665_v10  ;;  %680 = vmatpush.bf16.msra.mxu3 %v665_v10  ;;  %v569_v47 = vld [vmem:[%s843_s0 + $0x24] sm:$0xf0]  ;;  %v273_v49 = vunpack.c.l.b16 %v181_v45  ;;  %v280_v51 = vpack.c.b16 %v271_v48, %v271_v48  ;;  %v281_v54 = vpack.c.b16 %v272_v53, %v272_v53 }
  0x19   : > { %441 = vmatpush.bf16.msra.mxu1 %v673_v11  ;;  %246 = vperm.xlu2 %699, %v223_v43   ;;  %v572_v50 = vor.u32 %v657_v46, %v569_v47 }
  0x1a   : > { %468 = vmatpush.bf16.msra.mxu2 %v677_v13  ;;  %v282_v52 = vpack.c.b16 %v273_v49, %v273_v49 }
  0x1c   : > { %419 = vmatpush.bf16.msra.mxu0 %v664_v14  ;;  %681 = vmatpush.bf16.msra.mxu3 %v664_v14 }
  0x1d   : > { %442 = vmatpush.bf16.msra.mxu1 %v672_v15 }
  0x1e   : > { %469 = vmatpush.bf16.msra.mxu2 %v676_v16 }
  0x20   : > { %420 = vmatpush.bf16.msra.mxu0 %v663_v19  ;;  %682 = vmatpush.bf16.msra.mxu3 %v663_v19 }
  0x21   : > { %443 = vmatpush.bf16.msra.mxu1 %v671_v20  ;;  %649 = vmatmul.msk.bf16.vlgmr.msra.gmra.mxu2 %vm400_vm1, %v564_v21 }
  0x24   : > { %421 = vmatpush.bf16.msra.mxu0 %v662_v22  ;;  %683 = vmatpush.bf16.msra.mxu3 %v662_v22 }
  0x25   : > { %444 = vmatpush.bf16.msra.mxu1 %v670_v23 }
  0x28   : > { %422 = vmatpush.bf16.msra.mxu0 %v661_v26  ;;  %684 = vmatpush.bf16.msra.mxu3 %v661_v26 }
  0x29   : > { %445 = vmatpush.bf16.msra.mxu1 %v669_v27 }
  0x2c   : > { %423 = vmatpush.bf16.msra.mxu0 %v660_v32  ;;  %685 = vmatpush.bf16.msra.mxu3 %v660_v32 }
  0x2d   : > { %446 = vmatpush.bf16.msra.mxu1 %v668_v33 }
  0x2f   : > { %424 = vmatmul.bf16.vlgmr.msra.gmra.mxu0 %v556_v39  ;;  %429 = vmatmul.bf16.vlgmr.msra.gmra.mxu3 %v568_v41 }
  0x30   : > { %447 = vmatmul.bf16.vlgmr.msra.gmra.mxu1 %v560_v40 }
  0x31   : > { %650 = vmatmul.msk.bf16.gmra.mxu2 %vm400_vm1, %v576_v42 }
  0x3f   : > { %434 = vmatmul.bf16.gmra.mxu3 %v280_v51 }
  0x40   : > { %452 = vmatmul.bf16.gmra.mxu1 %v572_v50 }
  0x41   : > { %651 = vmatmul.msk.bf16.gmra.mxu2 %vm400_vm1, %v282_v52 }
  0x50   : > { %457 = vmatmul.bf16.gmra.mxu1 %v281_v54 }
  0x73   : > { %v247_v20 = vpop.permute.xlu2 %246 }
  0x7f   : > { %v227_v56 = vpop.permute.xlu0 %226 }
  0x80   : > { %v237_v5 = vpop.permute.xlu1 %236 }
  0x87   : > { %v232_v63 = vpop.permute.xlu0 %231 }
  0x88   : > { %v242_v14 = vpop.permute.xlu1 %241 }
  0xa4   : > { %v471_v55 = vpop.f32.mrf.mxu2 }
  0xac   : > { %v425_v57 = vpop.f32.mrf.mxu0  ;;  %v473_v60 = vpop.f32.mrf.mxu2 }
  0xad   : > { %v448_v58 = vpop.f32.mrf.mxu1  ;;  %v426_v59 = vadd.f32 %v425_v57, %v227_v56 }
  0xaf   : > { %v449_v61 = vadd.f32 %v448_v58, %v426_v59 }
  0xb1   : > { %v472_v62 = vadd.f32 %v471_v55, %v449_v61 }
  0xb2   : > { %v430_v0 = vpop.f32.mrf.mxu3 }
  0xb3   : > { %486 = vst.msk [vmem:[%s828_s7] sm:$0xff] %vm485_vm2, %v472_v62  ;;  %v431_v7 = vadd.f32 %v430_v0, %v237_v5 }
  0xb4   : > { %v427_v1 = vpop.f32.mrf.mxu0  ;;  %v476_v4 = vpop.f32.mrf.mxu2 }
  0xb5   : > { %v450_v2 = vpop.f32.mrf.mxu1  ;;  %v428_v3 = vadd.f32 %v427_v1, %v232_v63 }
  0xb7   : > { %v451_v6 = vadd.f32 %v450_v2, %v428_v3 }
  0xb9   : > { %v474_v8 = vadd.f32 %v473_v60, %v451_v6 }
  0xba   : > { %v432_v9 = vpop.f32.mrf.mxu3 }
  0xbb   : > { %487 = vst.msk [vmem:[%s828_s7 + $0x8] sm:$0xff] %vm485_vm2, %v474_v8  ;;  %v433_v15 = vadd.f32 %v432_v9, %v242_v14 }
  0xbc   : > { %v478_v12 = vpop.f32.mrf.mxu2 }
  0xbd   : > { %v453_v10 = vpop.f32.mrf.mxu1 }
  0xbe   : > { %v454_v11 = vadd.f32 %v453_v10, %v431_v7 }
  0xc0   : > { %v477_v13 = vadd.f32 %v476_v4, %v454_v11 }
  0xc2   : > { %488 = vst.msk [vmem:[%s828_s7 + $0x10] sm:$0xff] %vm485_vm2, %v477_v13  ;;  %v435_v16 = vpop.f32.mrf.mxu3 }
  0xc3   : > { %v436_v22 = vadd.f32 %v435_v16, %v247_v20 }
  0xc4   : > { %v481_v19 = vpop.f32.mrf.mxu2 }
  0xc5   : > { %v455_v17 = vpop.f32.mrf.mxu1 }
  0xc6   : > { %v456_v18 = vadd.f32 %v455_v17, %v433_v15 }
  0xc8   : > { %v479_v21 = vadd.f32 %v478_v12, %v456_v18 }
  0xca   : > { %489 = vst.msk [vmem:[%s828_s7 + $0x18] sm:$0xff] %vm485_vm2, %v479_v21  ;;  %v437_v23 = vpop.f32.mrf.mxu3 }
  0xcc   : > { %v483_v26 = vpop.f32.mrf.mxu2 }
  0xcd   : > { %v458_v24 = vpop.f32.mrf.mxu1 }
  0xce   : > { %v459_v25 = vadd.f32 %v458_v24, %v436_v22 }
  0xd0   : > { %v482_v27 = vadd.f32 %v481_v19, %v459_v25 }
  0xd2   : > { %490 = vst.msk [vmem:[%s828_s7 + $0x20] sm:$0xff] %vm485_vm2, %v482_v27 }
  0xd5   : > { %v460_v28 = vpop.f32.mrf.mxu1 }
  0xd6 PF: > { %s13_s12 = sadd.s32 1, %s706_s12  }
  0xd7   : > { %p10_p4 = scmp.ge.s32.totalorder %s13_s12, 4  }
  0xd9   :  { %12 = sbr.rel (!%p10_p4) target bundleno = 1 (0x1), region = 62 }

// kernel: co3net_forward.13
= control target key start
LH: loop header
LB: loop body
LE: loop exit
PB: predicated region body
PF: predicated region fallthrough
CT: control target
= control target key end

     0   :  { %s12817_s12 = smov 0   ;;  %s14901_s0 = inlined_call_operand.vmem [shape: bf16[40,10404], index: 0, kind: input, shape index: {}]   ;;  %s14902_s1 = inlined_call_operand.vmem [shape: bf16[2,10404,121], index: 1, kind: input, shape index: {}]   ;;  %s14903_s2 = inlined_call_operand.vmem [shape: f32[40,1], index: 2, kind: input, shape index: {}]   ;;  %s14904_s3 = inlined_call_operand.vmem [shape: f32[2,40,121], index: 3, kind: output, shape index: {}]  }
   0x1 LB: > { %s8676_s13 = sadd.s32 4294967295, %s12794_s12   ;;  %p8680_p0 = scmp.ge.s32.totalorder %s12794_s12, 1  ;;  %s12794_s12 = sphi %s12817_s12, %s13_s12  }
   0x2   : > { %p137_p1 = scmp.lt.s32.totalorder %s12794_s12, 3 }
   0x4   : > { %p138_p2 = pnand %p8680_p0, %p137_p1 }
   0x5   : > { %p161_p3 = scmp.lt.s32.totalorder (!%p138_p2), %s8676_s13, 1 }
   0x6   : > { %141 = sbr.rel (%p138_p2) target bundleno = 1164 (0x48c), region = 32 }
   0xb   : > { %s14906_s13 = smov (!%p161_p3, %s8676_s13), 1  ;;  %v12796_v8 = vmov 0   ;;  %v1678_v9 = vld [vmem:[%s14903_s2] sm:$0xff]  ;;  %v1679_v14 = vld [vmem:[%s14903_s2 + $0x8] sm:$0xff]  ;;  %v1680_v28 = vld [vmem:[%s14903_s2 + $0x10] sm:$0xff]  ;;  %vm6725_vm0 = vcmask 1041408  }
   0xc   : > { %s12774_s14 = smul.u32 5204, %s14906_s13  ;;  %12785 = vset.pattern.permute.xlu0 %v12796_v8  ;;  %12786 = vset.pattern.permute.xlu1 %v12796_v8  ;;  %v336_v17 = vld [vmem:[%s14901_s0 + $0x520] sm:$0xff]  ;;  %v11985_v20 = vld [vmem:[%s14901_s0 + $0x144] sm:$0xf0]  ;;  %v8687_v23 = vld [vmem:[%s14901_s0 + $0x148] sm:$0xf0] }
   0xd   : > { %1685 = vperm.xlu0 %12785, %v1678_v9   ;;  %12787 = vset.pattern.permute.xlu2 %v12796_v8  ;;  %v8685_v19 = vld [vmem:[%s14901_s0] sm:$0xf]  ;;  %v11944_v22 = vld [vmem:[%s14901_s0 + $0x4] sm:$0xf]  ;;  %v2241_v24 = vunpack.c.l.b16 %v336_v17  ;;  %v2242_v25 = vunpack.c.h.b16 %v336_v17  ;;  %v1681_v39 = vld [vmem:[%s14903_s2 + $0x18] sm:$0xff]  ;;  %vm6715_vm1 = vcmask 293888  }
   0xe   : > { %s12831_s17 = scalar_lea.vmem %s14902_s1, %s12774_s14  ;;  %v8686_v29 = vor.u32 %v11985_v20, %v8685_v19  ;;  %1695 = vperm.xlu1 %12786, %v1680_v28   ;;  %v8690_v31 = vor.u32 %v11944_v22, %v8687_v23  ;;  %v9013_v48 = vld [vmem:[%s14901_s0 + $0x290] sm:$0xf]  ;;  %v12067_v49 = vld [vmem:[%s14901_s0 + $0x3d4] sm:$0xf0]  ;;  %v12026_v50 = vld [vmem:[%s14901_s0 + $0x294] sm:$0xf] }
   0xf   : > { %v12115_v0 = vld [vmem:[%s12831_s17 + $0x38] sm:$0xff]  ;;  %v12114_v2 = vld [vmem:[%s12831_s17 + $0x30] sm:$0xff]  ;;  %v12113_v4 = vld [vmem:[%s12831_s17 + $0x28] sm:$0xff]  ;;  %v2487_v33 = vpack.c.b16 %v2241_v24, %v2241_v24  ;;  %v2488_v34 = vpack.c.b16 %v2242_v25, %v2242_v25  ;;  %v9014_v54 = vor.u32 %v12067_v49, %v9013_v48  ;;  %s12775_s20 = smul.u32 40, %s14906_s13  ;;  %vm8615_vm2 = vcmask 990208  }
  0x10   : > { %v12123_v1 = vld [vmem:[%s12831_s17 + $0x78] sm:$0xff]  ;;  %6729 = vmatpush.bf16.msra.mxu0 %v12115_v0  ;;  %12758 = vmatpush.bf16.msra.mxu2 %v12115_v0  ;;  %v12122_v3 = vld [vmem:[%s12831_s17 + $0x70] sm:$0xff]  ;;  %v12121_v5 = vld [vmem:[%s12831_s17 + $0x68] sm:$0xff] }
  0x11   : > { %6752 = vmatpush.bf16.msra.mxu1 %v12123_v1  ;;  %12766 = vmatpush.bf16.msra.mxu3 %v12123_v1  ;;  %v12112_v6 = vld [vmem:[%s12831_s17 + $0x20] sm:$0xff]  ;;  %v12111_v10 = vld [vmem:[%s12831_s17 + $0x18] sm:$0xff]  ;;  %v12110_v12 = vld [vmem:[%s12831_s17 + $0x10] sm:$0xff]  ;;  %s14883_s23 = scalar_lea.vmem %s14904_s3, %s12775_s20 }
  0x12   : > { %v12120_v7 = vld [vmem:[%s12831_s17 + $0x60] sm:$0xff]  ;;  %v12119_v11 = vld [vmem:[%s12831_s17 + $0x58] sm:$0xff]  ;;  %v12118_v13 = vld [vmem:[%s12831_s17 + $0x50] sm:$0xff] }
  0x13   : > { %v12109_v15 = vld [vmem:[%s12831_s17 + $0x8] sm:$0xff]  ;;  %v12108_v18 = vld [vmem:[%s12831_s17] sm:$0xff]  ;;  %v12131_v26 = vld [vmem:[%s12831_s17 + $0xb8] sm:$0xff] }
  0x14   : > { %6730 = vmatpush.bf16.msra.mxu0 %v12114_v2  ;;  %12759 = vmatpush.bf16.msra.mxu2 %v12114_v2  ;;  %v12117_v16 = vld [vmem:[%s12831_s17 + $0x48] sm:$0xff]  ;;  %v12116_v21 = vld [vmem:[%s12831_s17 + $0x40] sm:$0xff]  ;;  %v12139_v27 = vld [vmem:[%s12831_s17 + $0xf8] sm:$0xff] }
  0x15   : > { %6753 = vmatpush.bf16.msra.mxu1 %v12122_v3  ;;  %12767 = vmatpush.bf16.msra.mxu3 %v12122_v3  ;;  %v12155_v30 = vld [vmem:[%s12831_s17 + $0x178] sm:$0xff]  ;;  %v12130_v35 = vld [vmem:[%s12831_s17 + $0xb0] sm:$0xff]  ;;  %v12129_v40 = vld [vmem:[%s12831_s17 + $0xa8] sm:$0xff] }
  0x16   : > { %1690 = vperm.xlu0 %12785, %v1679_v14   ;;  %v12147_v32 = vld [vmem:[%s12831_s17 + $0x138] sm:$0xff]  ;;  %v12138_v36 = vld [vmem:[%s12831_s17 + $0xf0] sm:$0xff]  ;;  %v12137_v41 = vld [vmem:[%s12831_s17 + $0xe8] sm:$0xff]  ;;  %1700 = vperm.xlu1 %12786, %v1681_v39  }
  0x17   : > { %v12154_v37 = vld [vmem:[%s12831_s17 + $0x170] sm:$0xff]  ;;  %v12153_v42 = vld [vmem:[%s12831_s17 + $0x168] sm:$0xff]  ;;  %v12128_v44 = vld [vmem:[%s12831_s17 + $0xa0] sm:$0xff] }
  0x18   : > { %6731 = vmatpush.bf16.msra.mxu0 %v12113_v4  ;;  %12760 = vmatpush.bf16.msra.mxu2 %v12113_v4  ;;  %v12146_v38 = vld [vmem:[%s12831_s17 + $0x130] sm:$0xff]  ;;  %v12145_v43 = vld [vmem:[%s12831_s17 + $0x128] sm:$0xff]  ;;  %v12136_v45 = vld [vmem:[%s12831_s17 + $0xe0] sm:$0xff] }
  0x19   : > { %6754 = vmatpush.bf16.msra.mxu1 %v12121_v5  ;;  %12768 = vmatpush.bf16.msra.mxu3 %v12121_v5  ;;  %v12152_v46 = vld [vmem:[%s12831_s17 + $0x160] sm:$0xff]  ;;  %v9015_v51 = vld [vmem:[%s14901_s0 + $0x3d8] sm:$0xf0]  ;;  %v12126_v58 = vld [vmem:[%s12831_s17 + $0x90] sm:$0xff] }
  0x1a   : > { %v12144_v47 = vld [vmem:[%s12831_s17 + $0x120] sm:$0xff]  ;;  %v12127_v52 = vld [vmem:[%s12831_s17 + $0x98] sm:$0xff]  ;;  %v9018_v56 = vor.u32 %v12026_v50, %v9015_v51  ;;  %v12134_v59 = vld [vmem:[%s12831_s17 + $0xd0] sm:$0xff] }
  0x1b   : > { %v12135_v53 = vld [vmem:[%s12831_s17 + $0xd8] sm:$0xff]  ;;  %v12150_v60 = vld [vmem:[%s12831_s17 + $0x150] sm:$0xff]  ;;  %v1682_v62 = vld [vmem:[%s14903_s2 + $0x20] sm:$0xff] }
  0x1c   : > { %6732 = vmatpush.bf16.msra.mxu0 %v12112_v6  ;;  %12761 = vmatpush.bf16.msra.mxu2 %v12112_v6  ;;  %v12151_v55 = vld [vmem:[%s12831_s17 + $0x158] sm:$0xff]  ;;  %v12142_v61 = vld [vmem:[%s12831_s17 + $0x110] sm:$0xff]  ;;  %v12125_v63 = vld [vmem:[%s12831_s17 + $0x88] sm:$0xff] }
  0x1d   : > { %6755 = vmatpush.bf16.msra.mxu1 %v12120_v7  ;;  %12769 = vmatpush.bf16.msra.mxu3 %v12120_v7  ;;  %v12143_v57 = vld [vmem:[%s12831_s17 + $0x118] sm:$0xff]  ;;  %v12133_v0 = vld [vmem:[%s12831_s17 + $0xc8] sm:$0xff]  ;;  %v12124_v3 = vld [vmem:[%s12831_s17 + $0x80] sm:$0xff] }
  0x1e   : > { %v12149_v1 = vld [vmem:[%s12831_s17 + $0x148] sm:$0xff]  ;;  %1705 = vperm.xlu2 %12787, %v1682_v62   ;;  %v12132_v4 = vld [vmem:[%s12831_s17 + $0xc0] sm:$0xff]  ;;  %v11986_v6 = vld [vmem:[%s14901_s0 + $0x14c] sm:$0xf0] }
  0x1f   : > { %v12141_v2 = vld [vmem:[%s12831_s17 + $0x108] sm:$0xff]  ;;  %v8695_v8 = vld [vmem:[%s14901_s0 + $0x150] sm:$0xf0]  ;;  %v12140_v9 = vld [vmem:[%s12831_s17 + $0x100] sm:$0xff] }
  0x20   : > { %6733 = vmatpush.bf16.msra.mxu0 %v12111_v10  ;;  %12762 = vmatpush.bf16.msra.mxu2 %v12111_v10  ;;  %v8693_v5 = vld [vmem:[%s14901_s0 + $0x8] sm:$0xf]  ;;  %v11945_v7 = vld [vmem:[%s14901_s0 + $0xc] sm:$0xf]  ;;  %v12148_v10 = vld [vmem:[%s12831_s17 + $0x140] sm:$0xff] }
  0x21   : > { %6756 = vmatpush.bf16.msra.mxu1 %v12119_v11  ;;  %12770 = vmatpush.bf16.msra.mxu3 %v12119_v11  ;;  %v12163_v11 = vld [vmem:[%s12831_s17 + $0x1b8] sm:$0xff]  ;;  %v11946_v17 = vld [vmem:[%s14901_s0 + $0x14] sm:$0xf]  ;;  %v12169_v28 = vld [vmem:[%s12831_s17 + $0x1e8] sm:$0xff] }
  0x22   : > { %v11987_v14 = vld [vmem:[%s14901_s0 + $0x154] sm:$0xf0]  ;;  %v12162_v22 = vld [vmem:[%s12831_s17 + $0x1b0] sm:$0xff]  ;;  %v12164_v62 = vld [vmem:[%s12831_s17 + $0x1c0] sm:$0xff] }
  0x23   : > { %v12179_v19 = vld [vmem:[%s12831_s17 + $0x238] sm:$0xff]  ;;  %v12170_v24 = vld [vmem:[%s12831_s17 + $0x1f0] sm:$0xff] }
  0x24   : > { %6734 = vmatpush.bf16.msra.mxu0 %v12110_v12  ;;  %12763 = vmatpush.bf16.msra.mxu2 %v12110_v12  ;;  %v12171_v12 = vld [vmem:[%s12831_s17 + $0x1f8] sm:$0xff]  ;;  %v12178_v25 = vld [vmem:[%s12831_s17 + $0x230] sm:$0xff] }
  0x25   : > { %6757 = vmatpush.bf16.msra.mxu1 %v12118_v13  ;;  %12771 = vmatpush.bf16.msra.mxu3 %v12118_v13  ;;  %v8701_v13 = vld [vmem:[%s14901_s0 + $0x10] sm:$0xf]  ;;  %v12187_v20 = vld [vmem:[%s12831_s17 + $0x278] sm:$0xff] }
  0x26   : > { %v12159_v39 = vld [vmem:[%s12831_s17 + $0x198] sm:$0xff]  ;;  %v12158_v50 = vld [vmem:[%s12831_s17 + $0x190] sm:$0xff] }
  0x27   : > { %v12183_v48 = vld [vmem:[%s12831_s17 + $0x258] sm:$0xff] }
  0x28   : > { %6735 = vmatpush.bf16.msra.mxu0 %v12109_v15  ;;  %12764 = vmatpush.bf16.msra.mxu2 %v12109_v15  ;;  %v8694_v15 = vor.u32 %v11986_v6, %v8693_v5  ;;  %v12211_v6 = vld [vmem:[%s12831_s17 + $0x338] sm:$0xff] }
  0x29   : > { %6758 = vmatpush.bf16.msra.mxu1 %v12117_v16  ;;  %12772 = vmatpush.bf16.msra.mxu3 %v12117_v16  ;;  %v8698_v16 = vor.u32 %v11945_v7, %v8695_v8  ;;  %v12219_v7 = vld [vmem:[%s12831_s17 + $0x378] sm:$0xff] }
  0x2c   : > { %6736 = vmatpush.bf16.msra.mxu0 %v12108_v18  ;;  %12765 = vmatpush.bf16.msra.mxu2 %v12108_v18  ;;  %v8703_v18 = vld [vmem:[%s14901_s0 + $0x158] sm:$0xf0] }
  0x2d   : > { %6759 = vmatpush.bf16.msra.mxu1 %v12116_v21  ;;  %12773 = vmatpush.bf16.msra.mxu3 %v12116_v21  ;;  %v8702_v21 = vor.u32 %v11987_v14, %v8701_v13  ;;  %v8706_v23 = vor.u32 %v11946_v17, %v8703_v18  ;;  %v12218_v14 = vld [vmem:[%s12831_s17 + $0x370] sm:$0xff]  ;;  %v12201_v18 = vld [vmem:[%s12831_s17 + $0x2e8] sm:$0xff] }
  0x2e   : > { %v12210_v17 = vld [vmem:[%s12831_s17 + $0x330] sm:$0xff] }
  0x2f   : > { %6737 = vmatmul.bf16.vlgmr.msra.gmra.mxu0 %v8686_v29  ;;  %6747 = vmatmul.bf16.vlgmr.msra.gmra.mxu2 %v2487_v33  ;;  %v12177_v29 = vld [vmem:[%s12831_s17 + $0x228] sm:$0xff]  ;;  %v9021_v33 = vld [vmem:[%s14901_s0 + $0x298] sm:$0xf] }
  0x30   : > { %6775 = vmatpush.bf16.msrb.mxu2 %v12131_v26  ;;  %6760 = vmatmul.bf16.vlgmr.msra.gmra.mxu1 %v8690_v31  ;;  %v12186_v26 = vld [vmem:[%s12831_s17 + $0x270] sm:$0xff]  ;;  %v12160_v31 = vld [vmem:[%s12831_s17 + $0x1a0] sm:$0xff] }
  0x31   : > { %6798 = vmatpush.bf16.msrb.mxu3 %v12139_v27  ;;  %6844 = vmatpush.bf16.msrb.mxu1 %v12155_v30  ;;  %v12161_v27 = vld [vmem:[%s12831_s17 + $0x1a8] sm:$0xff] }
  0x32   : > { %6821 = vmatpush.bf16.msrb.mxu0 %v12147_v32  ;;  %6770 = vmatmul.bf16.vlgmr.msra.gmra.mxu3 %v2488_v34  ;;  %v12185_v30 = vld [vmem:[%s12831_s17 + $0x268] sm:$0xff]  ;;  %v12168_v32 = vld [vmem:[%s12831_s17 + $0x1e0] sm:$0xff] }
  0x33   : > { %v12068_v34 = vld [vmem:[%s14901_s0 + $0x3dc] sm:$0xf0] }
  0x34   : > { %6776 = vmatpush.bf16.msrb.mxu2 %v12130_v35  ;;  %v12027_v35 = vld [vmem:[%s14901_s0 + $0x29c] sm:$0xf] }
  0x35   : > { %6799 = vmatpush.bf16.msrb.mxu3 %v12138_v36  ;;  %6845 = vmatpush.bf16.msrb.mxu1 %v12154_v37  ;;  %v9023_v36 = vld [vmem:[%s14901_s0 + $0x3e0] sm:$0xf0] }
  0x36   : > { %6822 = vmatpush.bf16.msrb.mxu0 %v12146_v38  ;;  %v12176_v37 = vld [vmem:[%s12831_s17 + $0x220] sm:$0xff] }
  0x37   : > { %v12184_v38 = vld [vmem:[%s12831_s17 + $0x260] sm:$0xff] }
  0x38   : > { %6777 = vmatpush.bf16.msrb.mxu2 %v12129_v40  ;;  %v9029_v40 = vld [vmem:[%s14901_s0 + $0x2a0] sm:$0xf] }
  0x39   : > { %6800 = vmatpush.bf16.msrb.mxu3 %v12137_v41  ;;  %6846 = vmatpush.bf16.msrb.mxu1 %v12153_v42  ;;  %v12069_v41 = vld [vmem:[%s14901_s0 + $0x3e4] sm:$0xf0]  ;;  %v12167_v42 = vld [vmem:[%s12831_s17 + $0x1d8] sm:$0xff] }
  0x3a   : > { %6823 = vmatpush.bf16.msrb.mxu0 %v12145_v43  ;;  %v9022_v43 = vor.u32 %v12068_v34, %v9021_v33  ;;  %v9030_v49 = vor.u32 %v12069_v41, %v9029_v40  ;;  %v11989_v33 = vld [vmem:[%s14901_s0 + $0x164] sm:$0xf0]  ;;  %v12190_v34 = vld [vmem:[%s12831_s17 + $0x290] sm:$0xff]  ;;  %v12207_v40 = vld [vmem:[%s12831_s17 + $0x318] sm:$0xff] }
  0x3c   : > { %6778 = vmatpush.bf16.msrb.mxu2 %v12128_v44  ;;  %v9026_v44 = vor.u32 %v12027_v35, %v9023_v36 }
  0x3d   : > { %6801 = vmatpush.bf16.msrb.mxu3 %v12136_v45  ;;  %6847 = vmatpush.bf16.msrb.mxu1 %v12152_v46  ;;  %v12028_v45 = vld [vmem:[%s14901_s0 + $0x2a4] sm:$0xf]  ;;  %v9031_v46 = vld [vmem:[%s14901_s0 + $0x3e8] sm:$0xf0] }
  0x3e   : > { %6824 = vmatpush.bf16.msrb.mxu0 %v12144_v47  ;;  %v12175_v47 = vld [vmem:[%s12831_s17 + $0x218] sm:$0xff]  ;;  %v9034_v51 = vor.u32 %v12028_v45, %v9031_v46  ;;  %v12206_v45 = vld [vmem:[%s12831_s17 + $0x310] sm:$0xff] }
  0x3f   : > { %6742 = vmatmul.bf16.gmra.mxu0 %v9014_v54  ;;  %v12182_v54 = vld [vmem:[%s12831_s17 + $0x250] sm:$0xff] }
  0x40   : > { %6779 = vmatpush.bf16.msrb.mxu2 %v12127_v52  ;;  %6765 = vmatmul.bf16.gmra.mxu1 %v9018_v56  ;;  %v12166_v52 = vld [vmem:[%s12831_s17 + $0x1d0] sm:$0xff]  ;;  %v12165_v56 = vld [vmem:[%s12831_s17 + $0x1c8] sm:$0xff] }
  0x41   : > { %6802 = vmatpush.bf16.msrb.mxu3 %v12135_v53  ;;  %6848 = vmatpush.bf16.msrb.mxu1 %v12151_v55  ;;  %v12174_v53 = vld [vmem:[%s12831_s17 + $0x210] sm:$0xff]  ;;  %v12157_v55 = vld [vmem:[%s12831_s17 + $0x188] sm:$0xff] }
  0x42   : > { %6825 = vmatpush.bf16.msrb.mxu0 %v12143_v57  ;;  %v337_v57 = vld [vmem:[%s14901_s0 + $0x528] sm:$0xff]  ;;  %v12214_v46 = vld [vmem:[%s12831_s17 + $0x350] sm:$0xff] }
  0x44   : > { %6780 = vmatpush.bf16.msrb.mxu2 %v12126_v58  ;;  %v12173_v58 = vld [vmem:[%s12831_s17 + $0x208] sm:$0xff] }
  0x45   : > { %6803 = vmatpush.bf16.msrb.mxu3 %v12134_v59  ;;  %6849 = vmatpush.bf16.msrb.mxu1 %v12150_v60  ;;  %v12181_v59 = vld [vmem:[%s12831_s17 + $0x248] sm:$0xff]  ;;  %v12156_v60 = vld [vmem:[%s12831_s17 + $0x180] sm:$0xff] }
  0x46   : > { %6826 = vmatpush.bf16.msrb.mxu0 %v12142_v61  ;;  %v338_v61 = vld [vmem:[%s14901_s0 + $0x530] sm:$0xff] }
  0x47   : > { %v2245_v5 = vunpack.c.l.b16 %v338_v61  ;;  %v2246_v8 = vunpack.c.h.b16 %v338_v61 }
  0x48   : > { %6781 = vmatpush.bf16.msrb.mxu2 %v12125_v63  ;;  %v12195_v63 = vld [vmem:[%s12831_s17 + $0x2b8] sm:$0xff] }
  0x49   : > { %6804 = vmatpush.bf16.msrb.mxu3 %v12133_v0  ;;  %6850 = vmatpush.bf16.msrb.mxu1 %v12149_v1  ;;  %v2243_v0 = vunpack.c.l.b16 %v337_v57  ;;  %v2244_v1 = vunpack.c.h.b16 %v337_v57  ;;  %v2491_v13 = vpack.c.b16 %v2245_v5, %v2245_v5  ;;  %v12234_v5 = vld [vmem:[%s12831_s17 + $0x3f0] sm:$0xff] }
  0x4a   : > { %6827 = vmatpush.bf16.msrb.mxu0 %v12141_v2  ;;  %v12203_v2 = vld [vmem:[%s12831_s17 + $0x2f8] sm:$0xff] }
  0x4c   : > { %6782 = vmatpush.bf16.msrb.mxu2 %v12124_v3  ;;  %v12172_v3 = vld [vmem:[%s12831_s17 + $0x200] sm:$0xff] }
  0x4d   : > { %6805 = vmatpush.bf16.msrb.mxu3 %v12132_v4  ;;  %6851 = vmatpush.bf16.msrb.mxu1 %v12148_v10  ;;  %v12180_v4 = vld [vmem:[%s12831_s17 + $0x240] sm:$0xff]  ;;  %v2489_v10 = vpack.c.b16 %v2243_v0, %v2243_v0 }
  0x4e   : > { %6828 = vmatpush.bf16.msrb.mxu0 %v12140_v9  ;;  %v12194_v9 = vld [vmem:[%s12831_s17 + $0x2b0] sm:$0xff] }
  0x4f   : > { %6783 = vmatmul.bf16.vlgmr.msrb.gmra.mxu2 %v8694_v15  ;;  %v2492_v15 = vpack.c.b16 %v2246_v8, %v2246_v8  ;;  %v340_v8 = vld [vmem:[%s14901_s0 + $0x540] sm:$0xff] }
  0x50   : > { %6867 = vmatpush.bf16.msra.mxu2 %v12163_v11  ;;  %6806 = vmatmul.bf16.vlgmr.msrb.gmra.mxu3 %v8698_v16  ;;  %v2490_v11 = vpack.c.b16 %v2244_v1, %v2244_v1  ;;  %v12193_v16 = vld [vmem:[%s12831_s17 + $0x2a8] sm:$0xff]  ;;  %v12227_v1 = vld [vmem:[%s12831_s17 + $0x3b8] sm:$0xff] }
  0x51   : > { %6890 = vmatpush.bf16.msra.mxu3 %v12171_v12  ;;  %6936 = vmatpush.bf16.msra.mxu1 %v12187_v20  ;;  %v12202_v12 = vld [vmem:[%s12831_s17 + $0x2f0] sm:$0xff]  ;;  %v12217_v20 = vld [vmem:[%s12831_s17 + $0x368] sm:$0xff] }
  0x52   : > { %6913 = vmatpush.bf16.msra.mxu0 %v12179_v19  ;;  %6852 = vmatmul.bf16.vlgmr.msrb.gmra.mxu1 %v8706_v23  ;;  %v12192_v19 = vld [vmem:[%s12831_s17 + $0x2a0] sm:$0xff] }
  0x53   : > { %6829 = vmatmul.bf16.vlgmr.msrb.gmra.mxu0 %v8702_v21  ;;  %v12209_v21 = vld [vmem:[%s12831_s17 + $0x328] sm:$0xff]  ;;  %v12216_v23 = vld [vmem:[%s12831_s17 + $0x360] sm:$0xff] }
  0x54   : > { %6868 = vmatpush.bf16.msra.mxu2 %v12162_v22  ;;  %v12200_v22 = vld [vmem:[%s12831_s17 + $0x2e0] sm:$0xff] }
  0x55   : > { %6891 = vmatpush.bf16.msra.mxu3 %v12170_v24  ;;  %6937 = vmatpush.bf16.msra.mxu1 %v12186_v26  ;;  %v12191_v24 = vld [vmem:[%s12831_s17 + $0x298] sm:$0xff]  ;;  %v11988_v26 = vld [vmem:[%s14901_s0 + $0x15c] sm:$0xf0] }
  0x56   : > { %6914 = vmatpush.bf16.msra.mxu0 %v12178_v25  ;;  %v8709_v25 = vld [vmem:[%s14901_s0 + $0x18] sm:$0xf] }
  0x57   : > { %v8710_v35 = vor.u32 %v11988_v26, %v8709_v25  ;;  %v8725_v25 = vld [vmem:[%s14901_s0 + $0x28] sm:$0xf]  ;;  %v11990_v26 = vld [vmem:[%s14901_s0 + $0x16c] sm:$0xf0] }
  0x58   : > { %6869 = vmatpush.bf16.msra.mxu2 %v12161_v27  ;;  %v12208_v27 = vld [vmem:[%s12831_s17 + $0x320] sm:$0xff] }
  0x59   : > { %6892 = vmatpush.bf16.msra.mxu3 %v12169_v28  ;;  %6938 = vmatpush.bf16.msra.mxu1 %v12185_v30  ;;  %v11947_v28 = vld [vmem:[%s14901_s0 + $0x1c] sm:$0xf] }
  0x5a   : > { %6915 = vmatpush.bf16.msra.mxu0 %v12177_v29  ;;  %v8711_v29 = vld [vmem:[%s14901_s0 + $0x160] sm:$0xf0]  ;;  %v12199_v30 = vld [vmem:[%s12831_s17 + $0x2d8] sm:$0xff] }
  0x5b   : > { %v8714_v36 = vor.u32 %v11947_v28, %v8711_v29  ;;  %v8727_v28 = vld [vmem:[%s14901_s0 + $0x170] sm:$0xf0]  ;;  %v12223_v29 = vld [vmem:[%s12831_s17 + $0x398] sm:$0xff] }
  0x5c   : > { %6870 = vmatpush.bf16.msra.mxu2 %v12160_v31  ;;  %v12215_v31 = vld [vmem:[%s12831_s17 + $0x358] sm:$0xff] }
  0x5d   : > { %6893 = vmatpush.bf16.msra.mxu3 %v12168_v32  ;;  %6939 = vmatpush.bf16.msra.mxu1 %v12184_v38  ;;  %v8717_v32 = vld [vmem:[%s14901_s0 + $0x20] sm:$0xf]  ;;  %v8719_v38 = vld [vmem:[%s14901_s0 + $0x168] sm:$0xf0] }
  0x5e   : > { %6916 = vmatpush.bf16.msra.mxu0 %v12176_v37  ;;  %v11948_v37 = vld [vmem:[%s14901_s0 + $0x24] sm:$0xf]  ;;  %v8718_v41 = vor.u32 %v11989_v33, %v8717_v32  ;;  %v8733_v33 = vld [vmem:[%s14901_s0 + $0x30] sm:$0xf] }
  0x5f   : > { %6788 = vmatmul.bf16.gmra.mxu2 %v9022_v43  ;;  %v12189_v43 = vld [vmem:[%s12831_s17 + $0x288] sm:$0xff] }
  0x60   : > { %6871 = vmatpush.bf16.msra.mxu2 %v12159_v39  ;;  %6811 = vmatmul.bf16.gmra.mxu3 %v9026_v44  ;;  %v12198_v39 = vld [vmem:[%s12831_s17 + $0x2d0] sm:$0xff]  ;;  %v12197_v44 = vld [vmem:[%s12831_s17 + $0x2c8] sm:$0xff] }
  0x61   : > { %6894 = vmatpush.bf16.msra.mxu3 %v12167_v42  ;;  %6940 = vmatpush.bf16.msra.mxu1 %v12183_v48  ;;  %v8722_v42 = vor.u32 %v11948_v37, %v8719_v38  ;;  %v12196_v48 = vld [vmem:[%s12831_s17 + $0x2c0] sm:$0xff]  ;;  %v11950_v38 = vld [vmem:[%s14901_s0 + $0x34] sm:$0xf] }
  0x62   : > { %6917 = vmatpush.bf16.msra.mxu0 %v12175_v47  ;;  %6857 = vmatmul.bf16.gmra.mxu1 %v9034_v51  ;;  %v12188_v47 = vld [vmem:[%s12831_s17 + $0x280] sm:$0xff]  ;;  %v9037_v51 = vld [vmem:[%s14901_s0 + $0x2a8] sm:$0xf] }
  0x63   : > { %6834 = vmatmul.bf16.gmra.mxu0 %v9030_v49  ;;  %v12205_v49 = vld [vmem:[%s12831_s17 + $0x308] sm:$0xff] }
  0x64   : > { %6872 = vmatpush.bf16.msra.mxu2 %v12158_v50  ;;  %v12213_v50 = vld [vmem:[%s12831_s17 + $0x348] sm:$0xff] }
  0x65   : > { %6895 = vmatpush.bf16.msra.mxu3 %v12166_v52  ;;  %6941 = vmatpush.bf16.msra.mxu1 %v12182_v54  ;;  %v12070_v52 = vld [vmem:[%s14901_s0 + $0x3ec] sm:$0xf0]  ;;  %v9039_v54 = vld [vmem:[%s14901_s0 + $0x3f0] sm:$0xf0] }
  0x66   : > { %6918 = vmatpush.bf16.msra.mxu0 %v12174_v53  ;;  %v12029_v53 = vld [vmem:[%s14901_s0 + $0x2ac] sm:$0xf]  ;;  %v9038_v57 = vor.u32 %v12070_v52, %v9037_v51  ;;  %v12238_v52 = vld [vmem:[%s12831_s17 + $0x410] sm:$0xff] }
  0x68   : > { %6873 = vmatpush.bf16.msra.mxu2 %v12157_v55  ;;  %v9045_v55 = vld [vmem:[%s14901_s0 + $0x2b0] sm:$0xf] }
  0x69   : > { %6896 = vmatpush.bf16.msra.mxu3 %v12165_v56  ;;  %6942 = vmatpush.bf16.msra.mxu1 %v12181_v59  ;;  %v12071_v56 = vld [vmem:[%s14901_s0 + $0x3f4] sm:$0xf0]  ;;  %v12030_v59 = vld [vmem:[%s14901_s0 + $0x2b4] sm:$0xf] }
  0x6a   : > { %6919 = vmatpush.bf16.msra.mxu0 %v12173_v58  ;;  %v9042_v58 = vor.u32 %v12029_v53, %v9039_v54  ;;  %v9046_v61 = vor.u32 %v12071_v56, %v9045_v55  ;;  %v12246_v53 = vld [vmem:[%s12831_s17 + $0x450] sm:$0xff]  ;;  %v12221_v56 = vld [vmem:[%s12831_s17 + $0x388] sm:$0xff] }
  0x6c   : > { %6874 = vmatpush.bf16.msra.mxu2 %v12156_v60  ;;  %v9047_v60 = vld [vmem:[%s14901_s0 + $0x3f8] sm:$0xf0] }
  0x6d   : > { %6897 = vmatpush.bf16.msra.mxu3 %v12164_v62  ;;  %6943 = vmatpush.bf16.msra.mxu1 %v12180_v4  ;;  %v12204_v62 = vld [vmem:[%s12831_s17 + $0x300] sm:$0xff]  ;;  %v9050_v0 = vor.u32 %v12030_v59, %v9047_v60  ;;  %v12226_v4 = vld [vmem:[%s12831_s17 + $0x3b0] sm:$0xff] }
  0x6e   : > { %6920 = vmatpush.bf16.msra.mxu0 %v12172_v3  ;;  %v12243_v3 = vld [vmem:[%s12831_s17 + $0x438] sm:$0xff] }
  0x6f   : > { %6793 = vmatmul.bf16.gmra.mxu2 %v2489_v10 }
  0x70   : > { %6959 = vmatpush.bf16.msrb.mxu2 %v12195_v63  ;;  %6816 = vmatmul.bf16.gmra.mxu3 %v2490_v11  ;;  %v12212_v63 = vld [vmem:[%s12831_s17 + $0x340] sm:$0xff]  ;;  %v2249_v11 = vunpack.c.l.b16 %v340_v8 }
  0x71   : > { %6982 = vmatpush.bf16.msrb.mxu3 %v12203_v2  ;;  %7028 = vmatpush.bf16.msrb.mxu1 %v12219_v7  ;;  %v12235_v2 = vld [vmem:[%s12831_s17 + $0x3f8] sm:$0xff] }
  0x72   : > { %7005 = vmatpush.bf16.msrb.mxu0 %v12211_v6  ;;  %6862 = vmatmul.bf16.gmra.mxu1 %v2492_v15  ;;  %v12251_v6 = vld [vmem:[%s12831_s17 + $0x478] sm:$0xff]  ;;  %v2250_v15 = vunpack.c.h.b16 %v340_v8  ;;  %v9061_v8 = vld [vmem:[%s14901_s0 + $0x2c0] sm:$0xf] }
  0x73   : > { %6839 = vmatmul.bf16.gmra.mxu0 %v2491_v13  ;;  %v339_v7 = vld [vmem:[%s14901_s0 + $0x538] sm:$0xff]  ;;  %v12233_v13 = vld [vmem:[%s12831_s17 + $0x3e8] sm:$0xff] }
  0x74   : > { %6960 = vmatpush.bf16.msrb.mxu2 %v12194_v9  ;;  %v2247_v9 = vunpack.c.l.b16 %v339_v7  ;;  %v2248_v10 = vunpack.c.h.b16 %v339_v7 }
  0x75   : > { %6983 = vmatpush.bf16.msrb.mxu3 %v12202_v12  ;;  %7029 = vmatpush.bf16.msrb.mxu1 %v12218_v14  ;;  %v12225_v12 = vld [vmem:[%s12831_s17 + $0x3a8] sm:$0xff]  ;;  %v12242_v14 = vld [vmem:[%s12831_s17 + $0x430] sm:$0xff] }
  0x76   : > { %7006 = vmatpush.bf16.msrb.mxu0 %v12210_v17  ;;  %v2493_v17 = vpack.c.b16 %v2247_v9, %v2247_v9  ;;  %v12073_v9 = vld [vmem:[%s14901_s0 + $0x404] sm:$0xf0] }
  0x78   : > { %6961 = vmatpush.bf16.msrb.mxu2 %v12193_v16  ;;  %v12250_v16 = vld [vmem:[%s12831_s17 + $0x470] sm:$0xff]  ;;  %v1706_v51 = vpop.permute.xlu2 %1705 }
  0x79   : > { %6984 = vmatpush.bf16.msrb.mxu3 %v12201_v18  ;;  %7030 = vmatpush.bf16.msrb.mxu1 %v12217_v20  ;;  %v2494_v18 = vpack.c.b16 %v2248_v10, %v2248_v10  ;;  %v2496_v20 = vpack.c.b16 %v2250_v15, %v2250_v15  ;;  %v12228_v10 = vld [vmem:[%s12831_s17 + $0x3c0] sm:$0xff]  ;;  %v9062_v15 = vor.u32 %v12073_v9, %v9061_v8  ;;  %v11993_v9 = vld [vmem:[%s14901_s0 + $0x184] sm:$0xf0] }
  0x7a   : > { %7007 = vmatpush.bf16.msrb.mxu0 %v12209_v21  ;;  %v12224_v21 = vld [vmem:[%s12831_s17 + $0x3a0] sm:$0xff] }
  0x7b   : > { %v8749_v8 = vld [vmem:[%s14901_s0 + $0x40] sm:$0xf] }
  0x7c   : > { %6962 = vmatpush.bf16.msrb.mxu2 %v12192_v19  ;;  %v2495_v19 = vpack.c.b16 %v2249_v11, %v2249_v11 }
  0x7d   : > { %6985 = vmatpush.bf16.msrb.mxu3 %v12200_v22  ;;  %7031 = vmatpush.bf16.msrb.mxu1 %v12216_v23  ;;  %v12232_v22 = vld [vmem:[%s12831_s17 + $0x3e0] sm:$0xff]  ;;  %v12241_v23 = vld [vmem:[%s12831_s17 + $0x428] sm:$0xff] }
  0x7e   : > { %7008 = vmatpush.bf16.msrb.mxu0 %v12208_v27  ;;  %v11949_v27 = vld [vmem:[%s14901_s0 + $0x2c] sm:$0xf] }
  0x7f   : > { %6875 = vmatmul.bf16.vlgmr.msra.gmra.mxu2 %v8710_v35  ;;  %v1686_v32 = vpop.permute.xlu0 %1685  ;;  %v12248_v35 = vld [vmem:[%s12831_s17 + $0x460] sm:$0xff]  ;;  %v8730_v37 = vor.u32 %v11949_v27, %v8727_v28  ;;  %v341_v28 = vld [vmem:[%s14901_s0 + $0x548] sm:$0xff] }
  0x80   : > { %6963 = vmatpush.bf16.msrb.mxu2 %v12191_v24  ;;  %6898 = vmatmul.bf16.vlgmr.msra.gmra.mxu3 %v8714_v36  ;;  %v12249_v24 = vld [vmem:[%s12831_s17 + $0x468] sm:$0xff]  ;;  %v8726_v36 = vor.u32 %v11990_v26, %v8725_v25  ;;  %v1696_v7 = vpop.permute.xlu1 %1695  ;;  %v12259_v25 = vld [vmem:[%s12831_s17 + $0x4b8] sm:$0xff] }
  0x81   : > { %6986 = vmatpush.bf16.msrb.mxu3 %v12199_v30  ;;  %7032 = vmatpush.bf16.msrb.mxu1 %v12215_v31  ;;  %v12231_v30 = vld [vmem:[%s12831_s17 + $0x3d8] sm:$0xff]  ;;  %v12240_v31 = vld [vmem:[%s12831_s17 + $0x420] sm:$0xff] }
  0x82   : > { %7009 = vmatpush.bf16.msrb.mxu0 %v12207_v40  ;;  %6944 = vmatmul.bf16.vlgmr.msra.gmra.mxu1 %v8722_v42  ;;  %v12222_v40 = vld [vmem:[%s12831_s17 + $0x390] sm:$0xff]  ;;  %v12267_v26 = vld [vmem:[%s12831_s17 + $0x4f8] sm:$0xff] }
  0x83   : > { %6921 = vmatmul.bf16.vlgmr.msra.gmra.mxu0 %v8718_v41  ;;  %v12230_v41 = vld [vmem:[%s12831_s17 + $0x3d0] sm:$0xff] }
  0x84   : > { %6964 = vmatpush.bf16.msrb.mxu2 %v12190_v34  ;;  %v11991_v34 = vld [vmem:[%s14901_s0 + $0x174] sm:$0xf0] }
  0x85   : > { %6987 = vmatpush.bf16.msrb.mxu3 %v12198_v39  ;;  %7033 = vmatpush.bf16.msrb.mxu1 %v12214_v46  ;;  %v8735_v39 = vld [vmem:[%s14901_s0 + $0x178] sm:$0xf0]  ;;  %v8734_v42 = vor.u32 %v11991_v34, %v8733_v33  ;;  %v2251_v33 = vunpack.c.l.b16 %v341_v28  ;;  %v2252_v34 = vunpack.c.h.b16 %v341_v28 }
  0x86   : > { %7010 = vmatpush.bf16.msrb.mxu0 %v12206_v45  ;;  %v8738_v45 = vor.u32 %v11950_v38, %v8735_v39  ;;  %v12239_v46 = vld [vmem:[%s12831_s17 + $0x418] sm:$0xff]  ;;  %v12266_v38 = vld [vmem:[%s12831_s17 + $0x4f0] sm:$0xff] }
  0x87   : > { %v12275_v39 = vld [vmem:[%s12831_s17 + $0x538] sm:$0xff] }
  0x88   : > { %6965 = vmatpush.bf16.msrb.mxu2 %v12189_v43  ;;  %v12247_v43 = vld [vmem:[%s12831_s17 + $0x458] sm:$0xff]  ;;  %v1701_v27 = vpop.permute.xlu1 %1700 }
  0x89   : > { %6988 = vmatpush.bf16.msrb.mxu3 %v12197_v44  ;;  %7034 = vmatpush.bf16.msrb.mxu1 %v12213_v50  ;;  %v1691_v50 = vpop.permute.xlu0 %1690 }
  0x8a   : > { %7011 = vmatpush.bf16.msrb.mxu0 %v12205_v49 }
  0x8c   : > { %6966 = vmatpush.bf16.msrb.mxu2 %v12188_v47 }
  0x8d   : > { %6989 = vmatpush.bf16.msrb.mxu3 %v12196_v48  ;;  %7035 = vmatpush.bf16.msrb.mxu1 %v12212_v63  ;;  %v12072_v63 = vld [vmem:[%s14901_s0 + $0x3fc] sm:$0xf0] }
  0x8e   : > { %7012 = vmatpush.bf16.msrb.mxu0 %v12204_v62 }
  0x8f   : > { %6880 = vmatmul.bf16.gmra.mxu2 %v9038_v57  ;;  %v12229_v57 = vld [vmem:[%s12831_s17 + $0x3c8] sm:$0xff] }
  0x90   : > { %6903 = vmatmul.bf16.gmra.mxu3 %v9042_v58  ;;  %7051 = vmatpush.bf16.msra.mxu2 %v12227_v1  ;;  %v9055_v1 = vld [vmem:[%s14901_s0 + $0x400] sm:$0xf0] }
  0x91   : > { %7074 = vmatpush.bf16.msra.mxu3 %v12235_v2  ;;  %7120 = vmatpush.bf16.msra.mxu1 %v12251_v6  ;;  %v12245_v6 = vld [vmem:[%s12831_s17 + $0x448] sm:$0xff] }
  0x92   : > { %6949 = vmatmul.bf16.gmra.mxu1 %v9050_v0  ;;  %7097 = vmatpush.bf16.msra.mxu0 %v12243_v3  ;;  %v12031_v0 = vld [vmem:[%s14901_s0 + $0x2bc] sm:$0xf] }
  0x93   : > { %6926 = vmatmul.bf16.gmra.mxu0 %v9046_v61  ;;  %v9053_v61 = vld [vmem:[%s14901_s0 + $0x2b8] sm:$0xf] }
  0x94   : > { %7052 = vmatpush.bf16.msra.mxu2 %v12226_v4  ;;  %v12220_v4 = vld [vmem:[%s12831_s17 + $0x380] sm:$0xff]  ;;  %v9054_v11 = vor.u32 %v12072_v63, %v9053_v61  ;;  %v8741_v61 = vld [vmem:[%s14901_s0 + $0x38] sm:$0xf] }
  0x95   : > { %7075 = vmatpush.bf16.msra.mxu3 %v12234_v5  ;;  %7121 = vmatpush.bf16.msra.mxu1 %v12250_v16  ;;  %v12237_v5 = vld [vmem:[%s12831_s17 + $0x408] sm:$0xff]  ;;  %v12236_v16 = vld [vmem:[%s12831_s17 + $0x400] sm:$0xff] }
  0x96   : > { %7098 = vmatpush.bf16.msra.mxu0 %v12242_v14  ;;  %v9063_v14 = vld [vmem:[%s14901_s0 + $0x408] sm:$0xf0]  ;;  %v8743_v63 = vld [vmem:[%s14901_s0 + $0x180] sm:$0xf0] }
  0x98   : > { %7053 = vmatpush.bf16.msra.mxu2 %v12225_v12  ;;  %v9058_v12 = vor.u32 %v12031_v0, %v9055_v1  ;;  %v12264_v1 = vld [vmem:[%s12831_s17 + $0x4e0] sm:$0xff] }
  0x99   : > { %7076 = vmatpush.bf16.msra.mxu3 %v12233_v13  ;;  %7122 = vmatpush.bf16.msra.mxu1 %v12249_v24  ;;  %v12032_v13 = vld [vmem:[%s14901_s0 + $0x2c4] sm:$0xf] }
  0x9a   : > { %7099 = vmatpush.bf16.msra.mxu0 %v12241_v23 }
  0x9c   : > { %7054 = vmatpush.bf16.msra.mxu2 %v12224_v21 }
  0x9d   : > { %7077 = vmatpush.bf16.msra.mxu3 %v12232_v22  ;;  %7123 = vmatpush.bf16.msra.mxu1 %v12248_v35 }
  0x9e   : > { %7100 = vmatpush.bf16.msra.mxu0 %v12240_v31 }
  0x9f   : > { %6885 = vmatmul.bf16.gmra.mxu2 %v2493_v17  ;;  %v12244_v17 = vld [vmem:[%s12831_s17 + $0x440] sm:$0xff] }
  0xa0   : > { %6908 = vmatmul.bf16.gmra.mxu3 %v2494_v18  ;;  %7055 = vmatpush.bf16.msra.mxu2 %v12223_v29 }
  0xa1   : > { %7078 = vmatpush.bf16.msra.mxu3 %v12231_v30  ;;  %7124 = vmatpush.bf16.msra.mxu1 %v12247_v43  ;;  %v342_v30 = vld [vmem:[%s14901_s0 + $0x550] sm:$0xff]  ;;  %v2498_v43 = vpack.c.b16 %v2252_v34, %v2252_v34 }
  0xa2   : > { %6954 = vmatmul.bf16.gmra.mxu1 %v2496_v20  ;;  %7101 = vmatpush.bf16.msra.mxu0 %v12239_v46  ;;  %v9066_v20 = vor.u32 %v12032_v13, %v9063_v14  ;;  %v11952_v14 = vld [vmem:[%s14901_s0 + $0x44] sm:$0xf]  ;;  %v12270_v34 = vld [vmem:[%s12831_s17 + $0x510] sm:$0xff] }
  0xa3   : > { %6931 = vmatmul.bf16.gmra.mxu0 %v2495_v19 }
  0xa4   : > { %7056 = vmatpush.bf16.msra.mxu2 %v12222_v40  ;;  %v2254_v40 = vunpack.c.h.b16 %v342_v30 }
  0xa5   : > { %7079 = vmatpush.bf16.msra.mxu3 %v12230_v41  ;;  %7125 = vmatpush.bf16.msra.mxu1 %v12246_v53  ;;  %v12283_v41 = vld [vmem:[%s12831_s17 + $0x578] sm:$0xff] }
  0xa6   : > { %7102 = vmatpush.bf16.msra.mxu0 %v12238_v52  ;;  %v2500_v46 = vpack.c.b16 %v2254_v40, %v2254_v40 }
  0xa8   : > { %7057 = vmatpush.bf16.msra.mxu2 %v12221_v56  ;;  %v12256_v56 = vld [vmem:[%s12831_s17 + $0x4a0] sm:$0xff] }
  0xa9   : > { %7080 = vmatpush.bf16.msra.mxu3 %v12229_v57  ;;  %7126 = vmatpush.bf16.msra.mxu1 %v12245_v6 }
  0xaa   : > { %7103 = vmatpush.bf16.msra.mxu0 %v12237_v5  ;;  %v12281_v5 = vld [vmem:[%s12831_s17 + $0x568] sm:$0xff] }
  0xac   : > { %v6738_v44 = vpop.f32.mrf.mxu0  ;;  %7058 = vmatpush.bf16.msra.mxu2 %v12220_v4  ;;  %v12273_v4 = vld [vmem:[%s12831_s17 + $0x528] sm:$0xff] }
  0xad   : > { %v6739_v47 = vadd.f32 %v6738_v44, %v1686_v32  ;;  %v6761_v48 = vpop.f32.mrf.mxu1  ;;  %7081 = vmatpush.bf16.msra.mxu3 %v12228_v10  ;;  %7127 = vmatpush.bf16.msra.mxu1 %v12244_v17  ;;  %v12255_v10 = vld [vmem:[%s12831_s17 + $0x498] sm:$0xff]  ;;  %v12272_v17 = vld [vmem:[%s12831_s17 + $0x520] sm:$0xff] }
  0xae   : > { %7104 = vmatpush.bf16.msra.mxu0 %v12236_v16  ;;  %v12263_v16 = vld [vmem:[%s12831_s17 + $0x4d8] sm:$0xff] }
  0xaf   : > { %6967 = vmatmul.bf16.vlgmr.msrb.gmra.mxu2 %v8726_v36  ;;  %v13141_v49 = vadd.f32 %v6761_v48, %v6739_v47  ;;  %v2253_v36 = vunpack.c.l.b16 %v342_v30  ;;  %v12257_v48 = vld [vmem:[%s12831_s17 + $0x4a8] sm:$0xff] }
  0xb0   : > { %6990 = vmatmul.bf16.vlgmr.msrb.gmra.mxu3 %v8730_v37  ;;  %7143 = vmatpush.bf16.msrb.mxu2 %v12259_v25  ;;  %v12258_v37 = vld [vmem:[%s12831_s17 + $0x4b0] sm:$0xff] }
  0xb1   : > { %7166 = vmatpush.bf16.msrb.mxu3 %v12267_v26  ;;  %v2499_v44 = vpack.c.b16 %v2253_v36, %v2253_v36  ;;  %v12262_v26 = vld [vmem:[%s12831_s17 + $0x4d0] sm:$0xff] }
  0xb2   : > { %7036 = vmatmul.bf16.vlgmr.msrb.gmra.mxu1 %v8738_v45  ;;  %v6748_v55 = vpop.f32.mrf.mxu2  ;;  %v12278_v36 = vld [vmem:[%s12831_s17 + $0x550] sm:$0xff] }
  0xb3   : > { %7013 = vmatmul.bf16.vlgmr.msrb.gmra.mxu0 %v8734_v42  ;;  %v6749_v62 = vadd.f32 %v6748_v55, %v1706_v51  ;;  %v2497_v42 = vpack.c.b16 %v2251_v33, %v2251_v33  ;;  %7212 = vmatpush.bf16.msrb.mxu1 %v12283_v41  ;;  %v12274_v51 = vld [vmem:[%s12831_s17 + $0x530] sm:$0xff] }
  0xb4   : > { %v6740_v54 = vpop.f32.mrf.mxu0  ;;  %7144 = vmatpush.bf16.msrb.mxu2 %v12258_v37  ;;  %7189 = vmatpush.bf16.msrb.mxu0 %v12275_v39  ;;  %v12261_v39 = vld [vmem:[%s12831_s17 + $0x4c8] sm:$0xff] }
  0xb5   : > { %v6741_v58 = vadd.f32 %v6740_v54, %v1691_v50  ;;  %v6763_v59 = vpop.f32.mrf.mxu1  ;;  %v6771_v60 = vpop.f32.mrf.mxu3  ;;  %7167 = vmatpush.bf16.msrb.mxu3 %v12266_v38  ;;  %v12265_v50 = vld [vmem:[%s12831_s17 + $0x4e8] sm:$0xff]  ;;  %v12282_v54 = vld [vmem:[%s12831_s17 + $0x570] sm:$0xff] }
  0xb6   : > { %v13161_v3 = vadd.f32 %v6771_v60, %v6749_v62  ;;  %v11951_v62 = vld [vmem:[%s14901_s0 + $0x3c] sm:$0xf]  ;;  %v12253_v38 = vld [vmem:[%s12831_s17 + $0x488] sm:$0xff] }
  0xb7   : > { %v13159_v2 = vadd.f32 %v6763_v59, %v6741_v58  ;;  %7213 = vmatpush.bf16.msrb.mxu1 %v12282_v54  ;;  %v8746_v13 = vor.u32 %v11951_v62, %v8743_v63  ;;  %v12260_v54 = vld [vmem:[%s12831_s17 + $0x4c0] sm:$0xff] }
  0xb8   : > { %7145 = vmatpush.bf16.msrb.mxu2 %v12257_v48  ;;  %7190 = vmatpush.bf16.msrb.mxu0 %v12274_v51  ;;  %v12277_v48 = vld [vmem:[%s12831_s17 + $0x548] sm:$0xff]  ;;  %v12268_v63 = vld [vmem:[%s12831_s17 + $0x500] sm:$0xff] }
  0xb9   : > { %7168 = vmatpush.bf16.msrb.mxu3 %v12265_v50 }
  0xba   : > { %v6750_v19 = vpop.f32.mrf.mxu2 }
  0xbb   : > { %7214 = vmatpush.bf16.msrb.mxu1 %v12281_v5  ;;  %v12280_v19 = vld [vmem:[%s12831_s17 + $0x560] sm:$0xff] }
  0xbc   : > { %v6743_v18 = vpop.f32.mrf.mxu0  ;;  %7146 = vmatpush.bf16.msrb.mxu2 %v12256_v56  ;;  %7191 = vmatpush.bf16.msrb.mxu0 %v12273_v4 }
  0xbd   : > { %v6744_v21 = vadd.f32 %v6743_v18, %v1696_v7  ;;  %v6766_v22 = vpop.f32.mrf.mxu1  ;;  %v6773_v23 = vpop.f32.mrf.mxu3  ;;  %7169 = vmatpush.bf16.msrb.mxu3 %v12264_v1  ;;  %v8750_v18 = vor.u32 %v11993_v9, %v8749_v8 }
  0xbf   : > { %6972 = vmatmul.bf16.gmra.mxu2 %v9054_v11  ;;  %v13181_v24 = vadd.f32 %v6766_v22, %v6744_v21  ;;  %v12254_v22 = vld [vmem:[%s12831_s17 + $0x490] sm:$0xff]  ;;  %7215 = vmatpush.bf16.msrb.mxu1 %v12280_v19 }
  0xc0   : > { %6995 = vmatmul.bf16.gmra.mxu3 %v9058_v12  ;;  %7147 = vmatpush.bf16.msrb.mxu2 %v12255_v10  ;;  %v12290_v19 = vld [vmem:[%s12831_s17 + $0x5b0] sm:$0xff] }
  0xc1   : > { %7170 = vmatpush.bf16.msrb.mxu3 %v12263_v16  ;;  %7192 = vmatpush.bf16.msrb.mxu0 %v12272_v17 }
  0xc2   : > { %7041 = vmatmul.bf16.gmra.mxu1 %v9066_v20 }
  0xc3   : > { %7018 = vmatmul.bf16.gmra.mxu0 %v9062_v15  ;;  %v8751_v15 = vld [vmem:[%s14901_s0 + $0x188] sm:$0xf0] }
  0xc4   : > { %v6745_v29 = vpop.f32.mrf.mxu0  ;;  %v8754_v21 = vor.u32 %v11952_v14, %v8751_v15  ;;  %7148 = vmatpush.bf16.msrb.mxu2 %v12254_v22  ;;  %v344_v14 = vld [vmem:[%s14901_s0 + $0x560] sm:$0xff] }
  0xc5   : > { %v6746_v31 = vadd.f32 %v6745_v29, %v1701_v27  ;;  %v6768_v32 = vpop.f32.mrf.mxu1  ;;  %v12271_v27 = vld [vmem:[%s12831_s17 + $0x518] sm:$0xff]  ;;  %7171 = vmatpush.bf16.msrb.mxu3 %v12262_v26 }
  0xc6   : > { %v12279_v29 = vld [vmem:[%s12831_s17 + $0x558] sm:$0xff]  ;;  %7193 = vmatpush.bf16.msrb.mxu0 %v12271_v27 }
  0xc7   : > { %v13191_v35 = vadd.f32 %v6768_v32, %v6746_v31  ;;  %7216 = vmatpush.bf16.msrb.mxu1 %v12279_v29  ;;  %v12315_v26 = vld [vmem:[%s12831_s17 + $0x678] sm:$0xff] }
  0xc8   : > { %7149 = vmatpush.bf16.msrb.mxu2 %v12253_v38 }
  0xc9   : > { %7172 = vmatpush.bf16.msrb.mxu3 %v12261_v39 }
  0xca   : > { %7194 = vmatpush.bf16.msrb.mxu0 %v12270_v34  ;;  %v12289_v34 = vld [vmem:[%s12831_s17 + $0x5a8] sm:$0xff] }
  0xcb   : > { %7217 = vmatpush.bf16.msrb.mxu1 %v12278_v36  ;;  %v12297_v36 = vld [vmem:[%s12831_s17 + $0x5e8] sm:$0xff] }
  0xcd   : > { %7173 = vmatpush.bf16.msrb.mxu3 %v12260_v54  ;;  %v12313_v54 = vld [vmem:[%s12831_s17 + $0x668] sm:$0xff] }
  0xcf   : > { %v6853_v47 = vpop.f32.mrf.mxu1  ;;  %6977 = vmatmul.bf16.gmra.mxu2 %v2497_v42  ;;  %v9069_v42 = vld [vmem:[%s14901_s0 + $0x2c8] sm:$0xf]  ;;  %7218 = vmatpush.bf16.msrb.mxu1 %v12277_v48  ;;  %v11953_v48 = vld [vmem:[%s14901_s0 + $0x4c] sm:$0xf] }
  0xd0   : > { %v6830_v45 = vpop.f32.mrf.mxu0  ;;  %7000 = vmatmul.bf16.gmra.mxu3 %v2498_v43  ;;  %v12033_v43 = vld [vmem:[%s14901_s0 + $0x2cc] sm:$0xf] }
  0xd2   : > { %v6784_v52 = vpop.f32.mrf.mxu2  ;;  %7046 = vmatmul.bf16.gmra.mxu1 %v2500_v46  ;;  %v12252_v46 = vld [vmem:[%s12831_s17 + $0x480] sm:$0xff] }
  0xd3   : > { %7023 = vmatmul.bf16.gmra.mxu0 %v2499_v44  ;;  %v6807_v53 = vpop.f32.mrf.mxu3  ;;  %v6785_v55 = vadd.f32 %v6784_v52, %v13141_v49  ;;  %v11992_v49 = vld [vmem:[%s14901_s0 + $0x17c] sm:$0xf0]  ;;  %v9071_v44 = vld [vmem:[%s14901_s0 + $0x410] sm:$0xf0]  ;;  %v9077_v52 = vld [vmem:[%s14901_s0 + $0x2d0] sm:$0xf]  ;;  %7150 = vmatpush.bf16.msrb.mxu2 %v12252_v46 }
  0xd4   : > { %v8742_v12 = vor.u32 %v11992_v49, %v8741_v61  ;;  %v12276_v49 = vld [vmem:[%s12831_s17 + $0x540] sm:$0xff] }
  0xd5   : > { %v6808_v57 = vadd.f32 %v6807_v53, %v6785_v55  ;;  %v12075_v53 = vld [vmem:[%s14901_s0 + $0x414] sm:$0xf0]  ;;  %7219 = vmatpush.bf16.msrb.mxu1 %v12276_v49 }
  0xd6   : > { %v9078_v61 = vor.u32 %v12075_v53, %v9077_v52  ;;  %v12296_v52 = vld [vmem:[%s12831_s17 + $0x5e0] sm:$0xff]  ;;  %v12305_v53 = vld [vmem:[%s12831_s17 + $0x628] sm:$0xff] }
  0xd7   : > { %v6831_v59 = vadd.f32 %v6830_v45, %v6808_v57  ;;  %v6855_v60 = vpop.f32.mrf.mxu1  ;;  %v9074_v57 = vor.u32 %v12033_v43, %v9071_v44 }
  0xd8   : > { %v6832_v58 = vpop.f32.mrf.mxu0 }
  0xd9   : > { %v13215_v0 = vadd.f32 %v6853_v47, %v6831_v59  ;;  %v12269_v47 = vld [vmem:[%s12831_s17 + $0x508] sm:$0xff]  ;;  %v9079_v59 = vld [vmem:[%s14901_s0 + $0x418] sm:$0xf0] }
  0xda   : > { %v6786_v6 = vpop.f32.mrf.mxu2  ;;  %7195 = vmatpush.bf16.msrb.mxu0 %v12269_v47  ;;  %v8757_v47 = vld [vmem:[%s14901_s0 + $0x48] sm:$0xf] }
  0xdb   : > { %v6809_v7 = vpop.f32.mrf.mxu3  ;;  %v6787_v11 = vadd.f32 %v6786_v6, %v13159_v2  ;;  %v12291_v6 = vld [vmem:[%s12831_s17 + $0x5b8] sm:$0xff] }
  0xdd   : > { %v6810_v2 = vadd.f32 %v6809_v7, %v6787_v11  ;;  %v12299_v7 = vld [vmem:[%s12831_s17 + $0x5f8] sm:$0xff] }
  0xde   : > { %7196 = vmatpush.bf16.msrb.mxu0 %v12268_v63  ;;  %v343_v11 = vld [vmem:[%s14901_s0 + $0x558] sm:$0xff] }
  0xdf   : > { %v6833_v23 = vadd.f32 %v6832_v58, %v6810_v2  ;;  %v6858_v25 = vpop.f32.mrf.mxu1  ;;  %7059 = vmatmul.bf16.vlgmr.msra.gmra.mxu2 %v8742_v12  ;;  %v12034_v58 = vld [vmem:[%s14901_s0 + $0x2d4] sm:$0xf]  ;;  %v2255_v17 = vunpack.c.l.b16 %v343_v11  ;;  %v2256_v2 = vunpack.c.h.b16 %v343_v11  ;;  %v12295_v63 = vld [vmem:[%s12831_s17 + $0x5d8] sm:$0xff] }
  0xe0   : > { %v6835_v20 = vpop.f32.mrf.mxu0  ;;  %7082 = vmatmul.bf16.vlgmr.msra.gmra.mxu3 %v8746_v13  ;;  %v9082_v62 = vor.u32 %v12034_v58, %v9079_v59  ;;  %7235 = vmatpush.bf16.msra.mxu2 %v12291_v6  ;;  %v11995_v58 = vld [vmem:[%s14901_s0 + $0x194] sm:$0xf0]  ;;  %v12312_v6 = vld [vmem:[%s12831_s17 + $0x660] sm:$0xff] }
  0xe1   : > { %v13240_v28 = vadd.f32 %v6855_v60, %v6833_v23  ;;  %7258 = vmatpush.bf16.msra.mxu3 %v12299_v7  ;;  %v2501_v27 = vpack.c.b16 %v2255_v17, %v2255_v17  ;;  %v2502_v29 = vpack.c.b16 %v2256_v2, %v2256_v2  ;;  %v12287_v59 = vld [vmem:[%s12831_s17 + $0x598] sm:$0xff] }
  0xe2   : > { %v6789_v30 = vpop.f32.mrf.mxu2  ;;  %7128 = vmatmul.bf16.vlgmr.msra.gmra.mxu1 %v8754_v21  ;;  %v12307_v21 = vld [vmem:[%s12831_s17 + $0x638] sm:$0xff] }
  0xe3   : > { %7105 = vmatmul.bf16.vlgmr.msra.gmra.mxu0 %v8750_v18  ;;  %v6812_v31 = vpop.f32.mrf.mxu3  ;;  %v6790_v32 = vadd.f32 %v6789_v30, %v13181_v24  ;;  %v12074_v24 = vld [vmem:[%s14901_s0 + $0x40c] sm:$0xf0]  ;;  %7304 = vmatpush.bf16.msra.mxu1 %v12315_v26 }
  0xe4   : > { %v9070_v56 = vor.u32 %v12074_v24, %v9069_v42  ;;  %7236 = vmatpush.bf16.msra.mxu2 %v12290_v19  ;;  %7281 = vmatpush.bf16.msra.mxu0 %v12307_v21  ;;  %v12288_v42 = vld [vmem:[%s12831_s17 + $0x5a0] sm:$0xff]  ;;  %v12302_v19 = vld [vmem:[%s12831_s17 + $0x610] sm:$0xff] }
  0xe5   : > { %v6813_v33 = vadd.f32 %v6812_v31, %v6790_v32 }
  0xe7   : > { %v6836_v40 = vadd.f32 %v6835_v20, %v6813_v33  ;;  %v6860_v41 = vpop.f32.mrf.mxu1  ;;  %v12298_v20 = vld [vmem:[%s12831_s17 + $0x5f0] sm:$0xff] }
  0xe8   : > { %v6837_v37 = vpop.f32.mrf.mxu0  ;;  %7259 = vmatpush.bf16.msra.mxu3 %v12298_v20  ;;  %7237 = vmatpush.bf16.msra.mxu2 %v12289_v34  ;;  %v12310_v20 = vld [vmem:[%s12831_s17 + $0x650] sm:$0xff]  ;;  %v12309_v34 = vld [vmem:[%s12831_s17 + $0x648] sm:$0xff] }
  0xe9   : > { %v13260_v45 = vadd.f32 %v6858_v25, %v6836_v40  ;;  %v2258_v25 = vunpack.c.h.b16 %v344_v14  ;;  %v12314_v40 = vld [vmem:[%s12831_s17 + $0x670] sm:$0xff] }
  0xea   : > { %v6791_v50 = vpop.f32.mrf.mxu2  ;;  %7305 = vmatpush.bf16.msra.mxu1 %v12314_v40  ;;  %v12292_v40 = vld [vmem:[%s12831_s17 + $0x5c0] sm:$0xff] }
  0xeb   : > { %v6814_v51 = vpop.f32.mrf.mxu3  ;;  %v6792_v55 = vadd.f32 %v6791_v50, %v13191_v35  ;;  %v2504_v32 = vpack.c.b16 %v2258_v25, %v2258_v25  ;;  %v8759_v50 = vld [vmem:[%s14901_s0 + $0x190] sm:$0xf0] }
  0xec   : > { %7260 = vmatpush.bf16.msra.mxu3 %v12297_v36  ;;  %7238 = vmatpush.bf16.msra.mxu2 %v12288_v42  ;;  %v8762_v49 = vor.u32 %v11953_v48, %v8759_v50  ;;  %v12300_v50 = vld [vmem:[%s12831_s17 + $0x600] sm:$0xff] }
  0xed   : > { %v6815_v60 = vadd.f32 %v6814_v51, %v6792_v55 }
  0xee   : > { %7306 = vmatpush.bf16.msra.mxu1 %v12313_v54 }
  0xef   : > { %v6838_v1 = vadd.f32 %v6837_v37, %v6815_v60  ;;  %v6863_v4 = vpop.f32.mrf.mxu1  ;;  %7064 = vmatmul.bf16.gmra.mxu2 %v9070_v56  ;;  %v12306_v37 = vld [vmem:[%s12831_s17 + $0x630] sm:$0xff] }
  0xf0   : > { %v6840_v35 = vpop.f32.mrf.mxu0  ;;  %7087 = vmatmul.bf16.gmra.mxu3 %v9074_v57  ;;  %7282 = vmatpush.bf16.msra.mxu0 %v12306_v37  ;;  %v8765_v57 = vld [vmem:[%s14901_s0 + $0x50] sm:$0xf] }
  0xf1   : > { %v13281_v5 = vadd.f32 %v6860_v41, %v6838_v1  ;;  %7261 = vmatpush.bf16.msra.mxu3 %v12296_v52  ;;  %7239 = vmatpush.bf16.msra.mxu2 %v12287_v59  ;;  %v12304_v1 = vld [vmem:[%s12831_s17 + $0x620] sm:$0xff] }
  0xf2   : > { %v6794_v8 = vpop.f32.mrf.mxu2  ;;  %7133 = vmatmul.bf16.gmra.mxu1 %v9082_v62  ;;  %v8767_v62 = vld [vmem:[%s14901_s0 + $0x198] sm:$0xf0] }
  0xf3   : > { %7110 = vmatmul.bf16.gmra.mxu0 %v9078_v61  ;;  %v6817_v9 = vpop.f32.mrf.mxu3  ;;  %v6795_v10 = vadd.f32 %v6794_v8, %v13161_v3  ;;  %v2257_v3 = vunpack.c.l.b16 %v344_v14  ;;  %7307 = vmatpush.bf16.msra.mxu1 %v12312_v6  ;;  %v12322_v6 = vld [vmem:[%s12831_s17 + $0x6b0] sm:$0xff] }
  0xf4   : > { %7283 = vmatpush.bf16.msra.mxu0 %v12305_v53 }
  0xf5   : > { %v6818_v12 = vadd.f32 %v6817_v9, %v6795_v10  ;;  %v2503_v30 = vpack.c.b16 %v2257_v3, %v2257_v3  ;;  %v12286_v9 = vld [vmem:[%s12831_s17 + $0x590] sm:$0xff]  ;;  %7262 = vmatpush.bf16.msra.mxu3 %v12295_v63 }
  0xf6   : > { %7240 = vmatpush.bf16.msra.mxu2 %v12286_v9 }
  0xf7   : > { %v6841_v15 = vadd.f32 %v6840_v35, %v6818_v12  ;;  %v6865_v16 = vpop.f32.mrf.mxu1  ;;  %v11954_v35 = vld [vmem:[%s14901_s0 + $0x54] sm:$0xf] }
  0xf8   : > { %v6842_v13 = vpop.f32.mrf.mxu0  ;;  %v8770_v8 = vor.u32 %v11954_v35, %v8767_v62  ;;  %7284 = vmatpush.bf16.msra.mxu0 %v12304_v1  ;;  %v12294_v12 = vld [vmem:[%s12831_s17 + $0x5d0] sm:$0xff] }
  0xf9   : > { %v13292_v18 = vadd.f32 %v6863_v4, %v6841_v15  ;;  %v8766_v4 = vor.u32 %v11995_v58, %v8765_v57  ;;  %v12303_v13 = vld [vmem:[%s12831_s17 + $0x618] sm:$0xff]  ;;  %7263 = vmatpush.bf16.msra.mxu3 %v12294_v12  ;;  %v346_v35 = vld [vmem:[%s14901_s0 + $0x570] sm:$0xff] }
  0xfa   : > { %v6796_v22 = vpop.f32.mrf.mxu2  ;;  %v12311_v15 = vld [vmem:[%s12831_s17 + $0x658] sm:$0xff] }
  0xfb   : > { %v6819_v23 = vpop.f32.mrf.mxu3  ;;  %7308 = vmatpush.bf16.msra.mxu1 %v12311_v15  ;;  %v12285_v22 = vld [vmem:[%s12831_s17 + $0x588] sm:$0xff]  ;;  %v12347_v12 = vld [vmem:[%s12831_s17 + $0x778] sm:$0xff] }
  0xfc   : > { %7285 = vmatpush.bf16.msra.mxu0 %v12303_v13  ;;  %v12293_v23 = vld [vmem:[%s12831_s17 + $0x5c8] sm:$0xff]  ;;  %7241 = vmatpush.bf16.msra.mxu2 %v12285_v22 }
  0xfd   : > { %7264 = vmatpush.bf16.msra.mxu3 %v12293_v23 }
  0xff   : > { %v6945_v33 = vpop.f32.mrf.mxu1  ;;  %7069 = vmatmul.bf16.gmra.mxu2 %v2501_v27  ;;  %v9085_v27 = vld [vmem:[%s14901_s0 + $0x2d8] sm:$0xf]  ;;  %7309 = vmatpush.bf16.msra.mxu1 %v12310_v20  ;;  %v12329_v20 = vld [vmem:[%s12831_s17 + $0x6e8] sm:$0xff] }
 0x100   : > { %v6922_v31 = vpop.f32.mrf.mxu0  ;;  %7092 = vmatmul.bf16.gmra.mxu3 %v2502_v29  ;;  %v12035_v29 = vld [vmem:[%s14901_s0 + $0x2dc] sm:$0xf]  ;;  %7286 = vmatpush.bf16.msra.mxu0 %v12302_v19  ;;  %v12321_v19 = vld [vmem:[%s12831_s17 + $0x6a8] sm:$0xff] }
 0x101   : > { %7265 = vmatpush.bf16.msra.mxu3 %v12292_v40  ;;  %v12345_v40 = vld [vmem:[%s12831_s17 + $0x768] sm:$0xff] }
 0x102   : > { %v6876_v38 = vpop.f32.mrf.mxu2  ;;  %7138 = vmatmul.bf16.gmra.mxu1 %v2504_v32  ;;  %v12284_v32 = vld [vmem:[%s12831_s17 + $0x580] sm:$0xff] }
 0x103   : > { %7115 = vmatmul.bf16.gmra.mxu0 %v2503_v30  ;;  %v6899_v39 = vpop.f32.mrf.mxu3  ;;  %v6877_v41 = vadd.f32 %v6876_v38, %v13215_v0  ;;  %v11994_v0 = vld [vmem:[%s14901_s0 + $0x18c] sm:$0xf0]  ;;  %v9087_v30 = vld [vmem:[%s14901_s0 + $0x420] sm:$0xf0]  ;;  %v9093_v38 = vld [vmem:[%s14901_s0 + $0x2e0] sm:$0xf]  ;;  %7242 = vmatpush.bf16.msra.mxu2 %v12284_v32 }
 0x104   : > { %v8758_v61 = vor.u32 %v11994_v0, %v8757_v47  ;;  %7310 = vmatpush.bf16.msra.mxu1 %v12309_v34  ;;  %v12308_v0 = vld [vmem:[%s12831_s17 + $0x640] sm:$0xff]  ;;  %v11955_v34 = vld [vmem:[%s14901_s0 + $0x5c] sm:$0xf] }
 0x105   : > { %v6900_v24 = vadd.f32 %v6899_v39, %v6877_v41  ;;  %v12077_v39 = vld [vmem:[%s14901_s0 + $0x424] sm:$0xf0] }
 0x106   : > { %v9094_v47 = vor.u32 %v12077_v39, %v9093_v38  ;;  %v12328_v38 = vld [vmem:[%s12831_s17 + $0x6e0] sm:$0xff]  ;;  %v12337_v39 = vld [vmem:[%s12831_s17 + $0x728] sm:$0xff] }
 0x107   : > { %v6923_v44 = vadd.f32 %v6922_v31, %v6900_v24  ;;  %v6947_v46 = vpop.f32.mrf.mxu1  ;;  %v9090_v24 = vor.u32 %v12035_v29, %v9087_v30 }
 0x108   : > { %v6924_v43 = vpop.f32.mrf.mxu0  ;;  %7311 = vmatpush.bf16.msra.mxu1 %v12308_v0 }
 0x109   : > { %v13316_v51 = vadd.f32 %v6945_v33, %v6923_v44  ;;  %v12301_v33 = vld [vmem:[%s12831_s17 + $0x608] sm:$0xff] }
 0x10a   : > { %v6878_v55 = vpop.f32.mrf.mxu2  ;;  %v9095_v44 = vld [vmem:[%s14901_s0 + $0x428] sm:$0xf0]  ;;  %7287 = vmatpush.bf16.msra.mxu0 %v12301_v33  ;;  %v8773_v33 = vld [vmem:[%s14901_s0 + $0x58] sm:$0xf] }
 0x10b   : > { %v6901_v56 = vpop.f32.mrf.mxu3  ;;  %v6879_v60 = vadd.f32 %v6878_v55, %v13240_v28  ;;  %v12323_v55 = vld [vmem:[%s12831_s17 + $0x6b8] sm:$0xff] }
 0x10d   : > { %v6902_v28 = vadd.f32 %v6901_v56, %v6879_v60  ;;  %v12331_v56 = vld [vmem:[%s12831_s17 + $0x6f8] sm:$0xff]  ;;  %v345_v60 = vld [vmem:[%s14901_s0 + $0x568] sm:$0xff] }
 0x10e   : > { %7288 = vmatpush.bf16.msra.mxu0 %v12300_v50  ;;  %v2259_v1 = vunpack.c.l.b16 %v345_v60  ;;  %v12327_v50 = vld [vmem:[%s12831_s17 + $0x6d8] sm:$0xff] }
 0x10f   : > { %v6925_v10 = vadd.f32 %v6924_v43, %v6902_v28  ;;  %v6950_v11 = vpop.f32.mrf.mxu1  ;;  %7151 = vmatmul.bf16.vlgmr.msrb.gmra.mxu2 %v8758_v61  ;;  %v12036_v43 = vld [vmem:[%s14901_s0 + $0x2e4] sm:$0xf]  ;;  %v2260_v28 = vunpack.c.h.b16 %v345_v60 }
 0x110   : > { %v6927_v7 = vpop.f32.mrf.mxu0  ;;  %7174 = vmatmul.bf16.vlgmr.msrb.gmra.mxu3 %v8762_v49  ;;  %v9098_v48 = vor.u32 %v12036_v43, %v9095_v44  ;;  %7327 = vmatpush.bf16.msrb.mxu2 %v12323_v55  ;;  %v2505_v13 = vpack.c.b16 %v2259_v1, %v2259_v1  ;;  %v11997_v43 = vld [vmem:[%s14901_s0 + $0x1a4] sm:$0xf0]  ;;  %v12319_v44 = vld [vmem:[%s12831_s17 + $0x698] sm:$0xff]  ;;  %v12344_v55 = vld [vmem:[%s12831_s17 + $0x760] sm:$0xff] }
 0x111   : > { %v13341_v14 = vadd.f32 %v6947_v46, %v6925_v10  ;;  %7350 = vmatpush.bf16.msrb.mxu3 %v12331_v56  ;;  %v2506_v15 = vpack.c.b16 %v2260_v28, %v2260_v28 }
 0x112   : > { %v6881_v16 = vpop.f32.mrf.mxu2  ;;  %7220 = vmatmul.bf16.vlgmr.msrb.gmra.mxu1 %v8770_v8  ;;  %v12339_v8 = vld [vmem:[%s12831_s17 + $0x738] sm:$0xff] }
 0x113   : > { %7197 = vmatmul.bf16.vlgmr.msrb.gmra.mxu0 %v8766_v4  ;;  %v6904_v17 = vpop.f32.mrf.mxu3  ;;  %v6882_v2 = vadd.f32 %v6881_v16, %v13260_v45  ;;  %v12076_v45 = vld [vmem:[%s14901_s0 + $0x41c] sm:$0xf0]  ;;  %7396 = vmatpush.bf16.msrb.mxu1 %v12347_v12 }
 0x114   : > { %v9086_v42 = vor.u32 %v12076_v45, %v9085_v27  ;;  %7328 = vmatpush.bf16.msrb.mxu2 %v12322_v6  ;;  %7373 = vmatpush.bf16.msrb.mxu0 %v12339_v8  ;;  %v12320_v27 = vld [vmem:[%s12831_s17 + $0x6a0] sm:$0xff]  ;;  %v12334_v6 = vld [vmem:[%s12831_s17 + $0x710] sm:$0xff] }
 0x115   : > { %v6905_v3 = vadd.f32 %v6904_v17, %v6882_v2 }
 0x117   : > { %v6928_v25 = vadd.f32 %v6927_v7, %v6905_v3  ;;  %v6952_v26 = vpop.f32.mrf.mxu1  ;;  %v12330_v7 = vld [vmem:[%s12831_s17 + $0x6f0] sm:$0xff] }
 0x118   : > { %v6929_v21 = vpop.f32.mrf.mxu0  ;;  %7351 = vmatpush.bf16.msrb.mxu3 %v12330_v7  ;;  %7329 = vmatpush.bf16.msrb.mxu2 %v12321_v19  ;;  %v12342_v7 = vld [vmem:[%s12831_s17 + $0x750] sm:$0xff]  ;;  %v12341_v19 = vld [vmem:[%s12831_s17 + $0x748] sm:$0xff] }
 0x119   : > { %v13361_v31 = vadd.f32 %v6950_v11, %v6928_v25  ;;  %v2262_v11 = vunpack.c.h.b16 %v346_v35  ;;  %v12346_v25 = vld [vmem:[%s12831_s17 + $0x770] sm:$0xff] }
 0x11a   : > { %v6883_v36 = vpop.f32.mrf.mxu2  ;;  %7397 = vmatpush.bf16.msrb.mxu1 %v12346_v25  ;;  %v12324_v25 = vld [vmem:[%s12831_s17 + $0x6c0] sm:$0xff] }
 0x11b   : > { %v6906_v37 = vpop.f32.mrf.mxu3  ;;  %v6884_v41 = vadd.f32 %v6883_v36, %v13281_v5  ;;  %v2508_v2 = vpack.c.b16 %v2262_v11, %v2262_v11  ;;  %v8775_v36 = vld [vmem:[%s14901_s0 + $0x1a0] sm:$0xf0] }
 0x11c   : > { %7352 = vmatpush.bf16.msrb.mxu3 %v12329_v20  ;;  %7330 = vmatpush.bf16.msrb.mxu2 %v12320_v27  ;;  %v8778_v0 = vor.u32 %v11955_v34, %v8775_v36  ;;  %v12332_v36 = vld [vmem:[%s12831_s17 + $0x700] sm:$0xff] }
 0x11d   : > { %v6907_v46 = vadd.f32 %v6906_v37, %v6884_v41 }
 0x11e   : > { %7398 = vmatpush.bf16.msrb.mxu1 %v12345_v40 }
 0x11f   : > { %v6930_v52 = vadd.f32 %v6929_v21, %v6907_v46  ;;  %v6955_v53 = vpop.f32.mrf.mxu1  ;;  %7156 = vmatmul.bf16.gmra.mxu2 %v9086_v42  ;;  %v12338_v21 = vld [vmem:[%s12831_s17 + $0x730] sm:$0xff] }
 0x120   : > { %v6932_v5 = vpop.f32.mrf.mxu0  ;;  %7179 = vmatmul.bf16.gmra.mxu3 %v9090_v24  ;;  %7374 = vmatpush.bf16.msrb.mxu0 %v12338_v21  ;;  %v8781_v24 = vld [vmem:[%s14901_s0 + $0x60] sm:$0xf] }
 0x121   : > { %v13382_v54 = vadd.f32 %v6952_v26, %v6930_v52  ;;  %7353 = vmatpush.bf16.msrb.mxu3 %v12328_v38  ;;  %7331 = vmatpush.bf16.msrb.mxu2 %v12319_v44  ;;  %v12336_v52 = vld [vmem:[%s12831_s17 + $0x720] sm:$0xff] }
 0x122   : > { %v6886_v57 = vpop.f32.mrf.mxu2  ;;  %7225 = vmatmul.bf16.gmra.mxu1 %v9098_v48  ;;  %v8783_v48 = vld [vmem:[%s14901_s0 + $0x1a8] sm:$0xf0] }
 0x123   : > { %7202 = vmatmul.bf16.gmra.mxu0 %v9094_v47  ;;  %v6909_v58 = vpop.f32.mrf.mxu3  ;;  %v6887_v59 = vadd.f32 %v6886_v57, %v13292_v18  ;;  %v2261_v18 = vunpack.c.l.b16 %v346_v35  ;;  %7399 = vmatpush.bf16.msrb.mxu1 %v12344_v55  ;;  %v12354_v55 = vld [vmem:[%s12831_s17 + $0x7b0] sm:$0xff] }
 0x124   : > { %7375 = vmatpush.bf16.msrb.mxu0 %v12337_v39 }
 0x125   : > { %v6910_v61 = vadd.f32 %v6909_v58, %v6887_v59  ;;  %v2507_v16 = vpack.c.b16 %v2261_v18, %v2261_v18  ;;  %v12318_v58 = vld [vmem:[%s12831_s17 + $0x690] sm:$0xff]  ;;  %7354 = vmatpush.bf16.msrb.mxu3 %v12327_v50 }
 0x126   : > { %7332 = vmatpush.bf16.msrb.mxu2 %v12318_v58 }
 0x127   : > { %v6933_v62 = vadd.f32 %v6932_v5, %v6910_v61  ;;  %v6957_v63 = vpop.f32.mrf.mxu1  ;;  %v11956_v5 = vld [vmem:[%s14901_s0 + $0x64] sm:$0xf]  ;;  %v12326_v61 = vld [vmem:[%s12831_s17 + $0x6d0] sm:$0xff] }
 0x128   : > { %v6934_v49 = vpop.f32.mrf.mxu0  ;;  %v8786_v57 = vor.u32 %v11956_v5, %v8783_v48  ;;  %7376 = vmatpush.bf16.msrb.mxu0 %v12336_v52  ;;  %v348_v5 = vld [vmem:[%s14901_s0 + $0x580] sm:$0xff] }
 0x129   : > { %v13393_v4 = vadd.f32 %v6955_v53, %v6933_v62  ;;  %v8782_v53 = vor.u32 %v11997_v43, %v8781_v24  ;;  %v12335_v49 = vld [vmem:[%s12831_s17 + $0x718] sm:$0xff]  ;;  %7355 = vmatpush.bf16.msrb.mxu3 %v12326_v61 }
 0x12a   : > { %v6888_v9 = vpop.f32.mrf.mxu2  ;;  %v12343_v62 = vld [vmem:[%s12831_s17 + $0x758] sm:$0xff] }
 0x12b   : > { %v6911_v10 = vpop.f32.mrf.mxu3  ;;  %7400 = vmatpush.bf16.msrb.mxu1 %v12343_v62  ;;  %v12317_v9 = vld [vmem:[%s12831_s17 + $0x688] sm:$0xff]  ;;  %v12379_v61 = vld [vmem:[%s12831_s17 + $0x878] sm:$0xff] }
 0x12c   : > { %7377 = vmatpush.bf16.msrb.mxu0 %v12335_v49  ;;  %v12325_v10 = vld [vmem:[%s12831_s17 + $0x6c8] sm:$0xff]  ;;  %7333 = vmatpush.bf16.msrb.mxu2 %v12317_v9 }
 0x12d   : > { %7356 = vmatpush.bf16.msrb.mxu3 %v12325_v10 }
 0x12f   : > { %v7037_v3 = vpop.f32.mrf.mxu1  ;;  %7161 = vmatmul.bf16.gmra.mxu2 %v2505_v13  ;;  %v9101_v13 = vld [vmem:[%s14901_s0 + $0x2e8] sm:$0xf]  ;;  %7401 = vmatpush.bf16.msrb.mxu1 %v12342_v7 }
 0x130   : > { %v7014_v17 = vpop.f32.mrf.mxu0  ;;  %7184 = vmatmul.bf16.gmra.mxu3 %v2506_v15  ;;  %v12037_v15 = vld [vmem:[%s14901_s0 + $0x2ec] sm:$0xf]  ;;  %7378 = vmatpush.bf16.msrb.mxu0 %v12334_v6 }
 0x131   : > { %7357 = vmatpush.bf16.msrb.mxu3 %v12324_v25  ;;  %v12353_v6 = vld [vmem:[%s12831_s17 + $0x7a8] sm:$0xff] }
 0x132   : > { %v6968_v22 = vpop.f32.mrf.mxu2  ;;  %7230 = vmatmul.bf16.gmra.mxu1 %v2508_v2  ;;  %v12316_v2 = vld [vmem:[%s12831_s17 + $0x680] sm:$0xff]  ;;  %v12361_v7 = vld [vmem:[%s12831_s17 + $0x7e8] sm:$0xff] }
 0x133   : > { %7207 = vmatmul.bf16.gmra.mxu0 %v2507_v16  ;;  %v6991_v23 = vpop.f32.mrf.mxu3  ;;  %v6969_v26 = vadd.f32 %v6968_v22, %v13316_v51  ;;  %v11996_v51 = vld [vmem:[%s14901_s0 + $0x19c] sm:$0xf0]  ;;  %v9103_v16 = vld [vmem:[%s14901_s0 + $0x430] sm:$0xf0]  ;;  %v9109_v22 = vld [vmem:[%s14901_s0 + $0x2f0] sm:$0xf]  ;;  %7334 = vmatpush.bf16.msrb.mxu2 %v12316_v2 }
 0x134   : > { %v8774_v47 = vor.u32 %v11996_v51, %v8773_v33  ;;  %7402 = vmatpush.bf16.msrb.mxu1 %v12341_v19  ;;  %v12340_v51 = vld [vmem:[%s12831_s17 + $0x740] sm:$0xff]  ;;  %v11957_v19 = vld [vmem:[%s14901_s0 + $0x6c] sm:$0xf] }
 0x135   : > { %v6992_v45 = vadd.f32 %v6991_v23, %v6969_v26  ;;  %v12079_v23 = vld [vmem:[%s14901_s0 + $0x434] sm:$0xf0]  ;;  %v12377_v25 = vld [vmem:[%s12831_s17 + $0x868] sm:$0xff] }
 0x136   : > { %v9110_v33 = vor.u32 %v12079_v23, %v9109_v22  ;;  %v12360_v22 = vld [vmem:[%s12831_s17 + $0x7e0] sm:$0xff]  ;;  %v12369_v23 = vld [vmem:[%s12831_s17 + $0x828] sm:$0xff] }
 0x137   : > { %v7015_v30 = vadd.f32 %v7014_v17, %v6992_v45  ;;  %v7039_v32 = vpop.f32.mrf.mxu1  ;;  %v9106_v45 = vor.u32 %v12037_v15, %v9103_v16 }
 0x138   : > { %v7016_v29 = vpop.f32.mrf.mxu0  ;;  %7403 = vmatpush.bf16.msrb.mxu1 %v12340_v51 }
 0x139   : > { %v13417_v37 = vadd.f32 %v7037_v3, %v7015_v30  ;;  %v12333_v3 = vld [vmem:[%s12831_s17 + $0x708] sm:$0xff]  ;;  %v9111_v30 = vld [vmem:[%s14901_s0 + $0x438] sm:$0xf0] }
 0x13a   : > { %v6970_v41 = vpop.f32.mrf.mxu2  ;;  %7379 = vmatpush.bf16.msrb.mxu0 %v12333_v3  ;;  %v8789_v3 = vld [vmem:[%s14901_s0 + $0x68] sm:$0xf] }
 0x13b   : > { %v6993_v42 = vpop.f32.mrf.mxu3  ;;  %v6971_v46 = vadd.f32 %v6970_v41, %v13341_v14  ;;  %v12355_v41 = vld [vmem:[%s12831_s17 + $0x7b8] sm:$0xff] }
 0x13d   : > { %v6994_v14 = vadd.f32 %v6993_v42, %v6971_v46  ;;  %v12363_v42 = vld [vmem:[%s12831_s17 + $0x7f8] sm:$0xff] }
 0x13e   : > { %7380 = vmatpush.bf16.msrb.mxu0 %v12332_v36  ;;  %v347_v46 = vld [vmem:[%s14901_s0 + $0x578] sm:$0xff] }
 0x13f   : > { %v7017_v59 = vadd.f32 %v7016_v29, %v6994_v14  ;;  %v7042_v60 = vpop.f32.mrf.mxu1  ;;  %7243 = vmatmul.bf16.vlgmr.msra.gmra.mxu2 %v8774_v47  ;;  %v12038_v29 = vld [vmem:[%s14901_s0 + $0x2f4] sm:$0xf]  ;;  %v2263_v52 = vunpack.c.l.b16 %v347_v46  ;;  %v2264_v14 = vunpack.c.h.b16 %v347_v46  ;;  %v12359_v36 = vld [vmem:[%s12831_s17 + $0x7d8] sm:$0xff] }
 0x140   : > { %v7019_v56 = vpop.f32.mrf.mxu0  ;;  %7266 = vmatmul.bf16.vlgmr.msra.gmra.mxu3 %v8778_v0  ;;  %v9114_v34 = vor.u32 %v12038_v29, %v9111_v30  ;;  %7419 = vmatpush.bf16.msra.mxu2 %v12355_v41  ;;  %v11999_v29 = vld [vmem:[%s14901_s0 + $0x1b4] sm:$0xf0]  ;;  %v12376_v41 = vld [vmem:[%s12831_s17 + $0x860] sm:$0xff] }
 0x141   : > { %v13442_v35 = vadd.f32 %v7039_v32, %v7017_v59  ;;  %7442 = vmatpush.bf16.msra.mxu3 %v12363_v42  ;;  %v2509_v49 = vpack.c.b16 %v2263_v52, %v2263_v52  ;;  %v2510_v62 = vpack.c.b16 %v2264_v14, %v2264_v14  ;;  %v12351_v30 = vld [vmem:[%s12831_s17 + $0x798] sm:$0xff] }
 0x142   : > { %v6973_v63 = vpop.f32.mrf.mxu2  ;;  %7312 = vmatmul.bf16.vlgmr.msra.gmra.mxu1 %v8786_v57  ;;  %v12371_v57 = vld [vmem:[%s12831_s17 + $0x838] sm:$0xff] }
 0x143   : > { %7289 = vmatmul.bf16.vlgmr.msra.gmra.mxu0 %v8782_v53  ;;  %v6996_v1 = vpop.f32.mrf.mxu3  ;;  %v6974_v28 = vadd.f32 %v6973_v63, %v13361_v31  ;;  %v12078_v31 = vld [vmem:[%s14901_s0 + $0x42c] sm:$0xf0]  ;;  %7488 = vmatpush.bf16.msra.mxu1 %v12379_v61 }
 0x144   : > { %v9102_v27 = vor.u32 %v12078_v31, %v9101_v13  ;;  %7420 = vmatpush.bf16.msra.mxu2 %v12354_v55  ;;  %7465 = vmatpush.bf16.msra.mxu0 %v12371_v57  ;;  %v12352_v13 = vld [vmem:[%s12831_s17 + $0x7a0] sm:$0xff]  ;;  %v12366_v55 = vld [vmem:[%s12831_s17 + $0x810] sm:$0xff] }
 0x145   : > { %v6997_v18 = vadd.f32 %v6996_v1, %v6974_v28 }
 0x147   : > { %v7020_v11 = vadd.f32 %v7019_v56, %v6997_v18  ;;  %v7044_v12 = vpop.f32.mrf.mxu1  ;;  %v12362_v56 = vld [vmem:[%s12831_s17 + $0x7f0] sm:$0xff] }
 0x148   : > { %v7021_v8 = vpop.f32.mrf.mxu0  ;;  %7443 = vmatpush.bf16.msra.mxu3 %v12362_v56  ;;  %7421 = vmatpush.bf16.msra.mxu2 %v12353_v6  ;;  %v12374_v56 = vld [vmem:[%s12831_s17 + $0x850] sm:$0xff]  ;;  %v12373_v6 = vld [vmem:[%s12831_s17 + $0x848] sm:$0xff] }
 0x149   : > { %v13462_v17 = vadd.f32 %v7042_v60, %v7020_v11  ;;  %v2266_v60 = vunpack.c.h.b16 %v348_v5  ;;  %v12378_v11 = vld [vmem:[%s12831_s17 + $0x870] sm:$0xff] }
 0x14a   : > { %v6975_v20 = vpop.f32.mrf.mxu2  ;;  %7489 = vmatpush.bf16.msra.mxu1 %v12378_v11  ;;  %v12356_v11 = vld [vmem:[%s12831_s17 + $0x7c0] sm:$0xff] }
 0x14b   : > { %v6998_v21 = vpop.f32.mrf.mxu3  ;;  %v6976_v26 = vadd.f32 %v6975_v20, %v13382_v54  ;;  %v2512_v28 = vpack.c.b16 %v2266_v60, %v2266_v60  ;;  %v8791_v20 = vld [vmem:[%s14901_s0 + $0x1b0] sm:$0xf0] }
 0x14c   : > { %7444 = vmatpush.bf16.msra.mxu3 %v12361_v7  ;;  %7422 = vmatpush.bf16.msra.mxu2 %v12352_v13  ;;  %v8794_v51 = vor.u32 %v11957_v19, %v8791_v20  ;;  %v12364_v20 = vld [vmem:[%s12831_s17 + $0x800] sm:$0xff] }
 0x14d   : > { %v6999_v32 = vadd.f32 %v6998_v21, %v6976_v26 }
 0x14e   : > { %7490 = vmatpush.bf16.msra.mxu1 %v12377_v25  ;;  %v12387_v25 = vld [vmem:[%s12831_s17 + $0x8b8] sm:$0xff] }
 0x14f   : > { %v7022_v38 = vadd.f32 %v7021_v8, %v6999_v32  ;;  %v7047_v39 = vpop.f32.mrf.mxu1  ;;  %7248 = vmatmul.bf16.gmra.mxu2 %v9102_v27  ;;  %v12370_v8 = vld [vmem:[%s12831_s17 + $0x830] sm:$0xff] }
 0x150   : > { %v7024_v54 = vpop.f32.mrf.mxu0  ;;  %7271 = vmatmul.bf16.gmra.mxu3 %v9106_v45  ;;  %7466 = vmatpush.bf16.msra.mxu0 %v12370_v8  ;;  %v8797_v45 = vld [vmem:[%s14901_s0 + $0x70] sm:$0xf] }
 0x151   : > { %v13483_v40 = vadd.f32 %v7044_v12, %v7022_v38  ;;  %7445 = vmatpush.bf16.msra.mxu3 %v12360_v22  ;;  %7423 = vmatpush.bf16.msra.mxu2 %v12351_v30  ;;  %v12368_v38 = vld [vmem:[%s12831_s17 + $0x820] sm:$0xff] }
 0x152   : > { %v6978_v24 = vpop.f32.mrf.mxu2  ;;  %7317 = vmatmul.bf16.gmra.mxu1 %v9114_v34  ;;  %v8799_v34 = vld [vmem:[%s14901_s0 + $0x1b8] sm:$0xf0] }
 0x153   : > { %7294 = vmatmul.bf16.gmra.mxu0 %v9110_v33  ;;  %v7001_v43 = vpop.f32.mrf.mxu3  ;;  %v6979_v44 = vadd.f32 %v6978_v24, %v13393_v4  ;;  %v2265_v4 = vunpack.c.l.b16 %v348_v5  ;;  %7491 = vmatpush.bf16.msra.mxu1 %v12376_v41  ;;  %v12394_v41 = vld [vmem:[%s12831_s17 + $0x8f0] sm:$0xff] }
 0x154   : > { %7467 = vmatpush.bf16.msra.mxu0 %v12369_v23 }
 0x155   : > { %v7002_v47 = vadd.f32 %v7001_v43, %v6979_v44  ;;  %v2511_v63 = vpack.c.b16 %v2265_v4, %v2265_v4  ;;  %v12350_v43 = vld [vmem:[%s12831_s17 + $0x790] sm:$0xff]  ;;  %7446 = vmatpush.bf16.msra.mxu3 %v12359_v36 }
 0x156   : > { %7424 = vmatpush.bf16.msra.mxu2 %v12350_v43 }
 0x157   : > { %v7025_v48 = vadd.f32 %v7024_v54, %v7002_v47  ;;  %v7049_v50 = vpop.f32.mrf.mxu1  ;;  %v11958_v54 = vld [vmem:[%s14901_s0 + $0x74] sm:$0xf] }
 0x158   : > { %v7026_v0 = vpop.f32.mrf.mxu0  ;;  %v8802_v24 = vor.u32 %v11958_v54, %v8799_v34  ;;  %7468 = vmatpush.bf16.msra.mxu0 %v12368_v38  ;;  %v12358_v47 = vld [vmem:[%s12831_s17 + $0x7d0] sm:$0xff] }
 0x159   : > { %v13494_v53 = vadd.f32 %v7047_v39, %v7025_v48  ;;  %v8798_v39 = vor.u32 %v11999_v29, %v8797_v45  ;;  %v12367_v0 = vld [vmem:[%s12831_s17 + $0x818] sm:$0xff]  ;;  %7447 = vmatpush.bf16.msra.mxu3 %v12358_v47  ;;  %v350_v54 = vld [vmem:[%s14901_s0 + $0x590] sm:$0xff] }
 0x15a   : > { %v6980_v58 = vpop.f32.mrf.mxu2  ;;  %v12375_v48 = vld [vmem:[%s12831_s17 + $0x858] sm:$0xff]  ;;  %v2269_v43 = vunpack.c.l.b16 %v350_v54  ;;  %v2270_v47 = vunpack.c.h.b16 %v350_v54 }
 0x15b   : > { %v7003_v59 = vpop.f32.mrf.mxu3  ;;  %7492 = vmatpush.bf16.msra.mxu1 %v12375_v48  ;;  %v12349_v58 = vld [vmem:[%s12831_s17 + $0x788] sm:$0xff]  ;;  %v12407_v54 = vld [vmem:[%s12831_s17 + $0x958] sm:$0xff] }
 0x15c   : > { %7469 = vmatpush.bf16.msra.mxu0 %v12367_v0  ;;  %v12357_v59 = vld [vmem:[%s12831_s17 + $0x7c8] sm:$0xff]  ;;  %7425 = vmatpush.bf16.msra.mxu2 %v12349_v58  ;;  %v12410_v58 = vld [vmem:[%s12831_s17 + $0x970] sm:$0xff] }
 0x15d   : > { %7448 = vmatpush.bf16.msra.mxu3 %v12357_v59  ;;  %v12384_v59 = vld [vmem:[%s12831_s17 + $0x8a0] sm:$0xff] }
 0x15f   : > { %v7129_v18 = vpop.f32.mrf.mxu1  ;;  %7253 = vmatmul.bf16.gmra.mxu2 %v2509_v49  ;;  %v9117_v49 = vld [vmem:[%s14901_s0 + $0x2f8] sm:$0xf]  ;;  %7493 = vmatpush.bf16.msra.mxu1 %v12374_v56  ;;  %v12393_v56 = vld [vmem:[%s12831_s17 + $0x8e8] sm:$0xff] }
 0x160   : > { %v7106_v1 = vpop.f32.mrf.mxu0  ;;  %7276 = vmatmul.bf16.gmra.mxu3 %v2510_v62  ;;  %v12039_v62 = vld [vmem:[%s14901_s0 + $0x2fc] sm:$0xf]  ;;  %7470 = vmatpush.bf16.msra.mxu0 %v12366_v55  ;;  %v12385_v55 = vld [vmem:[%s12831_s17 + $0x8a8] sm:$0xff] }
 0x161   : > { %7449 = vmatpush.bf16.msra.mxu3 %v12356_v11  ;;  %v12383_v11 = vld [vmem:[%s12831_s17 + $0x898] sm:$0xff] }
 0x162   : > { %v7060_v9 = vpop.f32.mrf.mxu2  ;;  %7322 = vmatmul.bf16.gmra.mxu1 %v2512_v28 }
 0x163   : > { %7299 = vmatmul.bf16.gmra.mxu0 %v2511_v63  ;;  %v7083_v10 = vpop.f32.mrf.mxu3  ;;  %v7061_v12 = vadd.f32 %v7060_v9, %v13417_v37  ;;  %v11998_v37 = vld [vmem:[%s14901_s0 + $0x1ac] sm:$0xf0]  ;;  %v9119_v63 = vld [vmem:[%s14901_s0 + $0x440] sm:$0xf0]  ;;  %v9125_v9 = vld [vmem:[%s14901_s0 + $0x300] sm:$0xf]  ;;  %7494 = vmatpush.bf16.msra.mxu1 %v12373_v6 }
 0x164   : > { %v8790_v33 = vor.u32 %v11998_v37, %v8789_v3  ;;  %v12372_v37 = vld [vmem:[%s12831_s17 + $0x840] sm:$0xff] }
 0x165   : > { %v7084_v31 = vadd.f32 %v7083_v10, %v7061_v12  ;;  %v12081_v10 = vld [vmem:[%s14901_s0 + $0x444] sm:$0xf0] }
 0x166   : > { %v9126_v3 = vor.u32 %v12081_v10, %v9125_v9  ;;  %v11959_v9 = vld [vmem:[%s14901_s0 + $0x7c] sm:$0xf]  ;;  %v8807_v10 = vld [vmem:[%s14901_s0 + $0x1c0] sm:$0xf0] }
 0x167   : > { %v7107_v16 = vadd.f32 %v7106_v1, %v7084_v31  ;;  %v7131_v2 = vpop.f32.mrf.mxu1  ;;  %v12348_v1 = vld [vmem:[%s12831_s17 + $0x780] sm:$0xff]  ;;  %v9122_v31 = vor.u32 %v12039_v62, %v9119_v63  ;;  %7495 = vmatpush.bf16.msra.mxu1 %v12372_v37  ;;  %v8805_v63 = vld [vmem:[%s14901_s0 + $0x78] sm:$0xf] }
 0x168   : > { %v7108_v15 = vpop.f32.mrf.mxu0  ;;  %7426 = vmatpush.bf16.msra.mxu2 %v12348_v1  ;;  %v12000_v1 = vld [vmem:[%s14901_s0 + $0x1bc] sm:$0xf0] }
 0x169   : > { %v13518_v21 = vadd.f32 %v7129_v18, %v7107_v16  ;;  %v12365_v18 = vld [vmem:[%s12831_s17 + $0x808] sm:$0xff]  ;;  %v12408_v37 = vld [vmem:[%s12831_s17 + $0x960] sm:$0xff] }
 0x16a   : > { %v7062_v26 = vpop.f32.mrf.mxu2  ;;  %v9127_v16 = vld [vmem:[%s14901_s0 + $0x448] sm:$0xf0]  ;;  %7471 = vmatpush.bf16.msra.mxu0 %v12365_v18 }
 0x16b   : > { %v7085_v27 = vpop.f32.mrf.mxu3  ;;  %v7063_v32 = vadd.f32 %v7062_v26, %v13442_v35  ;;  %v12395_v26 = vld [vmem:[%s12831_s17 + $0x8f8] sm:$0xff] }
 0x16d   : > { %v7086_v35 = vadd.f32 %v7085_v27, %v7063_v32  ;;  %v349_v32 = vld [vmem:[%s14901_s0 + $0x588] sm:$0xff] }
 0x16e   : > { %7472 = vmatpush.bf16.msra.mxu0 %v12364_v20  ;;  %v2267_v38 = vunpack.c.l.b16 %v349_v32  ;;  %v8806_v20 = vor.u32 %v12000_v1, %v8805_v63  ;;  %v9143_v63 = vld [vmem:[%s14901_s0 + $0x458] sm:$0xf0] }
 0x16f   : > { %v7109_v44 = vadd.f32 %v7108_v15, %v7086_v35  ;;  %v7134_v46 = vpop.f32.mrf.mxu1  ;;  %7335 = vmatmul.bf16.vlgmr.msrb.gmra.mxu2 %v8790_v33  ;;  %v12040_v15 = vld [vmem:[%s14901_s0 + $0x304] sm:$0xf]  ;;  %v2268_v35 = vunpack.c.h.b16 %v349_v32 }
 0x170   : > { %v7111_v42 = vpop.f32.mrf.mxu0  ;;  %7358 = vmatmul.bf16.vlgmr.msrb.gmra.mxu3 %v8794_v51  ;;  %v9130_v19 = vor.u32 %v12040_v15, %v9127_v16  ;;  %7511 = vmatpush.bf16.msrb.mxu2 %v12387_v25  ;;  %v2513_v0 = vpack.c.b16 %v2267_v38, %v2267_v38  ;;  %v8815_v25 = vld [vmem:[%s14901_s0 + $0x1c8] sm:$0xf0] }
 0x171   : > { %v13543_v5 = vadd.f32 %v7131_v2, %v7109_v44  ;;  %7534 = vmatpush.bf16.msrb.mxu3 %v12395_v26  ;;  %v2514_v48 = vpack.c.b16 %v2268_v35, %v2268_v35 }
 0x172   : > { %v7065_v50 = vpop.f32.mrf.mxu2  ;;  %7404 = vmatmul.bf16.vlgmr.msrb.gmra.mxu1 %v8802_v24 }
 0x173   : > { %7381 = vmatmul.bf16.vlgmr.msrb.gmra.mxu0 %v8798_v39  ;;  %v7088_v52 = vpop.f32.mrf.mxu3  ;;  %v7066_v14 = vadd.f32 %v7065_v50, %v13462_v17  ;;  %v12080_v17 = vld [vmem:[%s14901_s0 + $0x43c] sm:$0xf0]  ;;  %v12386_v39 = vld [vmem:[%s12831_s17 + $0x8b0] sm:$0xff]  ;;  %v2515_v50 = vpack.c.b16 %v2269_v43, %v2269_v43  ;;  %v12381_v43 = vld [vmem:[%s12831_s17 + $0x888] sm:$0xff] }
 0x174   : > { %v9118_v13 = vor.u32 %v12080_v17, %v9117_v49  ;;  %7512 = vmatpush.bf16.msrb.mxu2 %v12386_v39 }
 0x175   : > { %v7089_v4 = vadd.f32 %v7088_v52, %v7066_v14  ;;  %7535 = vmatpush.bf16.msrb.mxu3 %v12394_v41  ;;  %v2516_v14 = vpack.c.b16 %v2270_v47, %v2270_v47  ;;  %v12398_v41 = vld [vmem:[%s12831_s17 + $0x910] sm:$0xff] }
 0x177   : > { %v7112_v60 = vadd.f32 %v7111_v42, %v7089_v4  ;;  %v7136_v61 = vpop.f32.mrf.mxu1  ;;  %v12403_v42 = vld [vmem:[%s12831_s17 + $0x938] sm:$0xff] }
 0x178   : > { %v7113_v57 = vpop.f32.mrf.mxu0  ;;  %7557 = vmatpush.bf16.msrb.mxu0 %v12403_v42  ;;  %7513 = vmatpush.bf16.msrb.mxu2 %v12385_v55  ;;  %v12406_v42 = vld [vmem:[%s12831_s17 + $0x950] sm:$0xff] }
 0x179   : > { %v13564_v28 = vadd.f32 %v7134_v46, %v7112_v60  ;;  %7536 = vmatpush.bf16.msrb.mxu3 %v12393_v56 }
 0x17a   : > { %v7067_v7 = vpop.f32.mrf.mxu2 }
 0x17b   : > { %v7090_v8 = vpop.f32.mrf.mxu3  ;;  %v7068_v12 = vadd.f32 %v7067_v7, %v13483_v40  ;;  %v12392_v7 = vld [vmem:[%s12831_s17 + $0x8e0] sm:$0xff] }
 0x17c   : > { %7514 = vmatpush.bf16.msrb.mxu2 %v12384_v59  ;;  %v12083_v59 = vld [vmem:[%s14901_s0 + $0x454] sm:$0xf0] }
 0x17d   : > { %v7091_v2 = vadd.f32 %v7090_v8, %v7068_v12  ;;  %v12401_v8 = vld [vmem:[%s12831_s17 + $0x928] sm:$0xff]  ;;  %v8813_v12 = vld [vmem:[%s14901_s0 + $0x80] sm:$0xf]  ;;  %7537 = vmatpush.bf16.msrb.mxu3 %v12392_v7 }
 0x17f   : > { %v7114_v22 = vadd.f32 %v7113_v57, %v7091_v2  ;;  %v7139_v23 = vpop.f32.mrf.mxu1  ;;  %7340 = vmatmul.bf16.gmra.mxu2 %v9118_v13  ;;  %v12402_v57 = vld [vmem:[%s12831_s17 + $0x930] sm:$0xff]  ;;  %v12391_v13 = vld [vmem:[%s12831_s17 + $0x8d8] sm:$0xff] }
 0x180   : > { %v7116_v40 = vpop.f32.mrf.mxu0  ;;  %7363 = vmatmul.bf16.gmra.mxu3 %v9122_v31  ;;  %7558 = vmatpush.bf16.msrb.mxu0 %v12402_v57  ;;  %v12400_v31 = vld [vmem:[%s12831_s17 + $0x920] sm:$0xff] }
 0x181   : > { %v13586_v27 = vadd.f32 %v7136_v61, %v7114_v22  ;;  %7515 = vmatpush.bf16.msrb.mxu2 %v12383_v11  ;;  %v8810_v22 = vor.u32 %v11959_v9, %v8807_v10  ;;  %7538 = vmatpush.bf16.msrb.mxu3 %v12391_v13  ;;  %v12419_v10 = vld [vmem:[%s12831_s17 + $0x9b8] sm:$0xff] }
 0x182   : > { %v7070_v45 = vpop.f32.mrf.mxu2  ;;  %7409 = vmatmul.bf16.gmra.mxu1 %v9130_v19  ;;  %v12427_v11 = vld [vmem:[%s12831_s17 + $0x9f8] sm:$0xff] }
 0x183   : > { %7386 = vmatmul.bf16.gmra.mxu0 %v9126_v3  ;;  %v7093_v29 = vpop.f32.mrf.mxu3  ;;  %v7071_v30 = vadd.f32 %v7070_v45, %v13494_v53  ;;  %v12411_v53 = vld [vmem:[%s12831_s17 + $0x978] sm:$0xff]  ;;  %v12001_v3 = vld [vmem:[%s14901_s0 + $0x1c4] sm:$0xf0] }
 0x184   : > { %7580 = vmatpush.bf16.msrb.mxu1 %v12411_v53  ;;  %7559 = vmatpush.bf16.msrb.mxu0 %v12401_v8  ;;  %v8814_v45 = vor.u32 %v12001_v3, %v8813_v12 }
 0x185   : > { %v7094_v33 = vadd.f32 %v7093_v29, %v7071_v30  ;;  %v12390_v29 = vld [vmem:[%s12831_s17 + $0x8d0] sm:$0xff] }
 0x186   : > { %7539 = vmatpush.bf16.msrb.mxu3 %v12390_v29  ;;  %v12443_v29 = vld [vmem:[%s12831_s17 + $0xa78] sm:$0xff] }
 0x187   : > { %v7117_v34 = vadd.f32 %v7116_v40, %v7094_v33  ;;  %v7141_v36 = vpop.f32.mrf.mxu1  ;;  %v12382_v40 = vld [vmem:[%s12831_s17 + $0x890] sm:$0xff] }
 0x188   : > { %v7118_v51 = vpop.f32.mrf.mxu0  ;;  %7581 = vmatpush.bf16.msrb.mxu1 %v12410_v58  ;;  %7560 = vmatpush.bf16.msrb.mxu0 %v12400_v31  ;;  %v9141_v58 = vld [vmem:[%s14901_s0 + $0x310] sm:$0xf] }
 0x189   : > { %v13599_v24 = vadd.f32 %v7139_v23, %v7117_v34  ;;  %v11960_v23 = vld [vmem:[%s14901_s0 + $0x84] sm:$0xf]  ;;  %7516 = vmatpush.bf16.msrb.mxu2 %v12382_v40 }
 0x18a   : > { %v7072_v44 = vpop.f32.mrf.mxu2  ;;  %v8818_v32 = vor.u32 %v11960_v23, %v8815_v25  ;;  %v352_v40 = vld [vmem:[%s14901_s0 + $0x5a0] sm:$0xff]  ;;  %v12418_v25 = vld [vmem:[%s12831_s17 + $0x9b0] sm:$0xff] }
 0x18b   : > { %v7095_v46 = vpop.f32.mrf.mxu3  ;;  %v12389_v44 = vld [vmem:[%s12831_s17 + $0x8c8] sm:$0xff] }
 0x18c   : > { %7540 = vmatpush.bf16.msrb.mxu3 %v12389_v44  ;;  %v12416_v44 = vld [vmem:[%s12831_s17 + $0x9a0] sm:$0xff] }
 0x18d   : > { %7517 = vmatpush.bf16.msrb.mxu2 %v12381_v43  ;;  %v12442_v43 = vld [vmem:[%s12831_s17 + $0xa70] sm:$0xff] }
 0x18f   : > { %v7221_v4 = vpop.f32.mrf.mxu1  ;;  %7345 = vmatmul.bf16.gmra.mxu2 %v2513_v0  ;;  %v9133_v0 = vld [vmem:[%s14901_s0 + $0x308] sm:$0xf] }
 0x190   : > { %v7198_v52 = vpop.f32.mrf.mxu0  ;;  %7368 = vmatmul.bf16.gmra.mxu3 %v2514_v48  ;;  %v12041_v48 = vld [vmem:[%s14901_s0 + $0x30c] sm:$0xf] }
 0x192   : > { %v7152_v60 = vpop.f32.mrf.mxu2  ;;  %7414 = vmatmul.bf16.gmra.mxu1 %v2516_v14  ;;  %v12397_v14 = vld [vmem:[%s12831_s17 + $0x908] sm:$0xff] }
 0x193   : > { %7391 = vmatmul.bf16.gmra.mxu0 %v2515_v50  ;;  %v7175_v61 = vpop.f32.mrf.mxu3  ;;  %v7153_v49 = vadd.f32 %v7152_v60, %v13518_v21  ;;  %v12409_v21 = vld [vmem:[%s12831_s17 + $0x968] sm:$0xff]  ;;  %v9135_v50 = vld [vmem:[%s14901_s0 + $0x450] sm:$0xf0]  ;;  %v12388_v60 = vld [vmem:[%s12831_s17 + $0x8c0] sm:$0xff] }
 0x194   : > { %7582 = vmatpush.bf16.msrb.mxu1 %v12409_v21  ;;  %7541 = vmatpush.bf16.msrb.mxu3 %v12388_v60  ;;  %v12415_v60 = vld [vmem:[%s12831_s17 + $0x998] sm:$0xff] }
 0x195   : > { %v7176_v17 = vadd.f32 %v7175_v61, %v7153_v49 }
 0x197   : > { %v7199_v18 = vadd.f32 %v7198_v52, %v7176_v17  ;;  %v7223_v6 = vpop.f32.mrf.mxu1  ;;  %v12380_v52 = vld [vmem:[%s12831_s17 + $0x880] sm:$0xff]  ;;  %v9138_v17 = vor.u32 %v12041_v48, %v9135_v50  ;;  %v8821_v50 = vld [vmem:[%s14901_s0 + $0x88] sm:$0xf] }
 0x198   : > { %v7200_v62 = vpop.f32.mrf.mxu0  ;;  %7583 = vmatpush.bf16.msrb.mxu1 %v12408_v37  ;;  %7518 = vmatpush.bf16.msrb.mxu2 %v12380_v52  ;;  %v12002_v52 = vld [vmem:[%s14901_s0 + $0x1cc] sm:$0xf0] }
 0x199   : > { %v13628_v15 = vadd.f32 %v7221_v4, %v7199_v18  ;;  %v12405_v4 = vld [vmem:[%s12831_s17 + $0x948] sm:$0xff]  ;;  %v9142_v18 = vor.u32 %v12083_v59, %v9141_v58  ;;  %v8823_v59 = vld [vmem:[%s14901_s0 + $0x1d0] sm:$0xf0] }
 0x19a   : > { %v7154_v16 = vpop.f32.mrf.mxu2  ;;  %v11961_v58 = vld [vmem:[%s14901_s0 + $0x8c] sm:$0xf] }
 0x19b   : > { %v7177_v2 = vpop.f32.mrf.mxu3  ;;  %v7155_v19 = vadd.f32 %v7154_v16, %v13543_v5  ;;  %v12399_v5 = vld [vmem:[%s12831_s17 + $0x918] sm:$0xff] }
 0x19c   : > { %7561 = vmatpush.bf16.msrb.mxu0 %v12399_v5  ;;  %7584 = vmatpush.bf16.msrb.mxu1 %v12407_v54 }
 0x19d   : > { %v7178_v26 = vadd.f32 %v7177_v2, %v7155_v19  ;;  %v351_v2 = vld [vmem:[%s14901_s0 + $0x598] sm:$0xff] }
 0x19e   : > { %v2272_v23 = vunpack.c.h.b16 %v351_v2 }
 0x19f   : > { %v7201_v33 = vadd.f32 %v7200_v62, %v7178_v26  ;;  %v7226_v51 = vpop.f32.mrf.mxu1  ;;  %7427 = vmatmul.bf16.vlgmr.msra.gmra.mxu2 %v8806_v20  ;;  %v12042_v62 = vld [vmem:[%s14901_s0 + $0x314] sm:$0xf] }
 0x1a0   : > { %v7203_v30 = vpop.f32.mrf.mxu0  ;;  %7450 = vmatmul.bf16.vlgmr.msra.gmra.mxu3 %v8810_v22  ;;  %7562 = vmatpush.bf16.msrb.mxu0 %v12398_v41  ;;  %v9146_v8 = vor.u32 %v12042_v62, %v9143_v63  ;;  %v2271_v22 = vunpack.c.l.b16 %v351_v2  ;;  %v12426_v26 = vld [vmem:[%s12831_s17 + $0x9f0] sm:$0xff]  ;;  %v2518_v54 = vpack.c.b16 %v2272_v23, %v2272_v23  ;;  %v12417_v41 = vld [vmem:[%s12831_s17 + $0x9a8] sm:$0xff] }
 0x1a1   : > { %v13645_v34 = vadd.f32 %v7223_v6, %v7201_v33  ;;  %7585 = vmatpush.bf16.msrb.mxu1 %v12406_v42  ;;  %v12396_v6 = vld [vmem:[%s12831_s17 + $0x900] sm:$0xff]  ;;  %7603 = vmatpush.bf16.msra.mxu2 %v12419_v10  ;;  %v2274_v33 = vunpack.c.h.b16 %v352_v40  ;;  %v12425_v42 = vld [vmem:[%s12831_s17 + $0x9e8] sm:$0xff]  ;;  %v8831_v10 = vld [vmem:[%s14901_s0 + $0x1d8] sm:$0xf0] }
 0x1a2   : > { %v7157_v36 = vpop.f32.mrf.mxu2  ;;  %7496 = vmatmul.bf16.vlgmr.msra.gmra.mxu1 %v8818_v32  ;;  %7626 = vmatpush.bf16.msra.mxu3 %v12427_v11 }
 0x1a3   : > { %7473 = vmatmul.bf16.vlgmr.msra.gmra.mxu0 %v8814_v45  ;;  %v7180_v38 = vpop.f32.mrf.mxu3  ;;  %v7158_v35 = vadd.f32 %v7157_v36, %v13564_v28  ;;  %v12082_v28 = vld [vmem:[%s14901_s0 + $0x44c] sm:$0xf0]  ;;  %v12435_v45 = vld [vmem:[%s12831_s17 + $0xa38] sm:$0xff] }
 0x1a4   : > { %v9134_v49 = vor.u32 %v12082_v28, %v9133_v0  ;;  %7563 = vmatpush.bf16.msrb.mxu0 %v12397_v14 }
 0x1a5   : > { %v7181_v39 = vadd.f32 %v7180_v38, %v7158_v35  ;;  %7586 = vmatpush.bf16.msrb.mxu1 %v12405_v4  ;;  %7604 = vmatpush.bf16.msra.mxu2 %v12418_v25  ;;  %v2520_v35 = vpack.c.b16 %v2274_v33, %v2274_v33 }
 0x1a6   : > { %7627 = vmatpush.bf16.msra.mxu3 %v12426_v26  ;;  %v12430_v26 = vld [vmem:[%s12831_s17 + $0xa10] sm:$0xff] }
 0x1a7   : > { %v7204_v46 = vadd.f32 %v7203_v30, %v7181_v39  ;;  %v7228_v47 = vpop.f32.mrf.mxu1  ;;  %v2273_v30 = vunpack.c.l.b16 %v352_v40  ;;  %v12439_v40 = vld [vmem:[%s12831_s17 + $0xa58] sm:$0xff] }
 0x1a8   : > { %v7205_v53 = vpop.f32.mrf.mxu0  ;;  %7564 = vmatpush.bf16.msrb.mxu0 %v12396_v6  ;;  %v12440_v6 = vld [vmem:[%s12831_s17 + $0xa60] sm:$0xff] }
 0x1a9   : > { %v13667_v55 = vadd.f32 %v7226_v51, %v7204_v46  ;;  %v2517_v51 = vpack.c.b16 %v2271_v22, %v2271_v22  ;;  %v2519_v36 = vpack.c.b16 %v2273_v30, %v2273_v30  ;;  %7605 = vmatpush.bf16.msra.mxu2 %v12417_v41  ;;  %v12413_v30 = vld [vmem:[%s12831_s17 + $0x988] sm:$0xff] }
 0x1aa   : > { %v7159_v56 = vpop.f32.mrf.mxu2  ;;  %7628 = vmatpush.bf16.msra.mxu3 %v12425_v42 }
 0x1ab   : > { %v7182_v57 = vpop.f32.mrf.mxu3  ;;  %v7160_v61 = vadd.f32 %v7159_v56, %v13586_v27  ;;  %v12404_v27 = vld [vmem:[%s12831_s17 + $0x940] sm:$0xff] }
 0x1ac   : > { %7587 = vmatpush.bf16.msrb.mxu1 %v12404_v27  ;;  %7649 = vmatpush.bf16.msra.mxu0 %v12435_v45  ;;  %v12424_v56 = vld [vmem:[%s12831_s17 + $0x9e0] sm:$0xff]  ;;  %v12414_v27 = vld [vmem:[%s12831_s17 + $0x990] sm:$0xff] }
 0x1ad   : > { %v7183_v1 = vadd.f32 %v7182_v57, %v7160_v61  ;;  %7606 = vmatpush.bf16.msra.mxu2 %v12416_v44  ;;  %v12433_v57 = vld [vmem:[%s12831_s17 + $0xa28] sm:$0xff]  ;;  %v8829_v61 = vld [vmem:[%s14901_s0 + $0x90] sm:$0xf] }
 0x1ae   : > { %7629 = vmatpush.bf16.msra.mxu3 %v12424_v56  ;;  %v12438_v45 = vld [vmem:[%s12831_s17 + $0xa50] sm:$0xff]  ;;  %v12085_v44 = vld [vmem:[%s14901_s0 + $0x464] sm:$0xf0] }
 0x1af   : > { %v7206_v21 = vadd.f32 %v7205_v53, %v7183_v1  ;;  %v7231_v9 = vpop.f32.mrf.mxu1  ;;  %7432 = vmatmul.bf16.gmra.mxu2 %v9134_v49  ;;  %v12434_v53 = vld [vmem:[%s12831_s17 + $0xa30] sm:$0xff]  ;;  %v12423_v49 = vld [vmem:[%s12831_s17 + $0x9d8] sm:$0xff] }
 0x1b0   : > { %v7208_v7 = vpop.f32.mrf.mxu0  ;;  %7455 = vmatmul.bf16.gmra.mxu3 %v9138_v17  ;;  %7672 = vmatpush.bf16.msra.mxu1 %v12443_v29  ;;  %v12432_v17 = vld [vmem:[%s12831_s17 + $0xa20] sm:$0xff] }
 0x1b1   : > { %v13687_v12 = vadd.f32 %v7228_v47, %v7206_v21  ;;  %7650 = vmatpush.bf16.msra.mxu0 %v12434_v53  ;;  %7607 = vmatpush.bf16.msra.mxu2 %v12415_v60  ;;  %v8826_v21 = vor.u32 %v11961_v58, %v8823_v59  ;;  %v12451_v59 = vld [vmem:[%s12831_s17 + $0xab8] sm:$0xff] }
 0x1b2   : > { %v7162_v13 = vpop.f32.mrf.mxu2  ;;  %7501 = vmatmul.bf16.gmra.mxu1 %v9146_v8  ;;  %v8822_v8 = vor.u32 %v12002_v52, %v8821_v50  ;;  %7630 = vmatpush.bf16.msra.mxu3 %v12423_v49  ;;  %v9159_v50 = vld [vmem:[%s14901_s0 + $0x468] sm:$0xf0]  ;;  %v12459_v60 = vld [vmem:[%s12831_s17 + $0xaf8] sm:$0xff] }
 0x1b3   : > { %7478 = vmatmul.bf16.gmra.mxu0 %v9142_v18  ;;  %v7185_v31 = vpop.f32.mrf.mxu3  ;;  %v7163_v16 = vadd.f32 %v7162_v13, %v13599_v24  ;;  %v12003_v18 = vld [vmem:[%s14901_s0 + $0x1d4] sm:$0xf0] }
 0x1b4   : > { %7673 = vmatpush.bf16.msra.mxu1 %v12442_v43  ;;  %v8830_v13 = vor.u32 %v12003_v18, %v8829_v61  ;;  %v9157_v43 = vld [vmem:[%s14901_s0 + $0x320] sm:$0xf] }
 0x1b5   : > { %v7186_v3 = vadd.f32 %v7185_v31, %v7163_v16  ;;  %7651 = vmatpush.bf16.msra.mxu0 %v12433_v57  ;;  %v12422_v31 = vld [vmem:[%s12831_s17 + $0x9d0] sm:$0xff]  ;;  %7608 = vmatpush.bf16.msra.mxu2 %v12414_v27 }
 0x1b6   : > { %7631 = vmatpush.bf16.msra.mxu3 %v12422_v31  ;;  %v354_v27 = vld [vmem:[%s14901_s0 + $0x5b0] sm:$0xff]  ;;  %v12475_v31 = vld [vmem:[%s12831_s17 + $0xb78] sm:$0xff] }
 0x1b7   : > { %v7209_v19 = vadd.f32 %v7208_v7, %v7186_v3  ;;  %v7233_v20 = vpop.f32.mrf.mxu1 }
 0x1b8   : > { %v7210_v37 = vpop.f32.mrf.mxu0 }
 0x1b9   : > { %v13700_v24 = vadd.f32 %v7231_v9, %v7209_v19  ;;  %v11962_v9 = vld [vmem:[%s14901_s0 + $0x94] sm:$0xf]  ;;  %7652 = vmatpush.bf16.msra.mxu0 %v12432_v17  ;;  %7609 = vmatpush.bf16.msra.mxu2 %v12413_v30 }
 0x1ba   : > { %v7164_v32 = vpop.f32.mrf.mxu2  ;;  %v8834_v2 = vor.u32 %v11962_v9, %v8831_v10  ;;  %v12450_v10 = vld [vmem:[%s12831_s17 + $0xab0] sm:$0xff] }
 0x1bb   : > { %v7187_v5 = vpop.f32.mrf.mxu3  ;;  %v12421_v32 = vld [vmem:[%s12831_s17 + $0x9c8] sm:$0xff]  ;;  %v12474_v30 = vld [vmem:[%s12831_s17 + $0xb70] sm:$0xff] }
 0x1bc   : > { %7632 = vmatpush.bf16.msra.mxu3 %v12421_v32  ;;  %v12448_v32 = vld [vmem:[%s12831_s17 + $0xaa0] sm:$0xff] }
 0x1bf   : > { %v7313_v39 = vpop.f32.mrf.mxu1  ;;  %7437 = vmatmul.bf16.gmra.mxu2 %v2517_v51  ;;  %v9149_v51 = vld [vmem:[%s14901_s0 + $0x318] sm:$0xf] }
 0x1c0   : > { %v7290_v38 = vpop.f32.mrf.mxu0  ;;  %7460 = vmatmul.bf16.gmra.mxu3 %v2518_v54  ;;  %v12043_v54 = vld [vmem:[%s14901_s0 + $0x31c] sm:$0xf] }
 0x1c2   : > { %v7244_v46 = vpop.f32.mrf.mxu2  ;;  %7506 = vmatmul.bf16.gmra.mxu1 %v2520_v35  ;;  %v12429_v35 = vld [vmem:[%s12831_s17 + $0xa08] sm:$0xff] }
 0x1c3   : > { %7483 = vmatmul.bf16.gmra.mxu0 %v2519_v36  ;;  %v7267_v47 = vpop.f32.mrf.mxu3  ;;  %v7245_v0 = vadd.f32 %v7244_v46, %v13628_v15  ;;  %v12441_v15 = vld [vmem:[%s12831_s17 + $0xa68] sm:$0xff]  ;;  %v9151_v36 = vld [vmem:[%s14901_s0 + $0x460] sm:$0xf0] }
 0x1c4   : > { %7674 = vmatpush.bf16.msra.mxu1 %v12441_v15  ;;  %v12420_v46 = vld [vmem:[%s12831_s17 + $0x9c0] sm:$0xff] }
 0x1c5   : > { %v7268_v28 = vadd.f32 %v7267_v47, %v7245_v0  ;;  %7633 = vmatpush.bf16.msra.mxu3 %v12420_v46  ;;  %v12447_v46 = vld [vmem:[%s12831_s17 + $0xa98] sm:$0xff] }
 0x1c7   : > { %v7291_v14 = vadd.f32 %v7290_v38, %v7268_v28  ;;  %v7315_v4 = vpop.f32.mrf.mxu1  ;;  %v12412_v38 = vld [vmem:[%s12831_s17 + $0x980] sm:$0xff]  ;;  %v9154_v28 = vor.u32 %v12043_v54, %v9151_v36  ;;  %v8837_v36 = vld [vmem:[%s14901_s0 + $0x98] sm:$0xf] }
 0x1c8   : > { %v7292_v48 = vpop.f32.mrf.mxu0  ;;  %7675 = vmatpush.bf16.msra.mxu1 %v12440_v6  ;;  %7610 = vmatpush.bf16.msra.mxu2 %v12412_v38  ;;  %v12004_v38 = vld [vmem:[%s14901_s0 + $0x1dc] sm:$0xf0] }
 0x1c9   : > { %v13729_v62 = vadd.f32 %v7313_v39, %v7291_v14  ;;  %v12437_v39 = vld [vmem:[%s12831_s17 + $0xa48] sm:$0xff]  ;;  %v9158_v14 = vor.u32 %v12085_v44, %v9157_v43  ;;  %v11963_v43 = vld [vmem:[%s14901_s0 + $0x9c] sm:$0xf]  ;;  %v8839_v44 = vld [vmem:[%s14901_s0 + $0x1e0] sm:$0xf0] }
 0x1ca   : > { %v7246_v63 = vpop.f32.mrf.mxu2 }
 0x1cb   : > { %v7269_v1 = vpop.f32.mrf.mxu3  ;;  %v7247_v7 = vadd.f32 %v7246_v63, %v13645_v34  ;;  %v12431_v34 = vld [vmem:[%s12831_s17 + $0xa18] sm:$0xff] }
 0x1cc   : > { %7653 = vmatpush.bf16.msra.mxu0 %v12431_v34  ;;  %7676 = vmatpush.bf16.msra.mxu1 %v12439_v40 }
 0x1cd   : > { %v7270_v11 = vadd.f32 %v7269_v1, %v7247_v7  ;;  %v353_v1 = vld [vmem:[%s14901_s0 + $0x5a8] sm:$0xff] }
 0x1ce   : > { %v2276_v9 = vunpack.c.h.b16 %v353_v1 }
 0x1cf   : > { %v7293_v3 = vadd.f32 %v7292_v48, %v7270_v11  ;;  %v7318_v37 = vpop.f32.mrf.mxu1  ;;  %7519 = vmatmul.bf16.vlgmr.msrb.gmra.mxu2 %v8822_v8  ;;  %v12044_v48 = vld [vmem:[%s14901_s0 + $0x324] sm:$0xf]  ;;  %v12458_v11 = vld [vmem:[%s12831_s17 + $0xaf0] sm:$0xff] }
 0x1d0   : > { %v7295_v16 = vpop.f32.mrf.mxu0  ;;  %7542 = vmatmul.bf16.vlgmr.msrb.gmra.mxu3 %v8826_v21  ;;  %7654 = vmatpush.bf16.msra.mxu0 %v12430_v26  ;;  %v9162_v57 = vor.u32 %v12044_v48, %v9159_v50  ;;  %v2275_v21 = vunpack.c.l.b16 %v353_v1  ;;  %v2522_v40 = vpack.c.b16 %v2276_v9, %v2276_v9  ;;  %v12449_v26 = vld [vmem:[%s12831_s17 + $0xaa8] sm:$0xff] }
 0x1d1   : > { %v13746_v19 = vadd.f32 %v7315_v4, %v7293_v3  ;;  %7677 = vmatpush.bf16.msra.mxu1 %v12438_v45  ;;  %v12428_v4 = vld [vmem:[%s12831_s17 + $0xa00] sm:$0xff]  ;;  %7695 = vmatpush.bf16.msrb.mxu2 %v12451_v59  ;;  %v2278_v3 = vunpack.c.h.b16 %v354_v27  ;;  %v12457_v45 = vld [vmem:[%s12831_s17 + $0xae8] sm:$0xff] }
 0x1d2   : > { %v7249_v20 = vpop.f32.mrf.mxu2  ;;  %7588 = vmatmul.bf16.vlgmr.msrb.gmra.mxu1 %v8834_v2  ;;  %7718 = vmatpush.bf16.msrb.mxu3 %v12459_v60  ;;  %v8847_v59 = vld [vmem:[%s14901_s0 + $0x1e8] sm:$0xf0] }
 0x1d3   : > { %7565 = vmatmul.bf16.vlgmr.msrb.gmra.mxu0 %v8830_v13  ;;  %v7272_v22 = vpop.f32.mrf.mxu3  ;;  %v7250_v23 = vadd.f32 %v7249_v20, %v13667_v55  ;;  %v12084_v55 = vld [vmem:[%s14901_s0 + $0x45c] sm:$0xf0]  ;;  %v12467_v13 = vld [vmem:[%s12831_s17 + $0xb38] sm:$0xff] }
 0x1d4   : > { %v9150_v0 = vor.u32 %v12084_v55, %v9149_v51  ;;  %7655 = vmatpush.bf16.msra.mxu0 %v12429_v35 }
 0x1d5   : > { %v7273_v25 = vadd.f32 %v7272_v22, %v7250_v23  ;;  %7678 = vmatpush.bf16.msra.mxu1 %v12437_v39  ;;  %7696 = vmatpush.bf16.msrb.mxu2 %v12450_v10  ;;  %v2524_v23 = vpack.c.b16 %v2278_v3, %v2278_v3 }
 0x1d6   : > { %7719 = vmatpush.bf16.msrb.mxu3 %v12458_v11  ;;  %v12462_v11 = vld [vmem:[%s12831_s17 + $0xb10] sm:$0xff] }
 0x1d7   : > { %v7296_v5 = vadd.f32 %v7295_v16, %v7273_v25  ;;  %v7320_v33 = vpop.f32.mrf.mxu1  ;;  %v2277_v16 = vunpack.c.l.b16 %v354_v27  ;;  %v12471_v27 = vld [vmem:[%s12831_s17 + $0xb58] sm:$0xff] }
 0x1d8   : > { %v7297_v29 = vpop.f32.mrf.mxu0  ;;  %7656 = vmatpush.bf16.msra.mxu0 %v12428_v4  ;;  %v12472_v4 = vld [vmem:[%s12831_s17 + $0xb60] sm:$0xff] }
 0x1d9   : > { %v13768_v41 = vadd.f32 %v7318_v37, %v7296_v5  ;;  %v2521_v37 = vpack.c.b16 %v2275_v21, %v2275_v21  ;;  %v2523_v20 = vpack.c.b16 %v2277_v16, %v2277_v16  ;;  %7697 = vmatpush.bf16.msrb.mxu2 %v12449_v26  ;;  %v12445_v16 = vld [vmem:[%s12831_s17 + $0xa88] sm:$0xff] }
 0x1da   : > { %v7251_v42 = vpop.f32.mrf.mxu2  ;;  %7720 = vmatpush.bf16.msrb.mxu3 %v12457_v45 }
 0x1db   : > { %v7274_v53 = vpop.f32.mrf.mxu3  ;;  %v7252_v47 = vadd.f32 %v7251_v42, %v13687_v12  ;;  %v12436_v12 = vld [vmem:[%s12831_s17 + $0xa40] sm:$0xff] }
 0x1dc   : > { %7679 = vmatpush.bf16.msra.mxu1 %v12436_v12  ;;  %7741 = vmatpush.bf16.msrb.mxu0 %v12467_v13  ;;  %v12456_v42 = vld [vmem:[%s12831_s17 + $0xae0] sm:$0xff]  ;;  %v12446_v12 = vld [vmem:[%s12831_s17 + $0xa90] sm:$0xff] }
 0x1dd   : > { %v7275_v52 = vadd.f32 %v7274_v53, %v7252_v47  ;;  %7698 = vmatpush.bf16.msrb.mxu2 %v12448_v32  ;;  %v12465_v53 = vld [vmem:[%s12831_s17 + $0xb28] sm:$0xff]  ;;  %v8845_v47 = vld [vmem:[%s14901_s0 + $0xa0] sm:$0xf]  ;;  %v12470_v13 = vld [vmem:[%s12831_s17 + $0xb50] sm:$0xff] }
 0x1de   : > { %7721 = vmatpush.bf16.msrb.mxu3 %v12456_v42  ;;  %v12087_v32 = vld [vmem:[%s14901_s0 + $0x474] sm:$0xf0] }
 0x1df   : > { %v7298_v15 = vadd.f32 %v7297_v29, %v7275_v52  ;;  %v7323_v58 = vpop.f32.mrf.mxu1  ;;  %7524 = vmatmul.bf16.gmra.mxu2 %v9150_v0  ;;  %v12466_v29 = vld [vmem:[%s12831_s17 + $0xb30] sm:$0xff]  ;;  %v12455_v0 = vld [vmem:[%s12831_s17 + $0xad8] sm:$0xff] }
 0x1e0   : > { %v7300_v56 = vpop.f32.mrf.mxu0  ;;  %7547 = vmatmul.bf16.gmra.mxu3 %v9154_v28  ;;  %7764 = vmatpush.bf16.msrb.mxu1 %v12475_v31  ;;  %v12464_v28 = vld [vmem:[%s12831_s17 + $0xb20] sm:$0xff] }
 0x1e1   : > { %v13788_v61 = vadd.f32 %v7320_v33, %v7298_v15  ;;  %7742 = vmatpush.bf16.msrb.mxu0 %v12466_v29  ;;  %7699 = vmatpush.bf16.msrb.mxu2 %v12447_v46  ;;  %v8842_v15 = vor.u32 %v11963_v43, %v8839_v44  ;;  %v12483_v44 = vld [vmem:[%s12831_s17 + $0xbb8] sm:$0xff] }
 0x1e2   : > { %v7254_v49 = vpop.f32.mrf.mxu2  ;;  %7593 = vmatmul.bf16.gmra.mxu1 %v9162_v57  ;;  %v8838_v57 = vor.u32 %v12004_v38, %v8837_v36  ;;  %7722 = vmatpush.bf16.msrb.mxu3 %v12455_v0  ;;  %v9175_v36 = vld [vmem:[%s14901_s0 + $0x478] sm:$0xf0] }
 0x1e3   : > { %7570 = vmatmul.bf16.gmra.mxu0 %v9158_v14  ;;  %v7277_v17 = vpop.f32.mrf.mxu3  ;;  %v7255_v63 = vadd.f32 %v7254_v49, %v13700_v24  ;;  %v12005_v14 = vld [vmem:[%s14901_s0 + $0x1e4] sm:$0xf0]  ;;  %v12491_v46 = vld [vmem:[%s12831_s17 + $0xbf8] sm:$0xff] }
 0x1e4   : > { %7765 = vmatpush.bf16.msrb.mxu1 %v12474_v30  ;;  %v8846_v49 = vor.u32 %v12005_v14, %v8845_v47  ;;  %v9173_v30 = vld [vmem:[%s14901_s0 + $0x330] sm:$0xf] }
 0x1e5   : > { %v7278_v18 = vadd.f32 %v7277_v17, %v7255_v63  ;;  %7743 = vmatpush.bf16.msrb.mxu0 %v12465_v53  ;;  %v12454_v17 = vld [vmem:[%s12831_s17 + $0xad0] sm:$0xff]  ;;  %7700 = vmatpush.bf16.msrb.mxu2 %v12446_v12  ;;  %v356_v12 = vld [vmem:[%s14901_s0 + $0x5c0] sm:$0xff] }
 0x1e6   : > { %7723 = vmatpush.bf16.msrb.mxu3 %v12454_v17  ;;  %v12507_v17 = vld [vmem:[%s12831_s17 + $0xc78] sm:$0xff] }
 0x1e7   : > { %v7301_v7 = vadd.f32 %v7300_v56, %v7278_v18  ;;  %v7325_v8 = vpop.f32.mrf.mxu1 }
 0x1e8   : > { %v7302_v6 = vpop.f32.mrf.mxu0 }
 0x1e9   : > { %v13801_v24 = vadd.f32 %v7323_v58, %v7301_v7  ;;  %v11964_v58 = vld [vmem:[%s14901_s0 + $0xa4] sm:$0xf]  ;;  %7744 = vmatpush.bf16.msrb.mxu0 %v12464_v28  ;;  %7701 = vmatpush.bf16.msrb.mxu2 %v12445_v16  ;;  %v12506_v16 = vld [vmem:[%s12831_s17 + $0xc70] sm:$0xff] }
 0x1ea   : > { %v7256_v2 = vpop.f32.mrf.mxu2  ;;  %v8850_v1 = vor.u32 %v11964_v58, %v8847_v59  ;;  %v12482_v59 = vld [vmem:[%s12831_s17 + $0xbb0] sm:$0xff] }
 0x1eb   : > { %v7279_v34 = vpop.f32.mrf.mxu3  ;;  %v12453_v2 = vld [vmem:[%s12831_s17 + $0xac8] sm:$0xff] }
 0x1ec   : > { %7724 = vmatpush.bf16.msrb.mxu3 %v12453_v2  ;;  %v12480_v2 = vld [vmem:[%s12831_s17 + $0xba0] sm:$0xff] }
 0x1ef   : > { %v7405_v25 = vpop.f32.mrf.mxu1  ;;  %7529 = vmatmul.bf16.gmra.mxu2 %v2521_v37  ;;  %v9165_v37 = vld [vmem:[%s14901_s0 + $0x328] sm:$0xf] }
 0x1f0   : > { %v7382_v22 = vpop.f32.mrf.mxu0  ;;  %7552 = vmatmul.bf16.gmra.mxu3 %v2522_v40  ;;  %v12045_v40 = vld [vmem:[%s14901_s0 + $0x32c] sm:$0xf] }
 0x1f2   : > { %v7336_v5 = vpop.f32.mrf.mxu2  ;;  %7598 = vmatmul.bf16.gmra.mxu1 %v2524_v23  ;;  %v12461_v23 = vld [vmem:[%s12831_s17 + $0xb08] sm:$0xff] }
 0x1f3   : > { %7575 = vmatmul.bf16.gmra.mxu0 %v2523_v20  ;;  %v7359_v33 = vpop.f32.mrf.mxu3  ;;  %v7337_v51 = vadd.f32 %v7336_v5, %v13729_v62  ;;  %v12473_v62 = vld [vmem:[%s12831_s17 + $0xb68] sm:$0xff]  ;;  %v9167_v20 = vld [vmem:[%s14901_s0 + $0x470] sm:$0xf0]  ;;  %v12452_v5 = vld [vmem:[%s12831_s17 + $0xac0] sm:$0xff] }
 0x1f4   : > { %7766 = vmatpush.bf16.msrb.mxu1 %v12473_v62  ;;  %7725 = vmatpush.bf16.msrb.mxu3 %v12452_v5  ;;  %v12479_v5 = vld [vmem:[%s12831_s17 + $0xb98] sm:$0xff] }
 0x1f5   : > { %v7360_v55 = vadd.f32 %v7359_v33, %v7337_v51 }
 0x1f7   : > { %v7383_v35 = vadd.f32 %v7382_v22, %v7360_v55  ;;  %v7407_v39 = vpop.f32.mrf.mxu1  ;;  %v12444_v22 = vld [vmem:[%s12831_s17 + $0xa80] sm:$0xff]  ;;  %v9170_v55 = vor.u32 %v12045_v40, %v9167_v20  ;;  %v8853_v20 = vld [vmem:[%s14901_s0 + $0xa8] sm:$0xf] }
 0x1f8   : > { %v7384_v54 = vpop.f32.mrf.mxu0  ;;  %7767 = vmatpush.bf16.msrb.mxu1 %v12472_v4  ;;  %7702 = vmatpush.bf16.msrb.mxu2 %v12444_v22  ;;  %v12006_v22 = vld [vmem:[%s14901_s0 + $0x1ec] sm:$0xf0] }
 0x1f9   : > { %v13830_v48 = vadd.f32 %v7405_v25, %v7383_v35  ;;  %v12469_v25 = vld [vmem:[%s12831_s17 + $0xb48] sm:$0xff]  ;;  %v9174_v35 = vor.u32 %v12087_v32, %v9173_v30  ;;  %v8855_v32 = vld [vmem:[%s14901_s0 + $0x1f0] sm:$0xf0] }
 0x1fa   : > { %v7338_v50 = vpop.f32.mrf.mxu2  ;;  %v11965_v30 = vld [vmem:[%s14901_s0 + $0xac] sm:$0xf] }
 0x1fb   : > { %v7361_v52 = vpop.f32.mrf.mxu3  ;;  %v7339_v56 = vadd.f32 %v7338_v50, %v13746_v19  ;;  %v12463_v19 = vld [vmem:[%s12831_s17 + $0xb18] sm:$0xff] }
 0x1fc   : > { %7745 = vmatpush.bf16.msrb.mxu0 %v12463_v19  ;;  %7768 = vmatpush.bf16.msrb.mxu1 %v12471_v27 }
 0x1fd   : > { %v7362_v60 = vadd.f32 %v7361_v52, %v7339_v56  ;;  %v355_v52 = vld [vmem:[%s14901_s0 + $0x5b8] sm:$0xff] }
 0x1fe   : > { %v2280_v58 = vunpack.c.h.b16 %v355_v52 }
 0x1ff   : > { %v7385_v18 = vadd.f32 %v7384_v54, %v7362_v60  ;;  %v7410_v6 = vpop.f32.mrf.mxu1  ;;  %7611 = vmatmul.bf16.vlgmr.msra.gmra.mxu2 %v8838_v57  ;;  %v12046_v54 = vld [vmem:[%s14901_s0 + $0x334] sm:$0xf] }
 0x200   : > { %v7387_v63 = vpop.f32.mrf.mxu0  ;;  %7634 = vmatmul.bf16.vlgmr.msra.gmra.mxu3 %v8842_v15  ;;  %7746 = vmatpush.bf16.msrb.mxu0 %v12462_v11  ;;  %v9178_v53 = vor.u32 %v12046_v54, %v9175_v36  ;;  %v2279_v15 = vunpack.c.l.b16 %v355_v52  ;;  %v12490_v60 = vld [vmem:[%s12831_s17 + $0xbf0] sm:$0xff]  ;;  %v2526_v27 = vpack.c.b16 %v2280_v58, %v2280_v58  ;;  %v12481_v11 = vld [vmem:[%s12831_s17 + $0xba8] sm:$0xff] }
 0x201   : > { %v13847_v7 = vadd.f32 %v7407_v39, %v7385_v18  ;;  %7769 = vmatpush.bf16.msrb.mxu1 %v12470_v13  ;;  %v12460_v39 = vld [vmem:[%s12831_s17 + $0xb00] sm:$0xff]  ;;  %7787 = vmatpush.bf16.msra.mxu2 %v12483_v44  ;;  %v2282_v18 = vunpack.c.h.b16 %v356_v12  ;;  %v12489_v13 = vld [vmem:[%s12831_s17 + $0xbe8] sm:$0xff]  ;;  %v8863_v44 = vld [vmem:[%s14901_s0 + $0x1f8] sm:$0xf0] }
 0x202   : > { %v7341_v8 = vpop.f32.mrf.mxu2  ;;  %7680 = vmatmul.bf16.vlgmr.msra.gmra.mxu1 %v8850_v1  ;;  %7810 = vmatpush.bf16.msra.mxu3 %v12491_v46 }
 0x203   : > { %7657 = vmatmul.bf16.vlgmr.msra.gmra.mxu0 %v8846_v49  ;;  %v7364_v21 = vpop.f32.mrf.mxu3  ;;  %v7342_v9 = vadd.f32 %v7341_v8, %v13768_v41  ;;  %v12086_v41 = vld [vmem:[%s14901_s0 + $0x46c] sm:$0xf0]  ;;  %v12499_v49 = vld [vmem:[%s12831_s17 + $0xc38] sm:$0xff] }
 0x204   : > { %v9166_v51 = vor.u32 %v12086_v41, %v9165_v37  ;;  %7747 = vmatpush.bf16.msrb.mxu0 %v12461_v23 }
 0x205   : > { %v7365_v10 = vadd.f32 %v7364_v21, %v7342_v9  ;;  %7770 = vmatpush.bf16.msrb.mxu1 %v12469_v25  ;;  %7788 = vmatpush.bf16.msra.mxu2 %v12482_v59  ;;  %v2528_v9 = vpack.c.b16 %v2282_v18, %v2282_v18 }
 0x206   : > { %7811 = vmatpush.bf16.msra.mxu3 %v12490_v60  ;;  %v12494_v60 = vld [vmem:[%s12831_s17 + $0xc10] sm:$0xff] }
 0x207   : > { %v7388_v34 = vadd.f32 %v7387_v63, %v7365_v10  ;;  %v7412_v3 = vpop.f32.mrf.mxu1  ;;  %v2281_v63 = vunpack.c.l.b16 %v356_v12  ;;  %v12503_v12 = vld [vmem:[%s12831_s17 + $0xc58] sm:$0xff] }
 0x208   : > { %v7389_v31 = vpop.f32.mrf.mxu0  ;;  %7748 = vmatpush.bf16.msrb.mxu0 %v12460_v39  ;;  %v12504_v39 = vld [vmem:[%s12831_s17 + $0xc60] sm:$0xff] }
 0x209   : > { %v13869_v26 = vadd.f32 %v7410_v6, %v7388_v34  ;;  %v2525_v6 = vpack.c.b16 %v2279_v15, %v2279_v15  ;;  %v2527_v8 = vpack.c.b16 %v2281_v63, %v2281_v63  ;;  %7789 = vmatpush.bf16.msra.mxu2 %v12481_v11  ;;  %v12477_v63 = vld [vmem:[%s12831_s17 + $0xb88] sm:$0xff] }
 0x20a   : > { %v7343_v45 = vpop.f32.mrf.mxu2  ;;  %7812 = vmatpush.bf16.msra.mxu3 %v12489_v13 }
 0x20b   : > { %v7366_v29 = vpop.f32.mrf.mxu3  ;;  %v7344_v33 = vadd.f32 %v7343_v45, %v13788_v61  ;;  %v12468_v61 = vld [vmem:[%s12831_s17 + $0xb40] sm:$0xff] }
 0x20c   : > { %7771 = vmatpush.bf16.msrb.mxu1 %v12468_v61  ;;  %7833 = vmatpush.bf16.msra.mxu0 %v12499_v49  ;;  %v12488_v45 = vld [vmem:[%s12831_s17 + $0xbe0] sm:$0xff]  ;;  %v12478_v61 = vld [vmem:[%s12831_s17 + $0xb90] sm:$0xff] }
 0x20d   : > { %v7367_v38 = vadd.f32 %v7366_v29, %v7344_v33  ;;  %7790 = vmatpush.bf16.msra.mxu2 %v12480_v2  ;;  %v12497_v29 = vld [vmem:[%s12831_s17 + $0xc28] sm:$0xff]  ;;  %v8861_v33 = vld [vmem:[%s14901_s0 + $0xb0] sm:$0xf] }
 0x20e   : > { %7813 = vmatpush.bf16.msra.mxu3 %v12488_v45  ;;  %v12502_v49 = vld [vmem:[%s12831_s17 + $0xc50] sm:$0xff]  ;;  %v12089_v2 = vld [vmem:[%s14901_s0 + $0x484] sm:$0xf0] }
 0x20f   : > { %v7390_v62 = vadd.f32 %v7389_v31, %v7367_v38  ;;  %v7415_v43 = vpop.f32.mrf.mxu1  ;;  %7616 = vmatmul.bf16.gmra.mxu2 %v9166_v51  ;;  %v12498_v31 = vld [vmem:[%s12831_s17 + $0xc30] sm:$0xff]  ;;  %v12487_v51 = vld [vmem:[%s12831_s17 + $0xbd8] sm:$0xff] }
 0x210   : > { %v7392_v42 = vpop.f32.mrf.mxu0  ;;  %7639 = vmatmul.bf16.gmra.mxu3 %v9170_v55  ;;  %7856 = vmatpush.bf16.msra.mxu1 %v12507_v17  ;;  %v12496_v55 = vld [vmem:[%s12831_s17 + $0xc20] sm:$0xff] }
 0x211   : > { %v13889_v47 = vadd.f32 %v7412_v3, %v7390_v62  ;;  %7834 = vmatpush.bf16.msra.mxu0 %v12498_v31  ;;  %7791 = vmatpush.bf16.msra.mxu2 %v12479_v5  ;;  %v8858_v62 = vor.u32 %v11965_v30, %v8855_v32  ;;  %v12515_v32 = vld [vmem:[%s12831_s17 + $0xcb8] sm:$0xff] }
 0x212   : > { %v7346_v0 = vpop.f32.mrf.mxu2  ;;  %7685 = vmatmul.bf16.gmra.mxu1 %v9178_v53  ;;  %v8854_v53 = vor.u32 %v12006_v22, %v8853_v20  ;;  %7814 = vmatpush.bf16.msra.mxu3 %v12487_v51  ;;  %v9191_v20 = vld [vmem:[%s14901_s0 + $0x488] sm:$0xf0]  ;;  %v12523_v5 = vld [vmem:[%s12831_s17 + $0xcf8] sm:$0xff] }
 0x213   : > { %7662 = vmatmul.bf16.gmra.mxu0 %v9174_v35  ;;  %v7369_v28 = vpop.f32.mrf.mxu3  ;;  %v7347_v50 = vadd.f32 %v7346_v0, %v13801_v24  ;;  %v12007_v35 = vld [vmem:[%s14901_s0 + $0x1f4] sm:$0xf0] }
 0x214   : > { %7857 = vmatpush.bf16.msra.mxu1 %v12506_v16  ;;  %v8862_v0 = vor.u32 %v12007_v35, %v8861_v33  ;;  %v9189_v16 = vld [vmem:[%s14901_s0 + $0x340] sm:$0xf] }
 0x215   : > { %v7370_v14 = vadd.f32 %v7369_v28, %v7347_v50  ;;  %7835 = vmatpush.bf16.msra.mxu0 %v12497_v29  ;;  %v12486_v28 = vld [vmem:[%s12831_s17 + $0xbd0] sm:$0xff]  ;;  %7792 = vmatpush.bf16.msra.mxu2 %v12478_v61 }
 0x216   : > { %7815 = vmatpush.bf16.msra.mxu3 %v12486_v28  ;;  %v358_v61 = vld [vmem:[%s14901_s0 + $0x5d0] sm:$0xff]  ;;  %v12539_v28 = vld [vmem:[%s12831_s17 + $0xd78] sm:$0xff] }
 0x217   : > { %v7393_v56 = vadd.f32 %v7392_v42, %v7370_v14  ;;  %v7417_v57 = vpop.f32.mrf.mxu1 }
 0x218   : > { %v7394_v4 = vpop.f32.mrf.mxu0 }
 0x219   : > { %v13902_v24 = vadd.f32 %v7415_v43, %v7393_v56  ;;  %v11966_v43 = vld [vmem:[%s14901_s0 + $0xb4] sm:$0xf]  ;;  %7836 = vmatpush.bf16.msra.mxu0 %v12496_v55  ;;  %7793 = vmatpush.bf16.msra.mxu2 %v12477_v63 }
 0x21a   : > { %v7348_v1 = vpop.f32.mrf.mxu2  ;;  %v8866_v52 = vor.u32 %v11966_v43, %v8863_v44  ;;  %v12514_v44 = vld [vmem:[%s12831_s17 + $0xcb0] sm:$0xff] }
 0x21b   : > { %v7371_v19 = vpop.f32.mrf.mxu3  ;;  %v12485_v1 = vld [vmem:[%s12831_s17 + $0xbc8] sm:$0xff]  ;;  %v12538_v63 = vld [vmem:[%s12831_s17 + $0xd70] sm:$0xff] }
 0x21c   : > { %7816 = vmatpush.bf16.msra.mxu3 %v12485_v1  ;;  %v12512_v1 = vld [vmem:[%s12831_s17 + $0xca0] sm:$0xff] }
 0x21f   : > { %v7497_v10 = vpop.f32.mrf.mxu1  ;;  %7621 = vmatmul.bf16.gmra.mxu2 %v2525_v6  ;;  %v9181_v6 = vld [vmem:[%s14901_s0 + $0x338] sm:$0xf] }
 0x220   : > { %v7474_v21 = vpop.f32.mrf.mxu0  ;;  %7644 = vmatmul.bf16.gmra.mxu3 %v2526_v27  ;;  %v12047_v27 = vld [vmem:[%s14901_s0 + $0x33c] sm:$0xf] }
 0x222   : > { %v7428_v34 = vpop.f32.mrf.mxu2  ;;  %7690 = vmatmul.bf16.gmra.mxu1 %v2528_v9  ;;  %v12493_v9 = vld [vmem:[%s12831_s17 + $0xc08] sm:$0xff] }
 0x223   : > { %7667 = vmatmul.bf16.gmra.mxu0 %v2527_v8  ;;  %v7451_v3 = vpop.f32.mrf.mxu3  ;;  %v7429_v37 = vadd.f32 %v7428_v34, %v13830_v48  ;;  %v12505_v48 = vld [vmem:[%s12831_s17 + $0xc68] sm:$0xff]  ;;  %v9183_v8 = vld [vmem:[%s14901_s0 + $0x480] sm:$0xf0] }
 0x224   : > { %7858 = vmatpush.bf16.msra.mxu1 %v12505_v48  ;;  %v12484_v34 = vld [vmem:[%s12831_s17 + $0xbc0] sm:$0xff] }
 0x225   : > { %v7452_v41 = vadd.f32 %v7451_v3, %v7429_v37  ;;  %7817 = vmatpush.bf16.msra.mxu3 %v12484_v34  ;;  %v12511_v34 = vld [vmem:[%s12831_s17 + $0xc98] sm:$0xff] }
 0x227   : > { %v7475_v23 = vadd.f32 %v7474_v21, %v7452_v41  ;;  %v7499_v25 = vpop.f32.mrf.mxu1  ;;  %v12476_v21 = vld [vmem:[%s12831_s17 + $0xb80] sm:$0xff]  ;;  %v9186_v41 = vor.u32 %v12047_v27, %v9183_v8  ;;  %v8869_v8 = vld [vmem:[%s14901_s0 + $0xb8] sm:$0xf] }
 0x228   : > { %v7476_v40 = vpop.f32.mrf.mxu0  ;;  %7859 = vmatpush.bf16.msra.mxu1 %v12504_v39  ;;  %7794 = vmatpush.bf16.msra.mxu2 %v12476_v21  ;;  %v12008_v21 = vld [vmem:[%s14901_s0 + $0x1fc] sm:$0xf0] }
 0x229   : > { %v13931_v54 = vadd.f32 %v7497_v10, %v7475_v23  ;;  %v12501_v10 = vld [vmem:[%s12831_s17 + $0xc48] sm:$0xff]  ;;  %v9190_v23 = vor.u32 %v12089_v2, %v9189_v16  ;;  %v11967_v16 = vld [vmem:[%s14901_s0 + $0xbc] sm:$0xf]  ;;  %v8871_v2 = vld [vmem:[%s14901_s0 + $0x200] sm:$0xf0] }
 0x22a   : > { %v7430_v36 = vpop.f32.mrf.mxu2 }
 0x22b   : > { %v7453_v38 = vpop.f32.mrf.mxu3  ;;  %v7431_v42 = vadd.f32 %v7430_v36, %v13847_v7  ;;  %v12495_v7 = vld [vmem:[%s12831_s17 + $0xc18] sm:$0xff] }
 0x22c   : > { %7837 = vmatpush.bf16.msra.mxu0 %v12495_v7  ;;  %7860 = vmatpush.bf16.msra.mxu1 %v12503_v12 }
 0x22d   : > { %v7454_v46 = vadd.f32 %v7453_v38, %v7431_v42  ;;  %v357_v38 = vld [vmem:[%s14901_s0 + $0x5c8] sm:$0xff] }
 0x22e   : > { %v2284_v43 = vunpack.c.h.b16 %v357_v38 }
 0x22f   : > { %v7477_v14 = vadd.f32 %v7476_v40, %v7454_v46  ;;  %v7502_v4 = vpop.f32.mrf.mxu1  ;;  %7703 = vmatmul.bf16.vlgmr.msrb.gmra.mxu2 %v8854_v53  ;;  %v12048_v40 = vld [vmem:[%s14901_s0 + $0x344] sm:$0xf]  ;;  %v12522_v46 = vld [vmem:[%s12831_s17 + $0xcf0] sm:$0xff] }
 0x230   : > { %v7479_v50 = vpop.f32.mrf.mxu0  ;;  %7726 = vmatmul.bf16.vlgmr.msrb.gmra.mxu3 %v8858_v62  ;;  %7838 = vmatpush.bf16.msra.mxu0 %v12494_v60  ;;  %v9194_v29 = vor.u32 %v12048_v40, %v9191_v20  ;;  %v2283_v62 = vunpack.c.l.b16 %v357_v38  ;;  %v2530_v12 = vpack.c.b16 %v2284_v43, %v2284_v43  ;;  %v12513_v60 = vld [vmem:[%s12831_s17 + $0xca8] sm:$0xff] }
 0x231   : > { %v13948_v56 = vadd.f32 %v7499_v25, %v7477_v14  ;;  %7861 = vmatpush.bf16.msra.mxu1 %v12502_v49  ;;  %v12492_v25 = vld [vmem:[%s12831_s17 + $0xc00] sm:$0xff]  ;;  %7879 = vmatpush.bf16.msrb.mxu2 %v12515_v32  ;;  %v2286_v14 = vunpack.c.h.b16 %v358_v61  ;;  %v12521_v49 = vld [vmem:[%s12831_s17 + $0xce8] sm:$0xff] }
 0x232   : > { %v7433_v57 = vpop.f32.mrf.mxu2  ;;  %7772 = vmatmul.bf16.vlgmr.msrb.gmra.mxu1 %v8866_v52  ;;  %7902 = vmatpush.bf16.msrb.mxu3 %v12523_v5  ;;  %v8879_v32 = vld [vmem:[%s14901_s0 + $0x208] sm:$0xf0] }
 0x233   : > { %7749 = vmatmul.bf16.vlgmr.msrb.gmra.mxu0 %v8862_v0  ;;  %v7456_v15 = vpop.f32.mrf.mxu3  ;;  %v7434_v58 = vadd.f32 %v7433_v57, %v13869_v26  ;;  %v12088_v26 = vld [vmem:[%s14901_s0 + $0x47c] sm:$0xf0]  ;;  %v12531_v0 = vld [vmem:[%s12831_s17 + $0xd38] sm:$0xff] }
 0x234   : > { %v9182_v37 = vor.u32 %v12088_v26, %v9181_v6  ;;  %7839 = vmatpush.bf16.msra.mxu0 %v12493_v9 }
 0x235   : > { %v7457_v59 = vadd.f32 %v7456_v15, %v7434_v58  ;;  %7862 = vmatpush.bf16.msra.mxu1 %v12501_v10  ;;  %7880 = vmatpush.bf16.msrb.mxu2 %v12514_v44  ;;  %v2532_v58 = vpack.c.b16 %v2286_v14, %v2286_v14 }
 0x236   : > { %7903 = vmatpush.bf16.msrb.mxu3 %v12522_v46  ;;  %v12526_v46 = vld [vmem:[%s12831_s17 + $0xd10] sm:$0xff] }
 0x237   : > { %v7480_v19 = vadd.f32 %v7479_v50, %v7457_v59  ;;  %v7504_v18 = vpop.f32.mrf.mxu1  ;;  %v2285_v50 = vunpack.c.l.b16 %v358_v61  ;;  %v12535_v61 = vld [vmem:[%s12831_s17 + $0xd58] sm:$0xff] }
 0x238   : > { %v7481_v17 = vpop.f32.mrf.mxu0  ;;  %7840 = vmatpush.bf16.msra.mxu0 %v12492_v25  ;;  %v12536_v25 = vld [vmem:[%s12831_s17 + $0xd60] sm:$0xff] }
 0x239   : > { %v13970_v11 = vadd.f32 %v7502_v4, %v7480_v19  ;;  %v2529_v4 = vpack.c.b16 %v2283_v62, %v2283_v62  ;;  %v2531_v57 = vpack.c.b16 %v2285_v50, %v2285_v50  ;;  %7881 = vmatpush.bf16.msrb.mxu2 %v12513_v60  ;;  %v12509_v50 = vld [vmem:[%s12831_s17 + $0xc88] sm:$0xff] }
 0x23a   : > { %v7435_v13 = vpop.f32.mrf.mxu2  ;;  %7904 = vmatpush.bf16.msrb.mxu3 %v12521_v49 }
 0x23b   : > { %v7458_v31 = vpop.f32.mrf.mxu3  ;;  %v7436_v3 = vadd.f32 %v7435_v13, %v13889_v47  ;;  %v12500_v47 = vld [vmem:[%s12831_s17 + $0xc40] sm:$0xff] }
 0x23c   : > { %7863 = vmatpush.bf16.msra.mxu1 %v12500_v47  ;;  %7925 = vmatpush.bf16.msrb.mxu0 %v12531_v0  ;;  %v12520_v13 = vld [vmem:[%s12831_s17 + $0xce0] sm:$0xff]  ;;  %v12510_v47 = vld [vmem:[%s12831_s17 + $0xc90] sm:$0xff] }
 0x23d   : > { %v7459_v22 = vadd.f32 %v7458_v31, %v7436_v3  ;;  %7882 = vmatpush.bf16.msrb.mxu2 %v12512_v1  ;;  %v12529_v31 = vld [vmem:[%s12831_s17 + $0xd28] sm:$0xff]  ;;  %v8877_v3 = vld [vmem:[%s14901_s0 + $0xc0] sm:$0xf]  ;;  %v12534_v0 = vld [vmem:[%s12831_s17 + $0xd50] sm:$0xff] }
 0x23e   : > { %7905 = vmatpush.bf16.msrb.mxu3 %v12520_v13  ;;  %v12091_v1 = vld [vmem:[%s14901_s0 + $0x494] sm:$0xf0] }
 0x23f   : > { %v7482_v48 = vadd.f32 %v7481_v17, %v7459_v22  ;;  %v7507_v30 = vpop.f32.mrf.mxu1  ;;  %7708 = vmatmul.bf16.gmra.mxu2 %v9182_v37  ;;  %v12530_v17 = vld [vmem:[%s12831_s17 + $0xd30] sm:$0xff]  ;;  %v12519_v37 = vld [vmem:[%s12831_s17 + $0xcd8] sm:$0xff] }
 0x240   : > { %v7484_v45 = vpop.f32.mrf.mxu0  ;;  %7731 = vmatmul.bf16.gmra.mxu3 %v9186_v41  ;;  %7948 = vmatpush.bf16.msrb.mxu1 %v12539_v28  ;;  %v12528_v41 = vld [vmem:[%s12831_s17 + $0xd20] sm:$0xff] }
 0x241   : > { %v13990_v33 = vadd.f32 %v7504_v18, %v7482_v48  ;;  %7926 = vmatpush.bf16.msrb.mxu0 %v12530_v17  ;;  %7883 = vmatpush.bf16.msrb.mxu2 %v12511_v34  ;;  %v8874_v48 = vor.u32 %v11967_v16, %v8871_v2  ;;  %v12547_v2 = vld [vmem:[%s12831_s17 + $0xdb8] sm:$0xff] }
 0x242   : > { %v7438_v51 = vpop.f32.mrf.mxu2  ;;  %7777 = vmatmul.bf16.gmra.mxu1 %v9194_v29  ;;  %v8870_v29 = vor.u32 %v12008_v21, %v8869_v8  ;;  %7906 = vmatpush.bf16.msrb.mxu3 %v12519_v37  ;;  %v9207_v8 = vld [vmem:[%s14901_s0 + $0x498] sm:$0xf0] }
 0x243   : > { %7754 = vmatmul.bf16.gmra.mxu0 %v9190_v23  ;;  %v7461_v55 = vpop.f32.mrf.mxu3  ;;  %v7439_v36 = vadd.f32 %v7438_v51, %v13902_v24  ;;  %v12009_v23 = vld [vmem:[%s14901_s0 + $0x204] sm:$0xf0]  ;;  %v12555_v34 = vld [vmem:[%s12831_s17 + $0xdf8] sm:$0xff] }
 0x244   : > { %7949 = vmatpush.bf16.msrb.mxu1 %v12538_v63  ;;  %v8878_v51 = vor.u32 %v12009_v23, %v8877_v3  ;;  %v9205_v63 = vld [vmem:[%s14901_s0 + $0x350] sm:$0xf] }
 0x245   : > { %v7462_v35 = vadd.f32 %v7461_v55, %v7439_v36  ;;  %7927 = vmatpush.bf16.msrb.mxu0 %v12529_v31  ;;  %v12518_v55 = vld [vmem:[%s12831_s17 + $0xcd0] sm:$0xff]  ;;  %7884 = vmatpush.bf16.msrb.mxu2 %v12510_v47  ;;  %v360_v47 = vld [vmem:[%s14901_s0 + $0x5e0] sm:$0xff] }
 0x246   : > { %7907 = vmatpush.bf16.msrb.mxu3 %v12518_v55  ;;  %v12571_v55 = vld [vmem:[%s12831_s17 + $0xe78] sm:$0xff] }
 0x247   : > { %v7485_v42 = vadd.f32 %v7484_v45, %v7462_v35  ;;  %v7509_v53 = vpop.f32.mrf.mxu1 }
 0x248   : > { %v7486_v39 = vpop.f32.mrf.mxu0 }
 0x249   : > { %v14003_v24 = vadd.f32 %v7507_v30, %v7485_v42  ;;  %v11968_v30 = vld [vmem:[%s14901_s0 + $0xc4] sm:$0xf]  ;;  %7928 = vmatpush.bf16.msrb.mxu0 %v12528_v41  ;;  %7885 = vmatpush.bf16.msrb.mxu2 %v12509_v50  ;;  %v12570_v50 = vld [vmem:[%s12831_s17 + $0xe70] sm:$0xff] }
 0x24a   : > { %v7440_v52 = vpop.f32.mrf.mxu2  ;;  %v8882_v38 = vor.u32 %v11968_v30, %v8879_v32  ;;  %v12546_v32 = vld [vmem:[%s12831_s17 + $0xdb0] sm:$0xff] }
 0x24b   : > { %v7463_v7 = vpop.f32.mrf.mxu3  ;;  %v12517_v52 = vld [vmem:[%s12831_s17 + $0xcc8] sm:$0xff] }
 0x24c   : > { %7908 = vmatpush.bf16.msrb.mxu3 %v12517_v52  ;;  %v12544_v52 = vld [vmem:[%s12831_s17 + $0xda0] sm:$0xff] }
 0x24f   : > { %v7589_v59 = vpop.f32.mrf.mxu1  ;;  %7713 = vmatmul.bf16.gmra.mxu2 %v2529_v4  ;;  %v9197_v4 = vld [vmem:[%s14901_s0 + $0x348] sm:$0xf] }
 0x250   : > { %v7566_v15 = vpop.f32.mrf.mxu0  ;;  %7736 = vmatmul.bf16.gmra.mxu3 %v2530_v12  ;;  %v12049_v12 = vld [vmem:[%s14901_s0 + $0x34c] sm:$0xf] }
 0x252   : > { %v7520_v19 = vpop.f32.mrf.mxu2  ;;  %7782 = vmatmul.bf16.gmra.mxu1 %v2532_v58  ;;  %v12525_v58 = vld [vmem:[%s12831_s17 + $0xd08] sm:$0xff] }
 0x253   : > { %7759 = vmatmul.bf16.gmra.mxu0 %v2531_v57  ;;  %v7543_v18 = vpop.f32.mrf.mxu3  ;;  %v7521_v6 = vadd.f32 %v7520_v19, %v13931_v54  ;;  %v12537_v54 = vld [vmem:[%s12831_s17 + $0xd68] sm:$0xff]  ;;  %v9199_v57 = vld [vmem:[%s14901_s0 + $0x490] sm:$0xf0]  ;;  %v12516_v19 = vld [vmem:[%s12831_s17 + $0xcc0] sm:$0xff] }
 0x254   : > { %7950 = vmatpush.bf16.msrb.mxu1 %v12537_v54  ;;  %7909 = vmatpush.bf16.msrb.mxu3 %v12516_v19  ;;  %v12543_v19 = vld [vmem:[%s12831_s17 + $0xd98] sm:$0xff] }
 0x255   : > { %v7544_v26 = vadd.f32 %v7543_v18, %v7521_v6 }
 0x257   : > { %v7567_v9 = vadd.f32 %v7566_v15, %v7544_v26  ;;  %v7591_v10 = vpop.f32.mrf.mxu1  ;;  %v12508_v15 = vld [vmem:[%s12831_s17 + $0xc80] sm:$0xff]  ;;  %v9202_v26 = vor.u32 %v12049_v12, %v9199_v57  ;;  %v8885_v57 = vld [vmem:[%s14901_s0 + $0xc8] sm:$0xf] }
 0x258   : > { %v7568_v27 = vpop.f32.mrf.mxu0  ;;  %7951 = vmatpush.bf16.msrb.mxu1 %v12536_v25  ;;  %7886 = vmatpush.bf16.msrb.mxu2 %v12508_v15  ;;  %v12010_v15 = vld [vmem:[%s14901_s0 + $0x20c] sm:$0xf0] }
 0x259   : > { %v14032_v40 = vadd.f32 %v7589_v59, %v7567_v9  ;;  %v12533_v59 = vld [vmem:[%s12831_s17 + $0xd48] sm:$0xff]  ;;  %v9206_v9 = vor.u32 %v12091_v1, %v9205_v63  ;;  %v8887_v1 = vld [vmem:[%s14901_s0 + $0x210] sm:$0xf0] }
 0x25a   : > { %v7522_v20 = vpop.f32.mrf.mxu2  ;;  %v11969_v63 = vld [vmem:[%s14901_s0 + $0xcc] sm:$0xf] }
 0x25b   : > { %v7545_v22 = vpop.f32.mrf.mxu3  ;;  %v7523_v45 = vadd.f32 %v7522_v20, %v13948_v56  ;;  %v12527_v56 = vld [vmem:[%s12831_s17 + $0xd18] sm:$0xff] }
 0x25c   : > { %7929 = vmatpush.bf16.msrb.mxu0 %v12527_v56  ;;  %7952 = vmatpush.bf16.msrb.mxu1 %v12535_v61 }
 0x25d   : > { %v7546_v5 = vadd.f32 %v7545_v22, %v7523_v45  ;;  %v359_v22 = vld [vmem:[%s14901_s0 + $0x5d8] sm:$0xff] }
 0x25e   : > { %v2288_v30 = vunpack.c.h.b16 %v359_v22 }
 0x25f   : > { %v7569_v35 = vadd.f32 %v7568_v27, %v7546_v5  ;;  %v7594_v39 = vpop.f32.mrf.mxu1  ;;  %7795 = vmatmul.bf16.vlgmr.msra.gmra.mxu2 %v8870_v29  ;;  %v12050_v27 = vld [vmem:[%s14901_s0 + $0x354] sm:$0xf] }
 0x260   : > { %v7571_v36 = vpop.f32.mrf.mxu0  ;;  %7818 = vmatmul.bf16.vlgmr.msra.gmra.mxu3 %v8874_v48  ;;  %7930 = vmatpush.bf16.msrb.mxu0 %v12526_v46  ;;  %v9210_v31 = vor.u32 %v12050_v27, %v9207_v8  ;;  %v2287_v48 = vunpack.c.l.b16 %v359_v22  ;;  %v12554_v5 = vld [vmem:[%s12831_s17 + $0xdf0] sm:$0xff]  ;;  %v2534_v61 = vpack.c.b16 %v2288_v30, %v2288_v30  ;;  %v12545_v46 = vld [vmem:[%s12831_s17 + $0xda8] sm:$0xff] }
 0x261   : > { %v14049_v42 = vadd.f32 %v7591_v10, %v7569_v35  ;;  %7953 = vmatpush.bf16.msrb.mxu1 %v12534_v0  ;;  %v12524_v10 = vld [vmem:[%s12831_s17 + $0xd00] sm:$0xff]  ;;  %7971 = vmatpush.bf16.msra.mxu2 %v12547_v2  ;;  %v2290_v35 = vunpack.c.h.b16 %v360_v47  ;;  %v12553_v0 = vld [vmem:[%s12831_s17 + $0xde8] sm:$0xff]  ;;  %v8895_v2 = vld [vmem:[%s14901_s0 + $0x218] sm:$0xf0] }
 0x262   : > { %v7525_v53 = vpop.f32.mrf.mxu2  ;;  %7864 = vmatmul.bf16.vlgmr.msra.gmra.mxu1 %v8882_v38  ;;  %7994 = vmatpush.bf16.msra.mxu3 %v12555_v34 }
 0x263   : > { %7841 = vmatmul.bf16.vlgmr.msra.gmra.mxu0 %v8878_v51  ;;  %v7548_v62 = vpop.f32.mrf.mxu3  ;;  %v7526_v43 = vadd.f32 %v7525_v53, %v13970_v11  ;;  %v12090_v11 = vld [vmem:[%s14901_s0 + $0x48c] sm:$0xf0]  ;;  %v12563_v51 = vld [vmem:[%s12831_s17 + $0xe38] sm:$0xff] }
 0x264   : > { %v9198_v6 = vor.u32 %v12090_v11, %v9197_v4  ;;  %7931 = vmatpush.bf16.msrb.mxu0 %v12525_v58 }
 0x265   : > { %v7549_v44 = vadd.f32 %v7548_v62, %v7526_v43  ;;  %7954 = vmatpush.bf16.msrb.mxu1 %v12533_v59  ;;  %7972 = vmatpush.bf16.msra.mxu2 %v12546_v32  ;;  %v2536_v43 = vpack.c.b16 %v2290_v35, %v2290_v35 }
 0x266   : > { %7995 = vmatpush.bf16.msra.mxu3 %v12554_v5  ;;  %v12558_v5 = vld [vmem:[%s12831_s17 + $0xe10] sm:$0xff] }
 0x267   : > { %v7572_v7 = vadd.f32 %v7571_v36, %v7549_v44  ;;  %v7596_v14 = vpop.f32.mrf.mxu1  ;;  %v2289_v36 = vunpack.c.l.b16 %v360_v47  ;;  %v12567_v47 = vld [vmem:[%s12831_s17 + $0xe58] sm:$0xff] }
 0x268   : > { %v7573_v28 = vpop.f32.mrf.mxu0  ;;  %7932 = vmatpush.bf16.msrb.mxu0 %v12524_v10  ;;  %v12568_v10 = vld [vmem:[%s12831_s17 + $0xe60] sm:$0xff] }
 0x269   : > { %v14071_v60 = vadd.f32 %v7594_v39, %v7572_v7  ;;  %v2533_v39 = vpack.c.b16 %v2287_v48, %v2287_v48  ;;  %v2535_v53 = vpack.c.b16 %v2289_v36, %v2289_v36  ;;  %7973 = vmatpush.bf16.msra.mxu2 %v12545_v46  ;;  %v12541_v36 = vld [vmem:[%s12831_s17 + $0xd88] sm:$0xff] }
 0x26a   : > { %v7527_v49 = vpop.f32.mrf.mxu2  ;;  %7996 = vmatpush.bf16.msra.mxu3 %v12553_v0 }
 0x26b   : > { %v7550_v17 = vpop.f32.mrf.mxu3  ;;  %v7528_v18 = vadd.f32 %v7527_v49, %v13990_v33  ;;  %v12532_v33 = vld [vmem:[%s12831_s17 + $0xd40] sm:$0xff] }
 0x26c   : > { %7955 = vmatpush.bf16.msrb.mxu1 %v12532_v33  ;;  %8017 = vmatpush.bf16.msra.mxu0 %v12563_v51  ;;  %v12552_v49 = vld [vmem:[%s12831_s17 + $0xde0] sm:$0xff]  ;;  %v12542_v33 = vld [vmem:[%s12831_s17 + $0xd90] sm:$0xff] }
 0x26d   : > { %v7551_v21 = vadd.f32 %v7550_v17, %v7528_v18  ;;  %7974 = vmatpush.bf16.msra.mxu2 %v12544_v52  ;;  %v12561_v17 = vld [vmem:[%s12831_s17 + $0xe28] sm:$0xff]  ;;  %v8893_v18 = vld [vmem:[%s14901_s0 + $0xd0] sm:$0xf] }
 0x26e   : > { %7997 = vmatpush.bf16.msra.mxu3 %v12552_v49  ;;  %v12566_v51 = vld [vmem:[%s12831_s17 + $0xe50] sm:$0xff]  ;;  %v12093_v52 = vld [vmem:[%s14901_s0 + $0x4a4] sm:$0xf0] }
 0x26f   : > { %v7574_v54 = vadd.f32 %v7573_v28, %v7551_v21  ;;  %v7599_v16 = vpop.f32.mrf.mxu1  ;;  %7800 = vmatmul.bf16.gmra.mxu2 %v9198_v6  ;;  %v12562_v28 = vld [vmem:[%s12831_s17 + $0xe30] sm:$0xff]  ;;  %v12551_v6 = vld [vmem:[%s12831_s17 + $0xdd8] sm:$0xff] }
 0x270   : > { %v7576_v13 = vpop.f32.mrf.mxu0  ;;  %7823 = vmatmul.bf16.gmra.mxu3 %v9202_v26  ;;  %8040 = vmatpush.bf16.msra.mxu1 %v12571_v55  ;;  %v12560_v26 = vld [vmem:[%s12831_s17 + $0xe20] sm:$0xff] }
 0x271   : > { %v14091_v3 = vadd.f32 %v7596_v14, %v7574_v54  ;;  %8018 = vmatpush.bf16.msra.mxu0 %v12562_v28  ;;  %7975 = vmatpush.bf16.msra.mxu2 %v12543_v19  ;;  %v8890_v54 = vor.u32 %v11969_v63, %v8887_v1  ;;  %v12579_v1 = vld [vmem:[%s12831_s17 + $0xeb8] sm:$0xff] }
 0x272   : > { %v7530_v37 = vpop.f32.mrf.mxu2  ;;  %7869 = vmatmul.bf16.gmra.mxu1 %v9210_v31  ;;  %v8886_v31 = vor.u32 %v12010_v15, %v8885_v57  ;;  %7998 = vmatpush.bf16.msra.mxu3 %v12551_v6  ;;  %v9223_v57 = vld [vmem:[%s14901_s0 + $0x4a8] sm:$0xf0]  ;;  %v12587_v19 = vld [vmem:[%s12831_s17 + $0xef8] sm:$0xff] }
 0x273   : > { %7846 = vmatmul.bf16.gmra.mxu0 %v9206_v9  ;;  %v7553_v41 = vpop.f32.mrf.mxu3  ;;  %v7531_v20 = vadd.f32 %v7530_v37, %v14003_v24  ;;  %v12011_v9 = vld [vmem:[%s14901_s0 + $0x214] sm:$0xf0] }
 0x274   : > { %8041 = vmatpush.bf16.msra.mxu1 %v12570_v50  ;;  %v8894_v37 = vor.u32 %v12011_v9, %v8893_v18  ;;  %v9221_v50 = vld [vmem:[%s14901_s0 + $0x360] sm:$0xf] }
 0x275   : > { %v7554_v23 = vadd.f32 %v7553_v41, %v7531_v20  ;;  %8019 = vmatpush.bf16.msra.mxu0 %v12561_v17  ;;  %v12550_v41 = vld [vmem:[%s12831_s17 + $0xdd0] sm:$0xff]  ;;  %7976 = vmatpush.bf16.msra.mxu2 %v12542_v33 }
 0x276   : > { %7999 = vmatpush.bf16.msra.mxu3 %v12550_v41  ;;  %v362_v33 = vld [vmem:[%s14901_s0 + $0x5f0] sm:$0xff]  ;;  %v12603_v41 = vld [vmem:[%s12831_s17 + $0xf78] sm:$0xff] }
 0x277   : > { %v7577_v45 = vadd.f32 %v7576_v13, %v7554_v23  ;;  %v7601_v29 = vpop.f32.mrf.mxu1 }
 0x278   : > { %v7578_v25 = vpop.f32.mrf.mxu0 }
 0x279   : > { %v14104_v24 = vadd.f32 %v7599_v16, %v7577_v45  ;;  %v11970_v16 = vld [vmem:[%s14901_s0 + $0xd4] sm:$0xf]  ;;  %8020 = vmatpush.bf16.msra.mxu0 %v12560_v26  ;;  %7977 = vmatpush.bf16.msra.mxu2 %v12541_v36 }
 0x27a   : > { %v7532_v38 = vpop.f32.mrf.mxu2  ;;  %v8898_v22 = vor.u32 %v11970_v16, %v8895_v2  ;;  %v12578_v2 = vld [vmem:[%s12831_s17 + $0xeb0] sm:$0xff] }
 0x27b   : > { %v7555_v56 = vpop.f32.mrf.mxu3  ;;  %v12549_v38 = vld [vmem:[%s12831_s17 + $0xdc8] sm:$0xff]  ;;  %v12602_v36 = vld [vmem:[%s12831_s17 + $0xf70] sm:$0xff] }
 0x27c   : > { %8000 = vmatpush.bf16.msra.mxu3 %v12549_v38  ;;  %v12576_v38 = vld [vmem:[%s12831_s17 + $0xea0] sm:$0xff] }
 0x27f   : > { %v7681_v44 = vpop.f32.mrf.mxu1  ;;  %7805 = vmatmul.bf16.gmra.mxu2 %v2533_v39  ;;  %v9213_v39 = vld [vmem:[%s14901_s0 + $0x358] sm:$0xf] }
 0x280   : > { %v7658_v62 = vpop.f32.mrf.mxu0  ;;  %7828 = vmatmul.bf16.gmra.mxu3 %v2534_v61  ;;  %v12051_v61 = vld [vmem:[%s14901_s0 + $0x35c] sm:$0xf] }
 0x282   : > { %v7612_v7 = vpop.f32.mrf.mxu2  ;;  %7874 = vmatmul.bf16.gmra.mxu1 %v2536_v43  ;;  %v12557_v43 = vld [vmem:[%s12831_s17 + $0xe08] sm:$0xff] }
 0x283   : > { %7851 = vmatmul.bf16.gmra.mxu0 %v2535_v53  ;;  %v7635_v14 = vpop.f32.mrf.mxu3  ;;  %v7613_v4 = vadd.f32 %v7612_v7, %v14032_v40  ;;  %v12569_v40 = vld [vmem:[%s12831_s17 + $0xe68] sm:$0xff]  ;;  %v9215_v53 = vld [vmem:[%s14901_s0 + $0x4a0] sm:$0xf0] }
 0x284   : > { %8042 = vmatpush.bf16.msra.mxu1 %v12569_v40  ;;  %v12548_v7 = vld [vmem:[%s12831_s17 + $0xdc0] sm:$0xff] }
 0x285   : > { %v7636_v11 = vadd.f32 %v7635_v14, %v7613_v4  ;;  %8001 = vmatpush.bf16.msra.mxu3 %v12548_v7  ;;  %v12575_v7 = vld [vmem:[%s12831_s17 + $0xe98] sm:$0xff] }
 0x287   : > { %v7659_v58 = vadd.f32 %v7658_v62, %v7636_v11  ;;  %v7683_v59 = vpop.f32.mrf.mxu1  ;;  %v12540_v62 = vld [vmem:[%s12831_s17 + $0xd80] sm:$0xff]  ;;  %v9218_v11 = vor.u32 %v12051_v61, %v9215_v53  ;;  %v8901_v53 = vld [vmem:[%s14901_s0 + $0xd8] sm:$0xf] }
 0x288   : > { %v7660_v12 = vpop.f32.mrf.mxu0  ;;  %8043 = vmatpush.bf16.msra.mxu1 %v12568_v10  ;;  %7978 = vmatpush.bf16.msra.mxu2 %v12540_v62  ;;  %v12012_v62 = vld [vmem:[%s14901_s0 + $0x21c] sm:$0xf0] }
 0x289   : > { %v14133_v27 = vadd.f32 %v7681_v44, %v7659_v58  ;;  %v12565_v44 = vld [vmem:[%s12831_s17 + $0xe48] sm:$0xff]  ;;  %v9222_v58 = vor.u32 %v12093_v52, %v9221_v50  ;;  %v11971_v50 = vld [vmem:[%s14901_s0 + $0xdc] sm:$0xf]  ;;  %v8903_v52 = vld [vmem:[%s14901_s0 + $0x220] sm:$0xf0] }
 0x28a   : > { %v7614_v8 = vpop.f32.mrf.mxu2 }
 0x28b   : > { %v7637_v21 = vpop.f32.mrf.mxu3  ;;  %v7615_v13 = vadd.f32 %v7614_v8, %v14049_v42  ;;  %v12559_v42 = vld [vmem:[%s12831_s17 + $0xe18] sm:$0xff] }
 0x28c   : > { %8021 = vmatpush.bf16.msra.mxu0 %v12559_v42  ;;  %8044 = vmatpush.bf16.msra.mxu1 %v12567_v47 }
 0x28d   : > { %v7638_v34 = vadd.f32 %v7637_v21, %v7615_v13  ;;  %v361_v21 = vld [vmem:[%s14901_s0 + $0x5e8] sm:$0xff] }
 0x28e   : > { %v2292_v16 = vunpack.c.h.b16 %v361_v21 }
 0x28f   : > { %v7661_v23 = vadd.f32 %v7660_v12, %v7638_v34  ;;  %v7686_v25 = vpop.f32.mrf.mxu1  ;;  %7887 = vmatmul.bf16.vlgmr.msrb.gmra.mxu2 %v8886_v31  ;;  %v12052_v12 = vld [vmem:[%s14901_s0 + $0x364] sm:$0xf]  ;;  %v12586_v34 = vld [vmem:[%s12831_s17 + $0xef0] sm:$0xff] }
 0x290   : > { %v7663_v20 = vpop.f32.mrf.mxu0  ;;  %7910 = vmatmul.bf16.vlgmr.msrb.gmra.mxu3 %v8890_v54  ;;  %8022 = vmatpush.bf16.msra.mxu0 %v12558_v5  ;;  %v9226_v17 = vor.u32 %v12052_v12, %v9223_v57  ;;  %v2291_v54 = vunpack.c.l.b16 %v361_v21  ;;  %v2538_v47 = vpack.c.b16 %v2292_v16, %v2292_v16  ;;  %v12577_v5 = vld [vmem:[%s12831_s17 + $0xea8] sm:$0xff] }
 0x291   : > { %v14150_v45 = vadd.f32 %v7683_v59, %v7661_v23  ;;  %8045 = vmatpush.bf16.msra.mxu1 %v12566_v51  ;;  %v12556_v59 = vld [vmem:[%s12831_s17 + $0xe00] sm:$0xff]  ;;  %8063 = vmatpush.bf16.msrb.mxu2 %v12579_v1  ;;  %v2294_v23 = vunpack.c.h.b16 %v362_v33  ;;  %v12585_v51 = vld [vmem:[%s12831_s17 + $0xee8] sm:$0xff] }
 0x292   : > { %v7617_v29 = vpop.f32.mrf.mxu2  ;;  %7956 = vmatmul.bf16.vlgmr.msrb.gmra.mxu1 %v8898_v22  ;;  %8086 = vmatpush.bf16.msrb.mxu3 %v12587_v19  ;;  %v8911_v1 = vld [vmem:[%s14901_s0 + $0x228] sm:$0xf0] }
 0x293   : > { %7933 = vmatmul.bf16.vlgmr.msrb.gmra.mxu0 %v8894_v37  ;;  %v7640_v48 = vpop.f32.mrf.mxu3  ;;  %v7618_v30 = vadd.f32 %v7617_v29, %v14071_v60  ;;  %v12092_v60 = vld [vmem:[%s14901_s0 + $0x49c] sm:$0xf0]  ;;  %v12595_v37 = vld [vmem:[%s12831_s17 + $0xf38] sm:$0xff] }
 0x294   : > { %v9214_v4 = vor.u32 %v12092_v60, %v9213_v39  ;;  %8023 = vmatpush.bf16.msra.mxu0 %v12557_v43 }
 0x295   : > { %v7641_v32 = vadd.f32 %v7640_v48, %v7618_v30  ;;  %8046 = vmatpush.bf16.msra.mxu1 %v12565_v44  ;;  %8064 = vmatpush.bf16.msrb.mxu2 %v12578_v2  ;;  %v2540_v30 = vpack.c.b16 %v2294_v23, %v2294_v23 }
 0x296   : > { %8087 = vmatpush.bf16.msrb.mxu3 %v12586_v34  ;;  %v12590_v34 = vld [vmem:[%s12831_s17 + $0xf10] sm:$0xff] }
 0x297   : > { %v7664_v56 = vadd.f32 %v7663_v20, %v7641_v32  ;;  %v7688_v35 = vpop.f32.mrf.mxu1  ;;  %v2293_v20 = vunpack.c.l.b16 %v362_v33  ;;  %v12599_v33 = vld [vmem:[%s12831_s17 + $0xf58] sm:$0xff] }
 0x298   : > { %v7665_v55 = vpop.f32.mrf.mxu0  ;;  %8024 = vmatpush.bf16.msra.mxu0 %v12556_v59  ;;  %v12600_v59 = vld [vmem:[%s12831_s17 + $0xf60] sm:$0xff] }
 0x299   : > { %v14172_v46 = vadd.f32 %v7686_v25, %v7664_v56  ;;  %v2537_v25 = vpack.c.b16 %v2291_v54, %v2291_v54  ;;  %v2539_v29 = vpack.c.b16 %v2293_v20, %v2293_v20  ;;  %8065 = vmatpush.bf16.msrb.mxu2 %v12577_v5  ;;  %v12573_v20 = vld [vmem:[%s12831_s17 + $0xe88] sm:$0xff] }
 0x29a   : > { %v7619_v0 = vpop.f32.mrf.mxu2  ;;  %8088 = vmatpush.bf16.msrb.mxu3 %v12585_v51 }
 0x29b   : > { %v7642_v28 = vpop.f32.mrf.mxu3  ;;  %v7620_v14 = vadd.f32 %v7619_v0, %v14091_v3  ;;  %v12564_v3 = vld [vmem:[%s12831_s17 + $0xe40] sm:$0xff] }
 0x29c   : > { %8047 = vmatpush.bf16.msra.mxu1 %v12564_v3  ;;  %8109 = vmatpush.bf16.msrb.mxu0 %v12595_v37  ;;  %v12584_v0 = vld [vmem:[%s12831_s17 + $0xee0] sm:$0xff]  ;;  %v12574_v3 = vld [vmem:[%s12831_s17 + $0xe90] sm:$0xff] }
 0x29d   : > { %v7643_v15 = vadd.f32 %v7642_v28, %v7620_v14  ;;  %8066 = vmatpush.bf16.msrb.mxu2 %v12576_v38  ;;  %v12593_v28 = vld [vmem:[%s12831_s17 + $0xf28] sm:$0xff]  ;;  %v8909_v14 = vld [vmem:[%s14901_s0 + $0xe0] sm:$0xf]  ;;  %v12598_v37 = vld [vmem:[%s12831_s17 + $0xf50] sm:$0xff] }
 0x29e   : > { %8089 = vmatpush.bf16.msrb.mxu3 %v12584_v0  ;;  %v12095_v38 = vld [vmem:[%s14901_s0 + $0x4b4] sm:$0xf0] }
 0x29f   : > { %v7666_v40 = vadd.f32 %v7665_v55, %v7643_v15  ;;  %v7691_v63 = vpop.f32.mrf.mxu1  ;;  %7892 = vmatmul.bf16.gmra.mxu2 %v9214_v4  ;;  %v12594_v55 = vld [vmem:[%s12831_s17 + $0xf30] sm:$0xff]  ;;  %v12583_v4 = vld [vmem:[%s12831_s17 + $0xed8] sm:$0xff] }
 0x2a0   : > { %v7668_v49 = vpop.f32.mrf.mxu0  ;;  %7915 = vmatmul.bf16.gmra.mxu3 %v9218_v11  ;;  %8132 = vmatpush.bf16.msrb.mxu1 %v12603_v41  ;;  %v12592_v11 = vld [vmem:[%s12831_s17 + $0xf20] sm:$0xff] }
 0x2a1   : > { %v14192_v18 = vadd.f32 %v7688_v35, %v7666_v40  ;;  %8110 = vmatpush.bf16.msrb.mxu0 %v12594_v55  ;;  %8067 = vmatpush.bf16.msrb.mxu2 %v12575_v7  ;;  %v8906_v40 = vor.u32 %v11971_v50, %v8903_v52  ;;  %v12611_v52 = vld [vmem:[%s12831_s17 + $0xfb8] sm:$0xff] }
 0x2a2   : > { %v7622_v6 = vpop.f32.mrf.mxu2  ;;  %7961 = vmatmul.bf16.gmra.mxu1 %v9226_v17  ;;  %v8902_v17 = vor.u32 %v12012_v62, %v8901_v53  ;;  %8090 = vmatpush.bf16.msrb.mxu3 %v12583_v4  ;;  %v9239_v53 = vld [vmem:[%s14901_s0 + $0x4b8] sm:$0xf0] }
 0x2a3   : > { %7938 = vmatmul.bf16.gmra.mxu0 %v9222_v58  ;;  %v7645_v26 = vpop.f32.mrf.mxu3  ;;  %v7623_v8 = vadd.f32 %v7622_v6, %v14104_v24  ;;  %v12013_v58 = vld [vmem:[%s14901_s0 + $0x224] sm:$0xf0]  ;;  %v12619_v7 = vld [vmem:[%s12831_s17 + $0xff8] sm:$0xff] }
 0x2a4   : > { %8133 = vmatpush.bf16.msrb.mxu1 %v12602_v36  ;;  %v8910_v6 = vor.u32 %v12013_v58, %v8909_v14  ;;  %v9237_v36 = vld [vmem:[%s14901_s0 + $0x370] sm:$0xf] }
 0x2a5   : > { %v7646_v9 = vadd.f32 %v7645_v26, %v7623_v8  ;;  %8111 = vmatpush.bf16.msrb.mxu0 %v12593_v28  ;;  %v12582_v26 = vld [vmem:[%s12831_s17 + $0xed0] sm:$0xff]  ;;  %8068 = vmatpush.bf16.msrb.mxu2 %v12574_v3  ;;  %v364_v3 = vld [vmem:[%s14901_s0 + $0x600] sm:$0xff] }
 0x2a6   : > { %8091 = vmatpush.bf16.msrb.mxu3 %v12582_v26  ;;  %v12635_v26 = vld [vmem:[%s12831_s17 + $0x1078] sm:$0xff] }
 0x2a7   : > { %v7669_v13 = vadd.f32 %v7668_v49, %v7646_v9  ;;  %v7693_v31 = vpop.f32.mrf.mxu1 }
 0x2a8   : > { %v7670_v10 = vpop.f32.mrf.mxu0 }
 0x2a9   : > { %v14205_v24 = vadd.f32 %v7691_v63, %v7669_v13  ;;  %v11972_v63 = vld [vmem:[%s14901_s0 + $0xe4] sm:$0xf]  ;;  %8112 = vmatpush.bf16.msrb.mxu0 %v12592_v11  ;;  %8069 = vmatpush.bf16.msrb.mxu2 %v12573_v20  ;;  %v12634_v20 = vld [vmem:[%s12831_s17 + $0x1070] sm:$0xff] }
 0x2aa   : > { %v7624_v22 = vpop.f32.mrf.mxu2  ;;  %v8914_v21 = vor.u32 %v11972_v63, %v8911_v1  ;;  %v12610_v1 = vld [vmem:[%s12831_s17 + $0xfb0] sm:$0xff] }
 0x2ab   : > { %v7647_v42 = vpop.f32.mrf.mxu3  ;;  %v12581_v22 = vld [vmem:[%s12831_s17 + $0xec8] sm:$0xff] }
 0x2ac   : > { %8092 = vmatpush.bf16.msrb.mxu3 %v12581_v22  ;;  %v12608_v22 = vld [vmem:[%s12831_s17 + $0xfa0] sm:$0xff] }
 0x2af   : > { %v7773_v32 = vpop.f32.mrf.mxu1  ;;  %7897 = vmatmul.bf16.gmra.mxu2 %v2537_v25  ;;  %v9229_v25 = vld [vmem:[%s14901_s0 + $0x368] sm:$0xf] }
 0x2b0   : > { %v7750_v48 = vpop.f32.mrf.mxu0  ;;  %7920 = vmatmul.bf16.gmra.mxu3 %v2538_v47  ;;  %v12053_v47 = vld [vmem:[%s14901_s0 + $0x36c] sm:$0xf] }
 0x2b2   : > { %v7704_v56 = vpop.f32.mrf.mxu2  ;;  %7966 = vmatmul.bf16.gmra.mxu1 %v2540_v30  ;;  %v12589_v30 = vld [vmem:[%s12831_s17 + $0xf08] sm:$0xff] }
 0x2b3   : > { %7943 = vmatmul.bf16.gmra.mxu0 %v2539_v29  ;;  %v7727_v35 = vpop.f32.mrf.mxu3  ;;  %v7705_v39 = vadd.f32 %v7704_v56, %v14133_v27  ;;  %v12601_v27 = vld [vmem:[%s12831_s17 + $0xf68] sm:$0xff]  ;;  %v9231_v29 = vld [vmem:[%s14901_s0 + $0x4b0] sm:$0xf0]  ;;  %v12580_v56 = vld [vmem:[%s12831_s17 + $0xec0] sm:$0xff] }
 0x2b4   : > { %8134 = vmatpush.bf16.msrb.mxu1 %v12601_v27  ;;  %8093 = vmatpush.bf16.msrb.mxu3 %v12580_v56  ;;  %v12607_v56 = vld [vmem:[%s12831_s17 + $0xf98] sm:$0xff] }
 0x2b5   : > { %v7728_v60 = vadd.f32 %v7727_v35, %v7705_v39 }
 0x2b7   : > { %v7751_v43 = vadd.f32 %v7750_v48, %v7728_v60  ;;  %v7775_v44 = vpop.f32.mrf.mxu1  ;;  %v12572_v48 = vld [vmem:[%s12831_s17 + $0xe80] sm:$0xff]  ;;  %v9234_v60 = vor.u32 %v12053_v47, %v9231_v29  ;;  %v8917_v29 = vld [vmem:[%s14901_s0 + $0xe8] sm:$0xf] }
 0x2b8   : > { %v7752_v61 = vpop.f32.mrf.mxu0  ;;  %8135 = vmatpush.bf16.msrb.mxu1 %v12600_v59  ;;  %8070 = vmatpush.bf16.msrb.mxu2 %v12572_v48  ;;  %v12014_v48 = vld [vmem:[%s14901_s0 + $0x22c] sm:$0xf0] }
 0x2b9   : > { %v14234_v12 = vadd.f32 %v7773_v32, %v7751_v43  ;;  %v12597_v32 = vld [vmem:[%s12831_s17 + $0xf48] sm:$0xff]  ;;  %v9238_v43 = vor.u32 %v12095_v38, %v9237_v36  ;;  %v8919_v38 = vld [vmem:[%s14901_s0 + $0x230] sm:$0xf0] }
 0x2ba   : > { %v7706_v57 = vpop.f32.mrf.mxu2  ;;  %v11973_v36 = vld [vmem:[%s14901_s0 + $0xec] sm:$0xf] }
 0x2bb   : > { %v7729_v15 = vpop.f32.mrf.mxu3  ;;  %v7707_v49 = vadd.f32 %v7706_v57, %v14150_v45  ;;  %v12591_v45 = vld [vmem:[%s12831_s17 + $0xf18] sm:$0xff] }
 0x2bc   : > { %8113 = vmatpush.bf16.msrb.mxu0 %v12591_v45  ;;  %8136 = vmatpush.bf16.msrb.mxu1 %v12599_v33 }
 0x2bd   : > { %v7730_v19 = vadd.f32 %v7729_v15, %v7707_v49  ;;  %v363_v15 = vld [vmem:[%s14901_s0 + $0x5f8] sm:$0xff] }
 0x2be   : > { %v2296_v63 = vunpack.c.h.b16 %v363_v15 }
 0x2bf   : > { %v7753_v9 = vadd.f32 %v7752_v61, %v7730_v19  ;;  %v7778_v10 = vpop.f32.mrf.mxu1  ;;  %7979 = vmatmul.bf16.vlgmr.msra.gmra.mxu2 %v8902_v17  ;;  %v12054_v61 = vld [vmem:[%s14901_s0 + $0x374] sm:$0xf] }
 0x2c0   : > { %v7755_v8 = vpop.f32.mrf.mxu0  ;;  %8002 = vmatmul.bf16.vlgmr.msra.gmra.mxu3 %v8906_v40  ;;  %8114 = vmatpush.bf16.msrb.mxu0 %v12590_v34  ;;  %v9242_v28 = vor.u32 %v12054_v61, %v9239_v53  ;;  %v2295_v40 = vunpack.c.l.b16 %v363_v15  ;;  %v12618_v19 = vld [vmem:[%s12831_s17 + $0xff0] sm:$0xff]  ;;  %v2542_v33 = vpack.c.b16 %v2296_v63, %v2296_v63  ;;  %v12609_v34 = vld [vmem:[%s12831_s17 + $0xfa8] sm:$0xff] }
 0x2c1   : > { %v14251_v13 = vadd.f32 %v7775_v44, %v7753_v9  ;;  %8137 = vmatpush.bf16.msrb.mxu1 %v12598_v37  ;;  %v12588_v44 = vld [vmem:[%s12831_s17 + $0xf00] sm:$0xff]  ;;  %8155 = vmatpush.bf16.msra.mxu2 %v12611_v52  ;;  %v2298_v9 = vunpack.c.h.b16 %v364_v3  ;;  %v12617_v37 = vld [vmem:[%s12831_s17 + $0xfe8] sm:$0xff]  ;;  %v8927_v52 = vld [vmem:[%s14901_s0 + $0x238] sm:$0xf0] }
 0x2c2   : > { %v7709_v31 = vpop.f32.mrf.mxu2  ;;  %8048 = vmatmul.bf16.vlgmr.msra.gmra.mxu1 %v8914_v21  ;;  %8178 = vmatpush.bf16.msra.mxu3 %v12619_v7 }
 0x2c3   : > { %8025 = vmatmul.bf16.vlgmr.msra.gmra.mxu0 %v8910_v6  ;;  %v7732_v54 = vpop.f32.mrf.mxu3  ;;  %v7710_v16 = vadd.f32 %v7709_v31, %v14172_v46  ;;  %v12094_v46 = vld [vmem:[%s14901_s0 + $0x4ac] sm:$0xf0]  ;;  %v12627_v6 = vld [vmem:[%s12831_s17 + $0x1038] sm:$0xff] }
 0x2c4   : > { %v9230_v39 = vor.u32 %v12094_v46, %v9229_v25  ;;  %8115 = vmatpush.bf16.msrb.mxu0 %v12589_v30 }
 0x2c5   : > { %v7733_v2 = vadd.f32 %v7732_v54, %v7710_v16  ;;  %8138 = vmatpush.bf16.msrb.mxu1 %v12597_v32  ;;  %8156 = vmatpush.bf16.msra.mxu2 %v12610_v1  ;;  %v2544_v16 = vpack.c.b16 %v2298_v9, %v2298_v9 }
 0x2c6   : > { %8179 = vmatpush.bf16.msra.mxu3 %v12618_v19  ;;  %v12622_v19 = vld [vmem:[%s12831_s17 + $0x1010] sm:$0xff] }
 0x2c7   : > { %v7756_v42 = vadd.f32 %v7755_v8, %v7733_v2  ;;  %v7780_v23 = vpop.f32.mrf.mxu1  ;;  %v2297_v8 = vunpack.c.l.b16 %v364_v3  ;;  %v12631_v3 = vld [vmem:[%s12831_s17 + $0x1058] sm:$0xff] }
 0x2c8   : > { %v7757_v41 = vpop.f32.mrf.mxu0  ;;  %8116 = vmatpush.bf16.msrb.mxu0 %v12588_v44  ;;  %v12632_v44 = vld [vmem:[%s12831_s17 + $0x1060] sm:$0xff] }
 0x2c9   : > { %v14273_v5 = vadd.f32 %v7778_v10, %v7756_v42  ;;  %v2541_v10 = vpack.c.b16 %v2295_v40, %v2295_v40  ;;  %v2543_v31 = vpack.c.b16 %v2297_v8, %v2297_v8  ;;  %8157 = vmatpush.bf16.msra.mxu2 %v12609_v34  ;;  %v12605_v8 = vld [vmem:[%s12831_s17 + $0xf88] sm:$0xff] }
 0x2ca   : > { %v7711_v51 = vpop.f32.mrf.mxu2  ;;  %8180 = vmatpush.bf16.msra.mxu3 %v12617_v37 }
 0x2cb   : > { %v7734_v55 = vpop.f32.mrf.mxu3  ;;  %v7712_v35 = vadd.f32 %v7711_v51, %v14192_v18  ;;  %v12596_v18 = vld [vmem:[%s12831_s17 + $0xf40] sm:$0xff] }
 0x2cc   : > { %8139 = vmatpush.bf16.msrb.mxu1 %v12596_v18  ;;  %8201 = vmatpush.bf16.msra.mxu0 %v12627_v6  ;;  %v12616_v51 = vld [vmem:[%s12831_s17 + $0xfe0] sm:$0xff]  ;;  %v12606_v18 = vld [vmem:[%s12831_s17 + $0xf90] sm:$0xff] }
 0x2cd   : > { %v7735_v62 = vadd.f32 %v7734_v55, %v7712_v35  ;;  %8158 = vmatpush.bf16.msra.mxu2 %v12608_v22  ;;  %v12625_v55 = vld [vmem:[%s12831_s17 + $0x1028] sm:$0xff]  ;;  %v8925_v35 = vld [vmem:[%s14901_s0 + $0xf0] sm:$0xf] }
 0x2ce   : > { %8181 = vmatpush.bf16.msra.mxu3 %v12616_v51  ;;  %v12630_v6 = vld [vmem:[%s12831_s17 + $0x1050] sm:$0xff]  ;;  %v12097_v22 = vld [vmem:[%s14901_s0 + $0x4c4] sm:$0xf0] }
 0x2cf   : > { %v7758_v27 = vadd.f32 %v7757_v41, %v7735_v62  ;;  %v7783_v50 = vpop.f32.mrf.mxu1  ;;  %7984 = vmatmul.bf16.gmra.mxu2 %v9230_v39  ;;  %v12626_v41 = vld [vmem:[%s12831_s17 + $0x1030] sm:$0xff]  ;;  %v12615_v39 = vld [vmem:[%s12831_s17 + $0xfd8] sm:$0xff] }
 0x2d0   : > { %v7760_v0 = vpop.f32.mrf.mxu0  ;;  %8007 = vmatmul.bf16.gmra.mxu3 %v9234_v60  ;;  %8224 = vmatpush.bf16.msra.mxu1 %v12635_v26  ;;  %v12624_v60 = vld [vmem:[%s12831_s17 + $0x1020] sm:$0xff] }
 0x2d1   : > { %v14293_v14 = vadd.f32 %v7780_v23, %v7758_v27  ;;  %8202 = vmatpush.bf16.msra.mxu0 %v12626_v41  ;;  %8159 = vmatpush.bf16.msra.mxu2 %v12607_v56  ;;  %v8922_v27 = vor.u32 %v11973_v36, %v8919_v38  ;;  %v12643_v38 = vld [vmem:[%s12831_s17 + $0x10b8] sm:$0xff] }
 0x2d2   : > { %v7714_v4 = vpop.f32.mrf.mxu2  ;;  %8053 = vmatmul.bf16.gmra.mxu1 %v9242_v28  ;;  %v8918_v28 = vor.u32 %v12014_v48, %v8917_v29  ;;  %8182 = vmatpush.bf16.msra.mxu3 %v12615_v39  ;;  %v9255_v29 = vld [vmem:[%s14901_s0 + $0x4c8] sm:$0xf0]  ;;  %v12651_v56 = vld [vmem:[%s12831_s17 + $0x10f8] sm:$0xff] }
 0x2d3   : > { %8030 = vmatmul.bf16.gmra.mxu0 %v9238_v43  ;;  %v7737_v11 = vpop.f32.mrf.mxu3  ;;  %v7715_v57 = vadd.f32 %v7714_v4, %v14205_v24  ;;  %v12015_v43 = vld [vmem:[%s14901_s0 + $0x234] sm:$0xf0] }
 0x2d4   : > { %8225 = vmatpush.bf16.msra.mxu1 %v12634_v20  ;;  %v8926_v4 = vor.u32 %v12015_v43, %v8925_v35  ;;  %v9253_v20 = vld [vmem:[%s14901_s0 + $0x380] sm:$0xf] }
 0x2d5   : > { %v7738_v58 = vadd.f32 %v7737_v11, %v7715_v57  ;;  %8203 = vmatpush.bf16.msra.mxu0 %v12625_v55  ;;  %v12614_v11 = vld [vmem:[%s12831_s17 + $0xfd0] sm:$0xff]  ;;  %8160 = vmatpush.bf16.msra.mxu2 %v12606_v18 }
 0x2d6   : > { %8183 = vmatpush.bf16.msra.mxu3 %v12614_v11  ;;  %v366_v18 = vld [vmem:[%s14901_s0 + $0x610] sm:$0xff]  ;;  %v12667_v11 = vld [vmem:[%s12831_s17 + $0x1178] sm:$0xff] }
 0x2d7   : > { %v7761_v49 = vadd.f32 %v7760_v0, %v7738_v58  ;;  %v7785_v17 = vpop.f32.mrf.mxu1 }
 0x2d8   : > { %v7762_v59 = vpop.f32.mrf.mxu0 }
 0x2d9   : > { %v14306_v24 = vadd.f32 %v7783_v50, %v7761_v49  ;;  %v11974_v50 = vld [vmem:[%s14901_s0 + $0xf4] sm:$0xf]  ;;  %8204 = vmatpush.bf16.msra.mxu0 %v12624_v60  ;;  %8161 = vmatpush.bf16.msra.mxu2 %v12605_v8 }
 0x2da   : > { %v7716_v21 = vpop.f32.mrf.mxu2  ;;  %v8930_v15 = vor.u32 %v11974_v50, %v8927_v52  ;;  %v12642_v52 = vld [vmem:[%s12831_s17 + $0x10b0] sm:$0xff] }
 0x2db   : > { %v7739_v45 = vpop.f32.mrf.mxu3  ;;  %v12613_v21 = vld [vmem:[%s12831_s17 + $0xfc8] sm:$0xff]  ;;  %v12666_v8 = vld [vmem:[%s12831_s17 + $0x1170] sm:$0xff] }
 0x2dc   : > { %8184 = vmatpush.bf16.msra.mxu3 %v12613_v21  ;;  %v12640_v21 = vld [vmem:[%s12831_s17 + $0x10a0] sm:$0xff] }
 0x2df   : > { %v7865_v2 = vpop.f32.mrf.mxu1  ;;  %7989 = vmatmul.bf16.gmra.mxu2 %v2541_v10  ;;  %v9245_v10 = vld [vmem:[%s14901_s0 + $0x378] sm:$0xf] }
 0x2e0   : > { %v7842_v54 = vpop.f32.mrf.mxu0  ;;  %8012 = vmatmul.bf16.gmra.mxu3 %v2542_v33  ;;  %v12055_v33 = vld [vmem:[%s14901_s0 + $0x37c] sm:$0xf] }
 0x2e2   : > { %v7796_v42 = vpop.f32.mrf.mxu2  ;;  %8058 = vmatmul.bf16.gmra.mxu1 %v2544_v16  ;;  %v12621_v16 = vld [vmem:[%s12831_s17 + $0x1008] sm:$0xff] }
 0x2e3   : > { %8035 = vmatmul.bf16.gmra.mxu0 %v2543_v31  ;;  %v7819_v23 = vpop.f32.mrf.mxu3  ;;  %v7797_v25 = vadd.f32 %v7796_v42, %v14234_v12  ;;  %v12633_v12 = vld [vmem:[%s12831_s17 + $0x1068] sm:$0xff]  ;;  %v9247_v31 = vld [vmem:[%s14901_s0 + $0x4c0] sm:$0xf0] }
 0x2e4   : > { %8226 = vmatpush.bf16.msra.mxu1 %v12633_v12  ;;  %v12612_v42 = vld [vmem:[%s12831_s17 + $0xfc0] sm:$0xff] }
 0x2e5   : > { %v7820_v46 = vadd.f32 %v7819_v23, %v7797_v25  ;;  %8185 = vmatpush.bf16.msra.mxu3 %v12612_v42  ;;  %v12639_v42 = vld [vmem:[%s12831_s17 + $0x1098] sm:$0xff] }
 0x2e7   : > { %v7843_v30 = vadd.f32 %v7842_v54, %v7820_v46  ;;  %v7867_v32 = vpop.f32.mrf.mxu1  ;;  %v12604_v54 = vld [vmem:[%s12831_s17 + $0xf80] sm:$0xff]  ;;  %v9250_v46 = vor.u32 %v12055_v33, %v9247_v31  ;;  %v8933_v31 = vld [vmem:[%s14901_s0 + $0xf8] sm:$0xf] }
 0x2e8   : > { %v7844_v47 = vpop.f32.mrf.mxu0  ;;  %8227 = vmatpush.bf16.msra.mxu1 %v12632_v44  ;;  %8162 = vmatpush.bf16.msra.mxu2 %v12604_v54  ;;  %v12016_v54 = vld [vmem:[%s14901_s0 + $0x23c] sm:$0xf0] }
 0x2e9   : > { %v14335_v61 = vadd.f32 %v7865_v2, %v7843_v30  ;;  %v12629_v2 = vld [vmem:[%s12831_s17 + $0x1048] sm:$0xff]  ;;  %v9254_v30 = vor.u32 %v12097_v22, %v9253_v20  ;;  %v11975_v20 = vld [vmem:[%s14901_s0 + $0xfc] sm:$0xf]  ;;  %v8935_v22 = vld [vmem:[%s14901_s0 + $0x240] sm:$0xf0] }
 0x2ea   : > { %v7798_v53 = vpop.f32.mrf.mxu2 }
 0x2eb   : > { %v7821_v62 = vpop.f32.mrf.mxu3  ;;  %v7799_v0 = vadd.f32 %v7798_v53, %v14251_v13  ;;  %v12623_v13 = vld [vmem:[%s12831_s17 + $0x1018] sm:$0xff] }
 0x2ec   : > { %8205 = vmatpush.bf16.msra.mxu0 %v12623_v13  ;;  %8228 = vmatpush.bf16.msra.mxu1 %v12631_v3 }
 0x2ed   : > { %v7822_v7 = vadd.f32 %v7821_v62, %v7799_v0  ;;  %v365_v62 = vld [vmem:[%s14901_s0 + $0x608] sm:$0xff] }
 0x2ee   : > { %v2300_v50 = vunpack.c.h.b16 %v365_v62 }
 0x2ef   : > { %v7845_v58 = vadd.f32 %v7844_v47, %v7822_v7  ;;  %v7870_v59 = vpop.f32.mrf.mxu1  ;;  %8071 = vmatmul.bf16.vlgmr.msrb.gmra.mxu2 %v8918_v28  ;;  %v12056_v47 = vld [vmem:[%s14901_s0 + $0x384] sm:$0xf]  ;;  %v12650_v7 = vld [vmem:[%s12831_s17 + $0x10f0] sm:$0xff] }
 0x2f0   : > { %v7847_v57 = vpop.f32.mrf.mxu0  ;;  %8094 = vmatmul.bf16.vlgmr.msrb.gmra.mxu3 %v8922_v27  ;;  %8206 = vmatpush.bf16.msra.mxu0 %v12622_v19  ;;  %v9258_v55 = vor.u32 %v12056_v47, %v9255_v29  ;;  %v2299_v27 = vunpack.c.l.b16 %v365_v62  ;;  %v2546_v3 = vpack.c.b16 %v2300_v50, %v2300_v50  ;;  %v12641_v19 = vld [vmem:[%s12831_s17 + $0x10a8] sm:$0xff] }
 0x2f1   : > { %v14352_v49 = vadd.f32 %v7867_v32, %v7845_v58  ;;  %8229 = vmatpush.bf16.msra.mxu1 %v12630_v6  ;;  %v12620_v32 = vld [vmem:[%s12831_s17 + $0x1000] sm:$0xff]  ;;  %8247 = vmatpush.bf16.msrb.mxu2 %v12643_v38  ;;  %v2302_v58 = vunpack.c.h.b16 %v366_v18  ;;  %v12649_v6 = vld [vmem:[%s12831_s17 + $0x10e8] sm:$0xff] }
 0x2f2   : > { %v7801_v17 = vpop.f32.mrf.mxu2  ;;  %8140 = vmatmul.bf16.vlgmr.msrb.gmra.mxu1 %v8930_v15  ;;  %8270 = vmatpush.bf16.msrb.mxu3 %v12651_v56  ;;  %v8943_v38 = vld [vmem:[%s14901_s0 + $0x248] sm:$0xf0] }
 0x2f3   : > { %8117 = vmatmul.bf16.vlgmr.msrb.gmra.mxu0 %v8926_v4  ;;  %v7824_v40 = vpop.f32.mrf.mxu3  ;;  %v7802_v63 = vadd.f32 %v7801_v17, %v14273_v5  ;;  %v12096_v5 = vld [vmem:[%s14901_s0 + $0x4bc] sm:$0xf0]  ;;  %v12659_v4 = vld [vmem:[%s12831_s17 + $0x1138] sm:$0xff] }
 0x2f4   : > { %v9246_v25 = vor.u32 %v12096_v5, %v9245_v10  ;;  %8207 = vmatpush.bf16.msra.mxu0 %v12621_v16 }
 0x2f5   : > { %v7825_v1 = vadd.f32 %v7824_v40, %v7802_v63  ;;  %8230 = vmatpush.bf16.msra.mxu1 %v12629_v2  ;;  %8248 = vmatpush.bf16.msrb.mxu2 %v12642_v52  ;;  %v2548_v63 = vpack.c.b16 %v2302_v58, %v2302_v58 }
 0x2f6   : > { %8271 = vmatpush.bf16.msrb.mxu3 %v12650_v7  ;;  %v12654_v7 = vld [vmem:[%s12831_s17 + $0x1110] sm:$0xff] }
 0x2f7   : > { %v7848_v45 = vadd.f32 %v7847_v57, %v7825_v1  ;;  %v7872_v9 = vpop.f32.mrf.mxu1  ;;  %v2301_v57 = vunpack.c.l.b16 %v366_v18  ;;  %v12663_v18 = vld [vmem:[%s12831_s17 + $0x1158] sm:$0xff] }
 0x2f8   : > { %v7849_v26 = vpop.f32.mrf.mxu0  ;;  %8208 = vmatpush.bf16.msra.mxu0 %v12620_v32  ;;  %v12664_v32 = vld [vmem:[%s12831_s17 + $0x1160] sm:$0xff] }
 0x2f9   : > { %v14374_v34 = vadd.f32 %v7870_v59, %v7848_v45  ;;  %v2545_v59 = vpack.c.b16 %v2299_v27, %v2299_v27  ;;  %v2547_v17 = vpack.c.b16 %v2301_v57, %v2301_v57  ;;  %8249 = vmatpush.bf16.msrb.mxu2 %v12641_v19  ;;  %v12637_v57 = vld [vmem:[%s12831_s17 + $0x1088] sm:$0xff] }
 0x2fa   : > { %v7803_v37 = vpop.f32.mrf.mxu2  ;;  %8272 = vmatpush.bf16.msrb.mxu3 %v12649_v6 }
 0x2fb   : > { %v7826_v41 = vpop.f32.mrf.mxu3  ;;  %v7804_v23 = vadd.f32 %v7803_v37, %v14293_v14  ;;  %v12628_v14 = vld [vmem:[%s12831_s17 + $0x1040] sm:$0xff] }
 0x2fc   : > { %8231 = vmatpush.bf16.msra.mxu1 %v12628_v14  ;;  %8293 = vmatpush.bf16.msrb.mxu0 %v12659_v4  ;;  %v12648_v37 = vld [vmem:[%s12831_s17 + $0x10e0] sm:$0xff]  ;;  %v12638_v14 = vld [vmem:[%s12831_s17 + $0x1090] sm:$0xff] }
 0x2fd   : > { %v7827_v48 = vadd.f32 %v7826_v41, %v7804_v23  ;;  %8250 = vmatpush.bf16.msrb.mxu2 %v12640_v21  ;;  %v12657_v41 = vld [vmem:[%s12831_s17 + $0x1128] sm:$0xff]  ;;  %v8941_v23 = vld [vmem:[%s14901_s0 + $0x100] sm:$0xf]  ;;  %v12662_v4 = vld [vmem:[%s12831_s17 + $0x1150] sm:$0xff] }
 0x2fe   : > { %8273 = vmatpush.bf16.msrb.mxu3 %v12648_v37  ;;  %v12099_v21 = vld [vmem:[%s14901_s0 + $0x4d4] sm:$0xf0] }
 0x2ff   : > { %v7850_v12 = vadd.f32 %v7849_v26, %v7827_v48  ;;  %v7875_v36 = vpop.f32.mrf.mxu1  ;;  %8076 = vmatmul.bf16.gmra.mxu2 %v9246_v25  ;;  %v12658_v26 = vld [vmem:[%s12831_s17 + $0x1130] sm:$0xff]  ;;  %v12647_v25 = vld [vmem:[%s12831_s17 + $0x10d8] sm:$0xff] }
 0x300   : > { %v7852_v51 = vpop.f32.mrf.mxu0  ;;  %8099 = vmatmul.bf16.gmra.mxu3 %v9250_v46  ;;  %8316 = vmatpush.bf16.msrb.mxu1 %v12667_v11  ;;  %v12656_v46 = vld [vmem:[%s12831_s17 + $0x1120] sm:$0xff] }
 0x301   : > { %v14394_v35 = vadd.f32 %v7872_v9, %v7850_v12  ;;  %8294 = vmatpush.bf16.msrb.mxu0 %v12658_v26  ;;  %8251 = vmatpush.bf16.msrb.mxu2 %v12639_v42  ;;  %v8938_v12 = vor.u32 %v11975_v20, %v8935_v22  ;;  %v12675_v22 = vld [vmem:[%s12831_s17 + $0x11b8] sm:$0xff] }
 0x302   : > { %v7806_v39 = vpop.f32.mrf.mxu2  ;;  %8145 = vmatmul.bf16.gmra.mxu1 %v9258_v55  ;;  %v8934_v55 = vor.u32 %v12016_v54, %v8933_v31  ;;  %8274 = vmatpush.bf16.msrb.mxu3 %v12647_v25  ;;  %v9271_v31 = vld [vmem:[%s14901_s0 + $0x4d8] sm:$0xf0] }
 0x303   : > { %8122 = vmatmul.bf16.gmra.mxu0 %v9254_v30  ;;  %v7829_v60 = vpop.f32.mrf.mxu3  ;;  %v7807_v53 = vadd.f32 %v7806_v39, %v14306_v24  ;;  %v12017_v30 = vld [vmem:[%s14901_s0 + $0x244] sm:$0xf0]  ;;  %v12683_v42 = vld [vmem:[%s12831_s17 + $0x11f8] sm:$0xff] }
 0x304   : > { %8317 = vmatpush.bf16.msrb.mxu1 %v12666_v8  ;;  %v8942_v39 = vor.u32 %v12017_v30, %v8941_v23  ;;  %v9269_v8 = vld [vmem:[%s14901_s0 + $0x390] sm:$0xf] }
 0x305   : > { %v7830_v43 = vadd.f32 %v7829_v60, %v7807_v53  ;;  %8295 = vmatpush.bf16.msrb.mxu0 %v12657_v41  ;;  %v12646_v60 = vld [vmem:[%s12831_s17 + $0x10d0] sm:$0xff]  ;;  %8252 = vmatpush.bf16.msrb.mxu2 %v12638_v14  ;;  %v368_v14 = vld [vmem:[%s14901_s0 + $0x620] sm:$0xff] }
 0x306   : > { %8275 = vmatpush.bf16.msrb.mxu3 %v12646_v60  ;;  %v12699_v60 = vld [vmem:[%s12831_s17 + $0x1278] sm:$0xff] }
 0x307   : > { %v7853_v0 = vadd.f32 %v7852_v51, %v7830_v43  ;;  %v7877_v28 = vpop.f32.mrf.mxu1 }
 0x308   : > { %v7854_v44 = vpop.f32.mrf.mxu0 }
 0x309   : > { %v14407_v24 = vadd.f32 %v7875_v36, %v7853_v0  ;;  %v11976_v36 = vld [vmem:[%s14901_s0 + $0x104] sm:$0xf]  ;;  %8296 = vmatpush.bf16.msrb.mxu0 %v12656_v46  ;;  %8253 = vmatpush.bf16.msrb.mxu2 %v12637_v57  ;;  %v12698_v57 = vld [vmem:[%s12831_s17 + $0x1270] sm:$0xff] }
 0x30a   : > { %v7808_v15 = vpop.f32.mrf.mxu2  ;;  %v8946_v62 = vor.u32 %v11976_v36, %v8943_v38  ;;  %v12674_v38 = vld [vmem:[%s12831_s17 + $0x11b0] sm:$0xff] }
 0x30b   : > { %v7831_v13 = vpop.f32.mrf.mxu3  ;;  %v12645_v15 = vld [vmem:[%s12831_s17 + $0x10c8] sm:$0xff] }
 0x30c   : > { %8276 = vmatpush.bf16.msrb.mxu3 %v12645_v15  ;;  %v12672_v15 = vld [vmem:[%s12831_s17 + $0x11a0] sm:$0xff] }
 0x30f   : > { %v7957_v1 = vpop.f32.mrf.mxu1  ;;  %8081 = vmatmul.bf16.gmra.mxu2 %v2545_v59  ;;  %v9261_v59 = vld [vmem:[%s14901_s0 + $0x388] sm:$0xf] }
 0x310   : > { %v7934_v40 = vpop.f32.mrf.mxu0  ;;  %8104 = vmatmul.bf16.gmra.mxu3 %v2546_v3  ;;  %v12057_v3 = vld [vmem:[%s14901_s0 + $0x38c] sm:$0xf] }
 0x312   : > { %v7888_v45 = vpop.f32.mrf.mxu2  ;;  %8150 = vmatmul.bf16.gmra.mxu1 %v2548_v63  ;;  %v12653_v63 = vld [vmem:[%s12831_s17 + $0x1108] sm:$0xff] }
 0x313   : > { %8127 = vmatmul.bf16.gmra.mxu0 %v2547_v17  ;;  %v7911_v9 = vpop.f32.mrf.mxu3  ;;  %v7889_v10 = vadd.f32 %v7888_v45, %v14335_v61  ;;  %v12665_v61 = vld [vmem:[%s12831_s17 + $0x1168] sm:$0xff]  ;;  %v9263_v17 = vld [vmem:[%s14901_s0 + $0x4d0] sm:$0xf0]  ;;  %v12644_v45 = vld [vmem:[%s12831_s17 + $0x10c0] sm:$0xff] }
 0x314   : > { %8318 = vmatpush.bf16.msrb.mxu1 %v12665_v61  ;;  %8277 = vmatpush.bf16.msrb.mxu3 %v12644_v45  ;;  %v12671_v45 = vld [vmem:[%s12831_s17 + $0x1198] sm:$0xff] }
 0x315   : > { %v7912_v5 = vadd.f32 %v7911_v9, %v7889_v10 }
 0x317   : > { %v7935_v16 = vadd.f32 %v7934_v40, %v7912_v5  ;;  %v7959_v2 = vpop.f32.mrf.mxu1  ;;  %v12636_v40 = vld [vmem:[%s12831_s17 + $0x1080] sm:$0xff]  ;;  %v9266_v5 = vor.u32 %v12057_v3, %v9263_v17  ;;  %v8949_v17 = vld [vmem:[%s14901_s0 + $0x108] sm:$0xf] }
 0x318   : > { %v7936_v33 = vpop.f32.mrf.mxu0  ;;  %8319 = vmatpush.bf16.msrb.mxu1 %v12664_v32  ;;  %8254 = vmatpush.bf16.msrb.mxu2 %v12636_v40  ;;  %v12018_v40 = vld [vmem:[%s14901_s0 + $0x24c] sm:$0xf0] }
 0x319   : > { %v14436_v47 = vadd.f32 %v7957_v1, %v7935_v16  ;;  %v12661_v1 = vld [vmem:[%s12831_s17 + $0x1148] sm:$0xff]  ;;  %v9270_v16 = vor.u32 %v12099_v21, %v9269_v8  ;;  %v8951_v21 = vld [vmem:[%s14901_s0 + $0x250] sm:$0xf0] }
 0x31a   : > { %v7890_v29 = vpop.f32.mrf.mxu2  ;;  %v11977_v8 = vld [vmem:[%s14901_s0 + $0x10c] sm:$0xf] }
 0x31b   : > { %v7913_v48 = vpop.f32.mrf.mxu3  ;;  %v7891_v51 = vadd.f32 %v7890_v29, %v14352_v49  ;;  %v12655_v49 = vld [vmem:[%s12831_s17 + $0x1118] sm:$0xff] }
 0x31c   : > { %8297 = vmatpush.bf16.msrb.mxu0 %v12655_v49  ;;  %8320 = vmatpush.bf16.msrb.mxu1 %v12663_v18 }
 0x31d   : > { %v7914_v56 = vadd.f32 %v7913_v48, %v7891_v51  ;;  %v367_v48 = vld [vmem:[%s14901_s0 + $0x618] sm:$0xff] }
 0x31e   : > { %v2304_v36 = vunpack.c.h.b16 %v367_v48 }
 0x31f   : > { %v7937_v43 = vadd.f32 %v7936_v33, %v7914_v56  ;;  %v7962_v44 = vpop.f32.mrf.mxu1  ;;  %8163 = vmatmul.bf16.vlgmr.msra.gmra.mxu2 %v8934_v55  ;;  %v12058_v33 = vld [vmem:[%s14901_s0 + $0x394] sm:$0xf] }
 0x320   : > { %v7939_v53 = vpop.f32.mrf.mxu0  ;;  %8186 = vmatmul.bf16.vlgmr.msra.gmra.mxu3 %v8938_v12  ;;  %8298 = vmatpush.bf16.msrb.mxu0 %v12654_v7  ;;  %v9274_v41 = vor.u32 %v12058_v33, %v9271_v31  ;;  %v2303_v12 = vunpack.c.l.b16 %v367_v48  ;;  %v12682_v56 = vld [vmem:[%s12831_s17 + $0x11f0] sm:$0xff]  ;;  %v2550_v18 = vpack.c.b16 %v2304_v36, %v2304_v36  ;;  %v12673_v7 = vld [vmem:[%s12831_s17 + $0x11a8] sm:$0xff] }
 0x321   : > { %v14453_v0 = vadd.f32 %v7959_v2, %v7937_v43  ;;  %8321 = vmatpush.bf16.msrb.mxu1 %v12662_v4  ;;  %v12652_v2 = vld [vmem:[%s12831_s17 + $0x1100] sm:$0xff]  ;;  %8339 = vmatpush.bf16.msra.mxu2 %v12675_v22  ;;  %v2306_v43 = vunpack.c.h.b16 %v368_v14  ;;  %v12681_v4 = vld [vmem:[%s12831_s17 + $0x11e8] sm:$0xff]  ;;  %v8959_v22 = vld [vmem:[%s14901_s0 + $0x258] sm:$0xf0] }
 0x322   : > { %v7893_v28 = vpop.f32.mrf.mxu2  ;;  %8232 = vmatmul.bf16.vlgmr.msra.gmra.mxu1 %v8946_v62  ;;  %8362 = vmatpush.bf16.msra.mxu3 %v12683_v42 }
 0x323   : > { %8209 = vmatmul.bf16.vlgmr.msra.gmra.mxu0 %v8942_v39  ;;  %v7916_v27 = vpop.f32.mrf.mxu3  ;;  %v7894_v50 = vadd.f32 %v7893_v28, %v14374_v34  ;;  %v12098_v34 = vld [vmem:[%s14901_s0 + $0x4cc] sm:$0xf0]  ;;  %v12691_v39 = vld [vmem:[%s12831_s17 + $0x1238] sm:$0xff] }
 0x324   : > { %v9262_v10 = vor.u32 %v12098_v34, %v9261_v59  ;;  %8299 = vmatpush.bf16.msrb.mxu0 %v12653_v63 }
 0x325   : > { %v7917_v52 = vadd.f32 %v7916_v27, %v7894_v50  ;;  %8322 = vmatpush.bf16.msrb.mxu1 %v12661_v1  ;;  %8340 = vmatpush.bf16.msra.mxu2 %v12674_v38  ;;  %v2552_v50 = vpack.c.b16 %v2306_v43, %v2306_v43 }
 0x326   : > { %8363 = vmatpush.bf16.msra.mxu3 %v12682_v56  ;;  %v12686_v56 = vld [vmem:[%s12831_s17 + $0x1210] sm:$0xff] }
 0x327   : > { %v7940_v13 = vadd.f32 %v7939_v53, %v7917_v52  ;;  %v7964_v58 = vpop.f32.mrf.mxu1  ;;  %v2305_v53 = vunpack.c.l.b16 %v368_v14  ;;  %v12695_v14 = vld [vmem:[%s12831_s17 + $0x1258] sm:$0xff] }
 0x328   : > { %v7941_v11 = vpop.f32.mrf.mxu0  ;;  %8300 = vmatpush.bf16.msrb.mxu0 %v12652_v2  ;;  %v12696_v2 = vld [vmem:[%s12831_s17 + $0x1260] sm:$0xff] }
 0x329   : > { %v14475_v19 = vadd.f32 %v7962_v44, %v7940_v13  ;;  %v2549_v44 = vpack.c.b16 %v2303_v12, %v2303_v12  ;;  %v2551_v28 = vpack.c.b16 %v2305_v53, %v2305_v53  ;;  %8341 = vmatpush.bf16.msra.mxu2 %v12673_v7  ;;  %v12669_v53 = vld [vmem:[%s12831_s17 + $0x1188] sm:$0xff] }
 0x32a   : > { %v7895_v6 = vpop.f32.mrf.mxu2  ;;  %8364 = vmatpush.bf16.msra.mxu3 %v12681_v4 }
 0x32b   : > { %v7918_v26 = vpop.f32.mrf.mxu3  ;;  %v7896_v9 = vadd.f32 %v7895_v6, %v14394_v35  ;;  %v12660_v35 = vld [vmem:[%s12831_s17 + $0x1140] sm:$0xff] }
 0x32c   : > { %8323 = vmatpush.bf16.msrb.mxu1 %v12660_v35  ;;  %8385 = vmatpush.bf16.msra.mxu0 %v12691_v39  ;;  %v12680_v6 = vld [vmem:[%s12831_s17 + $0x11e0] sm:$0xff]  ;;  %v12670_v35 = vld [vmem:[%s12831_s17 + $0x1190] sm:$0xff] }
 0x32d   : > { %v7919_v54 = vadd.f32 %v7918_v26, %v7896_v9  ;;  %8342 = vmatpush.bf16.msra.mxu2 %v12672_v15  ;;  %v12689_v26 = vld [vmem:[%s12831_s17 + $0x1228] sm:$0xff]  ;;  %v8957_v9 = vld [vmem:[%s14901_s0 + $0x110] sm:$0xf] }
 0x32e   : > { %8365 = vmatpush.bf16.msra.mxu3 %v12680_v6  ;;  %v12694_v39 = vld [vmem:[%s12831_s17 + $0x1250] sm:$0xff]  ;;  %v12101_v15 = vld [vmem:[%s14901_s0 + $0x4e4] sm:$0xf0] }
 0x32f   : > { %v7942_v61 = vadd.f32 %v7941_v11, %v7919_v54  ;;  %v7967_v20 = vpop.f32.mrf.mxu1  ;;  %8168 = vmatmul.bf16.gmra.mxu2 %v9262_v10  ;;  %v12690_v11 = vld [vmem:[%s12831_s17 + $0x1230] sm:$0xff]  ;;  %v12679_v10 = vld [vmem:[%s12831_s17 + $0x11d8] sm:$0xff] }
 0x330   : > { %v7944_v37 = vpop.f32.mrf.mxu0  ;;  %8191 = vmatmul.bf16.gmra.mxu3 %v9266_v5  ;;  %8408 = vmatpush.bf16.msra.mxu1 %v12699_v60  ;;  %v12688_v5 = vld [vmem:[%s12831_s17 + $0x1220] sm:$0xff] }
 0x331   : > { %v14495_v23 = vadd.f32 %v7964_v58, %v7942_v61  ;;  %8386 = vmatpush.bf16.msra.mxu0 %v12690_v11  ;;  %8343 = vmatpush.bf16.msra.mxu2 %v12671_v45  ;;  %v8954_v61 = vor.u32 %v11977_v8, %v8951_v21  ;;  %v12707_v21 = vld [vmem:[%s12831_s17 + $0x12b8] sm:$0xff] }
 0x332   : > { %v7898_v25 = vpop.f32.mrf.mxu2  ;;  %8237 = vmatmul.bf16.gmra.mxu1 %v9274_v41  ;;  %v8950_v41 = vor.u32 %v12018_v40, %v8949_v17  ;;  %8366 = vmatpush.bf16.msra.mxu3 %v12679_v10  ;;  %v9287_v17 = vld [vmem:[%s14901_s0 + $0x4e8] sm:$0xf0]  ;;  %v12715_v45 = vld [vmem:[%s12831_s17 + $0x12f8] sm:$0xff] }
 0x333   : > { %8214 = vmatmul.bf16.gmra.mxu0 %v9270_v16  ;;  %v7921_v46 = vpop.f32.mrf.mxu3  ;;  %v7899_v29 = vadd.f32 %v7898_v25, %v14407_v24  ;;  %v12019_v16 = vld [vmem:[%s14901_s0 + $0x254] sm:$0xf0] }
 0x334   : > { %8409 = vmatpush.bf16.msra.mxu1 %v12698_v57  ;;  %v8958_v25 = vor.u32 %v12019_v16, %v8957_v9  ;;  %v9285_v57 = vld [vmem:[%s14901_s0 + $0x3a0] sm:$0xf] }
 0x335   : > { %v7922_v30 = vadd.f32 %v7921_v46, %v7899_v29  ;;  %8387 = vmatpush.bf16.msra.mxu0 %v12689_v26  ;;  %v12678_v46 = vld [vmem:[%s12831_s17 + $0x11d0] sm:$0xff]  ;;  %8344 = vmatpush.bf16.msra.mxu2 %v12670_v35 }
 0x336   : > { %8367 = vmatpush.bf16.msra.mxu3 %v12678_v46  ;;  %v370_v35 = vld [vmem:[%s14901_s0 + $0x630] sm:$0xff]  ;;  %v12731_v46 = vld [vmem:[%s12831_s17 + $0x1378] sm:$0xff] }
 0x337   : > { %v7945_v51 = vadd.f32 %v7944_v37, %v7922_v30  ;;  %v7969_v55 = vpop.f32.mrf.mxu1 }
 0x338   : > { %v7946_v32 = vpop.f32.mrf.mxu0 }
 0x339   : > { %v14508_v24 = vadd.f32 %v7967_v20, %v7945_v51  ;;  %v11978_v20 = vld [vmem:[%s14901_s0 + $0x114] sm:$0xf]  ;;  %8388 = vmatpush.bf16.msra.mxu0 %v12688_v5  ;;  %8345 = vmatpush.bf16.msra.mxu2 %v12669_v53 }
 0x33a   : > { %v7900_v62 = vpop.f32.mrf.mxu2  ;;  %v8962_v48 = vor.u32 %v11978_v20, %v8959_v22  ;;  %v12706_v22 = vld [vmem:[%s12831_s17 + $0x12b0] sm:$0xff] }
 0x33b   : > { %v7923_v49 = vpop.f32.mrf.mxu3  ;;  %v12677_v62 = vld [vmem:[%s12831_s17 + $0x11c8] sm:$0xff]  ;;  %v12730_v53 = vld [vmem:[%s12831_s17 + $0x1370] sm:$0xff] }
 0x33c   : > { %8368 = vmatpush.bf16.msra.mxu3 %v12677_v62  ;;  %v12704_v62 = vld [vmem:[%s12831_s17 + $0x12a0] sm:$0xff] }
 0x33f   : > { %v8049_v52 = vpop.f32.mrf.mxu1  ;;  %8173 = vmatmul.bf16.gmra.mxu2 %v2549_v44  ;;  %v9277_v44 = vld [vmem:[%s14901_s0 + $0x398] sm:$0xf] }
 0x340   : > { %v8026_v27 = vpop.f32.mrf.mxu0  ;;  %8196 = vmatmul.bf16.gmra.mxu3 %v2550_v18  ;;  %v12059_v18 = vld [vmem:[%s14901_s0 + $0x39c] sm:$0xf] }
 0x342   : > { %v7980_v13 = vpop.f32.mrf.mxu2  ;;  %8242 = vmatmul.bf16.gmra.mxu1 %v2552_v50  ;;  %v12685_v50 = vld [vmem:[%s12831_s17 + $0x1208] sm:$0xff] }
 0x343   : > { %8219 = vmatmul.bf16.gmra.mxu0 %v2551_v28  ;;  %v8003_v58 = vpop.f32.mrf.mxu3  ;;  %v7981_v59 = vadd.f32 %v7980_v13, %v14436_v47  ;;  %v12697_v47 = vld [vmem:[%s12831_s17 + $0x1268] sm:$0xff]  ;;  %v9279_v28 = vld [vmem:[%s14901_s0 + $0x4e0] sm:$0xf0] }
 0x344   : > { %8410 = vmatpush.bf16.msra.mxu1 %v12697_v47  ;;  %v12676_v13 = vld [vmem:[%s12831_s17 + $0x11c0] sm:$0xff] }
 0x345   : > { %v8004_v34 = vadd.f32 %v8003_v58, %v7981_v59  ;;  %8369 = vmatpush.bf16.msra.mxu3 %v12676_v13  ;;  %v12703_v13 = vld [vmem:[%s12831_s17 + $0x1298] sm:$0xff] }
 0x347   : > { %v8027_v63 = vadd.f32 %v8026_v27, %v8004_v34  ;;  %v8051_v1 = vpop.f32.mrf.mxu1  ;;  %v12668_v27 = vld [vmem:[%s12831_s17 + $0x1180] sm:$0xff]  ;;  %v9282_v34 = vor.u32 %v12059_v18, %v9279_v28  ;;  %v8965_v28 = vld [vmem:[%s14901_s0 + $0x118] sm:$0xf] }
 0x348   : > { %v8028_v3 = vpop.f32.mrf.mxu0  ;;  %8411 = vmatpush.bf16.msra.mxu1 %v12696_v2  ;;  %8346 = vmatpush.bf16.msra.mxu2 %v12668_v27  ;;  %v12020_v27 = vld [vmem:[%s14901_s0 + $0x25c] sm:$0xf0] }
 0x349   : > { %v14537_v33 = vadd.f32 %v8049_v52, %v8027_v63  ;;  %v12693_v52 = vld [vmem:[%s12831_s17 + $0x1248] sm:$0xff]  ;;  %v9286_v63 = vor.u32 %v12101_v15, %v9285_v57  ;;  %v11979_v57 = vld [vmem:[%s14901_s0 + $0x11c] sm:$0xf]  ;;  %v8967_v15 = vld [vmem:[%s14901_s0 + $0x260] sm:$0xf0] }
 0x34a   : > { %v7982_v31 = vpop.f32.mrf.mxu2 }
 0x34b   : > { %v8005_v54 = vpop.f32.mrf.mxu3  ;;  %v7983_v37 = vadd.f32 %v7982_v31, %v14453_v0  ;;  %v12687_v0 = vld [vmem:[%s12831_s17 + $0x1218] sm:$0xff] }
 0x34c   : > { %8389 = vmatpush.bf16.msra.mxu0 %v12687_v0  ;;  %8412 = vmatpush.bf16.msra.mxu1 %v12695_v14 }
 0x34d   : > { %v8006_v42 = vadd.f32 %v8005_v54, %v7983_v37  ;;  %v369_v54 = vld [vmem:[%s14901_s0 + $0x628] sm:$0xff] }
 0x34e   : > { %v2308_v20 = vunpack.c.h.b16 %v369_v54 }
 0x34f   : > { %v8029_v30 = vadd.f32 %v8028_v3, %v8006_v42  ;;  %v8054_v32 = vpop.f32.mrf.mxu1  ;;  %8255 = vmatmul.bf16.vlgmr.msrb.gmra.mxu2 %v8950_v41  ;;  %v12060_v3 = vld [vmem:[%s14901_s0 + $0x3a4] sm:$0xf]  ;;  %v12714_v42 = vld [vmem:[%s12831_s17 + $0x12f0] sm:$0xff] }
 0x350   : > { %v8031_v29 = vpop.f32.mrf.mxu0  ;;  %8278 = vmatmul.bf16.vlgmr.msrb.gmra.mxu3 %v8954_v61  ;;  %8390 = vmatpush.bf16.msra.mxu0 %v12686_v56  ;;  %v9290_v26 = vor.u32 %v12060_v3, %v9287_v17  ;;  %v2307_v61 = vunpack.c.l.b16 %v369_v54  ;;  %v2554_v14 = vpack.c.b16 %v2308_v20, %v2308_v20  ;;  %v12705_v56 = vld [vmem:[%s12831_s17 + $0x12a8] sm:$0xff] }
 0x351   : > { %v14554_v51 = vadd.f32 %v8051_v1, %v8029_v30  ;;  %8413 = vmatpush.bf16.msra.mxu1 %v12694_v39  ;;  %v12684_v1 = vld [vmem:[%s12831_s17 + $0x1200] sm:$0xff]  ;;  %8431 = vmatpush.bf16.msrb.mxu2 %v12707_v21  ;;  %v2310_v30 = vunpack.c.h.b16 %v370_v35  ;;  %v12713_v39 = vld [vmem:[%s12831_s17 + $0x12e8] sm:$0xff] }
 0x352   : > { %v7985_v55 = vpop.f32.mrf.mxu2  ;;  %8324 = vmatmul.bf16.vlgmr.msrb.gmra.mxu1 %v8962_v48  ;;  %8454 = vmatpush.bf16.msrb.mxu3 %v12715_v45  ;;  %v8975_v21 = vld [vmem:[%s14901_s0 + $0x268] sm:$0xf0] }
 0x353   : > { %8301 = vmatmul.bf16.vlgmr.msrb.gmra.mxu0 %v8958_v25  ;;  %v8008_v12 = vpop.f32.mrf.mxu3  ;;  %v7986_v36 = vadd.f32 %v7985_v55, %v14475_v19  ;;  %v12100_v19 = vld [vmem:[%s14901_s0 + $0x4dc] sm:$0xf0]  ;;  %v12723_v25 = vld [vmem:[%s12831_s17 + $0x1338] sm:$0xff] }
 0x354   : > { %v9278_v59 = vor.u32 %v12100_v19, %v9277_v44  ;;  %8391 = vmatpush.bf16.msra.mxu0 %v12685_v50 }
 0x355   : > { %v8009_v38 = vadd.f32 %v8008_v12, %v7986_v36  ;;  %8414 = vmatpush.bf16.msra.mxu1 %v12693_v52  ;;  %8432 = vmatpush.bf16.msrb.mxu2 %v12706_v22  ;;  %v2556_v36 = vpack.c.b16 %v2310_v30, %v2310_v30 }
 0x356   : > { %8455 = vmatpush.bf16.msrb.mxu3 %v12714_v42  ;;  %v12718_v42 = vld [vmem:[%s12831_s17 + $0x1310] sm:$0xff] }
 0x357   : > { %v8032_v49 = vadd.f32 %v8031_v29, %v8009_v38  ;;  %v8056_v43 = vpop.f32.mrf.mxu1  ;;  %v2309_v29 = vunpack.c.l.b16 %v370_v35  ;;  %v12727_v35 = vld [vmem:[%s12831_s17 + $0x1358] sm:$0xff] }
 0x358   : > { %v8033_v60 = vpop.f32.mrf.mxu0  ;;  %8392 = vmatpush.bf16.msra.mxu0 %v12684_v1  ;;  %v12728_v1 = vld [vmem:[%s12831_s17 + $0x1360] sm:$0xff] }
 0x359   : > { %v14576_v7 = vadd.f32 %v8054_v32, %v8032_v49  ;;  %v2553_v32 = vpack.c.b16 %v2307_v61, %v2307_v61  ;;  %v2555_v55 = vpack.c.b16 %v2309_v29, %v2309_v29  ;;  %8433 = vmatpush.bf16.msrb.mxu2 %v12705_v56  ;;  %v12701_v29 = vld [vmem:[%s12831_s17 + $0x1288] sm:$0xff] }
 0x35a   : > { %v7987_v4 = vpop.f32.mrf.mxu2  ;;  %8456 = vmatpush.bf16.msrb.mxu3 %v12713_v39 }
 0x35b   : > { %v8010_v11 = vpop.f32.mrf.mxu3  ;;  %v7988_v58 = vadd.f32 %v7987_v4, %v14495_v23  ;;  %v12692_v23 = vld [vmem:[%s12831_s17 + $0x1240] sm:$0xff] }
 0x35c   : > { %8415 = vmatpush.bf16.msra.mxu1 %v12692_v23  ;;  %8477 = vmatpush.bf16.msrb.mxu0 %v12723_v25  ;;  %v12712_v4 = vld [vmem:[%s12831_s17 + $0x12e0] sm:$0xff]  ;;  %v12702_v23 = vld [vmem:[%s12831_s17 + $0x1290] sm:$0xff] }
 0x35d   : > { %v8011_v40 = vadd.f32 %v8010_v11, %v7988_v58  ;;  %8434 = vmatpush.bf16.msrb.mxu2 %v12704_v62  ;;  %v12721_v11 = vld [vmem:[%s12831_s17 + $0x1328] sm:$0xff]  ;;  %v8973_v58 = vld [vmem:[%s14901_s0 + $0x120] sm:$0xf]  ;;  %v12726_v25 = vld [vmem:[%s12831_s17 + $0x1350] sm:$0xff] }
 0x35e   : > { %8457 = vmatpush.bf16.msrb.mxu3 %v12712_v4  ;;  %v12103_v62 = vld [vmem:[%s14901_s0 + $0x4f4] sm:$0xf0] }
 0x35f   : > { %v8034_v47 = vadd.f32 %v8033_v60, %v8011_v40  ;;  %v8059_v8 = vpop.f32.mrf.mxu1  ;;  %8260 = vmatmul.bf16.gmra.mxu2 %v9278_v59  ;;  %v12722_v60 = vld [vmem:[%s12831_s17 + $0x1330] sm:$0xff]  ;;  %v12711_v59 = vld [vmem:[%s12831_s17 + $0x12d8] sm:$0xff] }
 0x360   : > { %v8036_v6 = vpop.f32.mrf.mxu0  ;;  %8283 = vmatmul.bf16.gmra.mxu3 %v9282_v34  ;;  %8500 = vmatpush.bf16.msrb.mxu1 %v12731_v46  ;;  %v12720_v34 = vld [vmem:[%s12831_s17 + $0x1320] sm:$0xff] }
 0x361   : > { %v14596_v9 = vadd.f32 %v8056_v43, %v8034_v47  ;;  %8478 = vmatpush.bf16.msrb.mxu0 %v12722_v60  ;;  %8435 = vmatpush.bf16.msrb.mxu2 %v12703_v13  ;;  %v8970_v47 = vor.u32 %v11979_v57, %v8967_v15  ;;  %v12739_v15 = vld [vmem:[%s12831_s17 + $0x13b8] sm:$0xff] }
 0x362   : > { %v7990_v10 = vpop.f32.mrf.mxu2  ;;  %8329 = vmatmul.bf16.gmra.mxu1 %v9290_v26  ;;  %v8966_v26 = vor.u32 %v12020_v27, %v8965_v28  ;;  %8458 = vmatpush.bf16.msrb.mxu3 %v12711_v59  ;;  %v9303_v28 = vld [vmem:[%s14901_s0 + $0x4f8] sm:$0xf0] }
 0x363   : > { %8306 = vmatmul.bf16.gmra.mxu0 %v9286_v63  ;;  %v8013_v5 = vpop.f32.mrf.mxu3  ;;  %v7991_v31 = vadd.f32 %v7990_v10, %v14508_v24  ;;  %v12021_v63 = vld [vmem:[%s14901_s0 + $0x264] sm:$0xf0]  ;;  %v12747_v13 = vld [vmem:[%s12831_s17 + $0x13f8] sm:$0xff] }
 0x364   : > { %8501 = vmatpush.bf16.msrb.mxu1 %v12730_v53  ;;  %v8974_v10 = vor.u32 %v12021_v63, %v8973_v58  ;;  %v9301_v53 = vld [vmem:[%s14901_s0 + $0x3b0] sm:$0xf] }
 0x365   : > { %v8014_v16 = vadd.f32 %v8013_v5, %v7991_v31  ;;  %8479 = vmatpush.bf16.msrb.mxu0 %v12721_v11  ;;  %v12710_v5 = vld [vmem:[%s12831_s17 + $0x12d0] sm:$0xff]  ;;  %8436 = vmatpush.bf16.msrb.mxu2 %v12702_v23  ;;  %v372_v23 = vld [vmem:[%s14901_s0 + $0x640] sm:$0xff] }
 0x366   : > { %8459 = vmatpush.bf16.msrb.mxu3 %v12710_v5  ;;  %v1677_v5 = vld [vmem:[%s12831_s17 + $0x1450] sm:$0x3] }
 0x367   : > { %v8037_v37 = vadd.f32 %v8036_v6, %v8014_v16  ;;  %v8061_v41 = vpop.f32.mrf.mxu1 }
 0x368   : > { %v8038_v2 = vpop.f32.mrf.mxu0 }
 0x369   : > { %v14609_v24 = vadd.f32 %v8059_v8, %v8037_v37  ;;  %v11980_v8 = vld [vmem:[%s14901_s0 + $0x124] sm:$0xf]  ;;  %8480 = vmatpush.bf16.msrb.mxu0 %v12720_v34  ;;  %8437 = vmatpush.bf16.msrb.mxu2 %v12701_v29  ;;  %v12737_v29 = vld [vmem:[%s12831_s17 + $0x13a8] sm:$0xff] }
 0x36a   : > { %v7992_v48 = vpop.f32.mrf.mxu2  ;;  %v8978_v54 = vor.u32 %v11980_v8, %v8975_v21  ;;  %v12738_v21 = vld [vmem:[%s12831_s17 + $0x13b0] sm:$0xff] }
 0x36b   : > { %v8015_v0 = vpop.f32.mrf.mxu3  ;;  %v12709_v48 = vld [vmem:[%s12831_s17 + $0x12c8] sm:$0xff] }
 0x36c   : > { %8460 = vmatpush.bf16.msrb.mxu3 %v12709_v48  ;;  %v12745_v48 = vld [vmem:[%s12831_s17 + $0x13e8] sm:$0xff] }
 0x36f   : > { %v8141_v38 = vpop.f32.mrf.mxu1  ;;  %8265 = vmatmul.bf16.gmra.mxu2 %v2553_v32  ;;  %v9293_v32 = vld [vmem:[%s14901_s0 + $0x3a8] sm:$0xf] }
 0x370   : > { %v8118_v12 = vpop.f32.mrf.mxu0  ;;  %8288 = vmatmul.bf16.gmra.mxu3 %v2554_v14  ;;  %v12061_v14 = vld [vmem:[%s14901_s0 + $0x3ac] sm:$0xf] }
 0x372   : > { %v8072_v49 = vpop.f32.mrf.mxu2  ;;  %8334 = vmatmul.bf16.gmra.mxu1 %v2556_v36  ;;  %v12717_v36 = vld [vmem:[%s12831_s17 + $0x1308] sm:$0xff] }
 0x373   : > { %8311 = vmatmul.bf16.gmra.mxu0 %v2555_v55  ;;  %v8095_v43 = vpop.f32.mrf.mxu3  ;;  %v8073_v44 = vadd.f32 %v8072_v49, %v14537_v33  ;;  %v12729_v33 = vld [vmem:[%s12831_s17 + $0x1368] sm:$0xff]  ;;  %v9295_v55 = vld [vmem:[%s14901_s0 + $0x4f0] sm:$0xf0]  ;;  %v12708_v49 = vld [vmem:[%s12831_s17 + $0x12c0] sm:$0xff] }
 0x374   : > { %8502 = vmatpush.bf16.msrb.mxu1 %v12729_v33  ;;  %8461 = vmatpush.bf16.msrb.mxu3 %v12708_v49  ;;  %v11981_v49 = vld [vmem:[%s14901_s0 + $0x12c] sm:$0xf] }
 0x375   : > { %v8096_v19 = vadd.f32 %v8095_v43, %v8073_v44 }
 0x377   : > { %v8119_v50 = vadd.f32 %v8118_v12, %v8096_v19  ;;  %v8143_v52 = vpop.f32.mrf.mxu1  ;;  %v12700_v12 = vld [vmem:[%s12831_s17 + $0x1280] sm:$0xff]  ;;  %v9298_v19 = vor.u32 %v12061_v14, %v9295_v55 }
 0x378   : > { %v8120_v18 = vpop.f32.mrf.mxu0  ;;  %8503 = vmatpush.bf16.msrb.mxu1 %v12728_v1  ;;  %8438 = vmatpush.bf16.msrb.mxu2 %v12700_v12 }
 0x379   : > { %v14638_v3 = vadd.f32 %v8141_v38, %v8119_v50  ;;  %v12725_v38 = vld [vmem:[%s12831_s17 + $0x1348] sm:$0xff]  ;;  %v9302_v50 = vor.u32 %v12103_v62, %v9301_v53  ;;  %v12744_v53 = vld [vmem:[%s12831_s17 + $0x13e0] sm:$0xff] }
 0x37a   : > { %v8074_v17 = vpop.f32.mrf.mxu2  ;;  %v12753_v62 = vld [vmem:[%s12831_s17 + $0x1428] sm:$0xff] }
 0x37b   : > { %v8097_v40 = vpop.f32.mrf.mxu3  ;;  %v8075_v6 = vadd.f32 %v8074_v17, %v14554_v51  ;;  %v12719_v51 = vld [vmem:[%s12831_s17 + $0x1318] sm:$0xff] }
 0x37c   : > { %8481 = vmatpush.bf16.msrb.mxu0 %v12719_v51  ;;  %8504 = vmatpush.bf16.msrb.mxu1 %v12727_v35 }
 0x37d   : > { %v8098_v45 = vadd.f32 %v8097_v40, %v8075_v6  ;;  %v371_v40 = vld [vmem:[%s14901_s0 + $0x638] sm:$0xff] }
 0x37e   : > { %v2312_v8 = vunpack.c.h.b16 %v371_v40 }
 0x37f   : > { %v8121_v16 = vadd.f32 %v8120_v18, %v8098_v45  ;;  %v8146_v2 = vpop.f32.mrf.mxu1  ;;  %8347 = vmatmul.bf16.vlgmr.msra.gmra.mxu2 %v8966_v26  ;;  %v12062_v18 = vld [vmem:[%s14901_s0 + $0x3b4] sm:$0xf] }
 0x380   : > { %v8123_v31 = vpop.f32.mrf.mxu0  ;;  %8370 = vmatmul.bf16.vlgmr.msra.gmra.mxu3 %v8970_v47  ;;  %8482 = vmatpush.bf16.msrb.mxu0 %v12718_v42  ;;  %v9306_v11 = vor.u32 %v12062_v18, %v9303_v28  ;;  %v2311_v47 = vunpack.c.l.b16 %v371_v40  ;;  %v12746_v45 = vld [vmem:[%s12831_s17 + $0x13f0] sm:$0xff]  ;;  %v12752_v18 = vld [vmem:[%s12831_s17 + $0x1420] sm:$0xff] }
 0x381   : > { %v14655_v37 = vadd.f32 %v8143_v52, %v8121_v16  ;;  %8505 = vmatpush.bf16.msrb.mxu1 %v12726_v25  ;;  %v12716_v52 = vld [vmem:[%s12831_s17 + $0x1300] sm:$0xff]  ;;  %8523 = vmatpush.bf16.msra.mxu2 %v12739_v15  ;;  %v11982_v15 = vld [vmem:[%s14901_s0 + $0x134] sm:$0xf] }
 0x382   : > { %v8077_v41 = vpop.f32.mrf.mxu2  ;;  %8416 = vmatmul.bf16.vlgmr.msra.gmra.mxu1 %v8978_v54  ;;  %8546 = vmatpush.bf16.msra.mxu3 %v12747_v13  ;;  %v2557_v35 = vpack.c.b16 %v2311_v47, %v2311_v47  ;;  %v8991_v13 = vld [vmem:[%s14901_s0 + $0x278] sm:$0xf0] }
 0x383   : > { %8393 = vmatmul.bf16.vlgmr.msra.gmra.mxu0 %v8974_v10  ;;  %v8100_v61 = vpop.f32.mrf.mxu3  ;;  %v8078_v20 = vadd.f32 %v8077_v41, %v14576_v7  ;;  %v12102_v7 = vld [vmem:[%s14901_s0 + $0x4ec] sm:$0xf0]  ;;  %v12755_v10 = vld [vmem:[%s12831_s17 + $0x1438] sm:$0xff]  ;;  %v2558_v41 = vpack.c.b16 %v2312_v8, %v2312_v8 }
 0x384   : > { %v9294_v44 = vor.u32 %v12102_v7, %v9293_v32  ;;  %8483 = vmatpush.bf16.msrb.mxu0 %v12717_v36  ;;  %v8981_v36 = vld [vmem:[%s14901_s0 + $0x128] sm:$0xf] }
 0x385   : > { %v8101_v22 = vadd.f32 %v8100_v61, %v8078_v20  ;;  %8506 = vmatpush.bf16.msrb.mxu1 %v12725_v38  ;;  %8524 = vmatpush.bf16.msra.mxu2 %v12738_v21  ;;  %v12022_v38 = vld [vmem:[%s14901_s0 + $0x26c] sm:$0xf0] }
 0x386   : > { %8547 = vmatpush.bf16.msra.mxu3 %v12746_v45  ;;  %v12750_v45 = vld [vmem:[%s12831_s17 + $0x1410] sm:$0xff] }
 0x387   : > { %v8124_v0 = vadd.f32 %v8123_v31, %v8101_v22  ;;  %v8148_v30 = vpop.f32.mrf.mxu1  ;;  %v2313_v31 = vunpack.c.l.b16 %v372_v23 }
 0x388   : > { %v8125_v46 = vpop.f32.mrf.mxu0  ;;  %8484 = vmatpush.bf16.msrb.mxu0 %v12716_v52  ;;  %v8989_v52 = vld [vmem:[%s14901_s0 + $0x130] sm:$0xf] }
 0x389   : > { %v14677_v56 = vadd.f32 %v8146_v2, %v8124_v0  ;;  %v2314_v2 = vunpack.c.h.b16 %v372_v23  ;;  %v2559_v20 = vpack.c.b16 %v2313_v31, %v2313_v31  ;;  %v12754_v0 = vld [vmem:[%s12831_s17 + $0x1430] sm:$0xff]  ;;  %8525 = vmatpush.bf16.msra.mxu2 %v12737_v29  ;;  %v12741_v31 = vld [vmem:[%s12831_s17 + $0x13c8] sm:$0xff] }
 0x38a   : > { %v8079_v39 = vpop.f32.mrf.mxu2  ;;  %8548 = vmatpush.bf16.msra.mxu3 %v12745_v48  ;;  %v12105_v29 = vld [vmem:[%s14901_s0 + $0x504] sm:$0xf0]  ;;  %v12740_v48 = vld [vmem:[%s12831_s17 + $0x13c0] sm:$0xff] }
 0x38b   : > { %v8102_v60 = vpop.f32.mrf.mxu3  ;;  %v8080_v43 = vadd.f32 %v8079_v39, %v14596_v9  ;;  %v12724_v9 = vld [vmem:[%s12831_s17 + $0x1340] sm:$0xff]  ;;  %v2560_v25 = vpack.c.b16 %v2314_v2, %v2314_v2 }
 0x38c   : > { %8507 = vmatpush.bf16.msrb.mxu1 %v12724_v9  ;;  %8569 = vmatpush.bf16.msra.mxu0 %v12755_v10  ;;  %v12023_v9 = vld [vmem:[%s14901_s0 + $0x274] sm:$0xf0]  ;;  %v12104_v2 = vld [vmem:[%s14901_s0 + $0x4fc] sm:$0xf0] }
 0x38d   : > { %v8103_v27 = vadd.f32 %v8102_v60, %v8080_v43  ;;  %v8983_v43 = vld [vmem:[%s14901_s0 + $0x270] sm:$0xf0] }
 0x38e   : > { %8549 = vmatpush.bf16.msra.mxu3 %v12744_v53 }
 0x38f   : > { %v8126_v33 = vadd.f32 %v8125_v46, %v8103_v27  ;;  %v8151_v57 = vpop.f32.mrf.mxu1  ;;  %8352 = vmatmul.bf16.gmra.mxu2 %v9294_v44  ;;  %v12735_v44 = vld [vmem:[%s12831_s17 + $0x1398] sm:$0xff] }
 0x390   : > { %v8128_v4 = vpop.f32.mrf.mxu0  ;;  %8375 = vmatmul.bf16.gmra.mxu3 %v9298_v19  ;;  %8570 = vmatpush.bf16.msra.mxu0 %v12754_v0  ;;  %v12743_v19 = vld [vmem:[%s12831_s17 + $0x13d8] sm:$0xff] }
 0x391   : > { %v14697_v58 = vadd.f32 %v8148_v30, %v8126_v33  ;;  %v12736_v30 = vld [vmem:[%s12831_s17 + $0x13a0] sm:$0xff]  ;;  %v8982_v33 = vor.u32 %v12022_v38, %v8981_v36 }
 0x392   : > { %v8082_v59 = vpop.f32.mrf.mxu2  ;;  %8421 = vmatmul.bf16.gmra.mxu1 %v9306_v11  ;;  %8526 = vmatpush.bf16.msra.mxu2 %v12736_v30  ;;  %v12748_v36 = vld [vmem:[%s12831_s17 + $0x1400] sm:$0xff] }
 0x393   : > { %8398 = vmatmul.bf16.gmra.mxu0 %v9302_v50  ;;  %v8105_v34 = vpop.f32.mrf.mxu3  ;;  %v8083_v17 = vadd.f32 %v8082_v59, %v14609_v24  ;;  %v5413_v24 = vunpack.c.l.b16 %v1677_v5  ;;  %8550 = vmatpush.bf16.msra.mxu3 %v12743_v19  ;;  %v12733_v5 = vld [vmem:[%s12831_s17 + $0x1388] sm:$0xff] }
 0x394   : > { %8571 = vmatpush.bf16.msra.mxu0 %v12753_v62 }
 0x395   : > { %v8106_v63 = vadd.f32 %v8105_v34, %v8083_v17  ;;  %v6064_v61 = vpack.c.b16 %v5413_v24, %v5413_v24  ;;  %v8990_v34 = vor.u32 %v12023_v9, %v8989_v52  ;;  %v12742_v17 = vld [vmem:[%s12831_s17 + $0x13d0] sm:$0xff] }
 0x396   : > { %8527 = vmatpush.bf16.msra.mxu2 %v12735_v44 }
 0x397   : > { %v8129_v6 = vadd.f32 %v8128_v4, %v8106_v63  ;;  %v8153_v26 = vpop.f32.mrf.mxu1  ;;  %v6727_v22 = vsel %vm6725_vm0, %v6064_v61, 0  ;;  %v12734_v4 = vld [vmem:[%s12831_s17 + $0x1390] sm:$0xff]  ;;  %v8994_v63 = vor.u32 %v11982_v15, %v8991_v13  ;;  %8551 = vmatpush.bf16.msra.mxu3 %v12742_v17  ;;  %v12732_v61 = vld [vmem:[%s12831_s17 + $0x1380] sm:$0xff] }
 0x398   : > { %v8130_v1 = vpop.f32.mrf.mxu0  ;;  %8597 = vmatpush.bf16.msra.mxu1 %v6727_v22  ;;  %8572 = vmatpush.bf16.msra.mxu0 %v12752_v18  ;;  %v374_v18 = vld [vmem:[%s14901_s0 + $0x650] sm:$0xff] }
 0x399   : > { %v14710_v54 = vadd.f32 %v8151_v57, %v8129_v6  ;;  %v8986_v57 = vor.u32 %v11981_v49, %v8983_v43  ;;  %v373_v43 = vld [vmem:[%s14901_s0 + $0x648] sm:$0xff] }
 0x39a   : > { %v8084_v51 = vpop.f32.mrf.mxu2  ;;  %8528 = vmatpush.bf16.msra.mxu2 %v12734_v4  ;;  %v2315_v52 = vunpack.c.l.b16 %v373_v43  ;;  %v2316_v9 = vunpack.c.h.b16 %v373_v43  ;;  %v2317_v4 = vunpack.c.l.b16 %v374_v18 }
 0x39b   : > { %v8107_v16 = vpop.f32.mrf.mxu3  ;;  %8552 = vmatpush.bf16.msra.mxu3 %v12741_v31 }
 0x39c   : > { %v9309_v16 = vld [vmem:[%s14901_s0 + $0x3b8] sm:$0xf]  ;;  %v2561_v15 = vpack.c.b16 %v2315_v52, %v2315_v52  ;;  %v2562_v13 = vpack.c.b16 %v2316_v9, %v2316_v9 }
 0x39d   : > { %v9310_v30 = vor.u32 %v12104_v2, %v9309_v16  ;;  %v12025_v16 = vld [vmem:[%s14901_s0 + $0x284] sm:$0xf0] }
 0x39e   : > { %8529 = vmatpush.bf16.msra.mxu2 %v12733_v5 }
 0x39f   : > { %v8233_v46 = vpop.f32.mrf.mxu1  ;;  %8357 = vmatmul.bf16.gmra.mxu2 %v2557_v35  ;;  %v12063_v35 = vld [vmem:[%s14901_s0 + $0x3bc] sm:$0xf]  ;;  %8553 = vmatpush.bf16.msra.mxu3 %v12740_v48 }
 0x3a0   : > { %v8210_v42 = vpop.f32.mrf.mxu0  ;;  %8380 = vmatmul.bf16.gmra.mxu3 %v2558_v41  ;;  %v9311_v41 = vld [vmem:[%s14901_s0 + $0x500] sm:$0xf0] }
 0x3a2   : > { %v8164_v32 = vpop.f32.mrf.mxu2  ;;  %8426 = vmatmul.bf16.gmra.mxu1 %v2560_v25  ;;  %8530 = vmatpush.bf16.msra.mxu2 %v12732_v61  ;;  %v9007_v61 = vld [vmem:[%s14901_s0 + $0x288] sm:$0xf0] }
 0x3a3   : > { %8403 = vmatmul.bf16.gmra.mxu0 %v2559_v20  ;;  %v8187_v7 = vpop.f32.mrf.mxu3  ;;  %v8165_v14 = vadd.f32 %v8164_v32, %v14638_v3  ;;  %v12757_v3 = vld [vmem:[%s12831_s17 + $0x1448] sm:$0xff]  ;;  %v9314_v32 = vor.u32 %v12063_v35, %v9311_v41  ;;  %v11984_v41 = vld [vmem:[%s14901_s0 + $0x144] sm:$0xf] }
 0x3a4   : > { %8598 = vmatpush.bf16.msra.mxu1 %v12757_v3  ;;  %v12749_v20 = vld [vmem:[%s12831_s17 + $0x1408] sm:$0xff] }
 0x3a5   : > { %v8188_v55 = vadd.f32 %v8187_v7, %v8165_v14  ;;  %v12064_v7 = vld [vmem:[%s14901_s0 + $0x3c4] sm:$0xf]  ;;  %v9319_v14 = vld [vmem:[%s14901_s0 + $0x508] sm:$0xf0] }
 0x3a7   : > { %v8211_v39 = vadd.f32 %v8210_v42, %v8188_v55  ;;  %v8235_v60 = vpop.f32.mrf.mxu1 }
 0x3a8   : > { %v8212_v12 = vpop.f32.mrf.mxu0 }
 0x3a9   : > { %v14735_v28 = vadd.f32 %v8233_v46, %v8211_v39  ;;  %v9317_v46 = vld [vmem:[%s14901_s0 + $0x3c0] sm:$0xf]  ;;  %v9322_v39 = vor.u32 %v12064_v7, %v9319_v14 }
 0x3aa   : > { %v8166_v27 = vpop.f32.mrf.mxu2 }
 0x3ab   : > { %v8189_v50 = vpop.f32.mrf.mxu3  ;;  %v8167_v11 = vadd.f32 %v8166_v27, %v14655_v37  ;;  %v12751_v37 = vld [vmem:[%s12831_s17 + $0x1418] sm:$0xff] }
 0x3ac   : > { %8573 = vmatpush.bf16.msra.mxu0 %v12751_v37 }
 0x3ad   : > { %v8190_v59 = vadd.f32 %v8189_v50, %v8167_v11 }
 0x3af   : > { %v8213_v1 = vadd.f32 %v8212_v12, %v8190_v59  ;;  %v8238_v23 = vpop.f32.mrf.mxu1  ;;  %8439 = vmatmul.bf16.vlgmr.msrb.gmra.mxu2 %v8982_v33  ;;  %v9318_v12 = vor.u32 %v12105_v29, %v9317_v46  ;;  %v2563_v59 = vpack.c.b16 %v2317_v4, %v2317_v4  ;;  %v9010_v46 = vor.u32 %v11984_v41, %v9007_v61 }
 0x3b0   : > { %v8215_v40 = vpop.f32.mrf.mxu0  ;;  %8462 = vmatmul.bf16.vlgmr.msrb.gmra.mxu3 %v8986_v57  ;;  %8574 = vmatpush.bf16.msra.mxu0 %v12750_v45  ;;  %v12024_v45 = vld [vmem:[%s14901_s0 + $0x27c] sm:$0xf0] }
 0x3b1   : > { %v14753_v6 = vadd.f32 %v8235_v60, %v8213_v1 }
 0x3b2   : > { %v8169_v26 = vpop.f32.mrf.mxu2  ;;  %8508 = vmatmul.bf16.vlgmr.msrb.gmra.mxu1 %v8994_v63 }
 0x3b3   : > { %8485 = vmatmul.bf16.vlgmr.msrb.gmra.mxu0 %v8990_v34  ;;  %v8192_v47 = vpop.f32.mrf.mxu3  ;;  %v8170_v8 = vadd.f32 %v8169_v26, %v14677_v56  ;;  %v12756_v56 = vld [vmem:[%s12831_s17 + $0x1440] sm:$0xff] }
 0x3b4   : > { %8599 = vmatpush.bf16.msra.mxu1 %v12756_v56  ;;  %8575 = vmatpush.bf16.msra.mxu0 %v12749_v20 }
 0x3b5   : > { %v8193_v21 = vadd.f32 %v8192_v47, %v8170_v8 }
 0x3b7   : > { %v8216_v24 = vadd.f32 %v8215_v40, %v8193_v21  ;;  %v8240_v51 = vpop.f32.mrf.mxu1  ;;  %v8997_v21 = vld [vmem:[%s14901_s0 + $0x138] sm:$0xf] }
 0x3b8   : > { %v8217_v10 = vpop.f32.mrf.mxu0  ;;  %8576 = vmatpush.bf16.msra.mxu0 %v12748_v36  ;;  %v8998_v56 = vor.u32 %v12024_v45, %v8997_v21  ;;  %v9325_v36 = vld [vmem:[%s14901_s0 + $0x3c8] sm:$0xf] }
 0x3b9   : > { %v14774_v22 = vadd.f32 %v8238_v23, %v8216_v24 }
 0x3ba   : > { %v8171_v42 = vpop.f32.mrf.mxu2 }
 0x3bb   : > { %v8194_v25 = vpop.f32.mrf.mxu3  ;;  %v8172_v0 = vadd.f32 %v8171_v42, %v14697_v58 }
 0x3bd   : > { %v8195_v55 = vadd.f32 %v8194_v25, %v8172_v0 }
 0x3bf   : > { %v8218_v60 = vadd.f32 %v8217_v10, %v8195_v55  ;;  %v8243_v58 = vpop.f32.mrf.mxu1  ;;  %8444 = vmatmul.bf16.gmra.mxu2 %v9310_v30  ;;  %v11983_v10 = vld [vmem:[%s14901_s0 + $0x13c] sm:$0xf] }
 0x3c0   : > { %v8220_v38 = vpop.f32.mrf.mxu0  ;;  %8467 = vmatmul.bf16.gmra.mxu3 %v9314_v32 }
 0x3c1   : > { %v14791_v53 = vadd.f32 %v8240_v51, %v8218_v60  ;;  %v9005_v51 = vld [vmem:[%s14901_s0 + $0x140] sm:$0xf] }
 0x3c2   : > { %v8174_v62 = vpop.f32.mrf.mxu2  ;;  %8513 = vmatmul.bf16.gmra.mxu1 %v9322_v39  ;;  %v9006_v42 = vor.u32 %v12025_v16, %v9005_v51  ;;  %v12065_v39 = vld [vmem:[%s14901_s0 + $0x3cc] sm:$0xf] }
 0x3c3   : > { %8490 = vmatmul.bf16.gmra.mxu0 %v9318_v12  ;;  %v8197_v3 = vpop.f32.mrf.mxu3  ;;  %v8175_v49 = vadd.f32 %v8174_v62, %v14710_v54  ;;  %v2318_v54 = vunpack.c.h.b16 %v374_v18  ;;  %v12066_v18 = vld [vmem:[%s14901_s0 + $0x3d4] sm:$0xf] }
 0x3c5   : > { %v8198_v44 = vadd.f32 %v8197_v3, %v8175_v49  ;;  %v2564_v17 = vpack.c.b16 %v2318_v54, %v2318_v54  ;;  %v9333_v3 = vld [vmem:[%s14901_s0 + $0x3d0] sm:$0xf]  ;;  %v12107_v49 = vld [vmem:[%s14901_s0 + $0x514] sm:$0xf0] }
 0x3c6   : > { %v9334_v52 = vor.u32 %v12107_v49, %v9333_v3 }
 0x3c7   : > { %v8221_v27 = vadd.f32 %v8220_v38, %v8198_v44  ;;  %v8245_v50 = vpop.f32.mrf.mxu1  ;;  %v12106_v38 = vld [vmem:[%s14901_s0 + $0x50c] sm:$0xf0] }
 0x3c8   : > { %v8222_v19 = vpop.f32.mrf.mxu0  ;;  %v9326_v44 = vor.u32 %v12106_v38, %v9325_v36 }
 0x3c9   : > { %v14800_v11 = vadd.f32 %v8243_v58, %v8221_v27  ;;  %v9335_v27 = vld [vmem:[%s14901_s0 + $0x518] sm:$0xf0] }
 0x3ca   : > { %v8176_v33 = vpop.f32.mrf.mxu2  ;;  %v9338_v4 = vor.u32 %v12066_v18, %v9335_v27 }
 0x3cb   : > { %v8199_v57 = vpop.f32.mrf.mxu3 }
 0x3cf   : > { %v8325_v40 = vpop.f32.mrf.mxu1  ;;  %8449 = vmatmul.bf16.gmra.mxu2 %v2561_v15 }
 0x3d0   : > { %v8302_v34 = vpop.f32.mrf.mxu0  ;;  %8472 = vmatmul.bf16.gmra.mxu3 %v2562_v13 }
 0x3d2   : > { %v8256_v63 = vpop.f32.mrf.mxu2  ;;  %8518 = vmatmul.bf16.gmra.mxu1 %v2564_v17 }
 0x3d3   : > { %8495 = vmatmul.bf16.gmra.mxu0 %v2563_v59  ;;  %v8279_v37 = vpop.f32.mrf.mxu3  ;;  %v8257_v1 = vadd.f32 %v8256_v63, %v14735_v28  ;;  %v8999_v28 = vld [vmem:[%s14901_s0 + $0x280] sm:$0xf0]  ;;  %v375_v59 = vld [vmem:[%s14901_s0 + $0x658] sm:$0xff] }
 0x3d4   : > { %v9002_v35 = vor.u32 %v11983_v10, %v8999_v28 }
 0x3d5   : > { %v8280_v23 = vadd.f32 %v8279_v37, %v8257_v1  ;;  %v2319_v1 = vunpack.c.l.b16 %v375_v59 }
 0x3d7   : > { %v8303_v47 = vadd.f32 %v8302_v34, %v8280_v23  ;;  %v8327_v8 = vpop.f32.mrf.mxu1  ;;  %v2320_v23 = vunpack.c.h.b16 %v375_v59 }
 0x3d8   : > { %v8304_v26 = vpop.f32.mrf.mxu0 }
 0x3d9   : > { %v14815_v5 = vadd.f32 %v8325_v40, %v8303_v47  ;;  %v376_v40 = vld [vmem:[%s14901_s0 + $0x660] sm:$0xff]  ;;  %v2566_v10 = vpack.c.b16 %v2320_v23, %v2320_v23 }
 0x3da   : > { %v8258_v31 = vpop.f32.mrf.mxu2  ;;  %v2322_v45 = vunpack.c.h.b16 %v376_v40 }
 0x3db   : > { %v8281_v24 = vpop.f32.mrf.mxu3  ;;  %v8259_v2 = vadd.f32 %v8258_v31, %v14753_v6 }
 0x3dd   : > { %v8282_v20 = vadd.f32 %v8281_v24, %v8259_v2  ;;  %v2568_v24 = vpack.c.b16 %v2322_v45, %v2322_v45 }
 0x3df   : > { %v8305_v29 = vadd.f32 %v8304_v26, %v8282_v20  ;;  %v8330_v48 = vpop.f32.mrf.mxu1  ;;  %8531 = vmatmul.bf16.vlgmr.msra.gmra.mxu2 %v8998_v56  ;;  %v2321_v26 = vunpack.c.l.b16 %v376_v40 }
 0x3e0   : > { %v8307_v25 = vpop.f32.mrf.mxu0  ;;  %8554 = vmatmul.bf16.vlgmr.msra.gmra.mxu3 %v9002_v35 }
 0x3e1   : > { %v14830_v6 = vadd.f32 %v8327_v8, %v8305_v29  ;;  %v2567_v28 = vpack.c.b16 %v2321_v26, %v2321_v26 }
 0x3e2   : > { %v8261_v0 = vpop.f32.mrf.mxu2  ;;  %11939 = vmatmul.msk.bf16.vlgmr.msra.gmra.mxu1 %vm6715_vm1, %v9010_v46 }
 0x3e3   : > { %8577 = vmatmul.bf16.vlgmr.msra.gmra.mxu0 %v9006_v42  ;;  %v8284_v30 = vpop.f32.mrf.mxu3  ;;  %v8262_v32 = vadd.f32 %v8261_v0, %v14774_v22  ;;  %v9327_v22 = vld [vmem:[%s14901_s0 + $0x510] sm:$0xf0] }
 0x3e4   : > { %v9330_v19 = vor.u32 %v12065_v39, %v9327_v22 }
 0x3e5   : > { %v8285_v7 = vadd.f32 %v8284_v30, %v8262_v32 }
 0x3e7   : > { %v8308_v55 = vadd.f32 %v8307_v25, %v8285_v7  ;;  %v8332_v12 = vpop.f32.mrf.mxu1 }
 0x3e8   : > { %v8309_v14 = vpop.f32.mrf.mxu0 }
 0x3e9   : > { %v14846_v60 = vadd.f32 %v8330_v48, %v8308_v55 }
 0x3ea   : > { %v8263_v58 = vpop.f32.mrf.mxu2 }
 0x3eb   : > { %v8286_v62 = vpop.f32.mrf.mxu3  ;;  %v8264_v43 = vadd.f32 %v8263_v58, %v14791_v53 }
 0x3ed   : > { %v8287_v50 = vadd.f32 %v8286_v62, %v8264_v43 }
 0x3ef   : > { %v8310_v33 = vadd.f32 %v8309_v14, %v8287_v50  ;;  %v8335_v57 = vpop.f32.mrf.mxu1  ;;  %8536 = vmatmul.bf16.gmra.mxu2 %v9326_v44 }
 0x3f0   : > { %v8312_v9 = vpop.f32.mrf.mxu0  ;;  %8559 = vmatmul.bf16.gmra.mxu3 %v9330_v19 }
 0x3f1   : > { %v8333_v53 = vadd.f32 %v8332_v12, %v8310_v33 }
 0x3f2   : > { %v8266_v54 = vpop.f32.mrf.mxu2  ;;  %11940 = vmatmul.msk.bf16.gmra.mxu1 %vm6715_vm1, %v9338_v4 }
 0x3f3   : > { %8582 = vmatmul.bf16.gmra.mxu0 %v9334_v52  ;;  %v8289_v15 = vpop.f32.mrf.mxu3  ;;  %v8267_v13 = vadd.f32 %v8266_v54, %v14800_v11  ;;  %v2565_v11 = vpack.c.b16 %v2319_v1, %v2319_v1 }
 0x3f5   : > { %v8290_v34 = vadd.f32 %v8289_v15, %v8267_v13 }
 0x3f7   : > { %v8313_v63 = vadd.f32 %v8312_v9, %v8290_v34  ;;  %v8337_v37 = vpop.f32.mrf.mxu1 }
 0x3f8   : > { %v8314_v17 = vpop.f32.mrf.mxu0 }
 0x3f9   : > { %v8336_v47 = vadd.f32 %v8335_v57, %v8313_v63 }
 0x3fa   : > { %v8268_v8 = vpop.f32.mrf.mxu2 }
 0x3fb   : > { %v8291_v21 = vpop.f32.mrf.mxu3 }
 0x3ff   : > { %v8417_v51 = vpop.f32.mrf.mxu1  ;;  %8541 = vmatmul.bf16.gmra.mxu2 %v2565_v11 }
 0x400   : > { %v8394_v31 = vpop.f32.mrf.mxu0  ;;  %8564 = vmatmul.bf16.gmra.mxu3 %v2566_v10 }
 0x402   : > { %v8348_v16 = vpop.f32.mrf.mxu2  ;;  %11941 = vmatmul.msk.bf16.gmra.mxu1 %vm6715_vm1, %v2568_v24 }
 0x403   : > { %8587 = vmatmul.bf16.gmra.mxu0 %v2567_v28  ;;  %v8371_v2 = vpop.f32.mrf.mxu3  ;;  %v8349_v56 = vadd.f32 %v8348_v16, %v14815_v5 }
 0x405   : > { %v8372_v35 = vadd.f32 %v8371_v2, %v8349_v56 }
 0x407   : > { %v8395_v61 = vadd.f32 %v8394_v31, %v8372_v35  ;;  %v8419_v20 = vpop.f32.mrf.mxu1 }
 0x408   : > { %v8396_v41 = vpop.f32.mrf.mxu0 }
 0x409   : > { %v8418_v42 = vadd.f32 %v8417_v51, %v8395_v61 }
 0x40a   : > { %v8350_v25 = vpop.f32.mrf.mxu2 }
 0x40b   : > { %v8373_v46 = vpop.f32.mrf.mxu3  ;;  %v8351_v29 = vadd.f32 %v8350_v25, %v14830_v6 }
 0x40d   : > { %v8374_v48 = vadd.f32 %v8373_v46, %v8351_v29 }
 0x40f   : > { %v8397_v30 = vadd.f32 %v8396_v41, %v8374_v48  ;;  %v8422_v32 = vpop.f32.mrf.mxu1 }
 0x410   : > { %v8399_v0 = vpop.f32.mrf.mxu0 }
 0x411   : > { %v8420_v7 = vadd.f32 %v8419_v20, %v8397_v30 }
 0x412   : > { %v8353_v14 = vpop.f32.mrf.mxu2 }
 0x413   : > { %v8376_v55 = vpop.f32.mrf.mxu3  ;;  %v8354_v12 = vadd.f32 %v8353_v14, %v14846_v60 }
 0x415   : > { %v8377_v36 = vadd.f32 %v8376_v55, %v8354_v12 }
 0x417   : > { %v8400_v38 = vadd.f32 %v8399_v0, %v8377_v36  ;;  %v8424_v39 = vpop.f32.mrf.mxu1 }
 0x418   : > { %v8401_v5 = vpop.f32.mrf.mxu0 }
 0x419   : > { %v8423_v22 = vadd.f32 %v8422_v32, %v8400_v38 }
 0x41a   : > { %v8355_v58 = vpop.f32.mrf.mxu2 }
 0x41b   : > { %v8378_v62 = vpop.f32.mrf.mxu3  ;;  %v8356_v3 = vadd.f32 %v8355_v58, %v8333_v53 }
 0x41d   : > { %v8379_v49 = vadd.f32 %v8378_v62, %v8356_v3 }
 0x41f   : > { %v8402_v6 = vadd.f32 %v8401_v5, %v8379_v49  ;;  %v8427_v44 = vpop.f32.mrf.mxu1 }
 0x420   : > { %v8404_v43 = vpop.f32.mrf.mxu0 }
 0x421   : > { %v14873_v19 = vadd.f32 %v8424_v39, %v8402_v6 }
 0x422   : > { %v8358_v18 = vpop.f32.mrf.mxu2 }
 0x423   : > { %v8381_v27 = vpop.f32.mrf.mxu3  ;;  %v8359_v50 = vadd.f32 %v8358_v18, %v8336_v47 }
 0x425   : > { %v8382_v52 = vadd.f32 %v8381_v27, %v8359_v50 }
 0x427   : > { %v8405_v60 = vadd.f32 %v8404_v43, %v8382_v52  ;;  %v8429_v4 = vpop.f32.mrf.mxu1 }
 0x428   : > { %v8406_v9 = vpop.f32.mrf.mxu0 }
 0x429   : > { %v14875_v33 = vadd.f32 %v8427_v44, %v8405_v60 }
 0x42a   : > { %v8360_v57 = vpop.f32.mrf.mxu2 }
 0x42b   : > { %v8383_v54 = vpop.f32.mrf.mxu3 }
 0x42f   : > { %v8509_v13 = vpop.f32.mrf.mxu1 }
 0x430   : > { %v8486_v15 = vpop.f32.mrf.mxu0 }
 0x432   : > { %v8440_v53 = vpop.f32.mrf.mxu2 }
 0x433   : > { %v8463_v59 = vpop.f32.mrf.mxu3  ;;  %v8441_v24 = vadd.f32 %v8440_v53, %v8418_v42 }
 0x435   : > { %v8464_v2 = vadd.f32 %v8463_v59, %v8441_v24 }
 0x437   : > { %v8511_v17 = vpop.f32.mrf.mxu1  ;;  %v8487_v41 = vadd.f32 %v8486_v15, %v8464_v2 }
 0x438   : > { %v8488_v34 = vpop.f32.mrf.mxu0 }
 0x439   : > { %v8510_v29 = vadd.f32 %v8509_v13, %v8487_v41 }
 0x43a   : > { %v8442_v40 = vpop.f32.mrf.mxu2 }
 0x43b   : > { %v8465_v63 = vpop.f32.mrf.mxu3  ;;  %v8443_v61 = vadd.f32 %v8442_v40, %v8420_v7 }
 0x43d   : > { %v8466_v46 = vadd.f32 %v8465_v63, %v8443_v61 }
 0x43f   : > { %v8514_v1 = vpop.f32.mrf.mxu1  ;;  %v8489_v32 = vadd.f32 %v8488_v34, %v8466_v46 }
 0x440   : > { %v8491_v37 = vpop.f32.mrf.mxu0 }
 0x441   : > { %v8512_v38 = vadd.f32 %v8511_v17, %v8489_v32 }
 0x442   : > { %v8445_v23 = vpop.f32.mrf.mxu2 }
 0x443   : > { %v8468_v26 = vpop.f32.mrf.mxu3  ;;  %v8446_v14 = vadd.f32 %v8445_v23, %v8423_v22 }
 0x445   : > { %v8469_v7 = vadd.f32 %v8468_v26, %v8446_v14 }
 0x447   : > { %v8516_v8 = vpop.f32.mrf.mxu1  ;;  %v8492_v62 = vadd.f32 %v8491_v37, %v8469_v7 }
 0x448   : > { %v8493_v47 = vpop.f32.mrf.mxu0 }
 0x449   : > { %v8515_v50 = vadd.f32 %v8514_v1, %v8492_v62 }
 0x44a   : > { %v8447_v21 = vpop.f32.mrf.mxu2 }
 0x44b   : > { %v8470_v45 = vpop.f32.mrf.mxu3  ;;  %v8448_v3 = vadd.f32 %v8447_v21, %v14873_v19 }
 0x44d   : > { %v8471_v18 = vadd.f32 %v8470_v45, %v8448_v3 }
 0x44f   : > { %v14877_v10 = vpop.f32.mrf.mxu1  ;;  %v8494_v4 = vadd.f32 %v8493_v47, %v8471_v18 }
 0x450   : > { %v8496_v11 = vpop.f32.mrf.mxu0 }
 0x451   : > { %v8517_v34 = vadd.f32 %v8516_v8, %v8494_v4 }
 0x452   : > { %v8450_v28 = vpop.f32.mrf.mxu2 }
 0x453   : > { %v8473_v31 = vpop.f32.mrf.mxu3  ;;  %v8451_v57 = vadd.f32 %v8450_v28, %v14875_v33 }
 0x455   : > { %v8474_v53 = vadd.f32 %v8473_v31, %v8451_v57 }
 0x457   : > { %v8521_v16 = vpop.f32.mrf.mxu1  ;;  %v8497_v37 = vadd.f32 %v8496_v11, %v8474_v53 }
 0x458   : > { %v8498_v51 = vpop.f32.mrf.mxu0 }
 0x459   : > { %v8520_v21 = vadd.f32 %v14877_v10, %v8497_v37 }
 0x45a   : > { %v8452_v56 = vpop.f32.mrf.mxu2 }
 0x45b   : > { %v8475_v35 = vpop.f32.mrf.mxu3 }
 0x45f   : > { %v8601_v25 = vpop.f32.mrf.mxu1 }
 0x460   : > { %v8578_v20 = vpop.f32.mrf.mxu0 }
 0x462   : > { %v8532_v48 = vpop.f32.mrf.mxu2 }
 0x463   : > { %v8555_v0 = vpop.f32.mrf.mxu3  ;;  %v8533_v30 = vadd.f32 %v8532_v48, %v8510_v29 }
 0x465   : > { %v8556_v55 = vadd.f32 %v8555_v0, %v8533_v30 }
 0x467   : > { %v8579_v42 = vadd.f32 %v8578_v20, %v8556_v55  ;;  %v8603_v36 = vpop.f32.mrf.mxu1 }
 0x468   : > { %v8580_v12 = vpop.f32.mrf.mxu0 }
 0x469   : > { %v8602_v5 = vadd.f32 %v8601_v25, %v8579_v42 }
 0x46a   : > { %v8534_v39 = vpop.f32.mrf.mxu2 }
 0x46b   : > { %v8557_v58 = vpop.f32.mrf.mxu3  ;;  %8616 = vst.msk [vmem:[%s14883_s23] sm:$0xff] %vm8615_vm2, %v8602_v5  ;;  %v8535_v22 = vadd.f32 %v8534_v39, %v8512_v38 }
 0x46d   : > { %v8558_v49 = vadd.f32 %v8557_v58, %v8535_v22 }
 0x46f   : > { %v8581_v6 = vadd.f32 %v8580_v12, %v8558_v49  ;;  %v8606_v44 = vpop.f32.mrf.mxu1 }
 0x470   : > { %v8583_v43 = vpop.f32.mrf.mxu0 }
 0x471   : > { %v8604_v27 = vadd.f32 %v8603_v36, %v8581_v6 }
 0x472   : > { %v8537_v52 = vpop.f32.mrf.mxu2 }
 0x473   : > { %v8560_v9 = vpop.f32.mrf.mxu3  ;;  %8617 = vst.msk [vmem:[%s14883_s23 + $0x8] sm:$0xff] %vm8615_vm2, %v8604_v27  ;;  %v8538_v60 = vadd.f32 %v8537_v52, %v8515_v50 }
 0x475   : > { %v8561_v54 = vadd.f32 %v8560_v9, %v8538_v60 }
 0x477   : > { %v8584_v13 = vadd.f32 %v8583_v43, %v8561_v54  ;;  %v8608_v19 = vpop.f32.mrf.mxu1 }
 0x478   : > { %v8585_v15 = vpop.f32.mrf.mxu0 }
 0x479   : > { %v8607_v59 = vadd.f32 %v8606_v44, %v8584_v13 }
 0x47a   : > { %v8539_v17 = vpop.f32.mrf.mxu2 }
 0x47b   : > { %v8562_v40 = vpop.f32.mrf.mxu3  ;;  %8618 = vst.msk [vmem:[%s14883_s23 + $0x10] sm:$0xff] %vm8615_vm2, %v8607_v59  ;;  %v8540_v63 = vadd.f32 %v8539_v17, %v8517_v34 }
 0x47d   : > { %v8563_v1 = vadd.f32 %v8562_v40, %v8540_v63 }
 0x47f   : > { %v8586_v26 = vadd.f32 %v8585_v15, %v8563_v1  ;;  %v8611_v47 = vpop.f32.mrf.mxu1 }
 0x480   : > { %v8588_v23 = vpop.f32.mrf.mxu0 }
 0x481   : > { %v8609_v33 = vadd.f32 %v8608_v19, %v8586_v26 }
 0x482   : > { %v8542_v45 = vpop.f32.mrf.mxu2 }
 0x483   : > { %v8565_v28 = vpop.f32.mrf.mxu3  ;;  %8619 = vst.msk [vmem:[%s14883_s23 + $0x18] sm:$0xff] %vm8615_vm2, %v8609_v33  ;;  %v8543_v31 = vadd.f32 %v8542_v45, %v8520_v21 }
 0x485   : > { %v8566_v8 = vadd.f32 %v8565_v28, %v8543_v31 }
 0x487   : > { %v8589_v51 = vadd.f32 %v8588_v23, %v8566_v8  ;;  %v8613_v16 = vpop.f32.mrf.mxu1 }
 0x488   : > { %v8590_v24 = vpop.f32.mrf.mxu0 }
 0x489   : > { %v8612_v2 = vadd.f32 %v8611_v47, %v8589_v51 }
 0x48a   : > { %v8544_v56 = vpop.f32.mrf.mxu2 }
 0x48b   : > { %v8567_v11 = vpop.f32.mrf.mxu3  ;;  %8620 = vst.msk [vmem:[%s14883_s23 + $0x20] sm:$0xff] %vm8615_vm2, %v8612_v2 }
 0x48c PF: > { %s13_s12 = sadd.s32 1, %s12794_s12  }
 0x48d   : > { %p10_p4 = scmp.ge.s32.totalorder %s13_s12, 4  }
 0x48f   :  { %12 = sbr.rel (!%p10_p4) target bundleno = 1 (0x1), region = 62 }

// kernel: mul.441
= control target key start
LH: loop header
LB: loop body
LE: loop exit
PB: predicated region body
PF: predicated region fallthrough
CT: control target
= control target key end

     0   :  { %s802_s0 = inlined_call_operand.vmem [shape: f32[2,36,11], index: 0, kind: input, shape index: {}]   ;;  %s803_s1 = inlined_call_operand.vmem [shape: f32[2,36,11,11], index: 1, kind: output, shape index: {}]  }
   0x1   :  { %v4_v0 = vld [vmem:[%s802_s0] sm:$0x3]  ;;  %v276_v1 = vld [vmem:[%s802_s0 + $0x2] sm:$0x3]  ;;  %v288_v2 = vld [vmem:[%s802_s0 + $0x4] sm:$0x3] }
   0x2   :  { %5 = vst [vmem:[%s803_s1] sm:$0x3] %v4_v0  ;;  %v300_v3 = vld [vmem:[%s802_s0 + $0x6] sm:$0x3]  ;;  %v312_v4 = vld [vmem:[%s802_s0 + $0x8] sm:$0x3] }
   0x3   :  { %266 = vst [vmem:[%s803_s1 + $0x16] sm:$0x3] %v4_v0  ;;  %v324_v5 = vld [vmem:[%s802_s0 + $0xa] sm:$0x3]  ;;  %v336_v6 = vld [vmem:[%s802_s0 + $0xc] sm:$0x3] }
   0x4   :  { %267 = vst [vmem:[%s803_s1 + $0x2c] sm:$0x3] %v4_v0  ;;  %v348_v7 = vld [vmem:[%s802_s0 + $0xe] sm:$0x3]  ;;  %v360_v8 = vld [vmem:[%s802_s0 + $0x10] sm:$0x3] }
   0x5   :  { %268 = vst [vmem:[%s803_s1 + $0x42] sm:$0x3] %v4_v0  ;;  %v372_v9 = vld [vmem:[%s802_s0 + $0x12] sm:$0x3]  ;;  %v384_v10 = vld [vmem:[%s802_s0 + $0x14] sm:$0x3] }
   0x6   :  { %269 = vst [vmem:[%s803_s1 + $0x58] sm:$0x3] %v4_v0 }
   0x7   :  { %270 = vst [vmem:[%s803_s1 + $0x6e] sm:$0x3] %v4_v0 }
   0x8   :  { %271 = vst [vmem:[%s803_s1 + $0x84] sm:$0x3] %v4_v0 }
   0x9   :  { %272 = vst [vmem:[%s803_s1 + $0x9a] sm:$0x3] %v4_v0 }
   0xa   :  { %273 = vst [vmem:[%s803_s1 + $0xb0] sm:$0x3] %v4_v0 }
   0xb   :  { %274 = vst [vmem:[%s803_s1 + $0xc6] sm:$0x3] %v4_v0 }
   0xc   :  { %275 = vst [vmem:[%s803_s1 + $0xdc] sm:$0x3] %v4_v0 }
   0xd   :  { %277 = vst [vmem:[%s803_s1 + $0x2] sm:$0x3] %v276_v1 }
   0xe   :  { %278 = vst [vmem:[%s803_s1 + $0x18] sm:$0x3] %v276_v1 }
   0xf   :  { %279 = vst [vmem:[%s803_s1 + $0x2e] sm:$0x3] %v276_v1 }
  0x10   :  { %280 = vst [vmem:[%s803_s1 + $0x44] sm:$0x3] %v276_v1 }
  0x11   :  { %281 = vst [vmem:[%s803_s1 + $0x5a] sm:$0x3] %v276_v1 }
  0x12   :  { %282 = vst [vmem:[%s803_s1 + $0x70] sm:$0x3] %v276_v1 }
  0x13   :  { %283 = vst [vmem:[%s803_s1 + $0x86] sm:$0x3] %v276_v1 }
  0x14   :  { %284 = vst [vmem:[%s803_s1 + $0x9c] sm:$0x3] %v276_v1 }
  0x15   :  { %285 = vst [vmem:[%s803_s1 + $0xb2] sm:$0x3] %v276_v1 }
  0x16   :  { %286 = vst [vmem:[%s803_s1 + $0xc8] sm:$0x3] %v276_v1 }
  0x17   :  { %287 = vst [vmem:[%s803_s1 + $0xde] sm:$0x3] %v276_v1 }
  0x18   :  { %289 = vst [vmem:[%s803_s1 + $0x4] sm:$0x3] %v288_v2 }
  0x19   :  { %290 = vst [vmem:[%s803_s1 + $0x1a] sm:$0x3] %v288_v2 }
  0x1a   :  { %291 = vst [vmem:[%s803_s1 + $0x30] sm:$0x3] %v288_v2 }
  0x1b   :  { %292 = vst [vmem:[%s803_s1 + $0x46] sm:$0x3] %v288_v2 }
  0x1c   :  { %293 = vst [vmem:[%s803_s1 + $0x5c] sm:$0x3] %v288_v2 }
  0x1d   :  { %294 = vst [vmem:[%s803_s1 + $0x72] sm:$0x3] %v288_v2 }
  0x1e   :  { %295 = vst [vmem:[%s803_s1 + $0x88] sm:$0x3] %v288_v2 }
  0x1f   :  { %296 = vst [vmem:[%s803_s1 + $0x9e] sm:$0x3] %v288_v2 }
  0x20   :  { %297 = vst [vmem:[%s803_s1 + $0xb4] sm:$0x3] %v288_v2 }
  0x21   :  { %298 = vst [vmem:[%s803_s1 + $0xca] sm:$0x3] %v288_v2 }
  0x22   :  { %299 = vst [vmem:[%s803_s1 + $0xe0] sm:$0x3] %v288_v2 }
  0x23   :  { %301 = vst [vmem:[%s803_s1 + $0x6] sm:$0x3] %v300_v3 }
  0x24   :  { %302 = vst [vmem:[%s803_s1 + $0x1c] sm:$0x3] %v300_v3 }
  0x25   :  { %303 = vst [vmem:[%s803_s1 + $0x32] sm:$0x3] %v300_v3 }
  0x26   :  { %304 = vst [vmem:[%s803_s1 + $0x48] sm:$0x3] %v300_v3 }
  0x27   :  { %305 = vst [vmem:[%s803_s1 + $0x5e] sm:$0x3] %v300_v3 }
  0x28   :  { %306 = vst [vmem:[%s803_s1 + $0x74] sm:$0x3] %v300_v3 }
  0x29   :  { %307 = vst [vmem:[%s803_s1 + $0x8a] sm:$0x3] %v300_v3 }
  0x2a   :  { %308 = vst [vmem:[%s803_s1 + $0xa0] sm:$0x3] %v300_v3 }
  0x2b   :  { %309 = vst [vmem:[%s803_s1 + $0xb6] sm:$0x3] %v300_v3 }
  0x2c   :  { %310 = vst [vmem:[%s803_s1 + $0xcc] sm:$0x3] %v300_v3 }
  0x2d   :  { %311 = vst [vmem:[%s803_s1 + $0xe2] sm:$0x3] %v300_v3 }
  0x2e   :  { %313 = vst [vmem:[%s803_s1 + $0x8] sm:$0x3] %v312_v4 }
  0x2f   :  { %314 = vst [vmem:[%s803_s1 + $0x1e] sm:$0x3] %v312_v4 }
  0x30   :  { %315 = vst [vmem:[%s803_s1 + $0x34] sm:$0x3] %v312_v4 }
  0x31   :  { %316 = vst [vmem:[%s803_s1 + $0x4a] sm:$0x3] %v312_v4 }
  0x32   :  { %317 = vst [vmem:[%s803_s1 + $0x60] sm:$0x3] %v312_v4 }
  0x33   :  { %318 = vst [vmem:[%s803_s1 + $0x76] sm:$0x3] %v312_v4 }
  0x34   :  { %319 = vst [vmem:[%s803_s1 + $0x8c] sm:$0x3] %v312_v4 }
  0x35   :  { %320 = vst [vmem:[%s803_s1 + $0xa2] sm:$0x3] %v312_v4 }
  0x36   :  { %321 = vst [vmem:[%s803_s1 + $0xb8] sm:$0x3] %v312_v4 }
  0x37   :  { %322 = vst [vmem:[%s803_s1 + $0xce] sm:$0x3] %v312_v4 }
  0x38   :  { %323 = vst [vmem:[%s803_s1 + $0xe4] sm:$0x3] %v312_v4 }
  0x39   :  { %325 = vst [vmem:[%s803_s1 + $0xa] sm:$0x3] %v324_v5 }
  0x3a   :  { %326 = vst [vmem:[%s803_s1 + $0x20] sm:$0x3] %v324_v5 }
  0x3b   :  { %327 = vst [vmem:[%s803_s1 + $0x36] sm:$0x3] %v324_v5 }
  0x3c   :  { %328 = vst [vmem:[%s803_s1 + $0x4c] sm:$0x3] %v324_v5 }
  0x3d   :  { %329 = vst [vmem:[%s803_s1 + $0x62] sm:$0x3] %v324_v5 }
  0x3e   :  { %330 = vst [vmem:[%s803_s1 + $0x78] sm:$0x3] %v324_v5 }
  0x3f   :  { %331 = vst [vmem:[%s803_s1 + $0x8e] sm:$0x3] %v324_v5 }
  0x40   :  { %332 = vst [vmem:[%s803_s1 + $0xa4] sm:$0x3] %v324_v5 }
  0x41   :  { %333 = vst [vmem:[%s803_s1 + $0xba] sm:$0x3] %v324_v5 }
  0x42   :  { %334 = vst [vmem:[%s803_s1 + $0xd0] sm:$0x3] %v324_v5 }
  0x43   :  { %335 = vst [vmem:[%s803_s1 + $0xe6] sm:$0x3] %v324_v5 }
  0x44   :  { %337 = vst [vmem:[%s803_s1 + $0xc] sm:$0x3] %v336_v6 }
  0x45   :  { %338 = vst [vmem:[%s803_s1 + $0x22] sm:$0x3] %v336_v6 }
  0x46   :  { %339 = vst [vmem:[%s803_s1 + $0x38] sm:$0x3] %v336_v6 }
  0x47   :  { %340 = vst [vmem:[%s803_s1 + $0x4e] sm:$0x3] %v336_v6 }
  0x48   :  { %341 = vst [vmem:[%s803_s1 + $0x64] sm:$0x3] %v336_v6 }
  0x49   :  { %342 = vst [vmem:[%s803_s1 + $0x7a] sm:$0x3] %v336_v6 }
  0x4a   :  { %343 = vst [vmem:[%s803_s1 + $0x90] sm:$0x3] %v336_v6 }
  0x4b   :  { %344 = vst [vmem:[%s803_s1 + $0xa6] sm:$0x3] %v336_v6 }
  0x4c   :  { %345 = vst [vmem:[%s803_s1 + $0xbc] sm:$0x3] %v336_v6 }
  0x4d   :  { %346 = vst [vmem:[%s803_s1 + $0xd2] sm:$0x3] %v336_v6 }
  0x4e   :  { %347 = vst [vmem:[%s803_s1 + $0xe8] sm:$0x3] %v336_v6 }
  0x4f   :  { %349 = vst [vmem:[%s803_s1 + $0xe] sm:$0x3] %v348_v7 }
  0x50   :  { %350 = vst [vmem:[%s803_s1 + $0x24] sm:$0x3] %v348_v7 }
  0x51   :  { %351 = vst [vmem:[%s803_s1 + $0x3a] sm:$0x3] %v348_v7 }
  0x52   :  { %352 = vst [vmem:[%s803_s1 + $0x50] sm:$0x3] %v348_v7 }
  0x53   :  { %353 = vst [vmem:[%s803_s1 + $0x66] sm:$0x3] %v348_v7 }
  0x54   :  { %354 = vst [vmem:[%s803_s1 + $0x7c] sm:$0x3] %v348_v7 }
  0x55   :  { %355 = vst [vmem:[%s803_s1 + $0x92] sm:$0x3] %v348_v7 }
  0x56   :  { %356 = vst [vmem:[%s803_s1 + $0xa8] sm:$0x3] %v348_v7 }
  0x57   :  { %357 = vst [vmem:[%s803_s1 + $0xbe] sm:$0x3] %v348_v7 }
  0x58   :  { %358 = vst [vmem:[%s803_s1 + $0xd4] sm:$0x3] %v348_v7 }
  0x59   :  { %359 = vst [vmem:[%s803_s1 + $0xea] sm:$0x3] %v348_v7 }
  0x5a   :  { %361 = vst [vmem:[%s803_s1 + $0x10] sm:$0x3] %v360_v8 }
  0x5b   :  { %362 = vst [vmem:[%s803_s1 + $0x26] sm:$0x3] %v360_v8 }
  0x5c   :  { %363 = vst [vmem:[%s803_s1 + $0x3c] sm:$0x3] %v360_v8 }
  0x5d   :  { %364 = vst [vmem:[%s803_s1 + $0x52] sm:$0x3] %v360_v8 }
  0x5e   :  { %365 = vst [vmem:[%s803_s1 + $0x68] sm:$0x3] %v360_v8 }
  0x5f   :  { %366 = vst [vmem:[%s803_s1 + $0x7e] sm:$0x3] %v360_v8 }
  0x60   :  { %367 = vst [vmem:[%s803_s1 + $0x94] sm:$0x3] %v360_v8 }
  0x61   :  { %368 = vst [vmem:[%s803_s1 + $0xaa] sm:$0x3] %v360_v8 }
  0x62   :  { %369 = vst [vmem:[%s803_s1 + $0xc0] sm:$0x3] %v360_v8 }
  0x63   :  { %370 = vst [vmem:[%s803_s1 + $0xd6] sm:$0x3] %v360_v8 }
  0x64   :  { %371 = vst [vmem:[%s803_s1 + $0xec] sm:$0x3] %v360_v8 }
  0x65   :  { %373 = vst [vmem:[%s803_s1 + $0x12] sm:$0x3] %v372_v9 }
  0x66   :  { %374 = vst [vmem:[%s803_s1 + $0x28] sm:$0x3] %v372_v9 }
  0x67   :  { %375 = vst [vmem:[%s803_s1 + $0x3e] sm:$0x3] %v372_v9 }
  0x68   :  { %376 = vst [vmem:[%s803_s1 + $0x54] sm:$0x3] %v372_v9 }
  0x69   :  { %377 = vst [vmem:[%s803_s1 + $0x6a] sm:$0x3] %v372_v9 }
  0x6a   :  { %378 = vst [vmem:[%s803_s1 + $0x80] sm:$0x3] %v372_v9 }
  0x6b   :  { %379 = vst [vmem:[%s803_s1 + $0x96] sm:$0x3] %v372_v9 }
  0x6c   :  { %380 = vst [vmem:[%s803_s1 + $0xac] sm:$0x3] %v372_v9 }
  0x6d   :  { %381 = vst [vmem:[%s803_s1 + $0xc2] sm:$0x3] %v372_v9 }
  0x6e   :  { %382 = vst [vmem:[%s803_s1 + $0xd8] sm:$0x3] %v372_v9 }
  0x6f   :  { %383 = vst [vmem:[%s803_s1 + $0xee] sm:$0x3] %v372_v9 }
  0x70   :  { %385 = vst [vmem:[%s803_s1 + $0x14] sm:$0x3] %v384_v10 }
  0x71   :  { %386 = vst [vmem:[%s803_s1 + $0x2a] sm:$0x3] %v384_v10 }
  0x72   :  { %387 = vst [vmem:[%s803_s1 + $0x40] sm:$0x3] %v384_v10 }
  0x73   :  { %388 = vst [vmem:[%s803_s1 + $0x56] sm:$0x3] %v384_v10 }
  0x74   :  { %389 = vst [vmem:[%s803_s1 + $0x6c] sm:$0x3] %v384_v10 }
  0x75   :  { %390 = vst [vmem:[%s803_s1 + $0x82] sm:$0x3] %v384_v10 }
  0x76   :  { %391 = vst [vmem:[%s803_s1 + $0x98] sm:$0x3] %v384_v10 }
  0x77   :  { %392 = vst [vmem:[%s803_s1 + $0xae] sm:$0x3] %v384_v10 }
  0x78   :  { %393 = vst [vmem:[%s803_s1 + $0xc4] sm:$0x3] %v384_v10 }
  0x79   :  { %394 = vst [vmem:[%s803_s1 + $0xda] sm:$0x3] %v384_v10 }
  0x7a   :  { %395 = vst [vmem:[%s803_s1 + $0xf0] sm:$0x3] %v384_v10 }

// kernel: mul.445
= control target key start
LH: loop header
LB: loop body
LE: loop exit
PB: predicated region body
PF: predicated region fallthrough
CT: control target
= control target key end

     0   :  { %s945_s0 = inlined_call_operand.vmem [shape: f32[2,36,11], index: 0, kind: input, shape index: {}]   ;;  %s946_s1 = inlined_call_operand.vmem [shape: f32[2,36,11,11], index: 1, kind: output, shape index: {}]  }
   0x1   :  { %v409_v0 = vld [vmem:[%s945_s0] sm:$0x3]  ;;  %v414_v1 = vld [vmem:[%s945_s0 + $0x2] sm:$0x3]  ;;  %v419_v2 = vld [vmem:[%s945_s0 + $0x4] sm:$0x3] }
   0x2   :  { %5 = vst [vmem:[%s946_s1] sm:$0x3] %v409_v0  ;;  %v428_v3 = vld [vmem:[%s945_s0 + $0x6] sm:$0x3]  ;;  %v437_v4 = vld [vmem:[%s945_s0 + $0x8] sm:$0x3] }
   0x3   :  { %267 = vst [vmem:[%s946_s1 + $0x16] sm:$0x3] %v414_v1  ;;  %v446_v5 = vld [vmem:[%s945_s0 + $0xa] sm:$0x3]  ;;  %v455_v6 = vld [vmem:[%s945_s0 + $0xc] sm:$0x3] }
   0x4   :  { %269 = vst [vmem:[%s946_s1 + $0x2c] sm:$0x3] %v419_v2  ;;  %v464_v7 = vld [vmem:[%s945_s0 + $0xe] sm:$0x3]  ;;  %v473_v8 = vld [vmem:[%s945_s0 + $0x10] sm:$0x3] }
   0x5   :  { %271 = vst [vmem:[%s946_s1 + $0x42] sm:$0x3] %v428_v3  ;;  %v482_v9 = vld [vmem:[%s945_s0 + $0x12] sm:$0x3]  ;;  %v491_v10 = vld [vmem:[%s945_s0 + $0x14] sm:$0x3] }
   0x6   :  { %273 = vst [vmem:[%s946_s1 + $0x58] sm:$0x3] %v437_v4 }
   0x7   :  { %275 = vst [vmem:[%s946_s1 + $0x6e] sm:$0x3] %v446_v5 }
   0x8   :  { %277 = vst [vmem:[%s946_s1 + $0x84] sm:$0x3] %v455_v6 }
   0x9   :  { %279 = vst [vmem:[%s946_s1 + $0x9a] sm:$0x3] %v464_v7 }
   0xa   :  { %281 = vst [vmem:[%s946_s1 + $0xb0] sm:$0x3] %v473_v8 }
   0xb   :  { %283 = vst [vmem:[%s946_s1 + $0xc6] sm:$0x3] %v482_v9 }
   0xc   :  { %285 = vst [vmem:[%s946_s1 + $0xdc] sm:$0x3] %v491_v10 }
   0xd   :  { %286 = vst [vmem:[%s946_s1 + $0x2] sm:$0x3] %v409_v0 }
   0xe   :  { %287 = vst [vmem:[%s946_s1 + $0x18] sm:$0x3] %v414_v1 }
   0xf   :  { %288 = vst [vmem:[%s946_s1 + $0x2e] sm:$0x3] %v419_v2 }
  0x10   :  { %289 = vst [vmem:[%s946_s1 + $0x44] sm:$0x3] %v428_v3 }
  0x11   :  { %290 = vst [vmem:[%s946_s1 + $0x5a] sm:$0x3] %v437_v4 }
  0x12   :  { %291 = vst [vmem:[%s946_s1 + $0x70] sm:$0x3] %v446_v5 }
  0x13   :  { %292 = vst [vmem:[%s946_s1 + $0x86] sm:$0x3] %v455_v6 }
  0x14   :  { %293 = vst [vmem:[%s946_s1 + $0x9c] sm:$0x3] %v464_v7 }
  0x15   :  { %294 = vst [vmem:[%s946_s1 + $0xb2] sm:$0x3] %v473_v8 }
  0x16   :  { %295 = vst [vmem:[%s946_s1 + $0xc8] sm:$0x3] %v482_v9 }
  0x17   :  { %296 = vst [vmem:[%s946_s1 + $0xde] sm:$0x3] %v491_v10 }
  0x18   :  { %297 = vst [vmem:[%s946_s1 + $0x4] sm:$0x3] %v409_v0 }
  0x19   :  { %298 = vst [vmem:[%s946_s1 + $0x1a] sm:$0x3] %v414_v1 }
  0x1a   :  { %299 = vst [vmem:[%s946_s1 + $0x30] sm:$0x3] %v419_v2 }
  0x1b   :  { %300 = vst [vmem:[%s946_s1 + $0x46] sm:$0x3] %v428_v3 }
  0x1c   :  { %301 = vst [vmem:[%s946_s1 + $0x5c] sm:$0x3] %v437_v4 }
  0x1d   :  { %302 = vst [vmem:[%s946_s1 + $0x72] sm:$0x3] %v446_v5 }
  0x1e   :  { %303 = vst [vmem:[%s946_s1 + $0x88] sm:$0x3] %v455_v6 }
  0x1f   :  { %304 = vst [vmem:[%s946_s1 + $0x9e] sm:$0x3] %v464_v7 }
  0x20   :  { %305 = vst [vmem:[%s946_s1 + $0xb4] sm:$0x3] %v473_v8 }
  0x21   :  { %306 = vst [vmem:[%s946_s1 + $0xca] sm:$0x3] %v482_v9 }
  0x22   :  { %307 = vst [vmem:[%s946_s1 + $0xe0] sm:$0x3] %v491_v10 }
  0x23   :  { %308 = vst [vmem:[%s946_s1 + $0x6] sm:$0x3] %v409_v0 }
  0x24   :  { %309 = vst [vmem:[%s946_s1 + $0x1c] sm:$0x3] %v414_v1 }
  0x25   :  { %310 = vst [vmem:[%s946_s1 + $0x32] sm:$0x3] %v419_v2 }
  0x26   :  { %311 = vst [vmem:[%s946_s1 + $0x48] sm:$0x3] %v428_v3 }
  0x27   :  { %312 = vst [vmem:[%s946_s1 + $0x5e] sm:$0x3] %v437_v4 }
  0x28   :  { %313 = vst [vmem:[%s946_s1 + $0x74] sm:$0x3] %v446_v5 }
  0x29   :  { %314 = vst [vmem:[%s946_s1 + $0x8a] sm:$0x3] %v455_v6 }
  0x2a   :  { %315 = vst [vmem:[%s946_s1 + $0xa0] sm:$0x3] %v464_v7 }
  0x2b   :  { %316 = vst [vmem:[%s946_s1 + $0xb6] sm:$0x3] %v473_v8 }
  0x2c   :  { %317 = vst [vmem:[%s946_s1 + $0xcc] sm:$0x3] %v482_v9 }
  0x2d   :  { %318 = vst [vmem:[%s946_s1 + $0xe2] sm:$0x3] %v491_v10 }
  0x2e   :  { %319 = vst [vmem:[%s946_s1 + $0x8] sm:$0x3] %v409_v0 }
  0x2f   :  { %320 = vst [vmem:[%s946_s1 + $0x1e] sm:$0x3] %v414_v1 }
  0x30   :  { %321 = vst [vmem:[%s946_s1 + $0x34] sm:$0x3] %v419_v2 }
  0x31   :  { %322 = vst [vmem:[%s946_s1 + $0x4a] sm:$0x3] %v428_v3 }
  0x32   :  { %323 = vst [vmem:[%s946_s1 + $0x60] sm:$0x3] %v437_v4 }
  0x33   :  { %324 = vst [vmem:[%s946_s1 + $0x76] sm:$0x3] %v446_v5 }
  0x34   :  { %325 = vst [vmem:[%s946_s1 + $0x8c] sm:$0x3] %v455_v6 }
  0x35   :  { %326 = vst [vmem:[%s946_s1 + $0xa2] sm:$0x3] %v464_v7 }
  0x36   :  { %327 = vst [vmem:[%s946_s1 + $0xb8] sm:$0x3] %v473_v8 }
  0x37   :  { %328 = vst [vmem:[%s946_s1 + $0xce] sm:$0x3] %v482_v9 }
  0x38   :  { %329 = vst [vmem:[%s946_s1 + $0xe4] sm:$0x3] %v491_v10 }
  0x39   :  { %330 = vst [vmem:[%s946_s1 + $0xa] sm:$0x3] %v409_v0 }
  0x3a   :  { %331 = vst [vmem:[%s946_s1 + $0x20] sm:$0x3] %v414_v1 }
  0x3b   :  { %332 = vst [vmem:[%s946_s1 + $0x36] sm:$0x3] %v419_v2 }
  0x3c   :  { %333 = vst [vmem:[%s946_s1 + $0x4c] sm:$0x3] %v428_v3 }
  0x3d   :  { %334 = vst [vmem:[%s946_s1 + $0x62] sm:$0x3] %v437_v4 }
  0x3e   :  { %335 = vst [vmem:[%s946_s1 + $0x78] sm:$0x3] %v446_v5 }
  0x3f   :  { %336 = vst [vmem:[%s946_s1 + $0x8e] sm:$0x3] %v455_v6 }
  0x40   :  { %337 = vst [vmem:[%s946_s1 + $0xa4] sm:$0x3] %v464_v7 }
  0x41   :  { %338 = vst [vmem:[%s946_s1 + $0xba] sm:$0x3] %v473_v8 }
  0x42   :  { %339 = vst [vmem:[%s946_s1 + $0xd0] sm:$0x3] %v482_v9 }
  0x43   :  { %340 = vst [vmem:[%s946_s1 + $0xe6] sm:$0x3] %v491_v10 }
  0x44   :  { %341 = vst [vmem:[%s946_s1 + $0xc] sm:$0x3] %v409_v0 }
  0x45   :  { %342 = vst [vmem:[%s946_s1 + $0x22] sm:$0x3] %v414_v1 }
  0x46   :  { %343 = vst [vmem:[%s946_s1 + $0x38] sm:$0x3] %v419_v2 }
  0x47   :  { %344 = vst [vmem:[%s946_s1 + $0x4e] sm:$0x3] %v428_v3 }
  0x48   :  { %345 = vst [vmem:[%s946_s1 + $0x64] sm:$0x3] %v437_v4 }
  0x49   :  { %346 = vst [vmem:[%s946_s1 + $0x7a] sm:$0x3] %v446_v5 }
  0x4a   :  { %347 = vst [vmem:[%s946_s1 + $0x90] sm:$0x3] %v455_v6 }
  0x4b   :  { %348 = vst [vmem:[%s946_s1 + $0xa6] sm:$0x3] %v464_v7 }
  0x4c   :  { %349 = vst [vmem:[%s946_s1 + $0xbc] sm:$0x3] %v473_v8 }
  0x4d   :  { %350 = vst [vmem:[%s946_s1 + $0xd2] sm:$0x3] %v482_v9 }
  0x4e   :  { %351 = vst [vmem:[%s946_s1 + $0xe8] sm:$0x3] %v491_v10 }
  0x4f   :  { %352 = vst [vmem:[%s946_s1 + $0xe] sm:$0x3] %v409_v0 }
  0x50   :  { %353 = vst [vmem:[%s946_s1 + $0x24] sm:$0x3] %v414_v1 }
  0x51   :  { %354 = vst [vmem:[%s946_s1 + $0x3a] sm:$0x3] %v419_v2 }
  0x52   :  { %355 = vst [vmem:[%s946_s1 + $0x50] sm:$0x3] %v428_v3 }
  0x53   :  { %356 = vst [vmem:[%s946_s1 + $0x66] sm:$0x3] %v437_v4 }
  0x54   :  { %357 = vst [vmem:[%s946_s1 + $0x7c] sm:$0x3] %v446_v5 }
  0x55   :  { %358 = vst [vmem:[%s946_s1 + $0x92] sm:$0x3] %v455_v6 }
  0x56   :  { %359 = vst [vmem:[%s946_s1 + $0xa8] sm:$0x3] %v464_v7 }
  0x57   :  { %360 = vst [vmem:[%s946_s1 + $0xbe] sm:$0x3] %v473_v8 }
  0x58   :  { %361 = vst [vmem:[%s946_s1 + $0xd4] sm:$0x3] %v482_v9 }
  0x59   :  { %362 = vst [vmem:[%s946_s1 + $0xea] sm:$0x3] %v491_v10 }
  0x5a   :  { %363 = vst [vmem:[%s946_s1 + $0x10] sm:$0x3] %v409_v0 }
  0x5b   :  { %364 = vst [vmem:[%s946_s1 + $0x26] sm:$0x3] %v414_v1 }
  0x5c   :  { %365 = vst [vmem:[%s946_s1 + $0x3c] sm:$0x3] %v419_v2 }
  0x5d   :  { %366 = vst [vmem:[%s946_s1 + $0x52] sm:$0x3] %v428_v3 }
  0x5e   :  { %367 = vst [vmem:[%s946_s1 + $0x68] sm:$0x3] %v437_v4 }
  0x5f   :  { %368 = vst [vmem:[%s946_s1 + $0x7e] sm:$0x3] %v446_v5 }
  0x60   :  { %369 = vst [vmem:[%s946_s1 + $0x94] sm:$0x3] %v455_v6 }
  0x61   :  { %370 = vst [vmem:[%s946_s1 + $0xaa] sm:$0x3] %v464_v7 }
  0x62   :  { %371 = vst [vmem:[%s946_s1 + $0xc0] sm:$0x3] %v473_v8 }
  0x63   :  { %372 = vst [vmem:[%s946_s1 + $0xd6] sm:$0x3] %v482_v9 }
  0x64   :  { %373 = vst [vmem:[%s946_s1 + $0xec] sm:$0x3] %v491_v10 }
  0x65   :  { %374 = vst [vmem:[%s946_s1 + $0x12] sm:$0x3] %v409_v0 }
  0x66   :  { %375 = vst [vmem:[%s946_s1 + $0x28] sm:$0x3] %v414_v1 }
  0x67   :  { %376 = vst [vmem:[%s946_s1 + $0x3e] sm:$0x3] %v419_v2 }
  0x68   :  { %377 = vst [vmem:[%s946_s1 + $0x54] sm:$0x3] %v428_v3 }
  0x69   :  { %378 = vst [vmem:[%s946_s1 + $0x6a] sm:$0x3] %v437_v4 }
  0x6a   :  { %379 = vst [vmem:[%s946_s1 + $0x80] sm:$0x3] %v446_v5 }
  0x6b   :  { %380 = vst [vmem:[%s946_s1 + $0x96] sm:$0x3] %v455_v6 }
  0x6c   :  { %381 = vst [vmem:[%s946_s1 + $0xac] sm:$0x3] %v464_v7 }
  0x6d   :  { %382 = vst [vmem:[%s946_s1 + $0xc2] sm:$0x3] %v473_v8 }
  0x6e   :  { %383 = vst [vmem:[%s946_s1 + $0xd8] sm:$0x3] %v482_v9 }
  0x6f   :  { %384 = vst [vmem:[%s946_s1 + $0xee] sm:$0x3] %v491_v10 }
  0x70   :  { %385 = vst [vmem:[%s946_s1 + $0x14] sm:$0x3] %v409_v0 }
  0x71   :  { %386 = vst [vmem:[%s946_s1 + $0x2a] sm:$0x3] %v414_v1 }
  0x72   :  { %387 = vst [vmem:[%s946_s1 + $0x40] sm:$0x3] %v419_v2 }
  0x73   :  { %388 = vst [vmem:[%s946_s1 + $0x56] sm:$0x3] %v428_v3 }
  0x74   :  { %389 = vst [vmem:[%s946_s1 + $0x6c] sm:$0x3] %v437_v4 }
  0x75   :  { %390 = vst [vmem:[%s946_s1 + $0x82] sm:$0x3] %v446_v5 }
  0x76   :  { %391 = vst [vmem:[%s946_s1 + $0x98] sm:$0x3] %v455_v6 }
  0x77   :  { %392 = vst [vmem:[%s946_s1 + $0xae] sm:$0x3] %v464_v7 }
  0x78   :  { %393 = vst [vmem:[%s946_s1 + $0xc4] sm:$0x3] %v473_v8 }
  0x79   :  { %394 = vst [vmem:[%s946_s1 + $0xda] sm:$0x3] %v482_v9 }
  0x7a   :  { %395 = vst [vmem:[%s946_s1 + $0xf0] sm:$0x3] %v491_v10 }

// kernel: co3net_forward.14
= control target key start
LH: loop header
LB: loop body
LE: loop exit
PB: predicated region body
PF: predicated region fallthrough
CT: control target
= control target key end

     0   :  { %s1379_s12 = smov 0   ;;  %s1579_s0 = inlined_call_operand.vmem [shape: bf16[32,900], index: 0, kind: input, shape index: {}]   ;;  %s1580_s1 = inlined_call_operand.vmem [shape: bf16[2,900,49], index: 1, kind: input, shape index: {}]   ;;  %s1581_s2 = inlined_call_operand.vmem [shape: f32[32,1], index: 2, kind: input, shape index: {}]   ;;  %s1582_s3 = inlined_call_operand.vmem [shape: f32[2,32,49], index: 3, kind: output, shape index: {}]  }
   0x1 LB: > { %s965_s13 = sadd.s32 4294967295, %s1356_s12   ;;  %p969_p0 = scmp.ge.s32.totalorder %s1356_s12, 1  ;;  %s1356_s12 = sphi %s1379_s12, %s13_s12  }
   0x2   : > { %p137_p1 = scmp.lt.s32.totalorder %s1356_s12, 3 }
   0x4   : > { %p138_p2 = pnand %p969_p0, %p137_p1 }
   0x5   : > { %p161_p3 = scmp.lt.s32.totalorder (!%p138_p2), %s965_s13, 1 }
   0x6   : > { %141 = sbr.rel (%p138_p2) target bundleno = 242 (0xf2), region = 32 }
   0xb   : > { %s1584_s13 = smov (!%p161_p3, %s965_s13), 1  ;;  %v1358_v16 = vmov 0   ;;  %v301_v21 = vld [vmem:[%s1581_s2] sm:$0xff]  ;;  %v302_v27 = vld [vmem:[%s1581_s2 + $0x8] sm:$0xff]  ;;  %v303_v45 = vld [vmem:[%s1581_s2 + $0x10] sm:$0xff]  ;;  %vm749_vm0 = vcmask 1041408  }
   0xc   : > { %s1338_s14 = smul.u32 452, %s1584_s13  ;;  %1348 = vset.pattern.permute.xlu0 %v1358_v16  ;;  %1349 = vset.pattern.permute.xlu1 %v1358_v16  ;;  %v975_v33 = vld [vmem:[%s1579_s0] sm:$0xf]  ;;  %v1266_v35 = vld [vmem:[%s1579_s0 + $0x4] sm:$0xf]  ;;  %v304_v58 = vld [vmem:[%s1581_s2 + $0x18] sm:$0xff] }
   0xd   : > { %307 = vperm.xlu0 %1348, %v301_v21   ;;  %v1270_v34 = vld [vmem:[%s1579_s0 + $0x1c] sm:$0xf0]  ;;  %v977_v40 = vld [vmem:[%s1579_s0 + $0x20] sm:$0xf0]  ;;  %v983_v41 = vld [vmem:[%s1579_s0 + $0x8] sm:$0xf]  ;;  %317 = vperm.xlu1 %1349, %v303_v45  }
   0xe   : > { %s1393_s17 = scalar_lea.vmem %s1580_s1, %s1338_s14  ;;  %v1271_v42 = vld [vmem:[%s1579_s0 + $0x24] sm:$0xf0]  ;;  %v1267_v43 = vld [vmem:[%s1579_s0 + $0xc] sm:$0xf]  ;;  %v976_v49 = vor.u32 %v1270_v34, %v975_v33  ;;  %v980_v50 = vor.u32 %v1266_v35, %v977_v40  ;;  %vm742_vm1 = vcmask 31744   ;;  %s1265_s16 = sshll.u32 %s1584_s13, 5 }
   0xf   : > { %v1289_v0 = vld [vmem:[%s1393_s17 + $0x38] sm:$0xff]  ;;  %v1288_v4 = vld [vmem:[%s1393_s17 + $0x30] sm:$0xff]  ;;  %v1287_v8 = vld [vmem:[%s1393_s17 + $0x28] sm:$0xff]  ;;  %v984_v51 = vor.u32 %v1271_v42, %v983_v41  ;;  %vm905_vm2 = vcmask 400384  }
  0x10   : > { %v1297_v1 = vld [vmem:[%s1393_s17 + $0x78] sm:$0xff]  ;;  %753 = vmatpush.bf16.msra.mxu0 %v1289_v0  ;;  %v1296_v5 = vld [vmem:[%s1393_s17 + $0x70] sm:$0xff]  ;;  %v1295_v9 = vld [vmem:[%s1393_s17 + $0x68] sm:$0xff] }
  0x11   : > { %v1305_v2 = vld [vmem:[%s1393_s17 + $0xb8] sm:$0xff]  ;;  %772 = vmatpush.bf16.msra.mxu1 %v1297_v1  ;;  %v1304_v6 = vld [vmem:[%s1393_s17 + $0xb0] sm:$0xff]  ;;  %v1303_v10 = vld [vmem:[%s1393_s17 + $0xa8] sm:$0xff] }
  0x12   : > { %v1313_v3 = vld [vmem:[%s1393_s17 + $0xf8] sm:$0xff]  ;;  %791 = vmatpush.bf16.msra.mxu2 %v1305_v2  ;;  %v1312_v7 = vld [vmem:[%s1393_s17 + $0xf0] sm:$0xff]  ;;  %v1311_v11 = vld [vmem:[%s1393_s17 + $0xe8] sm:$0xff] }
  0x13   : > { %810 = vmatpush.bf16.msra.mxu3 %v1313_v3  ;;  %v1286_v12 = vld [vmem:[%s1393_s17 + $0x20] sm:$0xff]  ;;  %v1285_v17 = vld [vmem:[%s1393_s17 + $0x18] sm:$0xff]  ;;  %v1284_v22 = vld [vmem:[%s1393_s17 + $0x10] sm:$0xff] }
  0x14   : > { %754 = vmatpush.bf16.msra.mxu0 %v1288_v4  ;;  %v1294_v13 = vld [vmem:[%s1393_s17 + $0x60] sm:$0xff]  ;;  %v1293_v18 = vld [vmem:[%s1393_s17 + $0x58] sm:$0xff]  ;;  %v1292_v23 = vld [vmem:[%s1393_s17 + $0x50] sm:$0xff] }
  0x15   : > { %773 = vmatpush.bf16.msra.mxu1 %v1296_v5  ;;  %v1302_v14 = vld [vmem:[%s1393_s17 + $0xa0] sm:$0xff]  ;;  %v1301_v19 = vld [vmem:[%s1393_s17 + $0x98] sm:$0xff]  ;;  %v1300_v24 = vld [vmem:[%s1393_s17 + $0x90] sm:$0xff]  ;;  %312 = vperm.xlu0 %1348, %v302_v27  }
  0x16   : > { %792 = vmatpush.bf16.msra.mxu2 %v1304_v6  ;;  %v1310_v15 = vld [vmem:[%s1393_s17 + $0xe0] sm:$0xff]  ;;  %v1309_v20 = vld [vmem:[%s1393_s17 + $0xd8] sm:$0xff]  ;;  %v1308_v25 = vld [vmem:[%s1393_s17 + $0xd0] sm:$0xff]  ;;  %322 = vperm.xlu1 %1349, %v304_v58  }
  0x17   : > { %811 = vmatpush.bf16.msra.mxu3 %v1312_v7  ;;  %v300_v26 = vld [vmem:[%s1393_s17 + $0x1c0] sm:$0x3]  ;;  %v1283_v28 = vld [vmem:[%s1393_s17 + $0x8] sm:$0xff]  ;;  %v1337_v46 = vld [vmem:[%s1393_s17 + $0x1b8] sm:$0xff] }
  0x18   : > { %755 = vmatpush.bf16.msra.mxu0 %v1287_v8  ;;  %v1291_v29 = vld [vmem:[%s1393_s17 + $0x48] sm:$0xff]  ;;  %v1282_v32 = vld [vmem:[%s1393_s17] sm:$0xff]  ;;  %v628_v36 = vunpack.c.l.b16 %v300_v26  ;;  %v1321_v47 = vld [vmem:[%s1393_s17 + $0x138] sm:$0xff] }
  0x19   : > { %774 = vmatpush.bf16.msra.mxu1 %v1295_v9  ;;  %v1299_v30 = vld [vmem:[%s1393_s17 + $0x88] sm:$0xff]  ;;  %v1290_v37 = vld [vmem:[%s1393_s17 + $0x40] sm:$0xff]  ;;  %v1329_v53 = vld [vmem:[%s1393_s17 + $0x178] sm:$0xff] }
  0x1a   : > { %793 = vmatpush.bf16.msra.mxu2 %v1303_v10  ;;  %v1307_v31 = vld [vmem:[%s1393_s17 + $0xc8] sm:$0xff]  ;;  %v1298_v38 = vld [vmem:[%s1393_s17 + $0x80] sm:$0xff]  ;;  %v685_v48 = vpack.c.b16 %v628_v36, %v628_v36  ;;  %v1336_v55 = vld [vmem:[%s1393_s17 + $0x1b0] sm:$0xff] }
  0x1b   : > { %812 = vmatpush.bf16.msra.mxu3 %v1311_v11  ;;  %v1306_v39 = vld [vmem:[%s1393_s17 + $0xc0] sm:$0xff]  ;;  %v985_v44 = vld [vmem:[%s1579_s0 + $0x28] sm:$0xf0]  ;;  %v1320_v56 = vld [vmem:[%s1393_s17 + $0x130] sm:$0xff] }
  0x1c   : > { %756 = vmatpush.bf16.msra.mxu0 %v1286_v12  ;;  %v988_v52 = vor.u32 %v1267_v43, %v985_v44  ;;  %v751_v54 = vsel %vm749_vm0, %v685_v48, 0  ;;  %v1328_v57 = vld [vmem:[%s1393_s17 + $0x170] sm:$0xff]  ;;  %v1335_v59 = vld [vmem:[%s1393_s17 + $0x1a8] sm:$0xff]  ;;  %v1334_v62 = vld [vmem:[%s1393_s17 + $0x1a0] sm:$0xff] }
  0x1d   : > { %775 = vmatpush.bf16.msra.mxu1 %v1294_v13  ;;  %v1319_v60 = vld [vmem:[%s1393_s17 + $0x128] sm:$0xff]  ;;  %v1318_v63 = vld [vmem:[%s1393_s17 + $0x120] sm:$0xff]  ;;  %v1333_v9 = vld [vmem:[%s1393_s17 + $0x198] sm:$0xff] }
  0x1e   : > { %794 = vmatpush.bf16.msra.mxu2 %v1302_v14  ;;  %v1327_v61 = vld [vmem:[%s1393_s17 + $0x168] sm:$0xff]  ;;  %v1326_v0 = vld [vmem:[%s1393_s17 + $0x160] sm:$0xff]  ;;  %v1317_v10 = vld [vmem:[%s1393_s17 + $0x118] sm:$0xff] }
  0x1f   : > { %813 = vmatpush.bf16.msra.mxu3 %v1310_v15  ;;  %v1007_v1 = vld [vmem:[%s1579_s0 + $0x40] sm:$0xf]  ;;  %v1274_v3 = vld [vmem:[%s1579_s0 + $0x44] sm:$0xf]  ;;  %v1015_v5 = vld [vmem:[%s1579_s0 + $0x48] sm:$0xf] }
  0x20   : > { %757 = vmatpush.bf16.msra.mxu0 %v1285_v17  ;;  %v1278_v2 = vld [vmem:[%s1579_s0 + $0x5c] sm:$0xf0]  ;;  %v1009_v4 = vld [vmem:[%s1579_s0 + $0x60] sm:$0xf0]  ;;  %v1279_v6 = vld [vmem:[%s1579_s0 + $0x64] sm:$0xf0] }
  0x21   : > { %776 = vmatpush.bf16.msra.mxu1 %v1293_v18  ;;  %v1275_v7 = vld [vmem:[%s1579_s0 + $0x4c] sm:$0xf]  ;;  %v1008_v11 = vor.u32 %v1278_v2, %v1007_v1  ;;  %v1012_v12 = vor.u32 %v1274_v3, %v1009_v4  ;;  %v1016_v13 = vor.u32 %v1279_v6, %v1015_v5  ;;  %v1325_v15 = vld [vmem:[%s1393_s17 + $0x158] sm:$0xff]  ;;  %v1332_v16 = vld [vmem:[%s1393_s17 + $0x190] sm:$0xff] }
  0x22   : > { %795 = vmatpush.bf16.msra.mxu2 %v1301_v19  ;;  %v1017_v8 = vld [vmem:[%s1579_s0 + $0x68] sm:$0xf0]  ;;  %v1316_v17 = vld [vmem:[%s1393_s17 + $0x110] sm:$0xff]  ;;  %v1031_v41 = vld [vmem:[%s1579_s0 + $0x58] sm:$0xf] }
  0x23   : > { %814 = vmatpush.bf16.msra.mxu3 %v1309_v20  ;;  %v1020_v14 = vor.u32 %v1275_v7, %v1017_v8  ;;  %v1324_v18 = vld [vmem:[%s1393_s17 + $0x150] sm:$0xff]  ;;  %v1331_v19 = vld [vmem:[%s1393_s17 + $0x188] sm:$0xff]  ;;  %v1281_v42 = vld [vmem:[%s1579_s0 + $0x74] sm:$0xf0] }
  0x24   : > { %758 = vmatpush.bf16.msra.mxu0 %v1284_v22  ;;  %v1315_v20 = vld [vmem:[%s1393_s17 + $0x108] sm:$0xff]  ;;  %v1330_v22 = vld [vmem:[%s1393_s17 + $0x180] sm:$0xff]  ;;  %v1272_v26 = vld [vmem:[%s1579_s0 + $0x2c] sm:$0xf0] }
  0x25   : > { %777 = vmatpush.bf16.msra.mxu1 %v1292_v23  ;;  %v1323_v21 = vld [vmem:[%s1393_s17 + $0x148] sm:$0xff]  ;;  %v1314_v23 = vld [vmem:[%s1393_s17 + $0x100] sm:$0xff]  ;;  %v1268_v27 = vld [vmem:[%s1579_s0 + $0x14] sm:$0xf] }
  0x26   : > { %796 = vmatpush.bf16.msra.mxu2 %v1300_v24  ;;  %v1322_v24 = vld [vmem:[%s1393_s17 + $0x140] sm:$0xff]  ;;  %v1025_v40 = vld [vmem:[%s1579_s0 + $0x70] sm:$0xf0]  ;;  %v1277_v43 = vld [vmem:[%s1579_s0 + $0x5c] sm:$0xf]  ;;  %s1566_s17 = scalar_lea.vmem %s1582_s3, %s1265_s16 }
  0x27   : > { %815 = vmatpush.bf16.msra.mxu3 %v1308_v25  ;;  %v991_v25 = vld [vmem:[%s1579_s0 + $0x10] sm:$0xf]  ;;  %v1033_v44 = vld [vmem:[%s1579_s0 + $0x78] sm:$0xf0] }
  0x28   : > { %759 = vmatpush.bf16.msra.mxu0 %v1283_v28  ;;  %v993_v28 = vld [vmem:[%s1579_s0 + $0x30] sm:$0xf0]  ;;  %v992_v33 = vor.u32 %v1272_v26, %v991_v25  ;;  %v1036_v48 = vor.u32 %v1277_v43, %v1033_v44 }
  0x29   : > { %778 = vmatpush.bf16.msra.mxu1 %v1291_v29  ;;  %v999_v29 = vld [vmem:[%s1579_s0 + $0x18] sm:$0xf]  ;;  %v996_v34 = vor.u32 %v1268_v27, %v993_v28 }
  0x2a   : > { %797 = vmatpush.bf16.msra.mxu2 %v1299_v30  ;;  %v1273_v30 = vld [vmem:[%s1579_s0 + $0x34] sm:$0xf0] }
  0x2b   : > { %816 = vmatpush.bf16.msra.mxu3 %v1307_v31  ;;  %v1269_v31 = vld [vmem:[%s1579_s0 + $0x1c] sm:$0xf]  ;;  %v1000_v35 = vor.u32 %v1273_v30, %v999_v29 }
  0x2c   : > { %760 = vmatpush.bf16.msra.mxu0 %v1282_v32  ;;  %v1001_v32 = vld [vmem:[%s1579_s0 + $0x38] sm:$0xf0] }
  0x2d   : > { %779 = vmatpush.bf16.msra.mxu1 %v1290_v37  ;;  %v1004_v36 = vor.u32 %v1269_v31, %v1001_v32  ;;  %v1023_v37 = vld [vmem:[%s1579_s0 + $0x50] sm:$0xf] }
  0x2e   : > { %798 = vmatpush.bf16.msra.mxu2 %v1298_v38  ;;  %v1280_v38 = vld [vmem:[%s1579_s0 + $0x6c] sm:$0xf0] }
  0x2f   : > { %817 = vmatpush.bf16.msra.mxu3 %v1306_v39  ;;  %761 = vmatmul.bf16.vlgmr.msra.gmra.mxu0 %v976_v49  ;;  %v1276_v39 = vld [vmem:[%s1579_s0 + $0x54] sm:$0xf]  ;;  %v1024_v45 = vor.u32 %v1280_v38, %v1023_v37 }
  0x30   : > { %829 = vmatpush.bf16.msrb.mxu0 %v1321_v47  ;;  %780 = vmatmul.bf16.vlgmr.msra.gmra.mxu1 %v980_v50  ;;  %v1032_v47 = vor.u32 %v1281_v42, %v1031_v41 }
  0x31   : > { %799 = vmatmul.bf16.vlgmr.msra.gmra.mxu2 %v984_v51  ;;  %848 = vmatpush.bf16.msrb.mxu1 %v1329_v53 }
  0x32   : > { %867 = vmatpush.bf16.msrb.mxu2 %v1337_v46  ;;  %818 = vmatmul.bf16.vlgmr.msra.gmra.mxu3 %v988_v52  ;;  %v1028_v46 = vor.u32 %v1276_v39, %v1025_v40 }
  0x33   : > { %893 = vmatpush.bf16.msrb.mxu3 %v751_v54 }
  0x34   : > { %830 = vmatpush.bf16.msrb.mxu0 %v1320_v56 }
  0x35   : > { %849 = vmatpush.bf16.msrb.mxu1 %v1328_v57 }
  0x36   : > { %868 = vmatpush.bf16.msrb.mxu2 %v1336_v55 }
  0x38   : > { %831 = vmatpush.bf16.msrb.mxu0 %v1319_v60 }
  0x39   : > { %850 = vmatpush.bf16.msrb.mxu1 %v1327_v61 }
  0x3a   : > { %869 = vmatpush.bf16.msrb.mxu2 %v1335_v59 }
  0x3c   : > { %832 = vmatpush.bf16.msrb.mxu0 %v1318_v63 }
  0x3d   : > { %851 = vmatpush.bf16.msrb.mxu1 %v1326_v0 }
  0x3e   : > { %870 = vmatpush.bf16.msrb.mxu2 %v1334_v62 }
  0x3f   : > { %766 = vmatmul.bf16.gmra.mxu0 %v1008_v11 }
  0x40   : > { %833 = vmatpush.bf16.msrb.mxu0 %v1317_v10  ;;  %785 = vmatmul.bf16.gmra.mxu1 %v1012_v12 }
  0x41   : > { %804 = vmatmul.bf16.gmra.mxu2 %v1016_v13  ;;  %852 = vmatpush.bf16.msrb.mxu1 %v1325_v15 }
  0x42   : > { %871 = vmatpush.bf16.msrb.mxu2 %v1333_v9  ;;  %823 = vmatmul.bf16.gmra.mxu3 %v1020_v14 }
  0x44   : > { %834 = vmatpush.bf16.msrb.mxu0 %v1316_v17 }
  0x45   : > { %853 = vmatpush.bf16.msrb.mxu1 %v1324_v18 }
  0x46   : > { %872 = vmatpush.bf16.msrb.mxu2 %v1332_v16 }
  0x48   : > { %835 = vmatpush.bf16.msrb.mxu0 %v1315_v20 }
  0x49   : > { %854 = vmatpush.bf16.msrb.mxu1 %v1323_v21 }
  0x4a   : > { %873 = vmatpush.bf16.msrb.mxu2 %v1331_v19 }
  0x4c   : > { %836 = vmatpush.bf16.msrb.mxu0 %v1314_v23 }
  0x4d   : > { %855 = vmatpush.bf16.msrb.mxu1 %v1322_v24 }
  0x4e   : > { %874 = vmatpush.bf16.msrb.mxu2 %v1330_v22 }
  0x4f   : > { %837 = vmatmul.bf16.vlgmr.msrb.gmra.mxu0 %v992_v33 }
  0x50   : > { %856 = vmatmul.bf16.vlgmr.msrb.gmra.mxu1 %v996_v34 }
  0x51   : > { %875 = vmatmul.bf16.vlgmr.msrb.gmra.mxu2 %v1000_v35 }
  0x52   : > { %1261 = vmatmul.msk.bf16.vlgmr.msrb.gmra.mxu3 %vm742_vm1, %v1004_v36 }
  0x5f   : > { %842 = vmatmul.bf16.gmra.mxu0 %v1024_v45 }
  0x60   : > { %861 = vmatmul.bf16.gmra.mxu1 %v1028_v46 }
  0x61   : > { %880 = vmatmul.bf16.gmra.mxu2 %v1032_v47 }
  0x62   : > { %1262 = vmatmul.msk.bf16.gmra.mxu3 %vm742_vm1, %v1036_v48 }
  0x7f   : > { %v308_v59 = vpop.permute.xlu0 %307  ;;  %v318_v9 = vpop.permute.xlu1 %317 }
  0x87   : > { %v313_v2 = vpop.permute.xlu0 %312 }
  0x88   : > { %v323_v25 = vpop.permute.xlu1 %322 }
  0xac   : > { %v762_v49 = vpop.f32.mrf.mxu0 }
  0xad   : > { %v781_v50 = vpop.f32.mrf.mxu1  ;;  %v763_v60 = vadd.f32 %v762_v49, %v308_v59 }
  0xaf   : > { %v782_v63 = vadd.f32 %v781_v50, %v763_v60 }
  0xb4   : > { %v800_v51 = vpop.f32.mrf.mxu2  ;;  %v764_v53 = vpop.f32.mrf.mxu0 }
  0xb5   : > { %v819_v52 = vpop.f32.mrf.mxu3  ;;  %v783_v54 = vpop.f32.mrf.mxu1  ;;  %v801_v3 = vadd.f32 %v800_v51, %v782_v63  ;;  %v765_v4 = vadd.f32 %v764_v53, %v313_v2 }
  0xb7   : > { %v820_v7 = vadd.f32 %v819_v52, %v801_v3  ;;  %v784_v11 = vadd.f32 %v783_v54, %v765_v4 }
  0xbc   : > { %v802_v55 = vpop.f32.mrf.mxu2  ;;  %v767_v57 = vpop.f32.mrf.mxu0 }
  0xbd   : > { %v821_v56 = vpop.f32.mrf.mxu3  ;;  %v786_v58 = vpop.f32.mrf.mxu1  ;;  %v803_v13 = vadd.f32 %v802_v55, %v784_v11  ;;  %v768_v14 = vadd.f32 %v767_v57, %v318_v9 }
  0xbf   : > { %v822_v17 = vadd.f32 %v821_v56, %v803_v13  ;;  %v787_v18 = vadd.f32 %v786_v58, %v768_v14 }
  0xc4   : > { %v805_v61 = vpop.f32.mrf.mxu2  ;;  %v769_v0 = vpop.f32.mrf.mxu0 }
  0xc5   : > { %v824_v62 = vpop.f32.mrf.mxu3  ;;  %v788_v1 = vpop.f32.mrf.mxu1  ;;  %v806_v26 = vadd.f32 %v805_v61, %v787_v18  ;;  %v770_v27 = vadd.f32 %v769_v0, %v323_v25 }
  0xc7   : > { %v825_v30 = vadd.f32 %v824_v62, %v806_v26  ;;  %v789_v34 = vadd.f32 %v788_v1, %v770_v27 }
  0xcc   : > { %v807_v5 = vpop.f32.mrf.mxu2  ;;  %v838_v8 = vpop.f32.mrf.mxu0 }
  0xcd   : > { %v826_v6 = vpop.f32.mrf.mxu3  ;;  %v857_v10 = vpop.f32.mrf.mxu1  ;;  %v839_v12 = vadd.f32 %v838_v8, %v820_v7  ;;  %v808_v38 = vadd.f32 %v807_v5, %v789_v34 }
  0xcf   : > { %v858_v15 = vadd.f32 %v857_v10, %v839_v12  ;;  %v827_v41 = vadd.f32 %v826_v6, %v808_v38 }
  0xd4   : > { %v876_v16 = vpop.f32.mrf.mxu2  ;;  %v840_v21 = vpop.f32.mrf.mxu0 }
  0xd5   : > { %v877_v19 = vadd.f32 %v876_v16, %v858_v15  ;;  %v895_v20 = vpop.f32.mrf.mxu3  ;;  %v859_v22 = vpop.f32.mrf.mxu1  ;;  %v841_v24 = vadd.f32 %v840_v21, %v822_v17 }
  0xd7   : > { %v896_v23 = vadd.f32 %v895_v20, %v877_v19  ;;  %v860_v28 = vadd.f32 %v859_v22, %v841_v24 }
  0xd9   : > { %906 = vst.msk [vmem:[%s1566_s17] sm:$0xff] %vm905_vm2, %v896_v23 }
  0xdc   : > { %v878_v29 = vpop.f32.mrf.mxu2  ;;  %v843_v33 = vpop.f32.mrf.mxu0 }
  0xdd   : > { %v879_v31 = vadd.f32 %v878_v29, %v860_v28  ;;  %v897_v32 = vpop.f32.mrf.mxu3  ;;  %v844_v36 = vadd.f32 %v843_v33, %v825_v30  ;;  %v862_v37 = vpop.f32.mrf.mxu1 }
  0xdf   : > { %v898_v35 = vadd.f32 %v897_v32, %v879_v31  ;;  %v863_v39 = vadd.f32 %v862_v37, %v844_v36 }
  0xe1   : > { %907 = vst.msk [vmem:[%s1566_s17 + $0x8] sm:$0xff] %vm905_vm2, %v898_v35 }
  0xe4   : > { %v881_v40 = vpop.f32.mrf.mxu2  ;;  %v845_v44 = vpop.f32.mrf.mxu0 }
  0xe5   : > { %v882_v42 = vadd.f32 %v881_v40, %v863_v39  ;;  %v900_v43 = vpop.f32.mrf.mxu3  ;;  %v846_v46 = vadd.f32 %v845_v44, %v827_v41  ;;  %v864_v47 = vpop.f32.mrf.mxu1 }
  0xe7   : > { %v901_v45 = vadd.f32 %v900_v43, %v882_v42  ;;  %v865_v48 = vadd.f32 %v864_v47, %v846_v46 }
  0xe9   : > { %908 = vst.msk [vmem:[%s1566_s17 + $0x10] sm:$0xff] %vm905_vm2, %v901_v45 }
  0xec   : > { %v883_v49 = vpop.f32.mrf.mxu2 }
  0xed   : > { %v884_v50 = vadd.f32 %v883_v49, %v865_v48  ;;  %v902_v51 = vpop.f32.mrf.mxu3 }
  0xef   : > { %v903_v52 = vadd.f32 %v902_v51, %v884_v50 }
  0xf1   : > { %909 = vst.msk [vmem:[%s1566_s17 + $0x18] sm:$0xff] %vm905_vm2, %v903_v52 }
  0xf2 PF: > { %s13_s12 = sadd.s32 1, %s1356_s12  }
  0xf3   : > { %p10_p4 = scmp.ge.s32.totalorder %s13_s12, 4  }
  0xf5   :  { %12 = sbr.rel (!%p10_p4) target bundleno = 1 (0x1), region = 62 }

// kernel: co3net_forward.15
= control target key start
LH: loop header
LB: loop body
LE: loop exit
PB: predicated region body
PF: predicated region fallthrough
CT: control target
= control target key end

     0   :  { %s373_s12 = smov 0   ;;  %s399_s0 = inlined_call_operand.vmem [shape: bf16[16,49], index: 0, kind: input, shape index: {}]   ;;  %s400_s1 = inlined_call_operand.vmem [shape: bf16[2,49,121], index: 1, kind: input, shape index: {}]   ;;  %s401_s2 = inlined_call_operand.vmem [shape: f32[16,1], index: 2, kind: input, shape index: {}]   ;;  %s402_s3 = inlined_call_operand.vmem [shape: f32[2,16,121], index: 3, kind: output, shape index: {}]  }
   0x1 LB: > { %s301_s13 = sadd.s32 4294967295, %s350_s12   ;;  %p305_p0 = scmp.ge.s32.totalorder %s350_s12, 1  ;;  %s350_s12 = sphi %s373_s12, %s13_s12  }
   0x2   : > { %p137_p1 = scmp.lt.s32.totalorder %s350_s12, 3 }
   0x4   : > { %p138_p2 = pnand %p305_p0, %p137_p1 }
   0x5   : > { %p161_p3 = scmp.lt.s32.totalorder (!%p138_p2), %s301_s13, 1 }
   0x6   : > { %141 = sbr.rel (%p138_p2) target bundleno = 174 (0xae), region = 32 }
   0xb   : > { %v181_v0 = vld [vmem:[%s401_s2] sm:$0xff]  ;;  %v352_v1 = vmov 0   ;;  %s404_s13 = smov (!%p161_p3, %s301_s13), 1  ;;  %vm223_vm0 = vcmask 1040384   ;;  %v182_v3 = vld [vmem:[%s401_s2 + $0x8] sm:$0xff]  ;;  %vm219_vm1 = vcmask 400384  }
   0xc   : > { %343 = vset.pattern.permute.xlu0 %v352_v1  ;;  %s333_s16 = smul.u32 28, %s404_s13  ;;  %v225_v5 = vsel %vm223_vm0, 65535, %v352_v1  ;;  %v329_v11 = vld [vmem:[%s399_s0] sm:$0xff]  ;;  %s328_s24 = sshll.u32 %s404_s13, 4  ;;  %vm243_vm2 = vcmask 990208  }
   0xd   : > { %185 = vperm.xlu0 %343, %v181_v0   ;;  %s170_s27 = scalar_lea.vmem %s402_s3, %s328_s24 }
   0xe   : > { %s165_s19 = scalar_lea.vmem %s400_s1, %s333_s16 }
   0xf   : > { %v180_v2 = vld [vmem:[%s165_s19 + $0x18] sm:$0x1]  ;;  %v332_v8 = vld [vmem:[%s165_s19 + $0x10] sm:$0xff]  ;;  %v331_v9 = vld [vmem:[%s165_s19 + $0x8] sm:$0xff] }
  0x10   : > { %v211_v4 = vunpack.c.l.b16 %v180_v2  ;;  %v330_v10 = vld [vmem:[%s165_s19] sm:$0xff] }
  0x12   : > { %v215_v6 = vpack.c.b16 %v211_v4, %v211_v4 }
  0x14   : > { %v227_v7 = vand.u32 %v225_v5, %v215_v6 }
  0x15   : > { %190 = vperm.xlu0 %343, %v182_v3  }
  0x16   : > { %233 = vmatpush.bf16.msra.mxu0 %v227_v7 }
  0x1a   : > { %234 = vmatpush.bf16.msra.mxu0 %v332_v8 }
  0x1e   : > { %235 = vmatpush.bf16.msra.mxu0 %v331_v9 }
  0x22   : > { %236 = vmatpush.bf16.msra.mxu0 %v330_v10 }
  0x25   : > { %325 = vmatmul.msk.bf16.vlgmr.msra.gmra.mxu0 %vm219_vm1, %v329_v11 }
  0x7f   : > { %v186_v12 = vpop.permute.xlu0 %185 }
  0x87   : > { %v191_v15 = vpop.permute.xlu0 %190 }
  0xa2   : > { %v238_v13 = vpop.f32.mrf.mxu0 }
  0xa3   : > { %v239_v14 = vadd.f32 %v238_v13, %v186_v12 }
  0xa5   : > { %244 = vst.msk [vmem:[%s170_s27] sm:$0xff] %vm243_vm2, %v239_v14 }
  0xaa   : > { %v240_v16 = vpop.f32.mrf.mxu0 }
  0xab   : > { %v241_v17 = vadd.f32 %v240_v16, %v191_v15 }
  0xad   : > { %245 = vst.msk [vmem:[%s170_s27 + $0x8] sm:$0xff] %vm243_vm2, %v241_v17 }
  0xae PF: > { %s13_s12 = sadd.s32 1, %s350_s12  }
  0xaf   : > { %p10_p4 = scmp.ge.s32.totalorder %s13_s12, 4  }
  0xb1   :  { %12 = sbr.rel (!%p10_p4) target bundleno = 1 (0x1), region = 62 }

// kernel: co3net_forward.16
= control target key start
LH: loop header
LB: loop body
LE: loop exit
PB: predicated region body
PF: predicated region fallthrough
CT: control target
= control target key end

     0   :  { %s769_s12 = smov 0   ;;  %s851_s0 = inlined_call_operand.vmem [shape: bf16[16,441], index: 0, kind: input, shape index: {}]   ;;  %s852_s1 = inlined_call_operand.vmem [shape: bf16[2,441,121], index: 1, kind: input, shape index: {}]   ;;  %s853_s2 = inlined_call_operand.vmem [shape: f32[16,1], index: 2, kind: input, shape index: {}]   ;;  %s854_s3 = inlined_call_operand.vmem [shape: f32[2,16,121], index: 3, kind: output, shape index: {}]  }
   0x1 LB: > { %s555_s13 = sadd.s32 4294967295, %s745_s12   ;;  %p559_p0 = scmp.ge.s32.totalorder %s745_s12, 1  ;;  %s745_s12 = sphi %s769_s12, %s13_s12  }
   0x2   : > { %p137_p1 = scmp.lt.s32.totalorder %s745_s12, 3 }
   0x4   : > { %p138_p2 = pnand %p559_p0, %p137_p1 }
   0x5   : > { %p161_p3 = scmp.lt.s32.totalorder (!%p138_p2), %s555_s13, 1 }
   0x6   : > { %141 = sbr.rel (%p138_p2) target bundleno = 194 (0xc2), region = 32 }
   0xb   : > { %s856_s13 = smov (!%p161_p3, %s555_s13), 1  ;;  %vm434_vm0 = vcmask 1043456   ;;  %vm435_vm1 = vcmask 1044480   ;;  %v747_v3 = vmov 65535   ;;  %v748_v11 = vmov 0   ;;  %v232_v20 = vld [vmem:[%s853_s2] sm:$0xff] }
   0xc   : > { %s727_s14 = smul.u32 224, %s856_s13  ;;  %v436_v4 = vsel %vm434_vm0, 4294967295, %v747_v3  ;;  %738 = vset.pattern.permute.xlu0 %v748_v11  ;;  %v696_v26 = vld [vmem:[%s851_s0 + $0xc] sm:$0xf]  ;;  %v575_v28 = vld [vmem:[%s851_s0 + $0x18] sm:$0xf0] }
   0xd   : > { %v437_v10 = vsel %vm435_vm1, %v436_v4, 0  ;;  %236 = vperm.xlu0 %738, %v232_v20   ;;  %v233_v29 = vld [vmem:[%s853_s2 + $0x8] sm:$0xff]  ;;  %v578_v33 = vor.u32 %v696_v26, %v575_v28  ;;  %vm430_vm2 = vcmask 465920   ;;  %v565_v37 = vld [vmem:[%s851_s0] sm:$0xf]  ;;  %s694_s11 = sshll.u32 %s856_s13, 4 }
   0xe   : > { %s783_s17 = scalar_lea.vmem %s852_s1, %s727_s14  ;;  %v697_v38 = vld [vmem:[%s851_s0 + $0xc] sm:$0xf0]  ;;  %v695_v39 = vld [vmem:[%s851_s0 + $0x4] sm:$0xf]  ;;  %v567_v42 = vld [vmem:[%s851_s0 + $0x10] sm:$0xf0]  ;;  %s170_s16 = scalar_lea.vmem %s854_s3, %s694_s11 }
   0xf   : > { %v706_v0 = vld [vmem:[%s783_s17 + $0x38] sm:$0xff]  ;;  %v705_v5 = vld [vmem:[%s783_s17 + $0x30] sm:$0xff]  ;;  %v704_v13 = vld [vmem:[%s783_s17 + $0x28] sm:$0xff]  ;;  %v566_v46 = vor.u32 %v697_v38, %v565_v37  ;;  %v570_v47 = vor.u32 %v695_v39, %v567_v42  ;;  %vm497_vm3 = vcmask 990208  }
  0x10   : > { %v714_v1 = vld [vmem:[%s783_s17 + $0x78] sm:$0xff]  ;;  %441 = vmatpush.bf16.msra.mxu0 %v706_v0  ;;  %v713_v6 = vld [vmem:[%s783_s17 + $0x70] sm:$0xff]  ;;  %v712_v14 = vld [vmem:[%s783_s17 + $0x68] sm:$0xff] }
  0x11   : > { %v722_v2 = vld [vmem:[%s783_s17 + $0xb8] sm:$0xff]  ;;  %455 = vmatpush.bf16.msra.mxu1 %v714_v1  ;;  %v721_v7 = vld [vmem:[%s783_s17 + $0xb0] sm:$0xff]  ;;  %v720_v16 = vld [vmem:[%s783_s17 + $0xa8] sm:$0xff] }
  0x12   : > { %469 = vmatpush.bf16.msra.mxu2 %v722_v2  ;;  %v689_v8 = vld [vmem:[%s783_s17 + $0xd8] sm:$0xf]  ;;  %v726_v9 = vld [vmem:[%s783_s17 + $0xd8] sm:$0x10]  ;;  %v725_v17 = vld [vmem:[%s783_s17 + $0xd0] sm:$0xff] }
  0x13   : > { %v690_v12 = vor.u32 %v726_v9, %v689_v8  ;;  %v703_v18 = vld [vmem:[%s783_s17 + $0x20] sm:$0xff]  ;;  %v724_v22 = vld [vmem:[%s783_s17 + $0xc8] sm:$0xff]  ;;  %v702_v23 = vld [vmem:[%s783_s17 + $0x18] sm:$0xff] }
  0x14   : > { %442 = vmatpush.bf16.msra.mxu0 %v705_v5  ;;  %v711_v19 = vld [vmem:[%s783_s17 + $0x60] sm:$0xff]  ;;  %v710_v24 = vld [vmem:[%s783_s17 + $0x58] sm:$0xff]  ;;  %v701_v30 = vld [vmem:[%s783_s17 + $0x10] sm:$0xff] }
  0x15   : > { %456 = vmatpush.bf16.msra.mxu1 %v713_v6  ;;  %v439_v15 = vand.u32 %v690_v12, %v437_v10  ;;  %v719_v21 = vld [vmem:[%s783_s17 + $0xa0] sm:$0xff]  ;;  %v718_v25 = vld [vmem:[%s783_s17 + $0x98] sm:$0xff]  ;;  %v709_v31 = vld [vmem:[%s783_s17 + $0x50] sm:$0xff]  ;;  %241 = vperm.xlu0 %738, %v233_v29  }
  0x16   : > { %470 = vmatpush.bf16.msra.mxu2 %v721_v7  ;;  %v723_v27 = vld [vmem:[%s783_s17 + $0xc0] sm:$0xff]  ;;  %v717_v32 = vld [vmem:[%s783_s17 + $0x90] sm:$0xff]  ;;  %v700_v34 = vld [vmem:[%s783_s17 + $0x8] sm:$0xff] }
  0x17   : > { %487 = vmatpush.bf16.msra.mxu3 %v439_v15  ;;  %v708_v35 = vld [vmem:[%s783_s17 + $0x48] sm:$0xff]  ;;  %v699_v40 = vld [vmem:[%s783_s17] sm:$0xff]  ;;  %v698_v45 = vld [vmem:[%s851_s0 + $0x14] sm:$0xf0] }
  0x18   : > { %443 = vmatpush.bf16.msra.mxu0 %v704_v13  ;;  %v716_v36 = vld [vmem:[%s783_s17 + $0x88] sm:$0xff]  ;;  %v707_v41 = vld [vmem:[%s783_s17 + $0x40] sm:$0xff] }
  0x19   : > { %457 = vmatpush.bf16.msra.mxu1 %v712_v14  ;;  %v715_v43 = vld [vmem:[%s783_s17 + $0x80] sm:$0xff]  ;;  %v573_v44 = vld [vmem:[%s851_s0 + $0x8] sm:$0xf] }
  0x1a   : > { %471 = vmatpush.bf16.msra.mxu2 %v720_v16  ;;  %v574_v48 = vor.u32 %v698_v45, %v573_v44 }
  0x1b   : > { %488 = vmatpush.bf16.msra.mxu3 %v725_v17 }
  0x1c   : > { %444 = vmatpush.bf16.msra.mxu0 %v703_v18 }
  0x1d   : > { %458 = vmatpush.bf16.msra.mxu1 %v711_v19 }
  0x1e   : > { %472 = vmatpush.bf16.msra.mxu2 %v719_v21 }
  0x1f   : > { %489 = vmatpush.bf16.msra.mxu3 %v724_v22 }
  0x20   : > { %445 = vmatpush.bf16.msra.mxu0 %v702_v23 }
  0x21   : > { %459 = vmatpush.bf16.msra.mxu1 %v710_v24 }
  0x22   : > { %473 = vmatpush.bf16.msra.mxu2 %v718_v25 }
  0x23   : > { %490 = vmatpush.bf16.msra.mxu3 %v723_v27 }
  0x24   : > { %446 = vmatpush.bf16.msra.mxu0 %v701_v30 }
  0x25   : > { %460 = vmatpush.bf16.msra.mxu1 %v709_v31 }
  0x26   : > { %474 = vmatpush.bf16.msra.mxu2 %v717_v32  ;;  %691 = vmatmul.msk.bf16.vlgmr.msra.gmra.mxu3 %vm430_vm2, %v578_v33 }
  0x28   : > { %447 = vmatpush.bf16.msra.mxu0 %v700_v34 }
  0x29   : > { %461 = vmatpush.bf16.msra.mxu1 %v708_v35 }
  0x2a   : > { %475 = vmatpush.bf16.msra.mxu2 %v716_v36 }
  0x2c   : > { %448 = vmatpush.bf16.msra.mxu0 %v699_v40 }
  0x2d   : > { %462 = vmatpush.bf16.msra.mxu1 %v707_v41 }
  0x2e   : > { %476 = vmatpush.bf16.msra.mxu2 %v715_v43 }
  0x2f   : > { %449 = vmatmul.bf16.vlgmr.msra.gmra.mxu0 %v566_v46 }
  0x30   : > { %463 = vmatmul.bf16.vlgmr.msra.gmra.mxu1 %v570_v47 }
  0x31   : > { %477 = vmatmul.bf16.vlgmr.msra.gmra.mxu2 %v574_v48 }
  0x7f   : > { %v237_v49 = vpop.permute.xlu0 %236 }
  0x87   : > { %v242_v58 = vpop.permute.xlu0 %241 }
  0xa9   : > { %v492_v54 = vpop.f32.mrf.mxu3 }
  0xac   : > { %v450_v50 = vpop.f32.mrf.mxu0 }
  0xad   : > { %v451_v51 = vadd.f32 %v450_v50, %v237_v49  ;;  %v464_v52 = vpop.f32.mrf.mxu1 }
  0xaf   : > { %v465_v53 = vadd.f32 %v464_v52, %v451_v51 }
  0xb1   : > { %v494_v1 = vpop.f32.mrf.mxu3 }
  0xb4   : > { %v478_v55 = vpop.f32.mrf.mxu2  ;;  %v452_v57 = vpop.f32.mrf.mxu0 }
  0xb5   : > { %v479_v56 = vadd.f32 %v478_v55, %v465_v53  ;;  %v453_v60 = vadd.f32 %v452_v57, %v242_v58  ;;  %v466_v61 = vpop.f32.mrf.mxu1 }
  0xb7   : > { %v493_v59 = vadd.f32 %v492_v54, %v479_v56  ;;  %v467_v62 = vadd.f32 %v466_v61, %v453_v60 }
  0xb9   : > { %498 = vst.msk [vmem:[%s170_s16] sm:$0xff] %vm497_vm3, %v493_v59 }
  0xbc   : > { %v480_v63 = vpop.f32.mrf.mxu2 }
  0xbd   : > { %v481_v0 = vadd.f32 %v480_v63, %v467_v62 }
  0xbf   : > { %v495_v2 = vadd.f32 %v494_v1, %v481_v0 }
  0xc1   : > { %499 = vst.msk [vmem:[%s170_s16 + $0x8] sm:$0xff] %vm497_vm3, %v495_v2 }
  0xc2 PF: > { %s13_s12 = sadd.s32 1, %s745_s12  }
  0xc3   : > { %p10_p4 = scmp.ge.s32.totalorder %s13_s12, 4  }
  0xc5   :  { %12 = sbr.rel (!%p10_p4) target bundleno = 1 (0x1), region = 62 }

</bundles_post_ra>
